<compile_context>
chip_gen: v7x
topology: tpu7x:2x2x1
jax: 0.10.0
libtpu: 0.0.40
codegen_flags: <defaults>
</compile_context>

<pallas_src>
import functools

import jax
import jax.numpy as jnp
from jax import lax
from jax.experimental import pallas as pl
from jax.experimental.pallas import tpu as pltpu

DIM = 8          # per-head dim ("dim" in LiteMLA)
EPS = 1e-15      # linear-attention eps
BN_EPS = 1e-5    # BatchNorm2d eps


# ------------------------------ fused kernel ------------------------------

def _lite_mla_kernel(x_ref, hw_ref, w_qkv_ref, w_dw_ref, w_grp_ref, w_proj_ref,
                     bn_scale_ref, bn_shift_ref, o_ref,
                     *, H, W, C, dim, heads_per_src, eps, mm_dtype):
    """Full LiteMLA forward for one batch element, channel-major, all in VMEM.

    x_ref:      (Cin, N)       input pixels, N = H*W on the lane axis
    hw_ref:     (2, N) int32   row 0 = pixel row index h, row 1 = column index w
    w_qkv_ref:  (C, Cin)       qkv 1x1 conv weight (torch layout), C = 3*total_dim
    w_dw_ref:   (C, 25)        depthwise 5x5 conv weight, tap t = di*5 + dj
    w_grp_ref:  (C, C)         grouped 1x1 conv as block-diagonal dense (out, in)
    w_proj_ref: (Cout, 2*total_dim)  proj 1x1 conv weight (torch layout)
    bn_*_ref:   (Cout, 1)      folded inference-mode BatchNorm affine
    o_ref:      (Cout, N)      output, channel-major (-> NCHW for free)
    """
    N = H * W

    # ---- qkv 1x1 conv on the MXU: (C, Cin) @ (Cin, N) -> (C, N) --------------
    x = x_ref[...].astype(mm_dtype)
    qkv = lax.dot_general(w_qkv_ref[...].astype(mm_dtype), x,
                          (((1,), (0,)), ((), ())),
                          preferred_element_type=jnp.float32)          # (C, N) f32

    # ---- depthwise 5x5 'same' conv: lane-axis rolls + static border masks ----
    # Source pixel of tap (di,dj) at flat position n is n + (di-2)*W + (dj-2);
    # pltpu.roll (XLU) brings it in place, masks kill row/column wrap-around.
    h_idx = hw_ref[0:1, :]                                             # (1, N)
    w_idx = hw_ref[1:2, :]                                             # (1, N)
    w_dw = w_dw_ref[...]                                               # (C, 25) f32
    acc = jnp.zeros((C, N), jnp.float32)
    for di in range(5):
        for dj in range(5):
            off = (di - 2) * W + (dj - 2)
            tap = qkv if off == 0 else pltpu.roll(qkv, (-off) % N, axis=1)
            term = tap * w_dw[:, di * 5 + dj:di * 5 + dj + 1]          # (C,N)*(C,1)
            conds = []
            if di < 2:
                conds.append(h_idx >= (2 - di))
            if di > 2:
                conds.append(h_idx < (H + 2 - di))
            if dj < 2:
                conds.append(w_idx >= (2 - dj))
            if dj > 2:
                conds.append(w_idx < (W + 2 - dj))
            if conds:
                m = conds[0]
                for c in conds[1:]:
                    m = jnp.logical_and(m, c)
                term = jnp.where(m, term, 0.0)
            acc = acc + term

    # ---- grouped 1x1 conv (block-diagonal dense): (C, C) @ (C, N) -> (C, N) --
    agg = lax.dot_general(w_grp_ref[...].astype(mm_dtype), acc.astype(mm_dtype),
                          (((1,), (0,)), ((), ())),
                          preferred_element_type=jnp.float32)          # (C, N) f32

    # ---- ReLU linear attention, all heads, channel-major ---------------------
    # The multi-scale concat [qkv | agg] is never materialized.  The ones row
    # appended to v makes the last row of (kv^T @ q) the denominator, so each
    # head is exactly two small matmuls; all heads' outputs are stacked so the
    # proj conv is a single (Cout, 32) @ (32, N) matmul.
    ones_row = jnp.ones((1, N), mm_dtype)
    att_rows = []
    for src in (qkv, agg):
        for hh in range(heads_per_src):
            c0 = hh * 3 * dim
            q = jnp.maximum(src[c0:c0 + dim, :], 0.0).astype(mm_dtype)          # (d, N)
            k = jnp.maximum(src[c0 + dim:c0 + 2 * dim, :], 0.0).astype(mm_dtype)
            v = src[c0 + 2 * dim:c0 + 3 * dim, :].astype(mm_dtype)              # (d, N)
            v1 = jnp.concatenate([v, ones_row], axis=0)                         # (d+1, N)
            # kvT[e, d] = sum_n v1[e, n] * k[d, n]     (contract lane axes)
            kvT = lax.dot_general(v1, k, (((1,), (1,)), ((), ())),
                                  preferred_element_type=jnp.float32)           # (d+1, d)
            # nd[e, n] = sum_d kvT[e, d] * q[d, n] ; rows 0..d-1 = numerator,
            # row d = denominator (the torch ones-padding column).
            nd = lax.dot_general(kvT.astype(mm_dtype), q,
                                 (((1,), (0,)), ((), ())),
                                 preferred_element_type=jnp.float32)            # (d+1, N)
            den = nd[dim:dim + 1, :] + eps
            r = pl.reciprocal(den, approx=True)        # EUP slot (free-ish)
            r = r * (2.0 - den * r)                    # one Newton-Raphson step
            att_rows.append(nd[:dim, :] * r)                                    # (d, N)

    att = jnp.concatenate(att_rows, axis=0).astype(mm_dtype)   # (2*heads*dim, N)

    # ---- proj 1x1 conv + folded inference BatchNorm, lane-dense store --------
    out = lax.dot_general(w_proj_ref[...].astype(mm_dtype), att,
                          (((1,), (0,)), ((), ())),
                          preferred_element_type=jnp.float32)          # (Cout, N)
    out = out * bn_scale_ref[...] + bn_shift_ref[...]
    o_ref[...] = out.astype(o_ref.dtype)


# ---------------------------- parameters / glue ----------------------------

def init_params(key, in_channels=16, out_channels=16, dim=DIM,
                heads=None, heads_ratio=1.0, scales=(5,)):
    heads = heads or int(in_channels // dim * heads_ratio)
    total_dim = heads * dim
    c3 = 3 * total_dim
    ks = jax.random.split(key, 6)

    def rnd(k, shape, scale=0.1):
        return (scale * jax.random.normal(k, shape)).astype(jnp.float32)

    # qkv ConvLayer: 1x1 conv, no bias / norm / act.  torch weight (c3, Cin, 1, 1).
    w_qkv = rnd(ks[0], (c3, in_channels))
    # aggreg[scale=5][0]: depthwise 5x5 conv, groups=c3.  torch (c3, 1, 5, 5),
    # stored channel-major (c3, 25) so the kernel slices tap columns directly.
    w_dw = rnd(ks[1], (c3, 25))
    # aggreg[scale=5][1]: 1x1 conv, groups=3*heads, expanded to an equivalent
    # block-diagonal dense (c3_out, c3_in) matrix.
    g = 3 * heads
    gin = c3 // g
    w_grp_t = rnd(ks[2], (c3, gin))
    w_grp = jnp.zeros((c3, c3), jnp.float32)
    for o in range(c3):
        gi = o // gin
        w_grp = w_grp.at[o, gi * gin:(gi + 1) * gin].set(w_grp_t[o])
    # proj ConvLayer: 1x1 conv (no bias) + BatchNorm2d.  torch (Cout, 2*td, 1, 1).
    proj_in = total_dim * (1 + len(scales))
    w_proj = rnd(ks[3], (out_channels, proj_in))
    # TODO(synk): BatchNorm2d implemented in inference mode (running stats),
    # not training-mode batch statistics.
    gamma = 1.0 + rnd(ks[4], (out_channels,))
    beta = rnd(ks[5], (out_channels,))
    run_mean = jnp.zeros((out_channels,), jnp.float32)
    run_var = jnp.ones((out_channels,), jnp.float32)
    bn_scale = gamma / jnp.sqrt(run_var + BN_EPS)
    bn_shift = beta - run_mean * bn_scale
    return dict(w_qkv=w_qkv, w_dw=w_dw, w_grp=w_grp, w_proj=w_proj,
                bn_scale=bn_scale.reshape(-1, 1), bn_shift=bn_shift.reshape(-1, 1),
                dim=dim)


def lite_mla_forward(x_nchw, p, matmul_dtype=jnp.bfloat16):
    """x_nchw: (B, Cin, H, W) -> (B, Cout, H, W) float32.

    matmul_dtype: dtype the MXU operands are cast to *inside* the kernel
    (bf16 for v6e/v7x native MXU; float32 for bit-exact checking).
    """
    B, Cin, H, W = x_nchw.shape
    dim = p["dim"]
    C = p["w_qkv"].shape[0]                   # 3 * total_dim
    Cout, proj_in = p["w_proj"].shape
    N = H * W
    heads_per_src = C // (3 * dim)

    # Free NCHW -> (B, Cin, N) view; dtype passed through untouched (no wrapper
    # upcast -- the HBM->VMEM DMA stays at the input's native width).
    x_flat = x_nchw.reshape(B, Cin, N)

    # Per-pixel (h, w) index planes for the dwconv border masks (2*N i32, tiny).
    n_idx = jnp.arange(N, dtype=jnp.int32)
    hw_idx = jnp.stack([n_idx // W, n_idx % W], axis=0)

    # TODO(synk): for production resolutions (H*W >> 4K) add a spatial row-band
    # grid axis with a 2-row halo so intermediates fit v7x's 64 MiB VMEM.
    kern = functools.partial(_lite_mla_kernel, H=H, W=W, C=C, dim=dim,
                             heads_per_src=heads_per_src, eps=EPS,
                             mm_dtype=matmul_dtype)
    out = pl.pallas_call(
        kern,
        out_shape=jax.ShapeDtypeStruct((B, Cout, N), jnp.float32),
        grid=(B,),
        in_specs=[
            pl.BlockSpec((None, Cin, N), lambda b: (b, 0, 0)),         # x
            pl.BlockSpec((2, N), lambda b: (0, 0)),                    # hw indices
            pl.BlockSpec((C, Cin), lambda b: (0, 0)),                  # w_qkv
            pl.BlockSpec((C, 25), lambda b: (0, 0)),                   # w_dw
            pl.BlockSpec((C, C), lambda b: (0, 0)),                    # w_grp
            pl.BlockSpec((Cout, proj_in), lambda b: (0, 0)),           # w_proj
            pl.BlockSpec((Cout, 1), lambda b: (0, 0)),                 # bn_scale
            pl.BlockSpec((Cout, 1), lambda b: (0, 0)),                 # bn_shift
        ],
        out_specs=pl.BlockSpec((None, Cout, N), lambda b: (b, 0, 0)),
        compiler_params=pltpu.CompilerParams(dimension_semantics=("parallel",)),
    )(x_flat, hw_idx, p["w_qkv"], p["w_dw"], p["w_grp"], p["w_proj"],
      p["bn_scale"], p["bn_shift"])
    return out.reshape(B, Cout, H, W)        # free view back to NCHW


# ------------------------------- reference -------------------------------

def reference(x_nchw, p):
    """Pure-jnp reference of the same math (for a sanity check)."""
    B, Cin, H, W = x_nchw.shape
    dim = p["dim"]
    hp = lambda a, b: jnp.matmul(a, b, precision=jax.lax.Precision.HIGHEST)
    x = jnp.transpose(x_nchw, (0, 2, 3, 1)).astype(jnp.float32)        # NHWC
    qkv = hp(x, p["w_qkv"].T)
    xpad = jnp.pad(qkv, ((0, 0), (2, 2), (2, 2), (0, 0)))
    dw = jnp.zeros_like(qkv)
    for di in range(5):
        for dj in range(5):
            dw = dw + xpad[:, di:di + H, dj:dj + W, :] * p["w_dw"][:, di * 5 + dj]
    agg = hp(dw, p["w_grp"].T)
    ms = jnp.concatenate([qkv, agg], axis=-1)
    nH = ms.shape[-1] // (3 * dim)
    qa = ms.reshape(B, H * W, nH, 3 * dim).transpose(0, 2, 1, 3)
    q = jnp.maximum(qa[..., :dim], 0.0)
    k = jnp.maximum(qa[..., dim:2 * dim], 0.0)
    v = qa[..., 2 * dim:]
    v1 = jnp.concatenate([v, jnp.ones(v.shape[:-1] + (1,), v.dtype)], axis=-1)
    kv = hp(jnp.swapaxes(k, -1, -2), v1)
    out = hp(q, kv)
    out = out[..., :-1] / (out[..., -1:] + EPS)
    out = out.transpose(0, 2, 1, 3).reshape(B, H, W, nH * dim)
    out = hp(out, p["w_proj"].T) * p["bn_scale"].ravel() + p["bn_shift"].ravel()
    return out.transpose(0, 3, 1, 2)


if __name__ == "__main__":
    key = jax.random.PRNGKey(0)
    kx, kp = jax.random.split(key)
    in_channels, out_channels = 16, 16
    B, H, W = 2, 16, 16

    x = jax.random.normal(kx, (B, in_channels, H, W), jnp.float32)
    params = init_params(kp, in_channels, out_channels)
    ref = reference(x, params)

    # 1) float32 MXU operands: tight correctness check of the fused kernel math
    #    (approx reciprocal + one Newton-Raphson step; tolerance as before).
    out32 = jax.block_until_ready(
        lite_mla_forward(x, params, matmul_dtype=jnp.float32))
    assert out32.shape == (B, out_channels, H, W)
    err32 = float(jnp.max(jnp.abs(out32 - ref)))
    assert err32 < 3e-2, f"f32 kernel/reference mismatch: max abs err = {err32}"

    # 2) bf16 MXU operands (perf default for v6e/v7x): loose smoke tolerance,
    #    since the fp32-HIGHEST reference does not round q/k/v/weights to bf16.
    out16 = jax.block_until_ready(
        lite_mla_forward(x, params, matmul_dtype=jnp.bfloat16))
    err16 = float(jnp.max(jnp.abs(out16 - ref)))
    assert err16 < 1.5e-1, f"bf16 kernel/reference mismatch: max abs err = {err16}"

    print("KERNEL_OK")
</pallas_src>

<mosaic_0001>
module attributes {stable_mosaic.version = 11 : i64} {
  func.func @_lite_mla_kernel(%arg0: i32, %arg1: memref<1x16x256xf32, #tpu.memory_space<vmem>>, %arg2: memref<2x256xi32, #tpu.memory_space<vmem>>, %arg3: memref<48x16xf32, #tpu.memory_space<vmem>>, %arg4: memref<48x25xf32, #tpu.memory_space<vmem>>, %arg5: memref<48x48xf32, #tpu.memory_space<vmem>>, %arg6: memref<16x32xf32, #tpu.memory_space<vmem>>, %arg7: memref<16x1xf32, #tpu.memory_space<vmem>>, %arg8: memref<16x1xf32, #tpu.memory_space<vmem>>, %arg9: memref<1x16x256xf32, #tpu.memory_space<vmem>>) attributes {dimension_semantics = [#tpu.dimension_semantics<parallel>], iteration_bounds = array<i64: 2>, scalar_prefetch = 0 : i64, scratch_operands = 0 : i64, tpu.core_type = #tpu.core_type<tc>, window_params = [{transform_indices = @transform_0, window_bounds = array<i64: 1, 16, 256>}, {pipeline_mode = #tpu.pipeline_mode<synchronous>, transform_indices = @transform_1, window_bounds = array<i64: 2, 256>}, {pipeline_mode = #tpu.pipeline_mode<synchronous>, transform_indices = @transform_2, window_bounds = array<i64: 48, 16>}, {pipeline_mode = #tpu.pipeline_mode<synchronous>, transform_indices = @transform_3, window_bounds = array<i64: 48, 25>}, {pipeline_mode = #tpu.pipeline_mode<synchronous>, transform_indices = @transform_4, window_bounds = array<i64: 48, 48>}, {pipeline_mode = #tpu.pipeline_mode<synchronous>, transform_indices = @transform_5, window_bounds = array<i64: 16, 32>}, {pipeline_mode = #tpu.pipeline_mode<synchronous>, transform_indices = @transform_6, window_bounds = array<i64: 16, 1>}, {pipeline_mode = #tpu.pipeline_mode<synchronous>, transform_indices = @transform_7, window_bounds = array<i64: 16, 1>}, {transform_indices = @transform_8, window_bounds = array<i64: 1, 16, 256>}]} {
    %c0 = arith.constant 0 : index
    %c0_0 = arith.constant 0 : index
    %c0_1 = arith.constant 0 : index
    %0 = vector.load %arg1[%c0, %c0_0, %c0_1] : memref<1x16x256xf32, #tpu.memory_space<vmem>>, vector<1x16x256xf32>
    %1 = vector.shape_cast %0 : vector<1x16x256xf32> to vector<16x256xf32>
    %c0_2 = arith.constant 0 : index
    %c0_3 = arith.constant 0 : index
    %2 = vector.load %arg3[%c0_2, %c0_3] : memref<48x16xf32, #tpu.memory_space<vmem>>, vector<48x16xf32>
    %cst = arith.constant dense<0.000000e+00> : vector<48x256xf32>
    %3 = tpu.matmul %2, %1, %cst {dimension_numbers = #tpu.dot_dimension_numbers<[1], [0], [0], [1], [0, 0, 1, 1], [], []>} : vector<48x16xf32>, vector<16x256xf32>, vector<48x256xf32> -> vector<48x256xf32>
    %c0_4 = arith.constant 0 : index
    %c0_5 = arith.constant 0 : index
    %4 = vector.load %arg2[%c0_4, %c0_5] : memref<2x256xi32, #tpu.memory_space<vmem>>, vector<1x256xi32>
    %c1 = arith.constant 1 : index
    %c0_6 = arith.constant 0 : index
    %5 = vector.load %arg2[%c1, %c0_6] : memref<2x256xi32, #tpu.memory_space<vmem>>, vector<1x256xi32>
    %c0_7 = arith.constant 0 : index
    %c0_8 = arith.constant 0 : index
    %6 = vector.load %arg4[%c0_7, %c0_8] : memref<48x25xf32, #tpu.memory_space<vmem>>, vector<48x25xf32>
    %cst_9 = arith.constant 0.000000e+00 : f32
    %7 = vector.broadcast %cst_9 : f32 to vector<48x256xf32>
    %c34_i32 = arith.constant 34 : i32
    %8 = tpu.dynamic_rotate %3 by %c34_i32 dim 1 : vector<48x256xf32>, i32 -> vector<48x256xf32>
    %9 = vector.extract_strided_slice %6 {offsets = [0, 0], sizes = [48, 1], strides = [1, 1]} : vector<48x25xf32> to vector<48x1xf32>
    %10 = vector.broadcast %9 : vector<48x1xf32> to vector<48x256xf32>
    %11 = arith.mulf %8, %10 : vector<48x256xf32>
    %c2_i32 = arith.constant 2 : i32
    %12 = vector.broadcast %c2_i32 : i32 to vector<1x256xi32>
    %13 = arith.cmpi sge, %4, %12 : vector<1x256xi32>
    %c2_i32_10 = arith.constant 2 : i32
    %14 = vector.broadcast %c2_i32_10 : i32 to vector<1x256xi32>
    %15 = arith.cmpi sge, %5, %14 : vector<1x256xi32>
    %16 = arith.andi %13, %15 : vector<1x256xi1>
    %cst_11 = arith.constant 0.000000e+00 : f32
    %17 = vector.shape_cast %16 : vector<1x256xi1> to vector<1x256xi1>
    %18 = vector.broadcast %17 : vector<1x256xi1> to vector<48x256xi1>
    %19 = vector.broadcast %cst_11 : f32 to vector<48x256xf32>
    %20 = arith.select %18, %11, %19 : vector<48x256xi1>, vector<48x256xf32>
    %21 = arith.addf %7, %20 : vector<48x256xf32>
    %c33_i32 = arith.constant 33 : i32
    %22 = tpu.dynamic_rotate %3 by %c33_i32 dim 1 : vector<48x256xf32>, i32 -> vector<48x256xf32>
    %23 = vector.extract_strided_slice %6 {offsets = [0, 1], sizes = [48, 1], strides = [1, 1]} : vector<48x25xf32> to vector<48x1xf32>
    %24 = vector.broadcast %23 : vector<48x1xf32> to vector<48x256xf32>
    %25 = arith.mulf %22, %24 : vector<48x256xf32>
    %c2_i32_12 = arith.constant 2 : i32
    %26 = vector.broadcast %c2_i32_12 : i32 to vector<1x256xi32>
    %27 = arith.cmpi sge, %4, %26 : vector<1x256xi32>
    %c1_i32 = arith.constant 1 : i32
    %28 = vector.broadcast %c1_i32 : i32 to vector<1x256xi32>
    %29 = arith.cmpi sge, %5, %28 : vector<1x256xi32>
    %30 = arith.andi %27, %29 : vector<1x256xi1>
    %cst_13 = arith.constant 0.000000e+00 : f32
    %31 = vector.shape_cast %30 : vector<1x256xi1> to vector<1x256xi1>
    %32 = vector.broadcast %31 : vector<1x256xi1> to vector<48x256xi1>
    %33 = vector.broadcast %cst_13 : f32 to vector<48x256xf32>
    %34 = arith.select %32, %25, %33 : vector<48x256xi1>, vector<48x256xf32>
    %35 = arith.addf %21, %34 : vector<48x256xf32>
    %c32_i32 = arith.constant 32 : i32
    %36 = tpu.dynamic_rotate %3 by %c32_i32 dim 1 : vector<48x256xf32>, i32 -> vector<48x256xf32>
    %37 = vector.extract_strided_slice %6 {offsets = [0, 2], sizes = [48, 1], strides = [1, 1]} : vector<48x25xf32> to vector<48x1xf32>
    %38 = vector.broadcast %37 : vector<48x1xf32> to vector<48x256xf32>
    %39 = arith.mulf %36, %38 : vector<48x256xf32>
    %c2_i32_14 = arith.constant 2 : i32
    %40 = vector.broadcast %c2_i32_14 : i32 to vector<1x256xi32>
    %41 = arith.cmpi sge, %4, %40 : vector<1x256xi32>
    %cst_15 = arith.constant 0.000000e+00 : f32
    %42 = vector.shape_cast %41 : vector<1x256xi1> to vector<1x256xi1>
    %43 = vector.broadcast %42 : vector<1x256xi1> to vector<48x256xi1>
    %44 = vector.broadcast %cst_15 : f32 to vector<48x256xf32>
    %45 = arith.select %43, %39, %44 : vector<48x256xi1>, vector<48x256xf32>
    %46 = arith.addf %35, %45 : vector<48x256xf32>
    %c31_i32 = arith.constant 31 : i32
    %47 = tpu.dynamic_rotate %3 by %c31_i32 dim 1 : vector<48x256xf32>, i32 -> vector<48x256xf32>
    %48 = vector.extract_strided_slice %6 {offsets = [0, 3], sizes = [48, 1], strides = [1, 1]} : vector<48x25xf32> to vector<48x1xf32>
    %49 = vector.broadcast %48 : vector<48x1xf32> to vector<48x256xf32>
    %50 = arith.mulf %47, %49 : vector<48x256xf32>
    %c2_i32_16 = arith.constant 2 : i32
    %51 = vector.broadcast %c2_i32_16 : i32 to vector<1x256xi32>
    %52 = arith.cmpi sge, %4, %51 : vector<1x256xi32>
    %c15_i32 = arith.constant 15 : i32
    %53 = vector.broadcast %c15_i32 : i32 to vector<1x256xi32>
    %54 = arith.cmpi slt, %5, %53 : vector<1x256xi32>
    %55 = arith.andi %52, %54 : vector<1x256xi1>
    %cst_17 = arith.constant 0.000000e+00 : f32
    %56 = vector.shape_cast %55 : vector<1x256xi1> to vector<1x256xi1>
    %57 = vector.broadcast %56 : vector<1x256xi1> to vector<48x256xi1>
    %58 = vector.broadcast %cst_17 : f32 to vector<48x256xf32>
    %59 = arith.select %57, %50, %58 : vector<48x256xi1>, vector<48x256xf32>
    %60 = arith.addf %46, %59 : vector<48x256xf32>
    %c30_i32 = arith.constant 30 : i32
    %61 = tpu.dynamic_rotate %3 by %c30_i32 dim 1 : vector<48x256xf32>, i32 -> vector<48x256xf32>
    %62 = vector.extract_strided_slice %6 {offsets = [0, 4], sizes = [48, 1], strides = [1, 1]} : vector<48x25xf32> to vector<48x1xf32>
    %63 = vector.broadcast %62 : vector<48x1xf32> to vector<48x256xf32>
    %64 = arith.mulf %61, %63 : vector<48x256xf32>
    %c2_i32_18 = arith.constant 2 : i32
    %65 = vector.broadcast %c2_i32_18 : i32 to vector<1x256xi32>
    %66 = arith.cmpi sge, %4, %65 : vector<1x256xi32>
    %c14_i32 = arith.constant 14 : i32
    %67 = vector.broadcast %c14_i32 : i32 to vector<1x256xi32>
    %68 = arith.cmpi slt, %5, %67 : vector<1x256xi32>
    %69 = arith.andi %66, %68 : vector<1x256xi1>
    %cst_19 = arith.constant 0.000000e+00 : f32
    %70 = vector.shape_cast %69 : vector<1x256xi1> to vector<1x256xi1>
    %71 = vector.broadcast %70 : vector<1x256xi1> to vector<48x256xi1>
    %72 = vector.broadcast %cst_19 : f32 to vector<48x256xf32>
    %73 = arith.select %71, %64, %72 : vector<48x256xi1>, vector<48x256xf32>
    %74 = arith.addf %60, %73 : vector<48x256xf32>
    %c18_i32 = arith.constant 18 : i32
    %75 = tpu.dynamic_rotate %3 by %c18_i32 dim 1 : vector<48x256xf32>, i32 -> vector<48x256xf32>
    %76 = vector.extract_strided_slice %6 {offsets = [0, 5], sizes = [48, 1], strides = [1, 1]} : vector<48x25xf32> to vector<48x1xf32>
    %77 = vector.broadcast %76 : vector<48x1xf32> to vector<48x256xf32>
    %78 = arith.mulf %75, %77 : vector<48x256xf32>
    %c1_i32_20 = arith.constant 1 : i32
    %79 = vector.broadcast %c1_i32_20 : i32 to vector<1x256xi32>
    %80 = arith.cmpi sge, %4, %79 : vector<1x256xi32>
    %c2_i32_21 = arith.constant 2 : i32
    %81 = vector.broadcast %c2_i32_21 : i32 to vector<1x256xi32>
    %82 = arith.cmpi sge, %5, %81 : vector<1x256xi32>
    %83 = arith.andi %80, %82 : vector<1x256xi1>
    %cst_22 = arith.constant 0.000000e+00 : f32
    %84 = vector.shape_cast %83 : vector<1x256xi1> to vector<1x256xi1>
    %85 = vector.broadcast %84 : vector<1x256xi1> to vector<48x256xi1>
    %86 = vector.broadcast %cst_22 : f32 to vector<48x256xf32>
    %87 = arith.select %85, %78, %86 : vector<48x256xi1>, vector<48x256xf32>
    %88 = arith.addf %74, %87 : vector<48x256xf32>
    %c17_i32 = arith.constant 17 : i32
    %89 = tpu.dynamic_rotate %3 by %c17_i32 dim 1 : vector<48x256xf32>, i32 -> vector<48x256xf32>
    %90 = vector.extract_strided_slice %6 {offsets = [0, 6], sizes = [48, 1], strides = [1, 1]} : vector<48x25xf32> to vector<48x1xf32>
    %91 = vector.broadcast %90 : vector<48x1xf32> to vector<48x256xf32>
    %92 = arith.mulf %89, %91 : vector<48x256xf32>
    %c1_i32_23 = arith.constant 1 : i32
    %93 = vector.broadcast %c1_i32_23 : i32 to vector<1x256xi32>
    %94 = arith.cmpi sge, %4, %93 : vector<1x256xi32>
    %c1_i32_24 = arith.constant 1 : i32
    %95 = vector.broadcast %c1_i32_24 : i32 to vector<1x256xi32>
    %96 = arith.cmpi sge, %5, %95 : vector<1x256xi32>
    %97 = arith.andi %94, %96 : vector<1x256xi1>
    %cst_25 = arith.constant 0.000000e+00 : f32
    %98 = vector.shape_cast %97 : vector<1x256xi1> to vector<1x256xi1>
    %99 = vector.broadcast %98 : vector<1x256xi1> to vector<48x256xi1>
    %100 = vector.broadcast %cst_25 : f32 to vector<48x256xf32>
    %101 = arith.select %99, %92, %100 : vector<48x256xi1>, vector<48x256xf32>
    %102 = arith.addf %88, %101 : vector<48x256xf32>
    %c16_i32 = arith.constant 16 : i32
    %103 = tpu.dynamic_rotate %3 by %c16_i32 dim 1 : vector<48x256xf32>, i32 -> vector<48x256xf32>
    %104 = vector.extract_strided_slice %6 {offsets = [0, 7], sizes = [48, 1], strides = [1, 1]} : vector<48x25xf32> to vector<48x1xf32>
    %105 = vector.broadcast %104 : vector<48x1xf32> to vector<48x256xf32>
    %106 = arith.mulf %103, %105 : vector<48x256xf32>
    %c1_i32_26 = arith.constant 1 : i32
    %107 = vector.broadcast %c1_i32_26 : i32 to vector<1x256xi32>
    %108 = arith.cmpi sge, %4, %107 : vector<1x256xi32>
    %cst_27 = arith.constant 0.000000e+00 : f32
    %109 = vector.shape_cast %108 : vector<1x256xi1> to vector<1x256xi1>
    %110 = vector.broadcast %109 : vector<1x256xi1> to vector<48x256xi1>
    %111 = vector.broadcast %cst_27 : f32 to vector<48x256xf32>
    %112 = arith.select %110, %106, %111 : vector<48x256xi1>, vector<48x256xf32>
    %113 = arith.addf %102, %112 : vector<48x256xf32>
    %c15_i32_28 = arith.constant 15 : i32
    %114 = tpu.dynamic_rotate %3 by %c15_i32_28 dim 1 : vector<48x256xf32>, i32 -> vector<48x256xf32>
    %115 = vector.extract_strided_slice %6 {offsets = [0, 8], sizes = [48, 1], strides = [1, 1]} : vector<48x25xf32> to vector<48x1xf32>
    %116 = vector.broadcast %115 : vector<48x1xf32> to vector<48x256xf32>
    %117 = arith.mulf %114, %116 : vector<48x256xf32>
    %c1_i32_29 = arith.constant 1 : i32
    %118 = vector.broadcast %c1_i32_29 : i32 to vector<1x256xi32>
    %119 = arith.cmpi sge, %4, %118 : vector<1x256xi32>
    %c15_i32_30 = arith.constant 15 : i32
    %120 = vector.broadcast %c15_i32_30 : i32 to vector<1x256xi32>
    %121 = arith.cmpi slt, %5, %120 : vector<1x256xi32>
    %122 = arith.andi %119, %121 : vector<1x256xi1>
    %cst_31 = arith.constant 0.000000e+00 : f32
    %123 = vector.shape_cast %122 : vector<1x256xi1> to vector<1x256xi1>
    %124 = vector.broadcast %123 : vector<1x256xi1> to vector<48x256xi1>
    %125 = vector.broadcast %cst_31 : f32 to vector<48x256xf32>
    %126 = arith.select %124, %117, %125 : vector<48x256xi1>, vector<48x256xf32>
    %127 = arith.addf %113, %126 : vector<48x256xf32>
    %c14_i32_32 = arith.constant 14 : i32
    %128 = tpu.dynamic_rotate %3 by %c14_i32_32 dim 1 : vector<48x256xf32>, i32 -> vector<48x256xf32>
    %129 = vector.extract_strided_slice %6 {offsets = [0, 9], sizes = [48, 1], strides = [1, 1]} : vector<48x25xf32> to vector<48x1xf32>
    %130 = vector.broadcast %129 : vector<48x1xf32> to vector<48x256xf32>
    %131 = arith.mulf %128, %130 : vector<48x256xf32>
    %c1_i32_33 = arith.constant 1 : i32
    %132 = vector.broadcast %c1_i32_33 : i32 to vector<1x256xi32>
    %133 = arith.cmpi sge, %4, %132 : vector<1x256xi32>
    %c14_i32_34 = arith.constant 14 : i32
    %134 = vector.broadcast %c14_i32_34 : i32 to vector<1x256xi32>
    %135 = arith.cmpi slt, %5, %134 : vector<1x256xi32>
    %136 = arith.andi %133, %135 : vector<1x256xi1>
    %cst_35 = arith.constant 0.000000e+00 : f32
    %137 = vector.shape_cast %136 : vector<1x256xi1> to vector<1x256xi1>
    %138 = vector.broadcast %137 : vector<1x256xi1> to vector<48x256xi1>
    %139 = vector.broadcast %cst_35 : f32 to vector<48x256xf32>
    %140 = arith.select %138, %131, %139 : vector<48x256xi1>, vector<48x256xf32>
    %141 = arith.addf %127, %140 : vector<48x256xf32>
    %c2_i32_36 = arith.constant 2 : i32
    %142 = tpu.dynamic_rotate %3 by %c2_i32_36 dim 1 : vector<48x256xf32>, i32 -> vector<48x256xf32>
    %143 = vector.extract_strided_slice %6 {offsets = [0, 10], sizes = [48, 1], strides = [1, 1]} : vector<48x25xf32> to vector<48x1xf32>
    %144 = vector.broadcast %143 : vector<48x1xf32> to vector<48x256xf32>
    %145 = arith.mulf %142, %144 : vector<48x256xf32>
    %c2_i32_37 = arith.constant 2 : i32
    %146 = vector.broadcast %c2_i32_37 : i32 to vector<1x256xi32>
    %147 = arith.cmpi sge, %5, %146 : vector<1x256xi32>
    %cst_38 = arith.constant 0.000000e+00 : f32
    %148 = vector.shape_cast %147 : vector<1x256xi1> to vector<1x256xi1>
    %149 = vector.broadcast %148 : vector<1x256xi1> to vector<48x256xi1>
    %150 = vector.broadcast %cst_38 : f32 to vector<48x256xf32>
    %151 = arith.select %149, %145, %150 : vector<48x256xi1>, vector<48x256xf32>
    %152 = arith.addf %141, %151 : vector<48x256xf32>
    %c1_i32_39 = arith.constant 1 : i32
    %153 = tpu.dynamic_rotate %3 by %c1_i32_39 dim 1 : vector<48x256xf32>, i32 -> vector<48x256xf32>
    %154 = vector.extract_strided_slice %6 {offsets = [0, 11], sizes = [48, 1], strides = [1, 1]} : vector<48x25xf32> to vector<48x1xf32>
    %155 = vector.broadcast %154 : vector<48x1xf32> to vector<48x256xf32>
    %156 = arith.mulf %153, %155 : vector<48x256xf32>
    %c1_i32_40 = arith.constant 1 : i32
    %157 = vector.broadcast %c1_i32_40 : i32 to vector<1x256xi32>
    %158 = arith.cmpi sge, %5, %157 : vector<1x256xi32>
    %cst_41 = arith.constant 0.000000e+00 : f32
    %159 = vector.shape_cast %158 : vector<1x256xi1> to vector<1x256xi1>
    %160 = vector.broadcast %159 : vector<1x256xi1> to vector<48x256xi1>
    %161 = vector.broadcast %cst_41 : f32 to vector<48x256xf32>
    %162 = arith.select %160, %156, %161 : vector<48x256xi1>, vector<48x256xf32>
    %163 = arith.addf %152, %162 : vector<48x256xf32>
    %164 = vector.extract_strided_slice %6 {offsets = [0, 12], sizes = [48, 1], strides = [1, 1]} : vector<48x25xf32> to vector<48x1xf32>
    %165 = vector.broadcast %164 : vector<48x1xf32> to vector<48x256xf32>
    %166 = arith.mulf %3, %165 : vector<48x256xf32>
    %167 = arith.addf %163, %166 : vector<48x256xf32>
    %c255_i32 = arith.constant 255 : i32
    %168 = tpu.dynamic_rotate %3 by %c255_i32 dim 1 : vector<48x256xf32>, i32 -> vector<48x256xf32>
    %169 = vector.extract_strided_slice %6 {offsets = [0, 13], sizes = [48, 1], strides = [1, 1]} : vector<48x25xf32> to vector<48x1xf32>
    %170 = vector.broadcast %169 : vector<48x1xf32> to vector<48x256xf32>
    %171 = arith.mulf %168, %170 : vector<48x256xf32>
    %c15_i32_42 = arith.constant 15 : i32
    %172 = vector.broadcast %c15_i32_42 : i32 to vector<1x256xi32>
    %173 = arith.cmpi slt, %5, %172 : vector<1x256xi32>
    %cst_43 = arith.constant 0.000000e+00 : f32
    %174 = vector.shape_cast %173 : vector<1x256xi1> to vector<1x256xi1>
    %175 = vector.broadcast %174 : vector<1x256xi1> to vector<48x256xi1>
    %176 = vector.broadcast %cst_43 : f32 to vector<48x256xf32>
    %177 = arith.select %175, %171, %176 : vector<48x256xi1>, vector<48x256xf32>
    %178 = arith.addf %167, %177 : vector<48x256xf32>
    %c254_i32 = arith.constant 254 : i32
    %179 = tpu.dynamic_rotate %3 by %c254_i32 dim 1 : vector<48x256xf32>, i32 -> vector<48x256xf32>
    %180 = vector.extract_strided_slice %6 {offsets = [0, 14], sizes = [48, 1], strides = [1, 1]} : vector<48x25xf32> to vector<48x1xf32>
    %181 = vector.broadcast %180 : vector<48x1xf32> to vector<48x256xf32>
    %182 = arith.mulf %179, %181 : vector<48x256xf32>
    %c14_i32_44 = arith.constant 14 : i32
    %183 = vector.broadcast %c14_i32_44 : i32 to vector<1x256xi32>
    %184 = arith.cmpi slt, %5, %183 : vector<1x256xi32>
    %cst_45 = arith.constant 0.000000e+00 : f32
    %185 = vector.shape_cast %184 : vector<1x256xi1> to vector<1x256xi1>
    %186 = vector.broadcast %185 : vector<1x256xi1> to vector<48x256xi1>
    %187 = vector.broadcast %cst_45 : f32 to vector<48x256xf32>
    %188 = arith.select %186, %182, %187 : vector<48x256xi1>, vector<48x256xf32>
    %189 = arith.addf %178, %188 : vector<48x256xf32>
    %c242_i32 = arith.constant 242 : i32
    %190 = tpu.dynamic_rotate %3 by %c242_i32 dim 1 : vector<48x256xf32>, i32 -> vector<48x256xf32>
    %191 = vector.extract_strided_slice %6 {offsets = [0, 15], sizes = [48, 1], strides = [1, 1]} : vector<48x25xf32> to vector<48x1xf32>
    %192 = vector.broadcast %191 : vector<48x1xf32> to vector<48x256xf32>
    %193 = arith.mulf %190, %192 : vector<48x256xf32>
    %c15_i32_46 = arith.constant 15 : i32
    %194 = vector.broadcast %c15_i32_46 : i32 to vector<1x256xi32>
    %195 = arith.cmpi slt, %4, %194 : vector<1x256xi32>
    %c2_i32_47 = arith.constant 2 : i32
    %196 = vector.broadcast %c2_i32_47 : i32 to vector<1x256xi32>
    %197 = arith.cmpi sge, %5, %196 : vector<1x256xi32>
    %198 = arith.andi %195, %197 : vector<1x256xi1>
    %cst_48 = arith.constant 0.000000e+00 : f32
    %199 = vector.shape_cast %198 : vector<1x256xi1> to vector<1x256xi1>
    %200 = vector.broadcast %199 : vector<1x256xi1> to vector<48x256xi1>
    %201 = vector.broadcast %cst_48 : f32 to vector<48x256xf32>
    %202 = arith.select %200, %193, %201 : vector<48x256xi1>, vector<48x256xf32>
    %203 = arith.addf %189, %202 : vector<48x256xf32>
    %c241_i32 = arith.constant 241 : i32
    %204 = tpu.dynamic_rotate %3 by %c241_i32 dim 1 : vector<48x256xf32>, i32 -> vector<48x256xf32>
    %205 = vector.extract_strided_slice %6 {offsets = [0, 16], sizes = [48, 1], strides = [1, 1]} : vector<48x25xf32> to vector<48x1xf32>
    %206 = vector.broadcast %205 : vector<48x1xf32> to vector<48x256xf32>
    %207 = arith.mulf %204, %206 : vector<48x256xf32>
    %c15_i32_49 = arith.constant 15 : i32
    %208 = vector.broadcast %c15_i32_49 : i32 to vector<1x256xi32>
    %209 = arith.cmpi slt, %4, %208 : vector<1x256xi32>
    %c1_i32_50 = arith.constant 1 : i32
    %210 = vector.broadcast %c1_i32_50 : i32 to vector<1x256xi32>
    %211 = arith.cmpi sge, %5, %210 : vector<1x256xi32>
    %212 = arith.andi %209, %211 : vector<1x256xi1>
    %cst_51 = arith.constant 0.000000e+00 : f32
    %213 = vector.shape_cast %212 : vector<1x256xi1> to vector<1x256xi1>
    %214 = vector.broadcast %213 : vector<1x256xi1> to vector<48x256xi1>
    %215 = vector.broadcast %cst_51 : f32 to vector<48x256xf32>
    %216 = arith.select %214, %207, %215 : vector<48x256xi1>, vector<48x256xf32>
    %217 = arith.addf %203, %216 : vector<48x256xf32>
    %c240_i32 = arith.constant 240 : i32
    %218 = tpu.dynamic_rotate %3 by %c240_i32 dim 1 : vector<48x256xf32>, i32 -> vector<48x256xf32>
    %219 = vector.extract_strided_slice %6 {offsets = [0, 17], sizes = [48, 1], strides = [1, 1]} : vector<48x25xf32> to vector<48x1xf32>
    %220 = vector.broadcast %219 : vector<48x1xf32> to vector<48x256xf32>
    %221 = arith.mulf %218, %220 : vector<48x256xf32>
    %c15_i32_52 = arith.constant 15 : i32
    %222 = vector.broadcast %c15_i32_52 : i32 to vector<1x256xi32>
    %223 = arith.cmpi slt, %4, %222 : vector<1x256xi32>
    %cst_53 = arith.constant 0.000000e+00 : f32
    %224 = vector.shape_cast %223 : vector<1x256xi1> to vector<1x256xi1>
    %225 = vector.broadcast %224 : vector<1x256xi1> to vector<48x256xi1>
    %226 = vector.broadcast %cst_53 : f32 to vector<48x256xf32>
    %227 = arith.select %225, %221, %226 : vector<48x256xi1>, vector<48x256xf32>
    %228 = arith.addf %217, %227 : vector<48x256xf32>
    %c239_i32 = arith.constant 239 : i32
    %229 = tpu.dynamic_rotate %3 by %c239_i32 dim 1 : vector<48x256xf32>, i32 -> vector<48x256xf32>
    %230 = vector.extract_strided_slice %6 {offsets = [0, 18], sizes = [48, 1], strides = [1, 1]} : vector<48x25xf32> to vector<48x1xf32>
    %231 = vector.broadcast %230 : vector<48x1xf32> to vector<48x256xf32>
    %232 = arith.mulf %229, %231 : vector<48x256xf32>
    %c15_i32_54 = arith.constant 15 : i32
    %233 = vector.broadcast %c15_i32_54 : i32 to vector<1x256xi32>
    %234 = arith.cmpi slt, %4, %233 : vector<1x256xi32>
    %c15_i32_55 = arith.constant 15 : i32
    %235 = vector.broadcast %c15_i32_55 : i32 to vector<1x256xi32>
    %236 = arith.cmpi slt, %5, %235 : vector<1x256xi32>
    %237 = arith.andi %234, %236 : vector<1x256xi1>
    %cst_56 = arith.constant 0.000000e+00 : f32
    %238 = vector.shape_cast %237 : vector<1x256xi1> to vector<1x256xi1>
    %239 = vector.broadcast %238 : vector<1x256xi1> to vector<48x256xi1>
    %240 = vector.broadcast %cst_56 : f32 to vector<48x256xf32>
    %241 = arith.select %239, %232, %240 : vector<48x256xi1>, vector<48x256xf32>
    %242 = arith.addf %228, %241 : vector<48x256xf32>
    %c238_i32 = arith.constant 238 : i32
    %243 = tpu.dynamic_rotate %3 by %c238_i32 dim 1 : vector<48x256xf32>, i32 -> vector<48x256xf32>
    %244 = vector.extract_strided_slice %6 {offsets = [0, 19], sizes = [48, 1], strides = [1, 1]} : vector<48x25xf32> to vector<48x1xf32>
    %245 = vector.broadcast %244 : vector<48x1xf32> to vector<48x256xf32>
    %246 = arith.mulf %243, %245 : vector<48x256xf32>
    %c15_i32_57 = arith.constant 15 : i32
    %247 = vector.broadcast %c15_i32_57 : i32 to vector<1x256xi32>
    %248 = arith.cmpi slt, %4, %247 : vector<1x256xi32>
    %c14_i32_58 = arith.constant 14 : i32
    %249 = vector.broadcast %c14_i32_58 : i32 to vector<1x256xi32>
    %250 = arith.cmpi slt, %5, %249 : vector<1x256xi32>
    %251 = arith.andi %248, %250 : vector<1x256xi1>
    %cst_59 = arith.constant 0.000000e+00 : f32
    %252 = vector.shape_cast %251 : vector<1x256xi1> to vector<1x256xi1>
    %253 = vector.broadcast %252 : vector<1x256xi1> to vector<48x256xi1>
    %254 = vector.broadcast %cst_59 : f32 to vector<48x256xf32>
    %255 = arith.select %253, %246, %254 : vector<48x256xi1>, vector<48x256xf32>
    %256 = arith.addf %242, %255 : vector<48x256xf32>
    %c226_i32 = arith.constant 226 : i32
    %257 = tpu.dynamic_rotate %3 by %c226_i32 dim 1 : vector<48x256xf32>, i32 -> vector<48x256xf32>
    %258 = vector.extract_strided_slice %6 {offsets = [0, 20], sizes = [48, 1], strides = [1, 1]} : vector<48x25xf32> to vector<48x1xf32>
    %259 = vector.broadcast %258 : vector<48x1xf32> to vector<48x256xf32>
    %260 = arith.mulf %257, %259 : vector<48x256xf32>
    %c14_i32_60 = arith.constant 14 : i32
    %261 = vector.broadcast %c14_i32_60 : i32 to vector<1x256xi32>
    %262 = arith.cmpi slt, %4, %261 : vector<1x256xi32>
    %c2_i32_61 = arith.constant 2 : i32
    %263 = vector.broadcast %c2_i32_61 : i32 to vector<1x256xi32>
    %264 = arith.cmpi sge, %5, %263 : vector<1x256xi32>
    %265 = arith.andi %262, %264 : vector<1x256xi1>
    %cst_62 = arith.constant 0.000000e+00 : f32
    %266 = vector.shape_cast %265 : vector<1x256xi1> to vector<1x256xi1>
    %267 = vector.broadcast %266 : vector<1x256xi1> to vector<48x256xi1>
    %268 = vector.broadcast %cst_62 : f32 to vector<48x256xf32>
    %269 = arith.select %267, %260, %268 : vector<48x256xi1>, vector<48x256xf32>
    %270 = arith.addf %256, %269 : vector<48x256xf32>
    %c225_i32 = arith.constant 225 : i32
    %271 = tpu.dynamic_rotate %3 by %c225_i32 dim 1 : vector<48x256xf32>, i32 -> vector<48x256xf32>
    %272 = vector.extract_strided_slice %6 {offsets = [0, 21], sizes = [48, 1], strides = [1, 1]} : vector<48x25xf32> to vector<48x1xf32>
    %273 = vector.broadcast %272 : vector<48x1xf32> to vector<48x256xf32>
    %274 = arith.mulf %271, %273 : vector<48x256xf32>
    %c14_i32_63 = arith.constant 14 : i32
    %275 = vector.broadcast %c14_i32_63 : i32 to vector<1x256xi32>
    %276 = arith.cmpi slt, %4, %275 : vector<1x256xi32>
    %c1_i32_64 = arith.constant 1 : i32
    %277 = vector.broadcast %c1_i32_64 : i32 to vector<1x256xi32>
    %278 = arith.cmpi sge, %5, %277 : vector<1x256xi32>
    %279 = arith.andi %276, %278 : vector<1x256xi1>
    %cst_65 = arith.constant 0.000000e+00 : f32
    %280 = vector.shape_cast %279 : vector<1x256xi1> to vector<1x256xi1>
    %281 = vector.broadcast %280 : vector<1x256xi1> to vector<48x256xi1>
    %282 = vector.broadcast %cst_65 : f32 to vector<48x256xf32>
    %283 = arith.select %281, %274, %282 : vector<48x256xi1>, vector<48x256xf32>
    %284 = arith.addf %270, %283 : vector<48x256xf32>
    %c224_i32 = arith.constant 224 : i32
    %285 = tpu.dynamic_rotate %3 by %c224_i32 dim 1 : vector<48x256xf32>, i32 -> vector<48x256xf32>
    %286 = vector.extract_strided_slice %6 {offsets = [0, 22], sizes = [48, 1], strides = [1, 1]} : vector<48x25xf32> to vector<48x1xf32>
    %287 = vector.broadcast %286 : vector<48x1xf32> to vector<48x256xf32>
    %288 = arith.mulf %285, %287 : vector<48x256xf32>
    %c14_i32_66 = arith.constant 14 : i32
    %289 = vector.broadcast %c14_i32_66 : i32 to vector<1x256xi32>
    %290 = arith.cmpi slt, %4, %289 : vector<1x256xi32>
    %cst_67 = arith.constant 0.000000e+00 : f32
    %291 = vector.shape_cast %290 : vector<1x256xi1> to vector<1x256xi1>
    %292 = vector.broadcast %291 : vector<1x256xi1> to vector<48x256xi1>
    %293 = vector.broadcast %cst_67 : f32 to vector<48x256xf32>
    %294 = arith.select %292, %288, %293 : vector<48x256xi1>, vector<48x256xf32>
    %295 = arith.addf %284, %294 : vector<48x256xf32>
    %c223_i32 = arith.constant 223 : i32
    %296 = tpu.dynamic_rotate %3 by %c223_i32 dim 1 : vector<48x256xf32>, i32 -> vector<48x256xf32>
    %297 = vector.extract_strided_slice %6 {offsets = [0, 23], sizes = [48, 1], strides = [1, 1]} : vector<48x25xf32> to vector<48x1xf32>
    %298 = vector.broadcast %297 : vector<48x1xf32> to vector<48x256xf32>
    %299 = arith.mulf %296, %298 : vector<48x256xf32>
    %c14_i32_68 = arith.constant 14 : i32
    %300 = vector.broadcast %c14_i32_68 : i32 to vector<1x256xi32>
    %301 = arith.cmpi slt, %4, %300 : vector<1x256xi32>
    %c15_i32_69 = arith.constant 15 : i32
    %302 = vector.broadcast %c15_i32_69 : i32 to vector<1x256xi32>
    %303 = arith.cmpi slt, %5, %302 : vector<1x256xi32>
    %304 = arith.andi %301, %303 : vector<1x256xi1>
    %cst_70 = arith.constant 0.000000e+00 : f32
    %305 = vector.shape_cast %304 : vector<1x256xi1> to vector<1x256xi1>
    %306 = vector.broadcast %305 : vector<1x256xi1> to vector<48x256xi1>
    %307 = vector.broadcast %cst_70 : f32 to vector<48x256xf32>
    %308 = arith.select %306, %299, %307 : vector<48x256xi1>, vector<48x256xf32>
    %309 = arith.addf %295, %308 : vector<48x256xf32>
    %c222_i32 = arith.constant 222 : i32
    %310 = tpu.dynamic_rotate %3 by %c222_i32 dim 1 : vector<48x256xf32>, i32 -> vector<48x256xf32>
    %311 = vector.extract_strided_slice %6 {offsets = [0, 24], sizes = [48, 1], strides = [1, 1]} : vector<48x25xf32> to vector<48x1xf32>
    %312 = vector.broadcast %311 : vector<48x1xf32> to vector<48x256xf32>
    %313 = arith.mulf %310, %312 : vector<48x256xf32>
    %c14_i32_71 = arith.constant 14 : i32
    %314 = vector.broadcast %c14_i32_71 : i32 to vector<1x256xi32>
    %315 = arith.cmpi slt, %4, %314 : vector<1x256xi32>
    %c14_i32_72 = arith.constant 14 : i32
    %316 = vector.broadcast %c14_i32_72 : i32 to vector<1x256xi32>
    %317 = arith.cmpi slt, %5, %316 : vector<1x256xi32>
    %318 = arith.andi %315, %317 : vector<1x256xi1>
    %cst_73 = arith.constant 0.000000e+00 : f32
    %319 = vector.shape_cast %318 : vector<1x256xi1> to vector<1x256xi1>
    %320 = vector.broadcast %319 : vector<1x256xi1> to vector<48x256xi1>
    %321 = vector.broadcast %cst_73 : f32 to vector<48x256xf32>
    %322 = arith.select %320, %313, %321 : vector<48x256xi1>, vector<48x256xf32>
    %323 = arith.addf %309, %322 : vector<48x256xf32>
    %c0_74 = arith.constant 0 : index
    %c0_75 = arith.constant 0 : index
    %324 = vector.load %arg5[%c0_74, %c0_75] : memref<48x48xf32, #tpu.memory_space<vmem>>, vector<48x48xf32>
    %cst_76 = arith.constant dense<0.000000e+00> : vector<48x256xf32>
    %325 = tpu.matmul %324, %323, %cst_76 {dimension_numbers = #tpu.dot_dimension_numbers<[1], [0], [0], [1], [0, 0, 1, 1], [], []>} : vector<48x48xf32>, vector<48x256xf32>, vector<48x256xf32> -> vector<48x256xf32>
    %cst_77 = arith.constant 1.000000e+00 : f32
    %326 = vector.broadcast %cst_77 : f32 to vector<1x256xf32>
    %327 = vector.extract_strided_slice %3 {offsets = [0, 0], sizes = [8, 256], strides = [1, 1]} : vector<48x256xf32> to vector<8x256xf32>
    %cst_78 = arith.constant 0.000000e+00 : f32
    %328 = vector.broadcast %cst_78 : f32 to vector<8x256xf32>
    %329 = arith.maximumf %327, %328 : vector<8x256xf32>
    %330 = vector.extract_strided_slice %3 {offsets = [8, 0], sizes = [8, 256], strides = [1, 1]} : vector<48x256xf32> to vector<8x256xf32>
    %cst_79 = arith.constant 0.000000e+00 : f32
    %331 = vector.broadcast %cst_79 : f32 to vector<8x256xf32>
    %332 = arith.maximumf %330, %331 : vector<8x256xf32>
    %333 = vector.extract_strided_slice %3 {offsets = [16, 0], sizes = [8, 256], strides = [1, 1]} : vector<48x256xf32> to vector<8x256xf32>
    %334 = tpu.concatenate %333, %326 in 0 : vector<8x256xf32>, vector<1x256xf32> -> vector<9x256xf32>
    %cst_80 = arith.constant dense<0.000000e+00> : vector<9x8xf32>
    %335 = tpu.matmul %334, %332, %cst_80 {dimension_numbers = #tpu.dot_dimension_numbers<[1], [1], [0], [0], [0, 0, 1, 0], [], []>} : vector<9x256xf32>, vector<8x256xf32>, vector<9x8xf32> -> vector<9x8xf32>
    %cst_81 = arith.constant dense<0.000000e+00> : vector<9x256xf32>
    %336 = tpu.matmul %335, %329, %cst_81 {dimension_numbers = #tpu.dot_dimension_numbers<[1], [0], [0], [1], [0, 0, 1, 1], [], []>} : vector<9x8xf32>, vector<8x256xf32>, vector<9x256xf32> -> vector<9x256xf32>
    %337 = vector.extract_strided_slice %336 {offsets = [8, 0], sizes = [1, 256], strides = [1, 1]} : vector<9x256xf32> to vector<1x256xf32>
    %cst_82 = arith.constant 1.000000e-15 : f32
    %338 = vector.broadcast %cst_82 : f32 to vector<1x256xf32>
    %339 = arith.addf %337, %338 : vector<1x256xf32>
    %340 = tpu.reciprocal %339 {approx = true} : vector<1x256xf32> -> vector<1x256xf32>
    %341 = arith.mulf %339, %340 : vector<1x256xf32>
    %cst_83 = arith.constant 2.000000e+00 : f32
    %342 = vector.broadcast %cst_83 : f32 to vector<1x256xf32>
    %343 = arith.subf %342, %341 : vector<1x256xf32>
    %344 = arith.mulf %340, %343 : vector<1x256xf32>
    %345 = vector.extract_strided_slice %336 {offsets = [0, 0], sizes = [8, 256], strides = [1, 1]} : vector<9x256xf32> to vector<8x256xf32>
    %346 = vector.broadcast %344 : vector<1x256xf32> to vector<8x256xf32>
    %347 = arith.mulf %345, %346 : vector<8x256xf32>
    %348 = vector.extract_strided_slice %3 {offsets = [24, 0], sizes = [8, 256], strides = [1, 1]} : vector<48x256xf32> to vector<8x256xf32>
    %cst_84 = arith.constant 0.000000e+00 : f32
    %349 = vector.broadcast %cst_84 : f32 to vector<8x256xf32>
    %350 = arith.maximumf %348, %349 : vector<8x256xf32>
    %351 = vector.extract_strided_slice %3 {offsets = [32, 0], sizes = [8, 256], strides = [1, 1]} : vector<48x256xf32> to vector<8x256xf32>
    %cst_85 = arith.constant 0.000000e+00 : f32
    %352 = vector.broadcast %cst_85 : f32 to vector<8x256xf32>
    %353 = arith.maximumf %351, %352 : vector<8x256xf32>
    %354 = vector.extract_strided_slice %3 {offsets = [40, 0], sizes = [8, 256], strides = [1, 1]} : vector<48x256xf32> to vector<8x256xf32>
    %355 = tpu.concatenate %354, %326 in 0 : vector<8x256xf32>, vector<1x256xf32> -> vector<9x256xf32>
    %cst_86 = arith.constant dense<0.000000e+00> : vector<9x8xf32>
    %356 = tpu.matmul %355, %353, %cst_86 {dimension_numbers = #tpu.dot_dimension_numbers<[1], [1], [0], [0], [0, 0, 1, 0], [], []>} : vector<9x256xf32>, vector<8x256xf32>, vector<9x8xf32> -> vector<9x8xf32>
    %cst_87 = arith.constant dense<0.000000e+00> : vector<9x256xf32>
    %357 = tpu.matmul %356, %350, %cst_87 {dimension_numbers = #tpu.dot_dimension_numbers<[1], [0], [0], [1], [0, 0, 1, 1], [], []>} : vector<9x8xf32>, vector<8x256xf32>, vector<9x256xf32> -> vector<9x256xf32>
    %358 = vector.extract_strided_slice %357 {offsets = [8, 0], sizes = [1, 256], strides = [1, 1]} : vector<9x256xf32> to vector<1x256xf32>
    %cst_88 = arith.constant 1.000000e-15 : f32
    %359 = vector.broadcast %cst_88 : f32 to vector<1x256xf32>
    %360 = arith.addf %358, %359 : vector<1x256xf32>
    %361 = tpu.reciprocal %360 {approx = true} : vector<1x256xf32> -> vector<1x256xf32>
    %362 = arith.mulf %360, %361 : vector<1x256xf32>
    %cst_89 = arith.constant 2.000000e+00 : f32
    %363 = vector.broadcast %cst_89 : f32 to vector<1x256xf32>
    %364 = arith.subf %363, %362 : vector<1x256xf32>
    %365 = arith.mulf %361, %364 : vector<1x256xf32>
    %366 = vector.extract_strided_slice %357 {offsets = [0, 0], sizes = [8, 256], strides = [1, 1]} : vector<9x256xf32> to vector<8x256xf32>
    %367 = vector.broadcast %365 : vector<1x256xf32> to vector<8x256xf32>
    %368 = arith.mulf %366, %367 : vector<8x256xf32>
    %369 = vector.extract_strided_slice %325 {offsets = [0, 0], sizes = [8, 256], strides = [1, 1]} : vector<48x256xf32> to vector<8x256xf32>
    %cst_90 = arith.constant 0.000000e+00 : f32
    %370 = vector.broadcast %cst_90 : f32 to vector<8x256xf32>
    %371 = arith.maximumf %369, %370 : vector<8x256xf32>
    %372 = vector.extract_strided_slice %325 {offsets = [8, 0], sizes = [8, 256], strides = [1, 1]} : vector<48x256xf32> to vector<8x256xf32>
    %cst_91 = arith.constant 0.000000e+00 : f32
    %373 = vector.broadcast %cst_91 : f32 to vector<8x256xf32>
    %374 = arith.maximumf %372, %373 : vector<8x256xf32>
    %375 = vector.extract_strided_slice %325 {offsets = [16, 0], sizes = [8, 256], strides = [1, 1]} : vector<48x256xf32> to vector<8x256xf32>
    %376 = tpu.concatenate %375, %326 in 0 : vector<8x256xf32>, vector<1x256xf32> -> vector<9x256xf32>
    %cst_92 = arith.constant dense<0.000000e+00> : vector<9x8xf32>
    %377 = tpu.matmul %376, %374, %cst_92 {dimension_numbers = #tpu.dot_dimension_numbers<[1], [1], [0], [0], [0, 0, 1, 0], [], []>} : vector<9x256xf32>, vector<8x256xf32>, vector<9x8xf32> -> vector<9x8xf32>
    %cst_93 = arith.constant dense<0.000000e+00> : vector<9x256xf32>
    %378 = tpu.matmul %377, %371, %cst_93 {dimension_numbers = #tpu.dot_dimension_numbers<[1], [0], [0], [1], [0, 0, 1, 1], [], []>} : vector<9x8xf32>, vector<8x256xf32>, vector<9x256xf32> -> vector<9x256xf32>
    %379 = vector.extract_strided_slice %378 {offsets = [8, 0], sizes = [1, 256], strides = [1, 1]} : vector<9x256xf32> to vector<1x256xf32>
    %cst_94 = arith.constant 1.000000e-15 : f32
    %380 = vector.broadcast %cst_94 : f32 to vector<1x256xf32>
    %381 = arith.addf %379, %380 : vector<1x256xf32>
    %382 = tpu.reciprocal %381 {approx = true} : vector<1x256xf32> -> vector<1x256xf32>
    %383 = arith.mulf %381, %382 : vector<1x256xf32>
    %cst_95 = arith.constant 2.000000e+00 : f32
    %384 = vector.broadcast %cst_95 : f32 to vector<1x256xf32>
    %385 = arith.subf %384, %383 : vector<1x256xf32>
    %386 = arith.mulf %382, %385 : vector<1x256xf32>
    %387 = vector.extract_strided_slice %378 {offsets = [0, 0], sizes = [8, 256], strides = [1, 1]} : vector<9x256xf32> to vector<8x256xf32>
    %388 = vector.broadcast %386 : vector<1x256xf32> to vector<8x256xf32>
    %389 = arith.mulf %387, %388 : vector<8x256xf32>
    %390 = vector.extract_strided_slice %325 {offsets = [24, 0], sizes = [8, 256], strides = [1, 1]} : vector<48x256xf32> to vector<8x256xf32>
    %cst_96 = arith.constant 0.000000e+00 : f32
    %391 = vector.broadcast %cst_96 : f32 to vector<8x256xf32>
    %392 = arith.maximumf %390, %391 : vector<8x256xf32>
    %393 = vector.extract_strided_slice %325 {offsets = [32, 0], sizes = [8, 256], strides = [1, 1]} : vector<48x256xf32> to vector<8x256xf32>
    %cst_97 = arith.constant 0.000000e+00 : f32
    %394 = vector.broadcast %cst_97 : f32 to vector<8x256xf32>
    %395 = arith.maximumf %393, %394 : vector<8x256xf32>
    %396 = vector.extract_strided_slice %325 {offsets = [40, 0], sizes = [8, 256], strides = [1, 1]} : vector<48x256xf32> to vector<8x256xf32>
    %397 = tpu.concatenate %396, %326 in 0 : vector<8x256xf32>, vector<1x256xf32> -> vector<9x256xf32>
    %cst_98 = arith.constant dense<0.000000e+00> : vector<9x8xf32>
    %398 = tpu.matmul %397, %395, %cst_98 {dimension_numbers = #tpu.dot_dimension_numbers<[1], [1], [0], [0], [0, 0, 1, 0], [], []>} : vector<9x256xf32>, vector<8x256xf32>, vector<9x8xf32> -> vector<9x8xf32>
    %cst_99 = arith.constant dense<0.000000e+00> : vector<9x256xf32>
    %399 = tpu.matmul %398, %392, %cst_99 {dimension_numbers = #tpu.dot_dimension_numbers<[1], [0], [0], [1], [0, 0, 1, 1], [], []>} : vector<9x8xf32>, vector<8x256xf32>, vector<9x256xf32> -> vector<9x256xf32>
    %400 = vector.extract_strided_slice %399 {offsets = [8, 0], sizes = [1, 256], strides = [1, 1]} : vector<9x256xf32> to vector<1x256xf32>
    %cst_100 = arith.constant 1.000000e-15 : f32
    %401 = vector.broadcast %cst_100 : f32 to vector<1x256xf32>
    %402 = arith.addf %400, %401 : vector<1x256xf32>
    %403 = tpu.reciprocal %402 {approx = true} : vector<1x256xf32> -> vector<1x256xf32>
    %404 = arith.mulf %402, %403 : vector<1x256xf32>
    %cst_101 = arith.constant 2.000000e+00 : f32
    %405 = vector.broadcast %cst_101 : f32 to vector<1x256xf32>
    %406 = arith.subf %405, %404 : vector<1x256xf32>
    %407 = arith.mulf %403, %406 : vector<1x256xf32>
    %408 = vector.extract_strided_slice %399 {offsets = [0, 0], sizes = [8, 256], strides = [1, 1]} : vector<9x256xf32> to vector<8x256xf32>
    %409 = vector.broadcast %407 : vector<1x256xf32> to vector<8x256xf32>
    %410 = arith.mulf %408, %409 : vector<8x256xf32>
    %411 = tpu.concatenate %347, %368, %389, %410 in 0 : vector<8x256xf32>, vector<8x256xf32>, vector<8x256xf32>, vector<8x256xf32> -> vector<32x256xf32>
    %c0_102 = arith.constant 0 : index
    %c0_103 = arith.constant 0 : index
    %412 = vector.load %arg6[%c0_102, %c0_103] : memref<16x32xf32, #tpu.memory_space<vmem>>, vector<16x32xf32>
    %cst_104 = arith.constant dense<0.000000e+00> : vector<16x256xf32>
    %413 = tpu.matmul %412, %411, %cst_104 {dimension_numbers = #tpu.dot_dimension_numbers<[1], [0], [0], [1], [0, 0, 1, 1], [], []>} : vector<16x32xf32>, vector<32x256xf32>, vector<16x256xf32> -> vector<16x256xf32>
    %c0_105 = arith.constant 0 : index
    %c0_106 = arith.constant 0 : index
    %414 = vector.load %arg7[%c0_105, %c0_106] : memref<16x1xf32, #tpu.memory_space<vmem>>, vector<16x1xf32>
    %415 = vector.broadcast %414 : vector<16x1xf32> to vector<16x256xf32>
    %416 = arith.mulf %413, %415 : vector<16x256xf32>
    %c0_107 = arith.constant 0 : index
    %c0_108 = arith.constant 0 : index
    %417 = vector.load %arg8[%c0_107, %c0_108] : memref<16x1xf32, #tpu.memory_space<vmem>>, vector<16x1xf32>
    %418 = vector.broadcast %417 : vector<16x1xf32> to vector<16x256xf32>
    %419 = arith.addf %416, %418 : vector<16x256xf32>
    %c0_109 = arith.constant 0 : index
    %c0_110 = arith.constant 0 : index
    %c0_111 = arith.constant 0 : index
    %420 = vector.load %arg9[%c0_109, %c0_110, %c0_111] : memref<1x16x256xf32, #tpu.memory_space<vmem>>, vector<1x16x256xf32>
    %421 = vector.shape_cast %420 : vector<1x16x256xf32> to vector<16x256xf32>
    %422 = vector.shape_cast %419 : vector<16x256xf32> to vector<1x16x256xf32>
    tpu.vector_store %arg9[%c0_109, %c0_110, %c0_111], %422 {strides = array<i32>} : memref<1x16x256xf32, #tpu.memory_space<vmem>>, vector<1x16x256xf32>,
    return
  }
  func.func @transform_0(%arg0: i32) -> (i32, i32, i32) {
    %c0_i32 = arith.constant 0 : i32
    %c0_i32_0 = arith.constant 0 : i32
    %c0_i32_1 = arith.constant 0 : i32
    return %arg0, %c0_i32, %c0_i32_0 : i32, i32, i32
  }
  func.func @transform_1(%arg0: i32) -> (i32, i32) {
    %c0_i32 = arith.constant 0 : i32
    %c0_i32_0 = arith.constant 0 : i32
    %c0_i32_1 = arith.constant 0 : i32
    return %c0_i32, %c0_i32_0 : i32, i32
  }
  func.func @transform_2(%arg0: i32) -> (i32, i32) {
    %c0_i32 = arith.constant 0 : i32
    %c0_i32_0 = arith.constant 0 : i32
    %c0_i32_1 = arith.constant 0 : i32
    return %c0_i32, %c0_i32_0 : i32, i32
  }
  func.func @transform_3(%arg0: i32) -> (i32, i32) {
    %c0_i32 = arith.constant 0 : i32
    %c0_i32_0 = arith.constant 0 : i32
    %c0_i32_1 = arith.constant 0 : i32
    return %c0_i32, %c0_i32_0 : i32, i32
  }
  func.func @transform_4(%arg0: i32) -> (i32, i32) {
    %c0_i32 = arith.constant 0 : i32
    %c0_i32_0 = arith.constant 0 : i32
    %c0_i32_1 = arith.constant 0 : i32
    return %c0_i32, %c0_i32_0 : i32, i32
  }
  func.func @transform_5(%arg0: i32) -> (i32, i32) {
    %c0_i32 = arith.constant 0 : i32
    %c0_i32_0 = arith.constant 0 : i32
    %c0_i32_1 = arith.constant 0 : i32
    return %c0_i32, %c0_i32_0 : i32, i32
  }
  func.func @transform_6(%arg0: i32) -> (i32, i32) {
    %c0_i32 = arith.constant 0 : i32
    %c0_i32_0 = arith.constant 0 : i32
    %c0_i32_1 = arith.constant 0 : i32
    return %c0_i32, %c0_i32_0 : i32, i32
  }
  func.func @transform_7(%arg0: i32) -> (i32, i32) {
    %c0_i32 = arith.constant 0 : i32
    %c0_i32_0 = arith.constant 0 : i32
    %c0_i32_1 = arith.constant 0 : i32
    return %c0_i32, %c0_i32_0 : i32, i32
  }
  func.func @transform_8(%arg0: i32) -> (i32, i32, i32) {
    %c0_i32 = arith.constant 0 : i32
    %c0_i32_0 = arith.constant 0 : i32
    %c0_i32_1 = arith.constant 0 : i32
    return %arg0, %c0_i32, %c0_i32_0 : i32, i32, i32
  }
}

</mosaic_0001>

<bundles_post_ra>
// kernel: tpu_custom_call.1
= control target key start
LH: loop header
LB: loop body
LE: loop exit
PB: predicated region body
PF: predicated region fallthrough
CT: control target
= control target key end

     0   :  { %13 = vsyncpa [#allocation3], 0  ;;  %s9128_s0 = inlined_call_operand.vmem [shape: f32[2,16,256], index: 0, kind: input, shape index: {}]   ;;  %s9129_s1 = inlined_call_operand.vmem [shape: s32[2,256], index: 1, kind: input, shape index: {}]   ;;  %s9130_s2 = inlined_call_operand.vmem [shape: f32[48,16], index: 2, kind: input, shape index: {}]   ;;  %s9131_s3 = inlined_call_operand.vmem [shape: f32[48,25], index: 3, kind: input, shape index: {}]   ;;  %s9132_s4 = inlined_call_operand.vmem [shape: f32[48,48], index: 4, kind: input, shape index: {}]   ;;  %s9133_s5 = inlined_call_operand.vmem [shape: f32[16,32], index: 5, kind: input, shape index: {}]   ;;  %s9134_s6 = inlined_call_operand.vmem [shape: f32[16,1], index: 6, kind: input, shape index: {}]   ;;  %s9135_s7 = inlined_call_operand.vmem [shape: f32[16,1], index: 7, kind: input, shape index: {}]   ;;  %s9136_s8 = inlined_call_operand.hbm [shape: f32[2,16,256], index: 8, kind: output, shape index: {}]  }
   0x1   :  { %15 = vsyncpa [#allocation3 + $0x1], 0  ;;  %s4609_s27 = smov 0   ;;  %s4611_s28 = smov 0  }
   0x2   :  { %s4613_s29 = smov 0   ;;  %s4615_s30 = smov 0  }
   0x3 LB: > { %s4630_s9 = sadd.s32 4294967295, %s4509_s30   ;;  %s4168_s10 = sadd.s32 4294967294, %s4509_s30   ;;  %s4509_s30 = sphi %s4615_s30, %s10956_s30   ;;  %s4505_s29 = sphi %s4613_s29, %s10955_s29   ;;  %s4501_s28 = sphi %s4611_s28, %s10954_s28   ;;  %s4497_s27 = sphi %s4609_s27, %s10953_s27  }
   0x4   : > { %s4634_s11 = sadd.s32 1, %s4509_s30   ;;  %s201_s12 = sadd.s32 1, %s4505_s29 }
   0x5   : > { %s198_s13 = ssub.s32 %s4509_s30, %s4634_s11  ;;  %p211_p0 = scmp.ne.s32.totalorder %s4505_s29, %s4501_s28 }
   0x6   : > { %p199_p1 = scmp.eq.s32.totalorder %s198_s13, 0  ;;  %p212_p2 = scmp.eq.s32.totalorder %s4630_s9, 1 }
   0x7   : > { %p217_p3 = scmp.ne.s32.totalorder %s4501_s28, %s4497_s27  ;;  %p218_p4 = scmp.eq.s32.totalorder %s4168_s10, 1 }
   0x8   : > { %s4645_s14 = scalar_select %p199_p1, %s4505_s29, %s201_s12  }
   0x9   : > { %p4647_p5 = por %p212_p2, %p211_p0  ;;  %p4651_p6 = por %p218_p4, %p217_p3 }
   0xa   : > { %p4171_p7 = scmp.ge.s32.totalorder %s4509_s30, 1  ;;  %p265_p8 = scmp.lt.s32.totalorder %s4509_s30, 3 }
   0xc   : > { %p266_p9 = pnand %p4171_p7, %p265_p8 }
   0xe   : > { %269 = sbr.rel (%p266_p9) target bundleno = 2236 (0x8bc), region = 52 }
  0x15   : > { %p299_p10 = scmp.lt.s32.totalorder %s4630_s9, 1  ;;  %v9141_v0 = vmov 0.0   ;;  %v4662_v1 = vld [vmem:[%s9131_s3 + $0x8] sm:$0xff]  ;;  %v9139_v2 = vmov 0   ;;  %v4670_v3 = vld [vmem:[%s9131_s3] sm:$0xff]  ;;  %v4678_v4 = vld [vmem:[%s9131_s3 + $0x10] sm:$0xff] }
  0x16   : > { %397 = vmatprep.mubr.f32.mxu0 %v9141_v0  ;;  %3204 = vmatprep.mubr.f32.mxu1 %v9141_v0  ;;  %v4686_v5 = vld [vmem:[%s9131_s3 + $0x18] sm:$0xff]  ;;  %v4693_v12 = vld [vmem:[%s9131_s3 + $0x20] sm:$0xff]  ;;  %vm314_vm0 = vcmask 130048   ;;  %v4701_v14 = vld [vmem:[%s9131_s3 + $0x28] sm:$0xff]  ;;  %v4513_v16 = vmov 1   ;;  %v4514_v19 = vmov 2  }
  0x17   : > { %s300_s19 = scalar_select %p299_p10, %s4630_s9, 1  ;;  %4321 = vset.pattern.permute.xlu1 %v9139_v2  ;;  %4320 = vset.pattern.permute.xlu0 %v9139_v2  ;;  %v308_v13 = vld [vmem:[%s9130_s2] sm:$0xff]  ;;  %v309_v15 = vld [vmem:[%s9130_s2 + $0x8] sm:$0xff]  ;;  %v310_v17 = vld [vmem:[%s9130_s2 + $0x10] sm:$0xff]  ;;  %v4515_v22 = vmov 3   ;;  %v4516_v23 = vmov 4  }
  0x18   : > { %489 = vperm.xlu1 %4321, %v4662_v1   ;;  %484 = vperm.xlu0 %4320, %v4670_v3   ;;  %v311_v18 = vld [vmem:[%s9130_s2 + $0x18] sm:$0xff]  ;;  %v312_v20 = vld [vmem:[%s9130_s2 + $0x20] sm:$0xff]  ;;  %v313_v21 = vld [vmem:[%s9130_s2 + $0x28] sm:$0xff]  ;;  %v4517_v24 = vmov 5   ;;  %v4518_v25 = vmov 6   ;;  %v9147_v26 = vmov 7  }
  0x19   : > { %s4203_s22 = sshll.u32 %s300_s19, 5  ;;  %v9145_v27 = vmov 8   ;;  %v9143_v28 = vmov 9   ;;  %s4522_s20 = smov 33   ;;  %v9137_v57 = vmov 1.0   ;;  %vm9409_vm1 = vcmask 64512  }
  0x1a   : > { %s303_s10 = scalar_lea.vmem %s9128_s0, %s4203_s22  ;;  %s4523_s21 = smov 34  }
  0x1b   : > { %v305_v6 = vld [vmem:[%s303_s10 + $0x8] sm:$0xff]  ;;  %v307_v7 = vld [vmem:[%s303_s10 + $0x18] sm:$0xff]  ;;  %v304_v8 = vld [vmem:[%s303_s10] sm:$0xff]  ;;  %s4524_s22 = smov 31   ;;  %s4525_s23 = smov 32  }
  0x1c   : > { %v4205_v9 = vpack.c.bf16 %v307_v7, %v305_v6  ;;  %v306_v10 = vld [vmem:[%s303_s10 + $0x10] sm:$0xff]  ;;  %494 = vperm.xlu1 %4321, %v4678_v4   ;;  %499 = vperm.xlu0 %4320, %v4686_v5   ;;  %s4526_s24 = smov 30   ;;  %s4527_s25 = smov 18  }
  0x1d   : > { %v4207_v11 = vpack.c.bf16 %v306_v10, %v304_v8  ;;  %s4529_s26 = smov 17   ;;  %s4530_s10 = smov 16  }
  0x1e   : > { %4206 = vmatprep.subr.bf16.mxu0 %v4205_v9  ;;  %s4532_s12 = smov 15   ;;  %s4534_s13 = smov 14  }
  0x1f   : > { %4208 = vmatpush1.bf16.msra.mxu0 %v4207_v11  ;;  %s4536_s17 = smov 2   ;;  %s4538_s18 = smov 1  }
  0x20   : > { %504 = vperm.xlu1 %4321, %v4693_v12   ;;  %509 = vperm.xlu0 %4320, %v4701_v14   ;;  %s4540_s19 = smov 127  }
  0x22   : > { %4175 = vmatmul.mubr.msk.f32.vlgmr.msra.gmra.mrb[0].mxu0 %vm314_vm0, %v308_v13 }
  0x23   : > { %403 = vmatprep.mubr.f32.mxu0 %v9141_v0 }
  0x24   : > { %4322 = vset.pattern.permute.xlu1 %v4513_v16  ;;  %4323 = vset.pattern.permute.xlu0 %v4513_v16 }
  0x25   : > { %600 = vperm.xlu1 %4322, %v4670_v3   ;;  %604 = vperm.xlu0 %4323, %v4662_v1  }
  0x26   : > { %4176 = vmatmul.mubr.msk.f32.gmra.mrb[2].mxu0 %vm314_vm0, %v309_v15 }
  0x27   : > { %409 = vmatprep.mubr.f32.mxu0 %v9141_v0 }
  0x29   : > { %608 = vperm.xlu1 %4322, %v4678_v4   ;;  %616 = vperm.xlu0 %4323, %v4693_v12  }
  0x2a   : > { %4177 = vmatmul.mubr.msk.f32.gmra.mrb[4].mxu0 %vm314_vm0, %v310_v17 }
  0x2b   : > { %415 = vmatprep.mubr.f32.mxu0 %v9141_v0 }
  0x2d   : > { %612 = vperm.xlu1 %4322, %v4686_v5   ;;  %4324 = vset.pattern.permute.xlu0 %v4514_v19 }
  0x2e   : > { %4178 = vmatmul.mubr.msk.f32.gmra.mrb[6].mxu0 %vm314_vm0, %v311_v18  ;;  %710 = vperm.xlu0 %4324, %v4670_v3  }
  0x2f   : > { %421 = vmatprep.mubr.f32.mxu0 %v9141_v0 }
  0x31   : > { %620 = vperm.xlu1 %4322, %v4701_v14  }
  0x32   : > { %4179 = vmatmul.mubr.msk.f32.gmra.mrb[8].mxu0 %vm314_vm0, %v312_v20  ;;  %722 = vperm.xlu0 %4324, %v4686_v5  }
  0x33   : > { %427 = vmatprep.mubr.f32.mxu0 %v9141_v0 }
  0x35   : > { %4325 = vset.pattern.permute.xlu1 %v4514_v19 }
  0x36   : > { %714 = vperm.xlu1 %4325, %v4662_v1   ;;  %4180 = vmatmul.mubr.msk.f32.gmra.mrb[10].mxu0 %vm314_vm0, %v313_v21 }
  0x37   : > { %730 = vperm.xlu0 %4324, %v4701_v14  }
  0x3a   : > { %718 = vperm.xlu1 %4325, %v4678_v4  }
  0x3b   : > { %4327 = vset.pattern.permute.xlu0 %v4515_v22 }
  0x3c   : > { %822 = vperm.xlu0 %4327, %v4662_v1  }
  0x3e   : > { %726 = vperm.xlu1 %4325, %v4693_v12  }
  0x40   : > { %826 = vperm.xlu0 %4327, %v4678_v4  }
  0x42   : > { %4326 = vset.pattern.permute.xlu1 %v4515_v22 }
  0x43   : > { %818 = vperm.xlu1 %4326, %v4670_v3  }
  0x44   : > { %834 = vperm.xlu0 %4327, %v4693_v12  }
  0x47   : > { %4328 = vset.pattern.permute.xlu1 %v4516_v23 }
  0x48   : > { %928 = vperm.xlu1 %4328, %v4670_v3   ;;  %4333 = vset.pattern.permute.xlu0 %v4516_v23 }
  0x49   : > { %940 = vperm.xlu0 %4333, %v4686_v5  }
  0x4c   : > { %932 = vperm.xlu1 %4328, %v4662_v1  }
  0x4d   : > { %944 = vperm.xlu0 %4333, %v4693_v12  }
  0x50   : > { %4329 = vset.pattern.permute.xlu1 %v4515_v22 }
  0x51   : > { %830 = vperm.xlu1 %4329, %v4686_v5   ;;  %4337 = vset.pattern.permute.xlu0 %v4517_v24 }
  0x52   : > { %1038 = vperm.xlu0 %4337, %v4670_v3  }
  0x55   : > { %4330 = vset.pattern.permute.xlu1 %v4517_v24 }
  0x56   : > { %1042 = vperm.xlu1 %4330, %v4662_v1   ;;  %1050 = vperm.xlu0 %4337, %v4686_v5  }
  0x5a   : > { %4331 = vset.pattern.permute.xlu1 %v4516_v23  ;;  %1054 = vperm.xlu0 %4337, %v4693_v12  }
  0x5b   : > { %936 = vperm.xlu1 %4331, %v4678_v4  }
  0x5e   : > { %4341 = vset.pattern.permute.xlu0 %v4518_v25 }
  0x5f   : > { %4332 = vset.pattern.permute.xlu1 %v4518_v25  ;;  %1160 = vperm.xlu0 %4341, %v4686_v5  }
  0x60   : > { %1148 = vperm.xlu1 %4332, %v4670_v3  }
  0x64   : > { %1152 = vperm.xlu1 %4332, %v4662_v1  }
  0x68   : > { %4334 = vset.pattern.permute.xlu1 %v4515_v22 }
  0x69   : > { %838 = vperm.xlu1 %4334, %v4701_v14  }
  0x6d   : > { %4335 = vset.pattern.permute.xlu1 %v4517_v24 }
  0x6e   : > { %1046 = vperm.xlu1 %4335, %v4678_v4  }
  0x72   : > { %4336 = vset.pattern.permute.xlu1 %v9147_v26 }
  0x73   : > { %1257 = vperm.xlu1 %4336, %v4670_v3  }
  0x77   : > { %1261 = vperm.xlu1 %4336, %v4662_v1  }
  0x7b   : > { %4338 = vset.pattern.permute.xlu1 %v4516_v23 }
  0x7c   : > { %948 = vperm.xlu1 %4338, %v4701_v14  }
  0x80   : > { %4339 = vset.pattern.permute.xlu1 %v4518_v25 }
  0x81   : > { %1156 = vperm.xlu1 %4339, %v4678_v4  }
  0x85   : > { %4340 = vset.pattern.permute.xlu1 %v9145_v27 }
  0x86   : > { %1365 = vperm.xlu1 %4340, %v4670_v3  }
  0x8a   : > { %1369 = vperm.xlu1 %4340, %v4662_v1  }
  0x8e   : > { %4342 = vset.pattern.permute.xlu1 %v4517_v24 }
  0x8f   : > { %1058 = vperm.xlu1 %4342, %v4701_v14  }
  0x93   : > { %4343 = vset.pattern.permute.xlu1 %v9147_v26 }
  0x94   : > { %1265 = vperm.xlu1 %4343, %v4678_v4  }
  0x97   : > { %v4776_v29 = vpop.permute.xlu1 %489  ;;  %v4831_v52 = vpop.permute.xlu0 %484 }
  0x98   : > { %4344 = vset.pattern.permute.xlu1 %v9143_v28  ;;  %9725 = vst [vmem:[#allocation16_spill] sm:$0xff] %v4831_v52 }
  0x99   : > { %1474 = vperm.xlu1 %4344, %v4670_v3  }
  0x9b   : > { %v4778_v30 = vpop.permute.xlu1 %494  ;;  %v4858_v61 = vpop.permute.xlu0 %499 }
  0x9c   : > { %9731 = vst [vmem:[#allocation22_spill] sm:$0xff] %v4858_v61  ;;  %v9771_v61 = vmov 7  }
  0x9d   : > { %1478 = vperm.xlu1 %4344, %v4662_v1  }
  0x9f   : > { %v4780_v31 = vpop.permute.xlu1 %504  ;;  %v4872_v7 = vpop.permute.xlu0 %509 }
  0xa0   : > { %9714 = vst [vmem:[#allocation5_spill] sm:$0xff] %v4780_v31  ;;  %9734 = vst [vmem:[#allocation25_spill] sm:$0xff] %v4872_v7 }
  0xa1   : > { %4346 = vset.pattern.permute.xlu1 %v4518_v25 }
  0xa4   : > { %v4782_v32 = vpop.permute.xlu1 %600  ;;  %v4882_v9 = vpop.permute.xlu0 %604 }
  0xa5   : > { %9715 = vst [vmem:[#allocation6_spill] sm:$0xff] %v4782_v32 }
  0xa8   : > { %v4784_v33 = vpop.permute.xlu1 %608  ;;  %v4892_v11 = vpop.permute.xlu0 %616 }
  0xa9   : > { %9716 = vst [vmem:[#allocation7_spill] sm:$0xff] %v4784_v33  ;;  %9736 = vst [vmem:[#allocation27_spill] sm:$0xff] %v4892_v11 }
  0xac   : > { %v4786_v34 = vpop.permute.xlu1 %612 }
  0xad   : > { %9717 = vst [vmem:[#allocation8_spill] sm:$0xff] %v4786_v34  ;;  %v4902_v15 = vpop.permute.xlu0 %710 }
  0xae   : > { %9738 = vst [vmem:[#allocation29_spill] sm:$0xff] %v4902_v15 }
  0xb0   : > { %v4788_v35 = vpop.permute.xlu1 %620 }
  0xb1   : > { %9718 = vst [vmem:[#allocation9_spill] sm:$0xff] %v4788_v35  ;;  %v4912_v17 = vpop.permute.xlu0 %722 }
  0xb2   : > { %9740 = vst [vmem:[#allocation31_spill] sm:$0xff] %v4912_v17 }
  0xb5   : > { %v4790_v36 = vpop.permute.xlu1 %714 }
  0xb6   : > { %v4922_v19 = vpop.permute.xlu0 %730 }
  0xb7   : > { %9742 = vst [vmem:[#allocation33_spill] sm:$0xff] %v4922_v19 }
  0xb9   : > { %v4792_v37 = vpop.permute.xlu1 %718 }
  0xba   : > { %9719 = vst [vmem:[#allocation10_spill] sm:$0xff] %v4792_v37 }
  0xbb   : > { %v4932_v21 = vpop.permute.xlu0 %822 }
  0xbd   : > { %v4794_v38 = vpop.permute.xlu1 %726 }
  0xbe   : > { %9720 = vst [vmem:[#allocation11_spill] sm:$0xff] %v4794_v38 }
  0xbf   : > { %v4942_v23 = vpop.permute.xlu0 %826 }
  0xc0   : > { %9745 = vst [vmem:[#allocation36_spill] sm:$0xff] %v4942_v23 }
  0xc2   : > { %v4796_v39 = vpop.permute.xlu1 %818 }
  0xc3   : > { %9721 = vst [vmem:[#allocation12_spill] sm:$0xff] %v4796_v39  ;;  %v4952_v25 = vpop.permute.xlu0 %834 }
  0xc4   : > { %9747 = vst [vmem:[#allocation38_spill] sm:$0xff] %v4952_v25 }
  0xc7   : > { %v4806_v42 = vpop.permute.xlu1 %928 }
  0xc8   : > { %9722 = vst [vmem:[#allocation13_spill] sm:$0xff] %v4806_v42 }
  0xcb   : > { %v4827_v50 = vpop.permute.xlu1 %932 }
  0xd0   : > { %v4838_v54 = vpop.permute.xlu1 %830 }
  0xd1   : > { %9727 = vst [vmem:[#allocation18_spill] sm:$0xff] %v4838_v54 }
  0xd5   : > { %v4856_v60 = vpop.permute.xlu1 %1042 }
  0xda   : > { %v4870_v6 = vpop.permute.xlu1 %936 }
  0xdb   : > { %9733 = vst [vmem:[#allocation24_spill] sm:$0xff] %v4870_v6  ;;  %v9799_v6 = vmov 10  }
  0xdf   : > { %v4880_v8 = vpop.permute.xlu1 %1148 }
  0xe0   : > { %9735 = vst [vmem:[#allocation26_spill] sm:$0xff] %v4880_v8 }
  0xe3   : > { %v4890_v10 = vpop.permute.xlu1 %1152 }
  0xe8   : > { %v4900_v13 = vpop.permute.xlu1 %838 }
  0xe9   : > { %9737 = vst [vmem:[#allocation28_spill] sm:$0xff] %v4900_v13 }
  0xed   : > { %v4910_v16 = vpop.permute.xlu1 %1046 }
  0xee   : > { %9739 = vst [vmem:[#allocation30_spill] sm:$0xff] %v4910_v16 }
  0xf2   : > { %v4920_v18 = vpop.permute.xlu1 %1257 }
  0xf3   : > { %9741 = vst [vmem:[#allocation32_spill] sm:$0xff] %v4920_v18 }
  0xf5   : > { %v4798_v40 = vpop.f32.mrb[0].mxu0 }
  0xf6   : > { %562 = vrot.lane.b32.xlu1 %v4798_v40, %s4522_s20  ;;  %443 = vrot.lane.b32.xlu0 %v4798_v40, %s4523_s21  ;;  %v4804_v41 = vpop.f32.mrb[1].mxu0  ;;  %v3241_v51 = vmax.f32 %v4798_v40, 0.0  ;;  %v4930_v20 = vpop.permute.xlu1 %1261 }
  0xf7   : > { %v3242_v49 = vmax.f32 %v4804_v41, 0.0  ;;  %9743 = vst [vmem:[#allocation34_spill] sm:$0xff] %v4930_v20 }
  0xf9   : > { %v4808_v43 = vpop.f32.mrb[2].mxu0 }
  0xfa   : > { %780 = vrot.lane.b32.xlu1 %v4798_v40, %s4524_s22  ;;  %672 = vrot.lane.b32.xlu0 %v4798_v40, %s4525_s23  ;;  %v4814_v44 = vpop.f32.mrb[3].mxu0  ;;  %v3243_v46 = vmax.f32 %v4808_v43, 0.0 }
  0xfb   : > { %v3244_v45 = vmax.f32 %v4814_v44, 0.0  ;;  %v4940_v22 = vpop.permute.xlu1 %948 }
  0xfc   : > { %9744 = vst [vmem:[#allocation35_spill] sm:$0xff] %v4940_v22 }
  0xfd   : > { %3245 = vmatprep.subr.mxu0 %v3244_v45  ;;  %v4818_v47 = vpop.f32.mrb[4].mxu0 }
  0xfe   : > { %9723 = vst [vmem:[#allocation14_spill] sm:$0xff] %v4818_v47  ;;  %890 = vrot.lane.b32.xlu1 %v4798_v40, %s4526_s24  ;;  %455 = vrot.lane.b32.xlu0 %v4804_v41, %s4523_s21  ;;  %v4824_v48 = vpop.f32.mrb[5].mxu0 }
  0xff   : > { %9724 = vst [vmem:[#allocation15_spill] sm:$0xff] %v4824_v48  ;;  %3246 = vmatpush1.xpose.msra.mxu0 %v3243_v46  ;;  %3309 = vmatprep.mubr.f32.mxu0 %v4824_v48  ;;  %v4962_v46 = vpop.permute.xlu0 %940 }
 0x100   : > { %3327 = vmatprep.subr.mxu0 %v3242_v49  ;;  %v4950_v24 = vpop.permute.xlu1 %1156  ;;  %9749 = vst [vmem:[#allocation40_spill] sm:$0xff] %v4962_v46 }
 0x101   : > { %v4833_v53 = vpop.f32.mrb[6].mxu0  ;;  %9746 = vst [vmem:[#allocation37_spill] sm:$0xff] %v4950_v24 }
 0x102   : > { %9726 = vst [vmem:[#allocation17_spill] sm:$0xff] %v4833_v53  ;;  %3310 = vmatmul.mubr.f32.vlgmr.msra.gmra.mrb[12].mxu0 %v4818_v47  ;;  %1000 = vrot.lane.b32.xlu1 %v4798_v40, %s4527_s25  ;;  %v4840_v55 = vpop.f32.mrb[7].mxu0  ;;  %v3424_v11 = vmax.f32 %v4833_v53, 0.0 }
 0x103   : > { %9728 = vst [vmem:[#allocation19_spill] sm:$0xff] %v4840_v55  ;;  %684 = vrot.lane.b32.xlu0 %v4804_v41, %s4525_s23  ;;  %3328 = vmatpush1.msra.mxu0 %v3241_v51  ;;  %v3425_v56 = vmax.f32 %v4840_v55, 0.0  ;;  %v4972_v51 = vpop.permute.xlu0 %944 }
 0x104   : > { %3314 = vmatprep.mubr.f32.mxu0 %v9137_v57  ;;  %9751 = vst [vmem:[#allocation42_spill] sm:$0xff] %v4972_v51  ;;  %v9200_v51 = vmov 11  }
 0x105   : > { %3509 = vmatprep.subr.mxu0 %v3425_v56  ;;  %v4846_v58 = vpop.f32.mrb[8].mxu0  ;;  %v4960_v45 = vpop.permute.xlu1 %1365 }
 0x106   : > { %9729 = vst [vmem:[#allocation20_spill] sm:$0xff] %v4846_v58  ;;  %1110 = vrot.lane.b32.xlu1 %v4798_v40, %s4529_s26  ;;  %3315 = vmatmul.mubr.f32.gmra.mrb[14].mxu0 %v9137_v57  ;;  %v4851_v59 = vpop.f32.mrb[9].mxu0  ;;  %9748 = vst [vmem:[#allocation39_spill] sm:$0xff] %v4960_v45 }
 0x107   : > { %9730 = vst [vmem:[#allocation21_spill] sm:$0xff] %v4851_v59  ;;  %445 = vrot.lane.b32.xlu0 %v4808_v43, %s4523_s21  ;;  %3391 = vmatprep.mubr.f32.mxu0 %v9141_v0  ;;  %v4982_v57 = vpop.permute.xlu0 %1038 }
 0x108   : > { %9753 = vst [vmem:[#allocation44_spill] sm:$0xff] %v4982_v57 }
 0x109   : > { %v4860_v62 = vpop.f32.mrb[10].mxu0  ;;  %v4970_v49 = vpop.permute.xlu1 %1369 }
 0x10a   : > { %574 = vrot.lane.b32.xlu1 %v4804_v41, %s4522_s20  ;;  %v4864_v63 = vpop.f32.mrb[11].mxu0  ;;  %9750 = vst [vmem:[#allocation41_spill] sm:$0xff] %v4970_v49 }
 0x10b   : > { %9732 = vst [vmem:[#allocation23_spill] sm:$0xff] %v4864_v63  ;;  %564 = vrot.lane.b32.xlu0 %v4808_v43, %s4522_s20  ;;  %v4992_v0 = vpop.permute.xlu0 %1050 }
 0x10c   : > { %9755 = vst [vmem:[#allocation46_spill] sm:$0xff] %v4992_v0 }
 0x10e   : > { %792 = vrot.lane.b32.xlu1 %v4804_v41, %s4524_s22  ;;  %v4980_v56 = vpop.permute.xlu1 %1058 }
 0x10f   : > { %782 = vrot.lane.b32.xlu0 %v4808_v43, %s4524_s22  ;;  %9752 = vst [vmem:[#allocation43_spill] sm:$0xff] %v4980_v56  ;;  %v5002_v27 = vpop.permute.xlu0 %1054 }
 0x110   : > { %9757 = vst [vmem:[#allocation48_spill] sm:$0xff] %v5002_v27 }
 0x112   : > { %902 = vrot.lane.b32.xlu1 %v4804_v41, %s4526_s24 }
 0x113   : > { %892 = vrot.lane.b32.xlu0 %v4808_v43, %s4526_s24  ;;  %v4990_v2 = vpop.permute.xlu1 %1265  ;;  %v5012_v56 = vpop.permute.xlu0 %1160 }
 0x114   : > { %9754 = vst [vmem:[#allocation45_spill] sm:$0xff] %v4990_v2  ;;  %9759 = vst [vmem:[#allocation50_spill] sm:$0xff] %v5012_v56 }
 0x116   : > { %1012 = vrot.lane.b32.xlu1 %v4804_v41, %s4527_s25 }
 0x117   : > { %1002 = vrot.lane.b32.xlu0 %v4808_v43, %s4527_s25 }
 0x118   : > { %v5000_v28 = vpop.permute.xlu1 %1474 }
 0x119   : > { %9756 = vst [vmem:[#allocation47_spill] sm:$0xff] %v5000_v28 }
 0x11a   : > { %1122 = vrot.lane.b32.xlu1 %v4804_v41, %s4529_s26 }
 0x11b   : > { %1112 = vrot.lane.b32.xlu0 %v4808_v43, %s4529_s26 }
 0x11c   : > { %v5010_v26 = vpop.permute.xlu1 %1478 }
 0x11d   : > { %9758 = vst [vmem:[#allocation49_spill] sm:$0xff] %v5010_v26  ;;  %v9779_v26 = vmov 9  }
 0x11e   : > { %674 = vrot.lane.b32.xlu1 %v4808_v43, %s4525_s23 }
 0x11f   : > { %576 = vrot.lane.b32.xlu0 %v4814_v44, %s4522_s20 }
 0x122   : > { %457 = vrot.lane.b32.xlu1 %v4814_v44, %s4523_s21 }
 0x123   : > { %794 = vrot.lane.b32.xlu0 %v4814_v44, %s4524_s22 }
 0x126   : > { %686 = vrot.lane.b32.xlu1 %v4814_v44, %s4525_s23 }
 0x127   : > { %904 = vrot.lane.b32.xlu0 %v4814_v44, %s4526_s24 }
 0x12a   : > { %447 = vrot.lane.b32.xlu1 %v4818_v47, %s4523_s21 }
 0x12b   : > { %1014 = vrot.lane.b32.xlu0 %v4814_v44, %s4527_s25 }
 0x12e   : > { %566 = vrot.lane.b32.xlu1 %v4818_v47, %s4522_s20 }
 0x12f   : > { %1124 = vrot.lane.b32.xlu0 %v4814_v44, %s4529_s26 }
 0x132   : > { %784 = vrot.lane.b32.xlu1 %v4818_v47, %s4524_s22 }
 0x133   : > { %676 = vrot.lane.b32.xlu0 %v4818_v47, %s4525_s23 }
 0x136   : > { %578 = vrot.lane.b32.xlu1 %v4824_v48, %s4522_s20 }
 0x137   : > { %894 = vrot.lane.b32.xlu0 %v4818_v47, %s4526_s24 }
 0x13a   : > { %449 = vrot.lane.b32.xlu1 %v4833_v53, %s4523_s21 }
 0x13b   : > { %1004 = vrot.lane.b32.xlu0 %v4818_v47, %s4527_s25 }
 0x13e   : > { %678 = vrot.lane.b32.xlu1 %v4833_v53, %s4525_s23 }
 0x13f   : > { %459 = vrot.lane.b32.xlu0 %v4824_v48, %s4523_s21 }
 0x142   : > { %896 = vrot.lane.b32.xlu1 %v4833_v53, %s4526_s24 }
 0x143   : > { %688 = vrot.lane.b32.xlu0 %v4824_v48, %s4525_s23 }
 0x146   : > { %461 = vrot.lane.b32.xlu1 %v4840_v55, %s4523_s21 }
 0x147   : > { %796 = vrot.lane.b32.xlu0 %v4824_v48, %s4524_s22 }
 0x14a   : > { %690 = vrot.lane.b32.xlu1 %v4840_v55, %s4525_s23 }
 0x14b   : > { %906 = vrot.lane.b32.xlu0 %v4824_v48, %s4526_s24 }
 0x14e   : > { %798 = vrot.lane.b32.xlu1 %v4840_v55, %s4524_s22 }
 0x14f   : > { %568 = vrot.lane.b32.xlu0 %v4833_v53, %s4522_s20 }
 0x152   : > { %908 = vrot.lane.b32.xlu1 %v4840_v55, %s4526_s24 }
 0x153   : > { %786 = vrot.lane.b32.xlu0 %v4833_v53, %s4524_s22 }
 0x156   : > { %570 = vrot.lane.b32.xlu1 %v4846_v58, %s4522_s20 }
 0x157   : > { %580 = vrot.lane.b32.xlu0 %v4840_v55, %s4522_s20 }
 0x15a   : > { %582 = vrot.lane.b32.xlu1 %v4851_v59, %s4522_s20 }
 0x15b   : > { %451 = vrot.lane.b32.xlu0 %v4846_v58, %s4523_s21 }
 0x15e   : > { %453 = vrot.lane.b32.xlu1 %v4860_v62, %s4523_s21 }
 0x15f   : > { %680 = vrot.lane.b32.xlu0 %v4846_v58, %s4525_s23 }
 0x162   : > { %682 = vrot.lane.b32.xlu1 %v4860_v62, %s4525_s23 }
 0x163   : > { %788 = vrot.lane.b32.xlu0 %v4846_v58, %s4524_s22 }
 0x166   : > { %790 = vrot.lane.b32.xlu1 %v4860_v62, %s4524_s22 }
 0x167   : > { %463 = vrot.lane.b32.xlu0 %v4851_v59, %s4523_s21 }
 0x168   : > { %v5020_v28 = vpop.permute.xlu1 %562  ;;  %v5022_v45 = vpop.permute.xlu0 %443 }
 0x169   : > { %9760 = vst [vmem:[#allocation51_spill] sm:$0xff] %v5020_v28  ;;  %9761 = vst [vmem:[#allocation52_spill] sm:$0xff] %v5022_v45 }
 0x16a   : > { %465 = vrot.lane.b32.xlu1 %v4864_v63, %s4523_s21  ;;  %s4561_s21 = smov 94  }
 0x16b   : > { %692 = vrot.lane.b32.xlu0 %v4851_v59, %s4525_s23 }
 0x16c   : > { %v5028_v56 = vpop.permute.xlu1 %780  ;;  %v5030_v22 = vpop.permute.xlu0 %672 }
 0x16d   : > { %9762 = vst [vmem:[#allocation53_spill] sm:$0xff] %v5028_v56  ;;  %9763 = vst [vmem:[#allocation54_spill] sm:$0xff] %v5030_v22 }
 0x16e   : > { %694 = vrot.lane.b32.xlu1 %v4864_v63, %s4525_s23  ;;  %s4553_s23 = smov 98  }
 0x16f   : > { %800 = vrot.lane.b32.xlu0 %v4851_v59, %s4524_s22 }
 0x170   : > { %v5036_v18 = vpop.permute.xlu1 %890  ;;  %v5038_v0 = vpop.permute.xlu0 %455 }
 0x171   : > { %9764 = vst [vmem:[#allocation55_spill] sm:$0xff] %v5036_v18  ;;  %9765 = vst [vmem:[#allocation56_spill] sm:$0xff] %v5038_v0  ;;  %v9177_v18 = vmov 10  }
 0x172   : > { %802 = vrot.lane.b32.xlu1 %v4864_v63, %s4524_s22  ;;  %s4544_s22 = smov 114  }
 0x173   : > { %572 = vrot.lane.b32.xlu0 %v4860_v62, %s4522_s20 }
 0x174   : > { %v5044_v13 = vpop.permute.xlu1 %1000 }
 0x175   : > { %9766 = vst [vmem:[#allocation57_spill] sm:$0xff] %v5044_v13  ;;  %v5046_v19 = vpop.permute.xlu0 %684 }
 0x176   : > { %9767 = vst [vmem:[#allocation58_spill] sm:$0xff] %v5046_v19  ;;  %1006 = vrot.lane.b32.xlu1 %v4833_v53, %s4527_s25 }
 0x177   : > { %584 = vrot.lane.b32.xlu0 %v4864_v63, %s4522_s20  ;;  %s4204_s20 = sshll.u32 %s4630_s9, 9 }
 0x178   : > { %v5052_v46 = vpop.permute.xlu1 %1110 }
 0x179   : > { %9768 = vst [vmem:[#allocation59_spill] sm:$0xff] %v5052_v46  ;;  %v5054_v7 = vpop.permute.xlu0 %445  ;;  %v9772_v46 = vmov 8  }
 0x17a   : > { %1018 = vrot.lane.b32.xlu1 %v4840_v55, %s4527_s25 }
 0x17b   : > { %1016 = vrot.lane.b32.xlu0 %v4824_v48, %s4527_s25 }
 0x17c   : > { %v5060_v35 = vpop.permute.xlu1 %574 }
 0x17d   : > { %9769 = vst [vmem:[#allocation60_spill] sm:$0xff] %v5060_v35  ;;  %v5062_v54 = vpop.permute.xlu0 %564 }
 0x17e   : > { %1168 = vperm.xlu1 %4346, %v4701_v14  }
 0x17f   : > { %1164 = vperm.xlu0 %4341, %v4693_v12  }
 0x180   : > { %v5066_v17 = vpop.permute.xlu1 %792 }
 0x181   : > { %9770 = vst [vmem:[#allocation61_spill] sm:$0xff] %v5066_v17  ;;  %v5068_v8 = vpop.permute.xlu0 %782 }
 0x182   : > { %1219 = vrot.lane.b32.xlu1 %v4798_v40, %s4530_s10 }
 0x183   : > { %4345 = vset.pattern.permute.xlu0 %v9771_v61  ;;  %4347 = vset.pattern.permute.xlu1 %v9772_v46 }
 0x184   : > { %1269 = vperm.xlu0 %4345, %v4686_v5   ;;  %v5075_v34 = vpop.permute.xlu1 %902 }
 0x185   : > { %9773 = vst [vmem:[#allocation62_spill] sm:$0xff] %v5075_v34  ;;  %v5077_v57 = vpop.permute.xlu0 %892 }
 0x186   : > { %1231 = vrot.lane.b32.xlu1 %v4804_v41, %s4530_s10 }
 0x188   : > { %1221 = vrot.lane.b32.xlu0 %v4808_v43, %s4530_s10  ;;  %v5083_v13 = vpop.permute.xlu1 %1012 }
 0x189   : > { %9774 = vst [vmem:[#allocation63_spill] sm:$0xff] %v5083_v13  ;;  %v5085_v42 = vpop.permute.xlu0 %1002 }
 0x18a   : > { %1373 = vperm.xlu1 %4347, %v4678_v4  }
 0x18c   : > { %1233 = vrot.lane.b32.xlu0 %v4814_v44, %s4530_s10  ;;  %v5090_v39 = vpop.permute.xlu1 %1122 }
 0x18d   : > { %9775 = vst [vmem:[#allocation64_spill] sm:$0xff] %v5090_v39  ;;  %v5092_v34 = vpop.permute.xlu0 %1112 }
 0x18e   : > { %4348 = vset.pattern.permute.xlu1 %v9177_v18 }
 0x18f   : > { %1583 = vperm.xlu1 %4348, %v4670_v3  }
 0x190   : > { %898 = vrot.lane.b32.xlu0 %v4846_v58, %s4526_s24  ;;  %v5098_v13 = vpop.permute.xlu1 %674 }
 0x191   : > { %v5100_v56 = vpop.permute.xlu0 %576 }
 0x193   : > { %1587 = vperm.xlu1 %4348, %v4662_v1  }
 0x194   : > { %910 = vrot.lane.b32.xlu0 %v4851_v59, %s4526_s24  ;;  %v5105_v39 = vpop.permute.xlu1 %457 }
 0x195   : > { %v5107_v17 = vpop.permute.xlu0 %794 }
 0x197   : > { %900 = vrot.lane.b32.xlu1 %v4860_v62, %s4526_s24 }
 0x198   : > { %1114 = vrot.lane.b32.xlu0 %v4818_v47, %s4529_s26  ;;  %v5113_v18 = vpop.permute.xlu1 %686  ;;  %4350 = vset.pattern.permute.xlu1 %v9771_v61 }
 0x199   : > { %v5116_v15 = vpop.permute.xlu0 %904 }
 0x19b   : > { %912 = vrot.lane.b32.xlu1 %v4864_v63, %s4526_s24 }
 0x19c   : > { %1126 = vrot.lane.b32.xlu0 %v4824_v48, %s4529_s26  ;;  %v5122_v52 = vpop.permute.xlu1 %447 }
 0x19d   : > { %v5124_v19 = vpop.permute.xlu0 %1014 }
 0x19f   : > { %1116 = vrot.lane.b32.xlu1 %v4833_v53, %s4529_s26 }
 0x1a0   : > { %1273 = vperm.xlu0 %4345, %v4693_v12   ;;  %v5129_v22 = vpop.permute.xlu1 %566 }
 0x1a1   : > { %v5131_v61 = vpop.permute.xlu0 %1124 }
 0x1a3   : > { %1128 = vrot.lane.b32.xlu1 %v4840_v55, %s4529_s26 }
 0x1a4   : > { %4349 = vset.pattern.permute.xlu0 %v9772_v46  ;;  %v5136_v32 = vpop.permute.xlu1 %784 }
 0x1a5   : > { %9776 = vst [vmem:[#allocation65_spill] sm:$0xff] %v5136_v32  ;;  %v5138_v0 = vpop.permute.xlu0 %676  ;;  %1377 = vperm.xlu0 %4349, %v4686_v5  }
 0x1a7   : > { %1277 = vperm.xlu1 %4350, %v4701_v14  }
 0x1a8   : > { %v5142_v45 = vpop.permute.xlu1 %578 }
 0x1a9   : > { %v5144_v35 = vpop.permute.xlu0 %894  ;;  %1329 = vrot.lane.b32.xlu0 %v4808_v43, %s4532_s12 }
 0x1aa   : > { %9777 = vst [vmem:[#allocation66_spill] sm:$0xff] %v5144_v35 }
 0x1ab   : > { %1327 = vrot.lane.b32.xlu1 %v4798_v40, %s4532_s12 }
 0x1ac   : > { %v5150_v28 = vpop.permute.xlu1 %449  ;;  %4351 = vset.pattern.permute.xlu1 %v9779_v26 }
 0x1ad   : > { %9778 = vst [vmem:[#allocation67_spill] sm:$0xff] %v5150_v28  ;;  %v5153_v2 = vpop.permute.xlu0 %1004  ;;  %1341 = vrot.lane.b32.xlu0 %v4814_v44, %s4532_s12 }
 0x1ae   : > { %9780 = vst [vmem:[#allocation68_spill] sm:$0xff] %v5153_v2 }
 0x1af   : > { %1339 = vrot.lane.b32.xlu1 %v4804_v41, %s4532_s12 }
 0x1b0   : > { %v5159_v27 = vpop.permute.xlu1 %678 }
 0x1b1   : > { %9781 = vst [vmem:[#allocation69_spill] sm:$0xff] %v5159_v27  ;;  %v5161_v49 = vpop.permute.xlu0 %459  ;;  %1008 = vrot.lane.b32.xlu0 %v4846_v58, %s4527_s25 }
 0x1b3   : > { %1482 = vperm.xlu1 %4351, %v4678_v4  }
 0x1b4   : > { %v5166_v28 = vpop.permute.xlu1 %896 }
 0x1b5   : > { %9782 = vst [vmem:[#allocation70_spill] sm:$0xff] %v5166_v28  ;;  %v5168_v24 = vpop.permute.xlu0 %688  ;;  %1020 = vrot.lane.b32.xlu0 %v4851_v59, %s4527_s25 }
 0x1b6   : > { %9783 = vst [vmem:[#allocation71_spill] sm:$0xff] %v5168_v24 }
 0x1b7   : > { %4352 = vset.pattern.permute.xlu1 %v9200_v51 }
 0x1b8   : > { %v5173_v20 = vpop.permute.xlu1 %461  ;;  %1691 = vperm.xlu1 %4352, %v4670_v3  }
 0x1b9   : > { %9784 = vst [vmem:[#allocation72_spill] sm:$0xff] %v5173_v20  ;;  %v5176_v27 = vpop.permute.xlu0 %796  ;;  %1223 = vrot.lane.b32.xlu0 %v4818_v47, %s4530_s10 }
 0x1ba   : > { %9785 = vst [vmem:[#allocation73_spill] sm:$0xff] %v5176_v27 }
 0x1bc   : > { %v5180_v16 = vpop.permute.xlu1 %690  ;;  %1695 = vperm.xlu1 %4352, %v4662_v1  }
 0x1bd   : > { %9786 = vst [vmem:[#allocation74_spill] sm:$0xff] %v5180_v16  ;;  %v5183_v28 = vpop.permute.xlu0 %906  ;;  %1235 = vrot.lane.b32.xlu0 %v4824_v48, %s4530_s10 }
 0x1be   : > { %9787 = vst [vmem:[#allocation75_spill] sm:$0xff] %v5183_v28 }
 0x1c0   : > { %v5187_v25 = vpop.permute.xlu1 %798  ;;  %1010 = vrot.lane.b32.xlu1 %v4860_v62, %s4527_s25 }
 0x1c1   : > { %9788 = vst [vmem:[#allocation76_spill] sm:$0xff] %v5187_v25  ;;  %v5191_v51 = vpop.permute.xlu0 %568  ;;  %1381 = vperm.xlu0 %4349, %v4693_v12   ;;  %4354 = vset.pattern.permute.xlu1 %v9772_v46 }
 0x1c2   : > { %9789 = vst [vmem:[#allocation77_spill] sm:$0xff] %v5191_v51 }
 0x1c4   : > { %v5195_v20 = vpop.permute.xlu1 %908  ;;  %1022 = vrot.lane.b32.xlu1 %v4864_v63, %s4527_s25  ;;  %s4549_s25 = smov 111  }
 0x1c5   : > { %9790 = vst [vmem:[#allocation78_spill] sm:$0xff] %v5195_v20  ;;  %v5199_v16 = vpop.permute.xlu0 %786  ;;  %4353 = vset.pattern.permute.xlu0 %v9779_v26 }
 0x1c6   : > { %9791 = vst [vmem:[#allocation79_spill] sm:$0xff] %v5199_v16  ;;  %1486 = vperm.xlu0 %4353, %v4686_v5  }
 0x1c8   : > { %v5203_v25 = vpop.permute.xlu1 %570  ;;  %1225 = vrot.lane.b32.xlu1 %v4833_v53, %s4530_s10 }
 0x1c9   : > { %9792 = vst [vmem:[#allocation80_spill] sm:$0xff] %v5203_v25  ;;  %v5207_v51 = vpop.permute.xlu0 %580 }
 0x1ca   : > { %9793 = vst [vmem:[#allocation81_spill] sm:$0xff] %v5207_v51  ;;  %1438 = vrot.lane.b32.xlu0 %v4808_v43, %s4534_s13 }
 0x1cc   : > { %v5211_v46 = vpop.permute.xlu1 %582  ;;  %1237 = vrot.lane.b32.xlu1 %v4840_v55, %s4530_s10 }
 0x1cd   : > { %9794 = vst [vmem:[#allocation82_spill] sm:$0xff] %v5211_v46  ;;  %v5215_v20 = vpop.permute.xlu0 %451 }
 0x1ce   : > { %9795 = vst [vmem:[#allocation83_spill] sm:$0xff] %v5215_v20  ;;  %1450 = vrot.lane.b32.xlu0 %v4814_v44, %s4534_s13 }
 0x1d0   : > { %v5219_v16 = vpop.permute.xlu1 %453  ;;  %1385 = vperm.xlu1 %4354, %v4701_v14  }
 0x1d1   : > { %9796 = vst [vmem:[#allocation84_spill] sm:$0xff] %v5219_v16  ;;  %v5222_v2 = vpop.permute.xlu0 %680 }
 0x1d2   : > { %9797 = vst [vmem:[#allocation85_spill] sm:$0xff] %v5222_v2  ;;  %1118 = vrot.lane.b32.xlu0 %v4846_v58, %s4529_s26  ;;  %v9801_v2 = vmov 0.0  }
 0x1d4   : > { %1436 = vrot.lane.b32.xlu1 %v4798_v40, %s4534_s13  ;;  %v5228_v51 = vpop.permute.xlu1 %682 }
 0x1d5   : > { %9798 = vst [vmem:[#allocation86_spill] sm:$0xff] %v5228_v51  ;;  %v3311_v38 = vpop.f32.mrb[12].mxu0  ;;  %4355 = vset.pattern.permute.xlu1 %v9799_v6  ;;  %v5232_v31 = vpop.permute.xlu0 %788 }
 0x1d6   : > { %9800 = vst [vmem:[#allocation87_spill] sm:$0xff] %v5232_v31  ;;  %1130 = vrot.lane.b32.xlu0 %v4851_v59, %s4529_s26  ;;  %4188 = vmatmul.mubr.msk.f32.vlgmr.msra.gmra.mrb[16].mxu0 %vm9409_vm1, %v3311_v38  ;;  %v3313_v16 = vpop.f32.mrb[13].mxu0  ;;  %v9220_v38 = vmov 12  }
 0x1d7   : > { %3510 = vmatpush1.msra.mxu0 %v3424_v11  ;;  %3397 = vmatprep.mubr.f32.mxu0 %v9801_v2 }
 0x1d8   : > { %1448 = vrot.lane.b32.xlu1 %v4804_v41, %s4534_s13  ;;  %v5243_v31 = vpop.permute.xlu1 %790 }
 0x1d9   : > { %v3316_v51 = vpop.f32.mrb[14].mxu0  ;;  %9802 = vst [vmem:[#allocation88_spill] sm:$0xff] %v5243_v31  ;;  %v5246_v46 = vpop.permute.xlu0 %463 }
 0x1da   : > { %1331 = vrot.lane.b32.xlu0 %v4818_v47, %s4532_s12  ;;  %4189 = vmatmul.mubr.msk.f32.gmra.mrb[18].mxu0 %vm9409_vm1, %v3316_v51  ;;  %v3318_v25 = vpop.f32.mrb[15].mxu0  ;;  %9803 = vst [vmem:[#allocation89_spill] sm:$0xff] %v5246_v46 }
 0x1db   : > { %3573 = vmatprep.mubr.f32.mxu0 %v9801_v2 }
 0x1dc   : > { %1591 = vperm.xlu1 %4355, %v4678_v4   ;;  %v5252_v11 = vpop.permute.xlu1 %465 }
 0x1dd   : > { %9804 = vst [vmem:[#allocation90_spill] sm:$0xff] %v5252_v11  ;;  %v5255_v16 = vpop.permute.xlu0 %692 }
 0x1de   : > { %1343 = vrot.lane.b32.xlu0 %v4824_v48, %s4532_s12  ;;  %9805 = vst [vmem:[#allocation91_spill] sm:$0xff] %v5255_v16 }
 0x1e0   : > { %4356 = vset.pattern.permute.xlu1 %v9220_v38  ;;  %v5260_v25 = vpop.permute.xlu1 %694 }
 0x1e1   : > { %1762 = vperm.xlu1 %4356, %v4670_v3   ;;  %9806 = vst [vmem:[#allocation92_spill] sm:$0xff] %v5260_v25  ;;  %v5263_v51 = vpop.permute.xlu0 %800 }
 0x1e2   : > { %1490 = vperm.xlu0 %4353, %v4693_v12   ;;  %9807 = vst [vmem:[#allocation93_spill] sm:$0xff] %v5263_v51 }
 0x1e4   : > { %v5270_v38 = vpop.permute.xlu1 %802 }
 0x1e5   : > { %1766 = vperm.xlu1 %4356, %v4662_v1   ;;  %9808 = vst [vmem:[#allocation94_spill] sm:$0xff] %v5270_v38  ;;  %v5274_v2 = vpop.permute.xlu0 %572 }
 0x1e6   : > { %4357 = vset.pattern.permute.xlu0 %v9799_v6  ;;  %9809 = vst [vmem:[#allocation95_spill] sm:$0xff] %v5274_v2 }
 0x1e7   : > { %1595 = vperm.xlu0 %4357, %v4686_v5  }
 0x1e8   : > { %v5280_v31 = vpop.permute.xlu1 %1006 }
 0x1e9   : > { %1120 = vrot.lane.b32.xlu1 %v4860_v62, %s4529_s26  ;;  %9810 = vst [vmem:[#allocation96_spill] sm:$0xff] %v5280_v31 }
 0x1ea   : > { %4358 = vset.pattern.permute.xlu1 %v9779_v26  ;;  %v5284_v26 = vpop.permute.xlu0 %584 }
 0x1eb   : > { %1547 = vrot.lane.b32.xlu0 %v4808_v43, %s4536_s17  ;;  %9811 = vst [vmem:[#allocation97_spill] sm:$0xff] %v5284_v26  ;;  %v9816_v26 = vmov 11  }
 0x1ec   : > { %v5290_v38 = vpop.permute.xlu1 %1018 }
 0x1ed   : > { %1132 = vrot.lane.b32.xlu1 %v4864_v63, %s4529_s26  ;;  %9812 = vst [vmem:[#allocation98_spill] sm:$0xff] %v5290_v38  ;;  %s4542_s26 = smov 126  }
 0x1ee   : > { %v5293_v25 = vpop.permute.xlu0 %1016 }
 0x1ef   : > { %1559 = vrot.lane.b32.xlu0 %v4814_v44, %s4536_s17  ;;  %9813 = vst [vmem:[#allocation99_spill] sm:$0xff] %v5293_v25 }
 0x1f1   : > { %1333 = vrot.lane.b32.xlu1 %v4833_v53, %s4532_s12 }
 0x1f3   : > { %1227 = vrot.lane.b32.xlu0 %v4846_v58, %s4530_s10 }
 0x1f5   : > { %1345 = vrot.lane.b32.xlu1 %v4840_v55, %s4532_s12 }
 0x1f7   : > { %1239 = vrot.lane.b32.xlu0 %v4851_v59, %s4530_s10 }
 0x1f9   : > { %1494 = vperm.xlu1 %4358, %v4701_v14  }
 0x1fb   : > { %1440 = vrot.lane.b32.xlu0 %v4818_v47, %s4534_s13 }
 0x1fd   : > { %1545 = vrot.lane.b32.xlu1 %v4798_v40, %s4536_s17  ;;  %v5299_v31 = vpop.permute.xlu1 %1168 }
 0x1fe   : > { %9814 = vst [vmem:[#allocation100_spill] sm:$0xff] %v5299_v31  ;;  %v5301_v11 = vpop.permute.xlu0 %1164  ;;  %4359 = vset.pattern.permute.xlu1 %v9816_v26 }
 0x1ff   : > { %9815 = vst [vmem:[#allocation101_spill] sm:$0xff] %v5301_v11  ;;  %1452 = vrot.lane.b32.xlu0 %v4824_v48, %s4534_s13  ;;  %v9238_v11 = vmov 13  }
 0x201   : > { %1557 = vrot.lane.b32.xlu1 %v4804_v41, %s4536_s17  ;;  %v5308_v38 = vpop.permute.xlu1 %1219 }
 0x202   : > { %9817 = vst [vmem:[#allocation102_spill] sm:$0xff] %v5308_v38 }
 0x203   : > { %1599 = vperm.xlu0 %4357, %v4693_v12   ;;  %v5311_v2 = vpop.permute.xlu0 %1269 }
 0x204   : > { %9818 = vst [vmem:[#allocation103_spill] sm:$0xff] %v5311_v2 }
 0x205   : > { %1699 = vperm.xlu1 %4359, %v4678_v4   ;;  %v5314_v25 = vpop.permute.xlu1 %1231 }
 0x206   : > { %9819 = vst [vmem:[#allocation104_spill] sm:$0xff] %v5314_v25 }
 0x207   : > { %4361 = vset.pattern.permute.xlu0 %v9816_v26  ;;  %v5317_v31 = vpop.permute.xlu0 %1221 }
 0x208   : > { %9820 = vst [vmem:[#allocation105_spill] sm:$0xff] %v5317_v31  ;;  %1703 = vperm.xlu0 %4361, %v4686_v5   ;;  %v9299_v31 = vmov 16  }
 0x209   : > { %4360 = vset.pattern.permute.xlu1 %v9238_v11  ;;  %v5321_v51 = vpop.permute.xlu1 %1373 }
 0x20a   : > { %9821 = vst [vmem:[#allocation106_spill] sm:$0xff] %v5321_v51  ;;  %1847 = vperm.xlu1 %4360, %v4670_v3  }
 0x20b   : > { %v5324_v38 = vpop.permute.xlu0 %1233 }
 0x20c   : > { %9822 = vst [vmem:[#allocation107_spill] sm:$0xff] %v5324_v38  ;;  %1655 = vrot.lane.b32.xlu0 %v4808_v43, %s4538_s18 }
 0x20e   : > { %1851 = vperm.xlu1 %4360, %v4662_v1   ;;  %v5329_v2 = vpop.permute.xlu1 %1583 }
 0x20f   : > { %9823 = vst [vmem:[#allocation108_spill] sm:$0xff] %v5329_v2  ;;  %v5331_v25 = vpop.permute.xlu0 %898 }
 0x210   : > { %9824 = vst [vmem:[#allocation109_spill] sm:$0xff] %v5331_v25  ;;  %1667 = vrot.lane.b32.xlu0 %v4814_v44, %s4538_s18  ;;  %v9254_v25 = vmov 14  }
 0x212   : > { %1229 = vrot.lane.b32.xlu1 %v4860_v62, %s4530_s10  ;;  %v5337_v11 = vpop.permute.xlu1 %1587 }
 0x213   : > { %9825 = vst [vmem:[#allocation110_spill] sm:$0xff] %v5337_v11  ;;  %v5339_v51 = vpop.permute.xlu0 %910  ;;  %4362 = vset.pattern.permute.xlu1 %v9799_v6 }
 0x214   : > { %9826 = vst [vmem:[#allocation111_spill] sm:$0xff] %v5339_v51  ;;  %1335 = vrot.lane.b32.xlu0 %v4846_v58, %s4532_s12 }
 0x216   : > { %1241 = vrot.lane.b32.xlu1 %v4864_v63, %s4530_s10  ;;  %v5346_v1 = vpop.permute.xlu1 %900 }
 0x217   : > { %9827 = vst [vmem:[#allocation112_spill] sm:$0xff] %v5346_v1  ;;  %v5348_v2 = vpop.permute.xlu0 %1114 }
 0x218   : > { %9828 = vst [vmem:[#allocation113_spill] sm:$0xff] %v5348_v2  ;;  %1347 = vrot.lane.b32.xlu0 %v4851_v59, %s4532_s12 }
 0x21a   : > { %1442 = vrot.lane.b32.xlu1 %v4833_v53, %s4534_s13  ;;  %v5354_v11 = vpop.permute.xlu1 %912 }
 0x21b   : > { %9829 = vst [vmem:[#allocation114_spill] sm:$0xff] %v5354_v11  ;;  %v5356_v51 = vpop.permute.xlu0 %1126 }
 0x21c   : > { %9830 = vst [vmem:[#allocation115_spill] sm:$0xff] %v5356_v51  ;;  %1549 = vrot.lane.b32.xlu0 %v4818_v47, %s4536_s17 }
 0x21e   : > { %1454 = vrot.lane.b32.xlu1 %v4840_v55, %s4534_s13  ;;  %v5362_v6 = vpop.permute.xlu1 %1116 }
 0x21f   : > { %9831 = vst [vmem:[#allocation116_spill] sm:$0xff] %v5362_v6  ;;  %v5364_v1 = vpop.permute.xlu0 %1273  ;;  %v9836_v6 = vmov 13  }
 0x220   : > { %9832 = vst [vmem:[#allocation117_spill] sm:$0xff] %v5364_v1  ;;  %1561 = vrot.lane.b32.xlu0 %v4824_v48, %s4536_s17 }
 0x222   : > { %1603 = vperm.xlu1 %4362, %v4701_v14   ;;  %v5369_v2 = vpop.permute.xlu1 %1128 }
 0x223   : > { %9833 = vst [vmem:[#allocation118_spill] sm:$0xff] %v5369_v2 }
 0x224   : > { %1707 = vperm.xlu0 %4361, %v4693_v12   ;;  %v5372_v11 = vpop.permute.xlu0 %1377 }
 0x225   : > { %9834 = vst [vmem:[#allocation119_spill] sm:$0xff] %v5372_v11 }
 0x226   : > { %1653 = vrot.lane.b32.xlu1 %v4798_v40, %s4538_s18  ;;  %v5376_v51 = vpop.permute.xlu1 %1277 }
 0x227   : > { %9835 = vst [vmem:[#allocation120_spill] sm:$0xff] %v5376_v51  ;;  %4363 = vset.pattern.permute.xlu1 %v9254_v25 }
 0x228   : > { %4367 = vset.pattern.permute.xlu0 %v9836_v6  ;;  %v5380_v1 = vpop.permute.xlu0 %1329 }
 0x229   : > { %9837 = vst [vmem:[#allocation121_spill] sm:$0xff] %v5380_v1  ;;  %1859 = vperm.xlu0 %4367, %v4686_v5   ;;  %v9842_v1 = vmov 12  }
 0x22a   : > { %1665 = vrot.lane.b32.xlu1 %v4804_v41, %s4538_s18  ;;  %v5385_v2 = vpop.permute.xlu1 %1327 }
 0x22b   : > { %9838 = vst [vmem:[#allocation122_spill] sm:$0xff] %v5385_v2 }
 0x22c   : > { %v5387_v11 = vpop.permute.xlu0 %1341 }
 0x22d   : > { %9839 = vst [vmem:[#allocation123_spill] sm:$0xff] %v5387_v11  ;;  %1444 = vrot.lane.b32.xlu0 %v4846_v58, %s4534_s13 }
 0x22e   : > { %1955 = vperm.xlu1 %4363, %v4670_v3   ;;  %v5392_v51 = vpop.permute.xlu1 %1339 }
 0x22f   : > { %9840 = vst [vmem:[#allocation124_spill] sm:$0xff] %v5392_v51 }
 0x230   : > { %v5394_v25 = vpop.permute.xlu0 %1008 }
 0x231   : > { %9841 = vst [vmem:[#allocation125_spill] sm:$0xff] %v5394_v25  ;;  %1456 = vrot.lane.b32.xlu0 %v4851_v59, %s4534_s13 }
 0x232   : > { %4364 = vset.pattern.permute.xlu1 %v9842_v1  ;;  %v5399_v38 = vpop.permute.xlu1 %1482 }
 0x233   : > { %9843 = vst [vmem:[#allocation126_spill] sm:$0xff] %v5399_v38  ;;  %1770 = vperm.xlu1 %4364, %v4678_v4  }
 0x234   : > { %v5402_v2 = vpop.permute.xlu0 %1020 }
 0x235   : > { %9844 = vst [vmem:[#allocation127_spill] sm:$0xff] %v5402_v2  ;;  %1657 = vrot.lane.b32.xlu0 %v4818_v47, %s4538_s18 }
 0x237   : > { %1774 = vperm.xlu1 %4364, %v4686_v5   ;;  %v5407_v3 = vpop.permute.xlu1 %1691 }
 0x238   : > { %9845 = vst [vmem:[#allocation128_spill] sm:$0xff] %v5407_v3  ;;  %v5409_v51 = vpop.permute.xlu0 %1223 }
 0x239   : > { %9846 = vst [vmem:[#allocation129_spill] sm:$0xff] %v5409_v51  ;;  %1669 = vrot.lane.b32.xlu0 %v4824_v48, %s4538_s18  ;;  %v5478_v51 = vld [vmem:[%s9131_s3] sm:$0xff] }
 0x23b   : > { %1337 = vrot.lane.b32.xlu1 %v4860_v62, %s4532_s12  ;;  %v5415_v38 = vpop.permute.xlu1 %1695 }
 0x23c   : > { %9847 = vst [vmem:[#allocation130_spill] sm:$0xff] %v5415_v38  ;;  %v5417_v4 = vpop.permute.xlu0 %1235  ;;  %4365 = vset.pattern.permute.xlu1 %v9816_v26 }
 0x23d   : > { %9848 = vst [vmem:[#allocation131_spill] sm:$0xff] %v5417_v4  ;;  %1809 = vrot.lane.b32.xlu0 %v4798_v40, %s4540_s19 }
 0x23f   : > { %1349 = vrot.lane.b32.xlu1 %v4864_v63, %s4532_s12  ;;  %v5424_v5 = vpop.permute.xlu1 %1010  ;;  %s4551_s12 = smov 110  }
 0x240   : > { %9849 = vst [vmem:[#allocation132_spill] sm:$0xff] %v5424_v5  ;;  %v5426_v3 = vpop.permute.xlu0 %1381 }
 0x241   : > { %9850 = vst [vmem:[#allocation133_spill] sm:$0xff] %v5426_v3  ;;  %1821 = vrot.lane.b32.xlu0 %v4804_v41, %s4540_s19 }
 0x243   : > { %1551 = vrot.lane.b32.xlu1 %v4833_v53, %s4536_s17  ;;  %v5432_v38 = vpop.permute.xlu1 %1022 }
 0x244   : > { %9851 = vst [vmem:[#allocation134_spill] sm:$0xff] %v5432_v38 }
 0x245   : > { %1553 = vrot.lane.b32.xlu0 %v4846_v58, %s4536_s17  ;;  %v5436_v26 = vpop.permute.xlu0 %1486 }
 0x246   : > { %9852 = vst [vmem:[#allocation135_spill] sm:$0xff] %v5436_v26 }
 0x247   : > { %1563 = vrot.lane.b32.xlu1 %v4840_v55, %s4536_s17  ;;  %v5440_v4 = vpop.permute.xlu1 %1225 }
 0x248   : > { %9853 = vst [vmem:[#allocation136_spill] sm:$0xff] %v5440_v4  ;;  %v5458_v4 = vld [vmem:[%s9131_s3 + $0x10] sm:$0xff] }
 0x249   : > { %1565 = vrot.lane.b32.xlu0 %v4851_v59, %s4536_s17  ;;  %v5444_v5 = vpop.permute.xlu0 %1438 }
 0x24a   : > { %9854 = vst [vmem:[#allocation137_spill] sm:$0xff] %v5444_v5  ;;  %v9858_v5 = vmov 14  }
 0x24b   : > { %1711 = vperm.xlu1 %4365, %v4701_v14   ;;  %v5447_v3 = vpop.permute.xlu1 %1237 }
 0x24c   : > { %9855 = vst [vmem:[#allocation138_spill] sm:$0xff] %v5447_v3 }
 0x24d   : > { %1863 = vperm.xlu0 %4367, %v4693_v12   ;;  %v5450_v38 = vpop.permute.xlu0 %1450  ;;  %v5467_v12 = vld [vmem:[%s9131_s3 + $0x8] sm:$0xff] }
 0x24e   : > { %9856 = vst [vmem:[#allocation139_spill] sm:$0xff] %v5450_v38 }
 0x24f   : > { %4366 = vset.pattern.permute.xlu1 %v9836_v6  ;;  %v5453_v26 = vpop.permute.xlu1 %1385 }
 0x250   : > { %9857 = vst [vmem:[#allocation140_spill] sm:$0xff] %v5453_v26  ;;  %1855 = vperm.xlu1 %4366, %v5458_v4   ;;  %v9276_v26 = vmov 15  }
 0x251   : > { %4372 = vset.pattern.permute.xlu0 %v9858_v5  ;;  %v5462_v14 = vpop.permute.xlu0 %1118 }
 0x252   : > { %9859 = vst [vmem:[#allocation141_spill] sm:$0xff] %v5462_v14  ;;  %1959 = vperm.xlu0 %4372, %v5467_v12  }
 0x253   : > { %v5470_v3 = vpop.permute.xlu1 %1436 }
 0x254   : > { %9860 = vst [vmem:[#allocation142_spill] sm:$0xff] %v5470_v3  ;;  %4368 = vset.pattern.permute.xlu1 %v9276_v26 }
 0x255   : > { %v5473_v38 = vpop.permute.xlu0 %1130  ;;  %2063 = vperm.xlu1 %4368, %v5478_v51  }
 0x256   : > { %9861 = vst [vmem:[#allocation143_spill] sm:$0xff] %v5473_v38  ;;  %1963 = vperm.xlu0 %4372, %v5458_v4  }
 0x257   : > { %v5482_v14 = vpop.permute.xlu1 %1448 }
 0x258   : > { %9862 = vst [vmem:[#allocation144_spill] sm:$0xff] %v5482_v14 }
 0x259   : > { %v5484_v25 = vpop.permute.xlu0 %1331  ;;  %2067 = vperm.xlu1 %4368, %v5467_v12  }
 0x25a   : > { %9863 = vst [vmem:[#allocation145_spill] sm:$0xff] %v5484_v25  ;;  %1919 = vrot.lane.b32.xlu0 %v4808_v43, %s4542_s26 }
 0x25b   : > { %v5489_v26 = vpop.permute.xlu1 %1591 }
 0x25c   : > { %9864 = vst [vmem:[#allocation146_spill] sm:$0xff] %v5489_v26 }
 0x25d   : > { %v5491_v3 = vpop.permute.xlu0 %1343  ;;  %1446 = vrot.lane.b32.xlu1 %v4860_v62, %s4534_s13 }
 0x25e   : > { %9865 = vst [vmem:[#allocation147_spill] sm:$0xff] %v5491_v3  ;;  %1931 = vrot.lane.b32.xlu0 %v4814_v44, %s4542_s26  ;;  %4369 = vset.pattern.permute.xlu1 %v9858_v5 }
 0x260   : > { %v5498_v14 = vpop.permute.xlu1 %1762 }
 0x261   : > { %9866 = vst [vmem:[#allocation148_spill] sm:$0xff] %v5498_v14  ;;  %v5500_v25 = vpop.permute.xlu0 %1490  ;;  %1458 = vrot.lane.b32.xlu1 %v4864_v63, %s4534_s13 }
 0x262   : > { %9867 = vst [vmem:[#allocation149_spill] sm:$0xff] %v5500_v25  ;;  %1661 = vrot.lane.b32.xlu0 %v4846_v58, %s4538_s18 }
 0x264   : > { %v5506_v26 = vpop.permute.xlu1 %1766 }
 0x265   : > { %9868 = vst [vmem:[#allocation150_spill] sm:$0xff] %v5506_v26  ;;  %1659 = vrot.lane.b32.xlu1 %v4833_v53, %s4538_s18 }
 0x266   : > { %1673 = vrot.lane.b32.xlu0 %v4851_v59, %s4538_s18  ;;  %v5512_v3 = vpop.permute.xlu0 %1595 }
 0x267   : > { %9869 = vst [vmem:[#allocation151_spill] sm:$0xff] %v5512_v3 }
 0x268   : > { %v5514_v38 = vpop.permute.xlu1 %1120 }
 0x269   : > { %9870 = vst [vmem:[#allocation152_spill] sm:$0xff] %v5514_v38  ;;  %1671 = vrot.lane.b32.xlu1 %v4840_v55, %s4538_s18  ;;  %v5537_v38 = vld [vmem:[%s9131_s3 + $0x20] sm:$0xff] }
 0x26a   : > { %1813 = vrot.lane.b32.xlu0 %v4818_v47, %s4540_s19  ;;  %v5520_v14 = vpop.permute.xlu0 %1547 }
 0x26b   : > { %9871 = vst [vmem:[#allocation153_spill] sm:$0xff] %v5520_v14 }
 0x26c   : > { %v5522_v25 = vpop.permute.xlu1 %1132 }
 0x26d   : > { %9872 = vst [vmem:[#allocation154_spill] sm:$0xff] %v5522_v25  ;;  %1811 = vrot.lane.b32.xlu1 %v4808_v43, %s4540_s19 }
 0x26e   : > { %1825 = vrot.lane.b32.xlu0 %v4824_v48, %s4540_s19  ;;  %v5528_v26 = vpop.permute.xlu0 %1559 }
 0x26f   : > { %9873 = vst [vmem:[#allocation155_spill] sm:$0xff] %v5528_v26  ;;  %v5547_v26 = vld [vmem:[%s9131_s3 + $0x18] sm:$0xff] }
 0x270   : > { %v5530_v3 = vpop.permute.xlu1 %1333 }
 0x271   : > { %9874 = vst [vmem:[#allocation156_spill] sm:$0xff] %v5530_v3  ;;  %1823 = vrot.lane.b32.xlu1 %v4814_v44, %s4540_s19  ;;  %v9877_v3 = vmov 15  }
 0x272   : > { %1971 = vperm.xlu0 %4372, %v5537_v38   ;;  %v5540_v25 = vpop.permute.xlu0 %1227 }
 0x273   : > { %9875 = vst [vmem:[#allocation157_spill] sm:$0xff] %v5540_v25 }
 0x274   : > { %v5542_v14 = vpop.permute.xlu1 %1345 }
 0x275   : > { %9876 = vst [vmem:[#allocation158_spill] sm:$0xff] %v5542_v14  ;;  %1967 = vperm.xlu1 %4369, %v5547_v26  }
 0x276   : > { %4376 = vset.pattern.permute.xlu0 %v9877_v3  ;;  %v5551_v2 = vpop.permute.xlu0 %1239 }
 0x277   : > { %9878 = vst [vmem:[#allocation159_spill] sm:$0xff] %v5551_v2  ;;  %2075 = vperm.xlu0 %4376, %v5547_v26  }
 0x278   : > { %v5554_v11 = vpop.permute.xlu1 %1494 }
 0x279   : > { %9879 = vst [vmem:[#allocation160_spill] sm:$0xff] %v5554_v11  ;;  %4370 = vset.pattern.permute.xlu1 %v9299_v31 }
 0x27a   : > { %v5557_v25 = vpop.permute.xlu0 %1440  ;;  %2173 = vperm.xlu1 %4370, %v5478_v51  }
 0x27b   : > { %9880 = vst [vmem:[#allocation161_spill] sm:$0xff] %v5557_v25  ;;  %2027 = vrot.lane.b32.xlu0 %v4808_v43, %s4544_s22 }
 0x27c   : > { %v5562_v14 = vpop.permute.xlu1 %1545 }
 0x27d   : > { %9881 = vst [vmem:[#allocation162_spill] sm:$0xff] %v5562_v14  ;;  %v5579_v14 = vld [vmem:[%s9131_s3 + $0x28] sm:$0xff] }
 0x27e   : > { %v5564_v16 = vpop.permute.xlu0 %1452  ;;  %4371 = vset.pattern.permute.xlu1 %v9842_v1 }
 0x27f   : > { %9882 = vst [vmem:[#allocation163_spill] sm:$0xff] %v5564_v16  ;;  %2039 = vrot.lane.b32.xlu0 %v4814_v44, %s4544_s22  ;;  %1778 = vperm.xlu1 %4371, %v5537_v38   ;;  %v9890_v16 = vmov 16  }
 0x280   : > { %v5570_v31 = vpop.permute.xlu1 %1557 }
 0x281   : > { %9883 = vst [vmem:[#allocation164_spill] sm:$0xff] %v5570_v31 }
 0x282   : > { %v5572_v11 = vpop.permute.xlu0 %1599 }
 0x283   : > { %9884 = vst [vmem:[#allocation165_spill] sm:$0xff] %v5572_v11  ;;  %1921 = vrot.lane.b32.xlu0 %v4818_v47, %s4542_s26  ;;  %1782 = vperm.xlu1 %4371, %v5579_v14  }
 0x284   : > { %v5582_v1 = vpop.permute.xlu1 %1699 }
 0x285   : > { %9885 = vst [vmem:[#allocation166_spill] sm:$0xff] %v5582_v1 }
 0x287   : > { %1933 = vrot.lane.b32.xlu0 %v4824_v48, %s4542_s26  ;;  %v5586_v25 = vpop.permute.xlu0 %1703  ;;  %1555 = vrot.lane.b32.xlu1 %v4860_v62, %s4536_s17 }
 0x288   : > { %9886 = vst [vmem:[#allocation167_spill] sm:$0xff] %v5586_v25  ;;  %4373 = vset.pattern.permute.xlu1 %v9836_v6 }
 0x289   : > { %v5591_v31 = vpop.permute.xlu1 %1847 }
 0x28a   : > { %9887 = vst [vmem:[#allocation168_spill] sm:$0xff] %v5591_v31 }
 0x28b   : > { %2079 = vperm.xlu0 %4376, %v5537_v38   ;;  %v5594_v11 = vpop.permute.xlu0 %1655  ;;  %1567 = vrot.lane.b32.xlu1 %v4864_v63, %s4536_s17  ;;  %s4545_s17 = smov 113  }
 0x28c   : > { %9888 = vst [vmem:[#allocation169_spill] sm:$0xff] %v5594_v11 }
 0x28d   : > { %v5598_v1 = vpop.permute.xlu1 %1851 }
 0x28e   : > { %9889 = vst [vmem:[#allocation170_spill] sm:$0xff] %v5598_v1 }
 0x28f   : > { %4380 = vset.pattern.permute.xlu0 %v9890_v16  ;;  %v5601_v2 = vpop.permute.xlu0 %1667  ;;  %1867 = vperm.xlu1 %4373, %v5579_v14  }
 0x290   : > { %9891 = vst [vmem:[#allocation171_spill] sm:$0xff] %v5601_v2  ;;  %2177 = vperm.xlu0 %4380, %v5467_v12  }
 0x291   : > { %v5605_v6 = vpop.permute.xlu1 %1229 }
 0x292   : > { %9892 = vst [vmem:[#allocation172_spill] sm:$0xff] %v5605_v6 }
 0x293   : > { %v5607_v25 = vpop.permute.xlu0 %1335  ;;  %1917 = vrot.lane.b32.xlu1 %v4798_v40, %s4542_s26 }
 0x294   : > { %9893 = vst [vmem:[#allocation173_spill] sm:$0xff] %v5607_v25  ;;  %2185 = vperm.xlu0 %4380, %v5547_v26   ;;  %4374 = vset.pattern.permute.xlu1 %v9877_v3 }
 0x295   : > { %v5613_v31 = vpop.permute.xlu1 %1241 }
 0x296   : > { %9894 = vst [vmem:[#allocation174_spill] sm:$0xff] %v5613_v31 }
 0x297   : > { %v5615_v1 = vpop.permute.xlu0 %1347  ;;  %1929 = vrot.lane.b32.xlu1 %v4804_v41, %s4542_s26 }
 0x298   : > { %9895 = vst [vmem:[#allocation175_spill] sm:$0xff] %v5615_v1  ;;  %2137 = vrot.lane.b32.xlu0 %v4808_v43, %s4545_s17  ;;  %v9320_v1 = vmov 17  }
 0x299   : > { %v5621_v6 = vpop.permute.xlu1 %1442 }
 0x29a   : > { %9896 = vst [vmem:[#allocation176_spill] sm:$0xff] %v5621_v6 }
 0x29b   : > { %v5623_v25 = vpop.permute.xlu0 %1549  ;;  %2071 = vperm.xlu1 %4374, %v5458_v4  }
 0x29c   : > { %9897 = vst [vmem:[#allocation177_spill] sm:$0xff] %v5623_v25  ;;  %2149 = vrot.lane.b32.xlu0 %v4814_v44, %s4545_s17 }
 0x29d   : > { %v5628_v11 = vpop.permute.xlu1 %1454 }
 0x29e   : > { %9898 = vst [vmem:[#allocation178_spill] sm:$0xff] %v5628_v11 }
 0x29f   : > { %v5630_v31 = vpop.permute.xlu0 %1561  ;;  %4375 = vset.pattern.permute.xlu1 %v9320_v1 }
 0x2a0   : > { %9899 = vst [vmem:[#allocation179_spill] sm:$0xff] %v5630_v31  ;;  %1817 = vrot.lane.b32.xlu0 %v4846_v58, %s4540_s19  ;;  %2282 = vperm.xlu1 %4375, %v5478_v51  }
 0x2a1   : > { %v5636_v6 = vpop.permute.xlu1 %1603 }
 0x2a2   : > { %9900 = vst [vmem:[#allocation180_spill] sm:$0xff] %v5636_v6 }
 0x2a3   : > { %v5638_v25 = vpop.permute.xlu0 %1707 }
 0x2a4   : > { %9901 = vst [vmem:[#allocation181_spill] sm:$0xff] %v5638_v25  ;;  %1829 = vrot.lane.b32.xlu0 %v4851_v59, %s4540_s19  ;;  %2286 = vperm.xlu1 %4375, %v5467_v12  }
 0x2a5   : > { %v5643_v11 = vpop.permute.xlu1 %1653 }
 0x2a6   : > { %9902 = vst [vmem:[#allocation182_spill] sm:$0xff] %v5643_v11 }
 0x2a8   : > { %2029 = vrot.lane.b32.xlu0 %v4818_v47, %s4544_s22  ;;  %v5647_v1 = vpop.permute.xlu0 %1859  ;;  %1663 = vrot.lane.b32.xlu1 %v4860_v62, %s4538_s18 }
 0x2a9   : > { %9903 = vst [vmem:[#allocation183_spill] sm:$0xff] %v5647_v1  ;;  %v5651_v31 = vpop.permute.xlu1 %1665  ;;  %4377 = vset.pattern.permute.xlu1 %v9858_v5  ;;  %v3393_v6 = vpop.f32.mrb[16].mxu0 }
 0x2aa   : > { %9904 = vst [vmem:[#allocation184_spill] sm:$0xff] %v5651_v31  ;;  %v3395_v25 = vpop.f32.mrb[17].mxu0 }
 0x2ac   : > { %2041 = vrot.lane.b32.xlu0 %v4824_v48, %s4544_s22  ;;  %v5656_v2 = vpop.permute.xlu0 %1444  ;;  %1675 = vrot.lane.b32.xlu1 %v4864_v63, %s4538_s18  ;;  %s4547_s18 = smov 112  }
 0x2ad   : > { %9905 = vst [vmem:[#allocation185_spill] sm:$0xff] %v5656_v2  ;;  %v5660_v11 = vpop.permute.xlu1 %1955  ;;  %v3399_v1 = vpop.f32.mrb[18].mxu0  ;;  %v9909_v2 = vmov 17  }
 0x2ae   : > { %9906 = vst [vmem:[#allocation186_spill] sm:$0xff] %v5660_v11  ;;  %v3404_v28 = vadd.f32 1e-15, %v3399_v1  ;;  %v3401_v35 = vpop.f32.mrb[19].mxu0  ;;  %v9346_v1 = vlaneseq }
 0x2af   : > { %v3405_v46 = vadd.f32 1e-15, %v3401_v35 }
 0x2b0   : > { %2189 = vperm.xlu0 %4380, %v5537_v38   ;;  %v5663_v31 = vpop.permute.xlu0 %1456  ;;  %1815 = vrot.lane.b32.xlu1 %v4833_v53, %s4540_s19  ;;  %4415 = vrcp.f32 %v3404_v28  ;;  %v5685_v23 = vshrl.u32 %v9346_v1, 7 }
 0x2b1   : > { %9907 = vst [vmem:[#allocation187_spill] sm:$0xff] %v5663_v31  ;;  %4417 = vrcp.f32 %v3405_v46 }
 0x2b2   : > { %v5667_v5 = vpop.permute.xlu1 %1770 }
 0x2b3   : > { %9908 = vst [vmem:[#allocation188_spill] sm:$0xff] %v5667_v5 }
 0x2b4   : > { %4384 = vset.pattern.permute.xlu0 %v9909_v2  ;;  %v5670_v20 = vpop.permute.xlu0 %1657  ;;  %1827 = vrot.lane.b32.xlu1 %v4840_v55, %s4540_s19 }
 0x2b5   : > { %9910 = vst [vmem:[#allocation189_spill] sm:$0xff] %v5670_v20  ;;  %2294 = vperm.xlu0 %4384, %v5547_v26  }
 0x2b6   : > { %v5675_v35 = vpop.permute.xlu1 %1774 }
 0x2b7   : > { %9911 = vst [vmem:[#allocation190_spill] sm:$0xff] %v5675_v35 }
 0x2b8   : > { %v5677_v11 = vpop.permute.xlu0 %1669  ;;  %1975 = vperm.xlu1 %4377, %v5579_v14  }
 0x2b9   : > { %9912 = vst [vmem:[#allocation191_spill] sm:$0xff] %v5677_v11  ;;  %2246 = vrot.lane.b32.xlu0 %v4808_v43, %s4547_s18 }
 0x2ba   : > { %v4416_v5 = vpop.eup %4415  ;;  %v5682_v31 = vpop.permute.xlu1 %1337 }
 0x2bb   : > { %9913 = vst [vmem:[#allocation192_spill] sm:$0xff] %v5682_v31  ;;  %v4418_v20 = vpop.eup %4417  ;;  %v3408_v37 = vmul.f32 %v4416_v5, %v3404_v28  ;;  %v5697_v31 = vsub.s32 0, %v5685_v23 }
 0x2bc   : > { %v5687_v27 = vpop.permute.xlu0 %1809  ;;  %2025 = vrot.lane.b32.xlu1 %v4798_v40, %s4544_s22  ;;  %v3409_v35 = vmul.f32 %v4418_v20, %v3405_v46 }
 0x2bd   : > { %9914 = vst [vmem:[#allocation193_spill] sm:$0xff] %v5687_v27  ;;  %v3410_v11 = vsub.f32 2.0, %v3408_v37  ;;  %2258 = vrot.lane.b32.xlu0 %v4814_v44, %s4547_s18  ;;  %4378 = vset.pattern.permute.xlu1 %v9890_v16  ;;  %9916 = vst [vmem:[#allocation195_spill] sm:$0xff] %v5697_v31 }
 0x2be   : > { %v3411_v32 = vsub.f32 2.0, %v3409_v35  ;;  %v5694_v33 = vpop.permute.xlu1 %1349 }
 0x2bf   : > { %9915 = vst [vmem:[#allocation194_spill] sm:$0xff] %v5694_v33  ;;  %v3412_v1 = vmul.f32 %v4416_v5, %v3410_v11  ;;  %v9350_v5 = vmov 18  }
 0x2c0   : > { %v3413_v28 = vmul.f32 %v4418_v20, %v3411_v32  ;;  %v5699_v24 = vpop.permute.xlu0 %1821  ;;  %2037 = vrot.lane.b32.xlu1 %v4804_v41, %s4544_s22 }
 0x2c1   : > { %9917 = vst [vmem:[#allocation196_spill] sm:$0xff] %v5699_v24  ;;  %v3417_v37 = vrot.slane %v3412_v1, %v5697_v31  ;;  %1925 = vrot.lane.b32.xlu0 %v4846_v58, %s4542_s26 }
 0x2c2   : > { %v3421_v46 = vrot.slane %v3413_v28, %v5697_v31  ;;  %v5707_v35 = vpop.permute.xlu1 %1551 }
 0x2c3   : > { %9918 = vst [vmem:[#allocation197_spill] sm:$0xff] %v5707_v35  ;;  %v5709_v27 = vmul.f32 %v3417_v37, %v3393_v6  ;;  %v9363_v35 = vmov 19  }
 0x2c4   : > { %v5711_v33 = vpop.permute.xlu0 %1553  ;;  %2181 = vperm.xlu1 %4378, %v5458_v4   ;;  %v5714_v32 = vmul.f32 %v3421_v46, %v3395_v25 }
 0x2c5   : > { %9919 = vst [vmem:[#allocation198_spill] sm:$0xff] %v5709_v27  ;;  %9920 = vst [vmem:[#allocation199_spill] sm:$0xff] %v5711_v33  ;;  %1937 = vrot.lane.b32.xlu0 %v4851_v59, %s4542_s26 }
 0x2c6   : > { %9921 = vst [vmem:[#allocation200_spill] sm:$0xff] %v5714_v32  ;;  %v5718_v20 = vpop.permute.xlu1 %1563 }
 0x2c7   : > { %9922 = vst [vmem:[#allocation201_spill] sm:$0xff] %v5718_v20 }
 0x2c8   : > { %v5720_v11 = vpop.permute.xlu0 %1565  ;;  %4379 = vset.pattern.permute.xlu1 %v9350_v5 }
 0x2c9   : > { %9923 = vst [vmem:[#allocation202_spill] sm:$0xff] %v5720_v11  ;;  %2139 = vrot.lane.b32.xlu0 %v4818_v47, %s4545_s17  ;;  %2390 = vperm.xlu1 %4379, %v5478_v51  }
 0x2ca   : > { %v5726_v6 = vpop.permute.xlu1 %1711 }
 0x2cb   : > { %9924 = vst [vmem:[#allocation203_spill] sm:$0xff] %v5726_v6 }
 0x2cc   : > { %v5728_v1 = vpop.permute.xlu0 %1863 }
 0x2cd   : > { %9925 = vst [vmem:[#allocation204_spill] sm:$0xff] %v5728_v1  ;;  %2151 = vrot.lane.b32.xlu0 %v4824_v48, %s4545_s17  ;;  %2394 = vperm.xlu1 %4379, %v5467_v12  }
 0x2cf   : > { %v5733_v25 = vpop.permute.xlu1 %1855 }
 0x2d0   : > { %9926 = vst [vmem:[#allocation205_spill] sm:$0xff] %v5733_v25 }
 0x2d1   : > { %2298 = vperm.xlu0 %4384, %v5537_v38   ;;  %v5736_v28 = vpop.permute.xlu0 %1959  ;;  %1923 = vrot.lane.b32.xlu1 %v4833_v53, %s4542_s26 }
 0x2d2   : > { %9927 = vst [vmem:[#allocation206_spill] sm:$0xff] %v5736_v28  ;;  %4381 = vset.pattern.permute.xlu1 %v9877_v3 }
 0x2d4   : > { %v5741_v37 = vpop.permute.xlu1 %2063 }
 0x2d5   : > { %9928 = vst [vmem:[#allocation207_spill] sm:$0xff] %v5741_v37  ;;  %4388 = vset.pattern.permute.xlu0 %v9350_v5  ;;  %v5744_v46 = vpop.permute.xlu0 %1963  ;;  %1935 = vrot.lane.b32.xlu1 %v4840_v55, %s4542_s26 }
 0x2d6   : > { %9929 = vst [vmem:[#allocation208_spill] sm:$0xff] %v5744_v46  ;;  %2402 = vperm.xlu0 %4388, %v5547_v26   ;;  %v9945_v46 = vmov 19  }
 0x2d8   : > { %v5749_v32 = vpop.permute.xlu1 %2067 }
 0x2d9   : > { %9930 = vst [vmem:[#allocation209_spill] sm:$0xff] %v5749_v32  ;;  %v5751_v27 = vpop.permute.xlu0 %1919  ;;  %2083 = vperm.xlu1 %4381, %v5579_v14  }
 0x2da   : > { %9931 = vst [vmem:[#allocation210_spill] sm:$0xff] %v5751_v27  ;;  %2354 = vrot.lane.b32.xlu0 %v4808_v43, %s4549_s25 }
 0x2dc   : > { %v5756_v3 = vpop.permute.xlu1 %1446 }
 0x2dd   : > { %9932 = vst [vmem:[#allocation211_spill] sm:$0xff] %v5756_v3  ;;  %v5758_v5 = vpop.permute.xlu0 %1931  ;;  %2135 = vrot.lane.b32.xlu1 %v4798_v40, %s4545_s17 }
 0x2de   : > { %9933 = vst [vmem:[#allocation212_spill] sm:$0xff] %v5758_v5  ;;  %2366 = vrot.lane.b32.xlu0 %v4814_v44, %s4549_s25  ;;  %4382 = vset.pattern.permute.xlu1 %v9909_v2 }
 0x2e0   : > { %v5765_v37 = vpop.permute.xlu1 %1458 }
 0x2e1   : > { %9934 = vst [vmem:[#allocation213_spill] sm:$0xff] %v5765_v37  ;;  %v5767_v6 = vpop.permute.xlu0 %1661  ;;  %2147 = vrot.lane.b32.xlu1 %v4804_v41, %s4545_s17 }
 0x2e2   : > { %9935 = vst [vmem:[#allocation214_spill] sm:$0xff] %v5767_v6  ;;  %2033 = vrot.lane.b32.xlu0 %v4846_v58, %s4544_s22 }
 0x2e4   : > { %v5773_v3 = vpop.permute.xlu1 %1659 }
 0x2e5   : > { %9936 = vst [vmem:[#allocation215_spill] sm:$0xff] %v5773_v3  ;;  %v5775_v24 = vpop.permute.xlu0 %1673  ;;  %2290 = vperm.xlu1 %4382, %v5458_v4  }
 0x2e6   : > { %9937 = vst [vmem:[#allocation216_spill] sm:$0xff] %v5775_v24  ;;  %2045 = vrot.lane.b32.xlu0 %v4851_v59, %s4544_s22 }
 0x2e8   : > { %v5780_v20 = vpop.permute.xlu1 %1671 }
 0x2e9   : > { %9938 = vst [vmem:[#allocation217_spill] sm:$0xff] %v5780_v20  ;;  %v5782_v37 = vpop.permute.xlu0 %1813  ;;  %4383 = vset.pattern.permute.xlu1 %v9363_v35 }
 0x2ea   : > { %9939 = vst [vmem:[#allocation218_spill] sm:$0xff] %v5782_v37  ;;  %2248 = vrot.lane.b32.xlu0 %v4818_v47, %s4547_s18  ;;  %2499 = vperm.xlu1 %4383, %v5478_v51  }
 0x2ec   : > { %v5788_v3 = vpop.permute.xlu1 %1811 }
 0x2ed   : > { %9940 = vst [vmem:[#allocation219_spill] sm:$0xff] %v5788_v3  ;;  %v5790_v1 = vpop.permute.xlu0 %1825  ;;  %v5901_v3 = vsub.s32 1, %v5685_v23 }
 0x2ee   : > { %9941 = vst [vmem:[#allocation220_spill] sm:$0xff] %v5790_v1  ;;  %2260 = vrot.lane.b32.xlu0 %v4824_v48, %s4547_s18  ;;  %2503 = vperm.xlu1 %4383, %v5467_v12  }
 0x2ef   : > { %9968 = vst [vmem:[#allocation244_spill] sm:$0xff] %v5901_v3 }
 0x2f0   : > { %v5795_v20 = vpop.permute.xlu1 %1823 }
 0x2f1   : > { %9942 = vst [vmem:[#allocation221_spill] sm:$0xff] %v5795_v20  ;;  %v5797_v32 = vpop.permute.xlu0 %1971 }
 0x2f2   : > { %9943 = vst [vmem:[#allocation222_spill] sm:$0xff] %v5797_v32  ;;  %2406 = vperm.xlu0 %4388, %v5537_v38   ;;  %1819 = vrot.lane.b32.xlu1 %v4860_v62, %s4540_s19 }
 0x2f3   : > { %4385 = vset.pattern.permute.xlu1 %v9890_v16 }
 0x2f4   : > { %v5802_v35 = vpop.permute.xlu1 %1967 }
 0x2f5   : > { %9944 = vst [vmem:[#allocation223_spill] sm:$0xff] %v5802_v35 }
 0x2f6   : > { %4392 = vset.pattern.permute.xlu0 %v9945_v46  ;;  %v5806_v25 = vpop.permute.xlu0 %2075  ;;  %1831 = vrot.lane.b32.xlu1 %v4864_v63, %s4540_s19  ;;  %s4557_s19 = smov 96  }
 0x2f7   : > { %9946 = vst [vmem:[#allocation224_spill] sm:$0xff] %v5806_v25  ;;  %2511 = vperm.xlu0 %4392, %v5547_v26  }
 0x2f9   : > { %v5811_v28 = vpop.permute.xlu1 %2173 }
 0x2fa   : > { %9947 = vst [vmem:[#allocation225_spill] sm:$0xff] %v5811_v28  ;;  %v5813_v32 = vpop.permute.xlu0 %2027  ;;  %2031 = vrot.lane.b32.xlu1 %v4833_v53, %s4544_s22 }
 0x2fb   : > { %9948 = vst [vmem:[#allocation226_spill] sm:$0xff] %v5813_v32  ;;  %2463 = vrot.lane.b32.xlu0 %v4808_v43, %s4551_s12 }
 0x2fe   : > { %v5819_v16 = vpop.permute.xlu0 %2039  ;;  %v5821_v35 = vpop.permute.xlu1 %1778  ;;  %2043 = vrot.lane.b32.xlu1 %v4840_v55, %s4544_s22 }
 0x2ff   : > { %9949 = vst [vmem:[#allocation227_spill] sm:$0xff] %v5819_v16  ;;  %9950 = vst [vmem:[#allocation228_spill] sm:$0xff] %v5821_v35  ;;  %2475 = vrot.lane.b32.xlu0 %v4814_v44, %s4551_s12  ;;  %v9955_v35 = vmov 18  }
 0x302   : > { %v5827_v25 = vpop.permute.xlu0 %1921  ;;  %v5829_v28 = vpop.permute.xlu1 %1782  ;;  %2193 = vperm.xlu1 %4385, %v5579_v14  }
 0x303   : > { %9951 = vst [vmem:[#allocation229_spill] sm:$0xff] %v5827_v25  ;;  %9952 = vst [vmem:[#allocation230_spill] sm:$0xff] %v5829_v28  ;;  %2143 = vrot.lane.b32.xlu0 %v4846_v58, %s4545_s17 }
 0x306   : > { %v5834_v32 = vpop.permute.xlu0 %1933  ;;  %v5836_v16 = vpop.permute.xlu1 %1555  ;;  %2244 = vrot.lane.b32.xlu1 %v4798_v40, %s4547_s18 }
 0x307   : > { %9953 = vst [vmem:[#allocation231_spill] sm:$0xff] %v5834_v32  ;;  %9954 = vst [vmem:[#allocation232_spill] sm:$0xff] %v5836_v16  ;;  %2155 = vrot.lane.b32.xlu0 %v4851_v59, %s4545_s17  ;;  %4386 = vset.pattern.permute.xlu1 %v9955_v35  ;;  %v9988_v35 = vmov 0 }
 0x30a   : > { %v5843_v25 = vpop.permute.xlu0 %2079  ;;  %v5845_v28 = vpop.permute.xlu1 %1567  ;;  %2256 = vrot.lane.b32.xlu1 %v4804_v41, %s4547_s18 }
 0x30b   : > { %9956 = vst [vmem:[#allocation233_spill] sm:$0xff] %v5843_v25  ;;  %9957 = vst [vmem:[#allocation234_spill] sm:$0xff] %v5845_v28  ;;  %2356 = vrot.lane.b32.xlu0 %v4818_v47, %s4549_s25  ;;  %v9387_v25 = vmov 20  }
 0x30e   : > { %v5851_v32 = vpop.permute.xlu1 %1867  ;;  %2398 = vperm.xlu1 %4386, %v5458_v4  }
 0x30f   : > { %9958 = vst [vmem:[#allocation235_spill] sm:$0xff] %v5851_v32  ;;  %2368 = vrot.lane.b32.xlu0 %v4824_v48, %s4549_s25  ;;  %v5855_v16 = vpop.permute.xlu0 %2177  ;;  %v5868_v32 = vld [vmem:[%s9129_s1] ss:$2 sm:$0x3] }
 0x310   : > { %9959 = vst [vmem:[#allocation236_spill] sm:$0xff] %v5855_v16  ;;  %v5873_v16 = vld [vmem:[%s9129_s1 + $0x1] ss:$2 sm:$0x3]  ;;  %vm524_vm2 = vcmp.ge.s32.totalorder %v5868_v32, 2  ;;  %vm9426_vm1 = vcmp.ge.s32.totalorder %v5868_v32, 1 }
 0x311   : > { %9962 = vst [vmem:[#allocation239_spill] sm:$0xff] %v5873_v16  ;;  %vm9416_vm3 = vcmp.ge.s32.totalorder %v5873_v16, 2  ;;  %vm9417_vm4 = vcmp.ge.s32.totalorder %v5873_v16, 1  ;;  %vm9415_vm8 = vcmp.lt.s32.totalorder %v5873_v16, 15  ;;  %vm9414_vm12 = vcmp.lt.s32.totalorder %v5873_v16, 14 }
 0x312   : > { %v5858_v37 = vpop.permute.xlu1 %1917  ;;  %4387 = vset.pattern.permute.xlu1 %v9387_v25  ;;  %vm526_vm5 = vmand %vm524_vm2, %vm9416_vm3 }
 0x313   : > { %9960 = vst [vmem:[#allocation237_spill] sm:$0xff] %v5858_v37  ;;  %2515 = vperm.xlu0 %4392, %v5537_v38   ;;  %v5861_v28 = vpop.permute.xlu0 %2185  ;;  %2608 = vperm.xlu1 %4387, %v5478_v51   ;;  %vm636_vm6 = vmand %vm524_vm2, %vm9417_vm4 }
 0x314   : > { %9961 = vst [vmem:[#allocation238_spill] sm:$0xff] %v5861_v28  ;;  %vm854_vm11 = vmand %vm524_vm2, %vm9415_vm8 }
 0x315   : > { %vm964_vm0 = vmand %vm524_vm2, %vm9414_vm12 }
 0x316   : > { %v5875_v37 = vpop.permute.xlu1 %1929  ;;  %vm1183_vm8 = vmand %vm9426_vm1, %vm9417_vm4 }
 0x317   : > { %9963 = vst [vmem:[#allocation240_spill] sm:$0xff] %v5875_v37  ;;  %4396 = vset.pattern.permute.xlu0 %v9387_v25  ;;  %v5878_v28 = vpop.permute.xlu0 %2137  ;;  %2612 = vperm.xlu1 %4387, %v5467_v12   ;;  %v9967_v37 = vlaneseq }
 0x318   : > { %9964 = vst [vmem:[#allocation241_spill] sm:$0xff] %v5878_v28  ;;  %2620 = vperm.xlu0 %4396, %v5547_v26  }
 0x319   : > { %v5894_v28 = vand.u32 127, %v9967_v37 }
 0x31a   : > { %v5885_v1 = vpop.permute.xlu1 %2071 }
 0x31b   : > { %9965 = vst [vmem:[#allocation242_spill] sm:$0xff] %v5885_v1  ;;  %v5891_v25 = vpop.permute.xlu0 %2149  ;;  %1927 = vrot.lane.b32.xlu1 %v4860_v62, %s4542_s26  ;;  %vm9427_vm7 = vcmp.lt.s32.totalorder %v5894_v28, 34  ;;  %vm9425_vm9 = vcmp.lt.s32.totalorder %v5894_v28, 32  ;;  %vm9430_vm10 = vcmp.lt.s32.totalorder %v5894_v28, 33  ;;  %vm9420_vm12 = vcmp.lt.s32.totalorder %v5894_v28, 30 }
 0x31c   : > { %9966 = vst [vmem:[#allocation243_spill] sm:$0xff] %v5891_v25  ;;  %2572 = vrot.lane.b32.xlu0 %v4808_v43, %s4553_s23  ;;  %4389 = vset.pattern.permute.xlu1 %v9909_v2  ;;  %v9969_v25 = vmov 0   ;;  %v471_v24 = vsel %vm9427_vm7, %v5054_v7, %v5105_v39  ;;  %v477_v6 = vsel %vm9427_vm7, %v5105_v39, %v5054_v7 }
 0x31d   : > { %v527_v37 = vsel %vm526_vm5, 1, %v9969_v25  ;;  %v745_v1 = vsel %vm524_vm2, 1, %v9969_v25  ;;  %v637_v23 = vsel %vm636_vm6, 1, %v9969_v25  ;;  %v594_v39 = vsel %vm9430_vm10, %v5100_v56, %v5062_v54 }
 0x31e   : > { %v531_v2 = vrot.slane %v527_v37, %v5697_v31  ;;  %v535_v5 = vrot.slane %v527_v37, %v5901_v3  ;;  %v641_v37 = vrot.slane %v637_v23, %v5697_v31  ;;  %v645_v11 = vrot.slane %v637_v23, %v5901_v3 }
 0x31f   : > { %v5912_v20 = vpop.permute.xlu0 %1817  ;;  %v5914_v27 = vpop.permute.xlu1 %2282  ;;  %1939 = vrot.lane.b32.xlu1 %v4864_v63, %s4542_s26  ;;  %v698_v7 = vsel %vm9425_vm9, %v5098_v13, %v5113_v18  ;;  %v704_v23 = vsel %vm9425_vm9, %v5113_v18, %v5098_v13  ;;  %v9980_v13 = vmov 0  ;;  %v855_v18 = vsel %vm854_vm11, 1, %v9969_v25  ;;  %s4555_s26 = smov 97  }
 0x320   : > { %9970 = vst [vmem:[#allocation245_spill] sm:$0xff] %v5912_v20  ;;  %9971 = vst [vmem:[#allocation246_spill] sm:$0xff] %v5914_v27  ;;  %2584 = vrot.lane.b32.xlu0 %v4814_v44, %s4553_s23  ;;  %v749_v27 = vrot.slane %v745_v1, %v5697_v31  ;;  %v753_v20 = vrot.slane %v745_v1, %v5901_v3  ;;  %v588_v1 = vsel %vm9430_vm10, %v5062_v54, %v5100_v56  ;;  %v9974_v56 = vmov 0 }
 0x321   : > { %v515_v54 = vmul.f32 %v4776_v29, %v471_v24  ;;  %vm5970_vm13 = vcmp.eq.s32.totalorder %v531_v2, 1  ;;  %vm5974_vm14 = vcmp.eq.s32.totalorder %v535_v5, 1  ;;  %v626_v24 = vmul.f32 %v4882_v9, %v588_v1 }
 0x322   : > { %v9975_v56 = vsel %vm5970_vm13, 4294967295, %v9974_v56  ;;  %vm5978_vm15 = vcmp.eq.s32.totalorder %v749_v27, 1  ;;  %v735_v5 = vmul.f32 %v4790_v36, %v704_v23  ;;  %vm5995_vm5 = vcmp.eq.s32.totalorder %v753_v20, 1 }
 0x323   : > { %v5948_v33 = vpop.permute.xlu0 %1829  ;;  %v5950_v63 = vpop.permute.xlu1 %2286  ;;  %2141 = vrot.lane.b32.xlu1 %v4833_v53, %s4545_s17  ;;  %9976 = vst [vmem:[#allocation249_spill] sm:$0xff] %v9975_v56  ;;  %v9981_v13 = vsel %vm5978_vm15, 4294967295, %v9980_v13  ;;  %v9985_v53 = vmov 0  ;;  %vm5999_vm6 = vcmp.eq.s32.totalorder %v641_v37, 1  ;;  %vm6003_vm2 = vcmp.eq.s32.totalorder %v645_v11, 1 }
 0x324   : > { %9972 = vst [vmem:[#allocation247_spill] sm:$0xff] %v5948_v33  ;;  %9973 = vst [vmem:[#allocation248_spill] sm:$0xff] %v5950_v63  ;;  %2252 = vrot.lane.b32.xlu0 %v4846_v58, %s4547_s18  ;;  %v514_v63 = vmul.f32 %v4776_v29, %v477_v6  ;;  %v9977_v33 = vmov 0  ;;  %v625_v29 = vmul.f32 %v4882_v9, %v594_v39  ;;  %v736_v6 = vmul.f32 %v4790_v36, %v698_v7 }
 0x325   : > { %v9978_v33 = vsel %vm5974_vm14, 4294967295, %v9977_v33  ;;  %9982 = vst [vmem:[#allocation251_spill] sm:$0xff] %v9981_v13  ;;  %v9986_v53 = vsel %vm5995_vm5, 4294967295, %v9985_v53  ;;  %v9989_v35 = vsel %vm5999_vm6, 4294967295, %v9988_v35  ;;  %v9991_v39 = vmov 0 }
 0x326   : > { %9979 = vst [vmem:[#allocation250_spill] sm:$0xff] %v9978_v33  ;;  %9987 = vst [vmem:[#allocation254_spill] sm:$0xff] %v9986_v53  ;;  %v9992_v39 = vsel %vm6003_vm2, 4294967295, %v9991_v39  ;;  %vm9419_vm11 = vcmp.lt.s32.totalorder %v5894_v28, 31  ;;  %v965_v36 = vsel %vm964_vm0, 1, %v9969_v25  ;;  %v540_v9 = vsel %vm5970_vm13, %v514_v63, 0.0 }
 0x327   : > { %v5991_v2 = vpop.permute.xlu0 %2029  ;;  %v5993_v27 = vpop.permute.xlu1 %1663  ;;  %9990 = vst [vmem:[#allocation255_spill] sm:$0xff] %v9989_v35  ;;  %9993 = vst [vmem:[#allocation256_spill] sm:$0xff] %v9992_v39  ;;  %2153 = vrot.lane.b32.xlu1 %v4840_v55, %s4545_s17  ;;  %v541_v20 = vsel %vm5974_vm14, %v515_v54, 0.0  ;;  %v859_v11 = vrot.slane %v855_v18, %v5697_v31  ;;  %v863_v37 = vrot.slane %v855_v18, %v5901_v3  ;;  %v650_v63 = vsel %vm5999_vm6, %v625_v29, 0.0  ;;  %v10093_v33 = vld [vmem:[#allocation17_spill] sm:$0xff]  ;;  %v10130_v35 = vld [vmem:[#allocation131_spill] sm:$0xff] }
 0x328   : > { %9983 = vst [vmem:[#allocation252_spill] sm:$0xff] %v5991_v2  ;;  %9984 = vst [vmem:[#allocation253_spill] sm:$0xff] %v5993_v27  ;;  %2264 = vrot.lane.b32.xlu0 %v4851_v59, %s4547_s18  ;;  %v806_v1 = vsel %vm9419_vm11, %v5068_v8, %v5107_v17  ;;  %v812_v7 = vsel %vm9419_vm11, %v5107_v17, %v5068_v8  ;;  %v651_v23 = vsel %vm6003_vm2, %v626_v24, 0.0  ;;  %v758_v54 = vsel %vm5978_vm15, %v735_v5, 0.0 }
 0x329   : > { %v759_v18 = vsel %vm5995_vm5, %v736_v6, 0.0  ;;  %v969_v55 = vrot.slane %v965_v36, %v5697_v31  ;;  %vm1074_vm0 = vmand %vm9426_vm1, %vm9416_vm3  ;;  %v662_v8 = vadd.f32 %v650_v63, %v540_v9  ;;  %v663_v17 = vadd.f32 %v651_v23, %v541_v20 }
 0x32a   : > { %v843_v29 = vmul.f32 %v4932_v21, %v812_v7  ;;  %v844_v24 = vmul.f32 %v4932_v21, %v806_v1  ;;  %v916_v5 = vsel %vm9420_vm12, %v5077_v57, %v5116_v15  ;;  %v922_v6 = vsel %vm9420_vm12, %v5116_v15, %v5077_v57 }
 0x32b   : > { %v6036_v27 = vpop.permute.xlu0 %2041  ;;  %v6038_v2 = vpop.permute.xlu1 %1675  ;;  %2302 = vperm.xlu1 %4389, %v5579_v14   ;;  %v770_v9 = vadd.f32 %v758_v54, %v662_v8  ;;  %v771_v20 = vadd.f32 %v759_v18, %v663_v17  ;;  %vm6063_vm3 = vcmp.eq.s32.totalorder %v859_v11, 1  ;;  %v9996_v63 = vmov 0 }
 0x32c   : > { %9994 = vst [vmem:[#allocation257_spill] sm:$0xff] %v6036_v27  ;;  %9995 = vst [vmem:[#allocation258_spill] sm:$0xff] %v6038_v2  ;;  %2465 = vrot.lane.b32.xlu0 %v4818_v47, %s4551_s12  ;;  %v9997_v63 = vsel %vm6063_vm3, 4294967295, %v9996_v63  ;;  %vm6067_vm4 = vcmp.eq.s32.totalorder %v863_v37, 1  ;;  %v9999_v7 = vmov 0  ;;  %v1075_v21 = vsel %vm1074_vm0, 1, %v9969_v25 }
 0x32d   : > { %9998 = vst [vmem:[#allocation259_spill] sm:$0xff] %v9997_v63  ;;  %v10000_v7 = vsel %vm6067_vm4, 4294967295, %v9999_v7  ;;  %v973_v2 = vrot.slane %v965_v36, %v5901_v3  ;;  %vm6077_vm11 = vcmp.eq.s32.totalorder %v969_v55, 1  ;;  %v10004_v57 = vmov 0 }
 0x32e   : > { %10001 = vst [vmem:[#allocation260_spill] sm:$0xff] %v10000_v7  ;;  %v10005_v57 = vsel %vm6077_vm11, 4294967295, %v10004_v57  ;;  %vm9424_vm12 = vcmp.lt.s32.totalorder %v5894_v28, 18  ;;  %v1184_v15 = vsel %vm1183_vm8, 1, %v9969_v25  ;;  %v868_v11 = vsel %vm6063_vm3, %v843_v29, 0.0  ;;  %v10109_v7 = vld [vmem:[#allocation115_spill] sm:$0xff] }
 0x32f   : > { %v6072_v1 = vpop.permute.xlu0 %2189  ;;  %v6074_v23 = vpop.permute.xlu1 %1815  ;;  %10006 = vst [vmem:[#allocation263_spill] sm:$0xff] %v10005_v57  ;;  %2352 = vrot.lane.b32.xlu1 %v4798_v40, %s4549_s25  ;;  %v869_v36 = vsel %vm6067_vm4, %v844_v24, 0.0  ;;  %v953_v55 = vmul.f32 %v4827_v50, %v922_v6  ;;  %v954_v37 = vmul.f32 %v4827_v50, %v916_v5  ;;  %v1079_v54 = vrot.slane %v1075_v21, %v5697_v31 }
 0x330   : > { %10002 = vst [vmem:[#allocation261_spill] sm:$0xff] %v6072_v1  ;;  %10003 = vst [vmem:[#allocation262_spill] sm:$0xff] %v6074_v23  ;;  %2477 = vrot.lane.b32.xlu0 %v4824_v48, %s4551_s12  ;;  %4390 = vset.pattern.permute.xlu1 %v9945_v46  ;;  %v880_v18 = vadd.f32 %v868_v11, %v770_v9  ;;  %v881_v8 = vadd.f32 %v869_v36, %v771_v20  ;;  %vm9423_vm8 = vcmp.lt.s32.totalorder %v5894_v28, 17  ;;  %v10008_v6 = vmov 0 }
 0x331   : > { %v1032_v17 = vsel %vm9424_vm12, %v5124_v19, %v5085_v42  ;;  %v1083_v29 = vrot.slane %v1075_v21, %v5901_v3  ;;  %v1188_v24 = vrot.slane %v1184_v15, %v5697_v31  ;;  %v1026_v50 = vsel %vm9424_vm12, %v5085_v42, %v5124_v19 }
 0x332   : > { %vm6108_vm0 = vcmp.eq.s32.totalorder %v973_v2, 1  ;;  %v1192_v9 = vrot.slane %v1184_v15, %v5901_v3  ;;  %v1136_v20 = vsel %vm9423_vm8, %v5092_v34, %v5131_v61  ;;  %v1142_v21 = vsel %vm9423_vm8, %v5131_v61, %v5092_v34 }
 0x333   : > { %v6106_v5 = vpop.permute.xlu1 %1827  ;;  %v10009_v6 = vsel %vm6108_vm0, 4294967295, %v10008_v6  ;;  %2364 = vrot.lane.b32.xlu1 %v4804_v41, %s4549_s25  ;;  %v978_v19 = vsel %vm6077_vm11, %v953_v55, 0.0  ;;  %v979_v2 = vsel %vm6108_vm0, %v954_v37, 0.0  ;;  %v1063_v15 = vmul.f32 %v4856_v60, %v1032_v17 }
 0x334   : > { %10007 = vst [vmem:[#allocation264_spill] sm:$0xff] %v6106_v5  ;;  %10010 = vst [vmem:[#allocation265_spill] sm:$0xff] %v10009_v6  ;;  %2624 = vperm.xlu0 %4396, %v5537_v38   ;;  %v6122_v42 = vpop.permute.xlu0 %2294  ;;  %v990_v11 = vadd.f32 %v978_v19, %v880_v18  ;;  %v991_v36 = vadd.f32 %v979_v2, %v881_v8  ;;  %v1064_v23 = vmul.f32 %v4856_v60, %v1026_v50  ;;  %v10013_v18 = vmov 0  ;;  %v10055_v5 = vld [vmem:[#allocation91_spill] sm:$0xff] }
 0x335   : > { %10011 = vst [vmem:[#allocation266_spill] sm:$0xff] %v6122_v42  ;;  %v1173_v34 = vmul.f32 %v4890_v10, %v1142_v21  ;;  %v1174_v61 = vmul.f32 %v4890_v10, %v1136_v20  ;;  %v472_v42 = vsel %vm9427_vm7, %v5122_v52, %v5161_v49  ;;  %v478_v55 = vsel %vm9427_vm7, %v5161_v49, %v5122_v52  ;;  %v10027_v20 = vld [vmem:[#allocation71_spill] sm:$0xff] }
 0x336   : > { %vm6144_vm8 = vcmp.eq.s32.totalorder %v1079_v54, 1  ;;  %vm6148_vm12 = vcmp.eq.s32.totalorder %v1083_v29, 1  ;;  %v10016_v60 = vmov 0  ;;  %vm6152_vm9 = vcmp.eq.s32.totalorder %v1188_v24, 1 }
 0x337   : > { %v6142_v37 = vpop.permute.xlu1 %1975  ;;  %v10014_v18 = vsel %vm6144_vm8, 4294967295, %v10013_v18  ;;  %v10017_v60 = vsel %vm6148_vm12, 4294967295, %v10016_v60  ;;  %v10019_v10 = vmov 0  ;;  %vm6156_vm1 = vcmp.eq.s32.totalorder %v1192_v9, 1  ;;  %2507 = vperm.xlu1 %4390, %v5458_v4  }
 0x338   : > { %10012 = vst [vmem:[#allocation267_spill] sm:$0xff] %v6142_v37  ;;  %10015 = vst [vmem:[#allocation268_spill] sm:$0xff] %v10014_v18  ;;  %v10020_v10 = vsel %vm6152_vm9, 4294967295, %v10019_v10  ;;  %v10022_v8 = vmov 0  ;;  %v9431_v17 = vmov 21   ;;  %v6161_v52 = vpop.permute.xlu0 %2246  ;;  %v1088_v49 = vsel %vm6144_vm8, %v1063_v15, 0.0 }
 0x339   : > { %10018 = vst [vmem:[#allocation269_spill] sm:$0xff] %v10017_v60  ;;  %10021 = vst [vmem:[#allocation270_spill] sm:$0xff] %v10020_v10  ;;  %v10023_v8 = vsel %vm6156_vm1, 4294967295, %v10022_v8  ;;  %4400 = vset.pattern.permute.xlu0 %v9431_v17  ;;  %v589_v54 = vsel %vm9430_vm10, %v5129_v22, %v5142_v45  ;;  %v595_v29 = vsel %vm9430_vm10, %v5142_v45, %v5129_v22  ;;  %vm10026_vm7 = vcmp.ge.s32.totalorder %v5868_v32, 1 }
 0x33a   : > { %10024 = vst [vmem:[#allocation271_spill] sm:$0xff] %v10023_v8  ;;  %10025 = vst [vmem:[#allocation272_spill] sm:$0xff] %v6161_v52  ;;  %v6177_v24 = vsel %vm10026_vm7, 1, %v9969_v25  ;;  %2730 = vperm.xlu0 %4400, %v5547_v26   ;;  %v1089_v4 = vsel %vm6148_vm12, %v1064_v23, 0.0  ;;  %v516_v50 = vmul.f32 %v4778_v30, %v478_v55  ;;  %v517_v9 = vmul.f32 %v4778_v30, %v472_v42  ;;  %v10030_v23 = vld [vmem:[#allocation7_spill] sm:$0xff]  ;;  %v10032_v42 = vld [vmem:[#allocation65_spill] sm:$0xff] }
 0x33b   : > { %vm10028_vm8 = vcmp.lt.s32.totalorder %v5894_v28, 32  ;;  %v1100_v22 = vadd.f32 %v1088_v49, %v990_v11  ;;  %v1101_v45 = vadd.f32 %v1089_v4, %v991_v36  ;;  %v1197_v19 = vsel %vm6152_vm9, %v1173_v34, 0.0  ;;  %v6192_v2 = vpop.permute.xlu1 %2025  ;;  %v10033_v11 = vld [vmem:[#allocation73_spill] sm:$0xff]  ;;  %4391 = vset.pattern.permute.xlu1 %v9431_v17 }
 0x33c   : > { %v705_v21 = vsel %vm10028_vm8, %v10027_v20, %v5138_v0  ;;  %v1198_v26 = vsel %vm6156_vm1, %v1174_v61, 0.0  ;;  %10029 = vst [vmem:[#allocation71_spill] sm:$0xff] %v6192_v2  ;;  %v627_v15 = vmul.f32 %v10030_v23, %v595_v29  ;;  %v628_v55 = vmul.f32 %v10030_v23, %v589_v54  ;;  %vm10031_vm7 = vmmov %vm10028_vm8  ;;  %v6204_v34 = vpop.permute.xlu0 %2258  ;;  %v10036_v61 = vld [vmem:[#allocation10_spill] sm:$0xff]  ;;  %2718 = vperm.xlu1 %4391, %v5478_v51   ;;  %v10040_v2 = vld [vmem:[#allocation83_spill] sm:$0xff] }
 0x33d   : > { %v699_v30 = vsel %vm10031_vm7, %v5138_v0, %v10027_v20  ;;  %vm10034_vm8 = vcmp.lt.s32.totalorder %v5894_v28, 31  ;;  %10035 = vst [vmem:[#allocation7_spill] sm:$0xff] %v6204_v34  ;;  %v737_v49 = vmul.f32 %v10036_v61, %v705_v21  ;;  %v542_v0 = vsel %vm5970_vm13, %v516_v50, 0.0  ;;  %v10041_v20 = vld [vmem:[#allocation89_spill] sm:$0xff] }
 0x33e   : > { %v813_v36 = vsel %vm10034_vm8, %v10033_v11, %v10032_v42  ;;  %vm10037_vm10 = vmmov %vm10034_vm8  ;;  %2682 = vrot.lane.b32.xlu0 %v4808_v43, %s4555_s26  ;;  %v543_v29 = vsel %vm5974_vm14, %v517_v9, 0.0  ;;  %v1296_v4 = vrot.slane %v6177_v24, %v5697_v31  ;;  %v6223_v21 = vadd.f32 %v1197_v19, %v1100_v22 }
 0x33f   : > { %v807_v54 = vsel %vm10037_vm10, %v10032_v42, %v10033_v11  ;;  %v6225_v23 = vadd.f32 %v1198_v26, %v1101_v45  ;;  %v738_v42 = vmul.f32 %v10036_v61, %v699_v30  ;;  %v10038_v11 = vld [vmem:[#allocation36_spill] sm:$0xff]  ;;  %v6229_v17 = vpop.permute.xlu1 %2037  ;;  %v652_v50 = vsel %vm5999_vm6, %v627_v15, 0.0  ;;  %v10045_v61 = vld [vmem:[#allocation75_spill] sm:$0xff] }
 0x340   : > { %v845_v51 = vmul.f32 %v10038_v11, %v813_v36  ;;  %10039 = vst [vmem:[#allocation65_spill] sm:$0xff] %v6229_v17  ;;  %v653_v9 = vsel %vm6003_vm2, %v628_v55, 0.0  ;;  %v846_v37 = vmul.f32 %v10038_v11, %v807_v54  ;;  %vm10042_vm10 = vcmp.lt.s32.totalorder %v5894_v28, 34  ;;  %v6240_v45 = vpop.permute.xlu0 %1925  ;;  %v10044_v36 = vld [vmem:[#allocation66_spill] sm:$0xff]  ;;  %v10049_v11 = vld [vmem:[#allocation80_spill] sm:$0xff]  ;;  %2722 = vperm.xlu1 %4391, %v5467_v12   ;;  %v10054_v17 = vld [vmem:[#allocation85_spill] sm:$0xff] }
 0x341   : > { %v480_v22 = vsel %vm10042_vm10, %v10041_v20, %v10040_v2  ;;  %10043 = vst [vmem:[#allocation73_spill] sm:$0xff] %v6240_v45  ;;  %v664_v19 = vadd.f32 %v652_v50, %v542_v0  ;;  %v665_v26 = vadd.f32 %v653_v9, %v543_v29  ;;  %v760_v30 = vsel %vm5978_vm15, %v737_v49, 0.0  ;;  %v10048_v54 = vld [vmem:[#allocation82_spill] sm:$0xff]  ;;  %v10063_v45 = vld [vmem:[#allocation27_spill] sm:$0xff] }
 0x342   : > { %vm10046_vm7 = vcmp.lt.s32.totalorder %v5894_v28, 30  ;;  %2694 = vrot.lane.b32.xlu0 %v4814_v44, %s4555_s26  ;;  %vm10050_vm10 = vcmp.lt.s32.totalorder %v5894_v28, 33  ;;  %v761_v50 = vsel %vm5995_vm5, %v738_v42, 0.0  ;;  %v870_v9 = vsel %vm6063_vm3, %v845_v51, 0.0  ;;  %v10060_v42 = vld [vmem:[#allocation24_spill] sm:$0xff] }
 0x343   : > { %v923_v15 = vsel %vm10046_vm7, %v10045_v61, %v10044_v36  ;;  %vm10047_vm8 = vmmov %vm10046_vm7  ;;  %v591_v0 = vsel %vm10050_vm10, %v10049_v11, %v10048_v54  ;;  %vm10052_vm7 = vcmp.lt.s32.totalorder %v5894_v28, 34  ;;  %v772_v12 = vadd.f32 %v760_v30, %v664_v19 }
 0x344   : > { %v917_v55 = vsel %vm10047_vm8, %v10044_v36, %v10045_v61  ;;  %vm10051_vm1 = vmmov %vm10050_vm10  ;;  %v474_v29 = vsel %vm10052_vm7, %v10040_v2, %v10041_v20  ;;  %v10053_v36 = vld [vmem:[#allocation5_spill] sm:$0xff]  ;;  %vm10057_vm8 = vcmp.lt.s32.totalorder %v5873_v16, 15  ;;  %vm10058_vm10 = vcmp.ge.s32.totalorder %v5868_v32, 1  ;;  %v6281_v2 = vpop.permute.xlu1 %2181  ;;  %2035 = vrot.lane.b32.xlu1 %v4860_v62, %s4544_s22 }
 0x345   : > { %v597_v49 = vsel %vm10051_vm1, %v10048_v54, %v10049_v11  ;;  %v520_v61 = vmul.f32 %v10053_v36, %v480_v22  ;;  %vm10056_vm1 = vcmp.lt.s32.totalorder %v5894_v28, 32  ;;  %vm1400_vm7 = vmand %vm10058_vm10, %vm10057_vm8  ;;  %10059 = vst [vmem:[#allocation10_spill] sm:$0xff] %v6281_v2  ;;  %v871_v20 = vsel %vm6067_vm4, %v846_v37, 0.0  ;;  %v6290_v11 = vpop.permute.xlu0 %1937 }
 0x346   : > { %v707_v54 = vsel %vm10056_vm1, %v10055_v5, %v10054_v17  ;;  %v955_v51 = vmul.f32 %v10060_v42, %v923_v15  ;;  %vm10061_vm9 = vmmov %vm10056_vm1  ;;  %10062 = vst [vmem:[#allocation36_spill] sm:$0xff] %v6290_v11  ;;  %v956_v1 = vmul.f32 %v10060_v42, %v917_v55  ;;  %v631_v52 = vmul.f32 %v10063_v45, %v597_v49  ;;  %v10064_v15 = vld [vmem:[#allocation11_spill] sm:$0xff] }
 0x347   : > { %v701_v22 = vsel %vm10061_vm9, %v10054_v17, %v10055_v5  ;;  %v632_v34 = vmul.f32 %v10063_v45, %v591_v0  ;;  %v521_v19 = vmul.f32 %v10053_v36, %v474_v29  ;;  %2360 = vrot.lane.b32.xlu0 %v4846_v58, %s4549_s25  ;;  %v773_v37 = vadd.f32 %v761_v50, %v665_v26  ;;  %v10065_v45 = vld [vmem:[#allocation93_spill] sm:$0xff]  ;;  %v10066_v55 = vld [vmem:[#allocation87_spill] sm:$0xff]  ;;  %v10071_v36 = vld [vmem:[#allocation68_spill] sm:$0xff] }
 0x348   : > { %v882_v30 = vadd.f32 %v870_v9, %v772_v12  ;;  %v741_v2 = vmul.f32 %v10064_v15, %v707_v54  ;;  %v1401_v27 = vsel %vm1400_vm7, 1, %v9969_v25  ;;  %v546_v5 = vsel %vm5970_vm13, %v520_v61, 0.0  ;;  %v10070_v9 = vld [vmem:[#allocation99_spill] sm:$0xff]  ;;  %v6326_v42 = vpop.permute.xlu1 %2390 }
 0x349   : > { %v742_v17 = vmul.f32 %v10064_v15, %v701_v22  ;;  %vm10067_vm9 = vcmp.lt.s32.totalorder %v5894_v28, 31  ;;  %v10069_v49 = vmov 18   ;;  %v883_v29 = vadd.f32 %v871_v20, %v773_v37  ;;  %v6324_v12 = vpop.permute.xlu0 %2139  ;;  %10074 = vst [vmem:[#allocation83_spill] sm:$0xff] %v6326_v42 }
 0x34a   : > { %v809_v0 = vsel %vm10067_vm9, %v10066_v55, %v10065_v45  ;;  %vm10068_vm1 = vmmov %vm10067_vm9  ;;  %4393 = vset.pattern.permute.xlu1 %v10069_v49  ;;  %v980_v50 = vsel %vm6077_vm11, %v955_v51, 0.0  ;;  %vm10072_vm8 = vcmp.lt.s32.totalorder %v5894_v28, 18  ;;  %v981_v20 = vsel %vm6108_vm0, %v956_v1, 0.0 }
 0x34b   : > { %v815_v26 = vsel %vm10068_vm1, %v10065_v45, %v10066_v55  ;;  %v1027_v61 = vsel %vm10072_vm8, %v10071_v36, %v10070_v9  ;;  %vm10073_vm10 = vmmov %vm10072_vm8  ;;  %v656_v51 = vsel %vm5999_vm6, %v631_v52, 0.0  ;;  %v657_v22 = vsel %vm6003_vm2, %v632_v34, 0.0  ;;  %2372 = vrot.lane.b32.xlu0 %v4851_v59, %s4549_s25  ;;  %v10078_v52 = vld [vmem:[#allocation38_spill] sm:$0xff] }
 0x34c   : > { %v1033_v54 = vsel %vm10073_vm10, %v10070_v9, %v10071_v36  ;;  %v547_v37 = vsel %vm5974_vm14, %v521_v19, 0.0  ;;  %vm6336_vm7 = vcmp.eq.s32.totalorder %v1296_v4, 1  ;;  %v10075_v15 = vmov 0  ;;  %v10088_v9 = vld [vmem:[#allocation107_spill] sm:$0xff] }
 0x34d   : > { %v10076_v15 = vsel %vm6336_vm7, 4294967295, %v10075_v15  ;;  %v668_v45 = vadd.f32 %v656_v51, %v546_v5  ;;  %v764_v1 = vsel %vm5978_vm15, %v741_v2, 0.0  ;;  %v849_v55 = vmul.f32 %v10078_v52, %v815_v26  ;;  %v10085_v5 = vld [vmem:[#allocation23_spill] sm:$0xff]  ;;  %v10086_v26 = vld [vmem:[#allocation30_spill] sm:$0xff] }
 0x34e   : > { %10077 = vst [vmem:[#allocation89_spill] sm:$0xff] %v10076_v15  ;;  %v850_v34 = vmul.f32 %v10078_v52, %v809_v0  ;;  %v10079_v19 = vrot.slane %v6177_v24, %v5901_v3  ;;  %v10080_v4 = vmov 0  ;;  %vm10083_vm8 = vcmp.lt.s32.totalorder %v5873_v16, 14  ;;  %2047 = vrot.lane.b32.xlu1 %v10085_v5, %s4544_s22  ;;  %v10087_v24 = vld [vmem:[#allocation105_spill] sm:$0xff]  ;;  %v10209_v15 = vld [vmem:[#allocation126_spill] sm:$0xff]  ;;  %s4562_s22 = smov [#allocation2]  }
 0x34f   : > { %vm10084_vm10 = vcmp.ge.s32.totalorder %v5868_v32, 1  ;;  %v765_v2 = vsel %vm5995_vm5, %v742_v17, 0.0  ;;  %v1065_v0 = vmul.f32 %v10086_v26, %v1033_v54  ;;  %v1066_v49 = vmul.f32 %v10086_v26, %v1027_v61  ;;  %v6374_v17 = vpop.permute.xlu0 %2151  ;;  %v6376_v54 = vpop.permute.xlu1 %2394  ;;  %2574 = vrot.lane.b32.xlu0 %v4818_v47, %s4553_s23 }
 0x350   : > { %vm6350_vm1 = vcmp.eq.s32.totalorder %v10079_v19, 1  ;;  %vm1509_vm9 = vmand %vm10084_vm10, %vm10083_vm8  ;;  %vm10089_vm15 = vcmp.lt.s32.totalorder %v5894_v28, 16  ;;  %v669_v51 = vadd.f32 %v657_v22, %v547_v37  ;;  %v1405_v19 = vrot.slane %v1401_v27, %v5697_v31  ;;  %10091 = vst [vmem:[#allocation75_spill] sm:$0xff] %v6376_v54 }
 0x351   : > { %v10081_v4 = vsel %vm6350_vm1, 4294967295, %v10080_v4  ;;  %v1251_v36 = vsel %vm10089_vm15, %v10088_v9, %v10087_v24  ;;  %vm10090_vm8 = vmmov %vm10089_vm15  ;;  %v1409_v42 = vrot.slane %v1401_v27, %v5901_v3  ;;  %v992_v61 = vadd.f32 %v980_v50, %v882_v30  ;;  %v10092_v27 = vld [vmem:[#allocation34_spill] sm:$0xff] }
 0x352   : > { %10082 = vst [vmem:[#allocation66_spill] sm:$0xff] %v10081_v4  ;;  %v1245_v52 = vsel %vm10090_vm8, %v10087_v24, %v10088_v9  ;;  %v993_v26 = vadd.f32 %v981_v20, %v883_v29  ;;  %v776_v53 = vadd.f32 %v764_v1, %v668_v45  ;;  %v1510_v13 = vsel %vm1509_vm9, 1, %v9969_v25  ;;  %2250 = vrot.lane.b32.xlu1 %v10093_v33, %s4547_s18  ;;  %v10096_v45 = vld [vmem:[#allocation109_spill] sm:$0xff]  ;;  %v10097_v1 = vld [vmem:[#allocation111_spill] sm:$0xff] }
 0x353   : > { %v777_v22 = vadd.f32 %v765_v2, %v669_v51  ;;  %v874_v37 = vsel %vm6063_vm3, %v849_v55, 0.0  ;;  %v875_v24 = vsel %vm6067_vm4, %v850_v34, 0.0  ;;  %v1282_v9 = vmul.f32 %v10092_v27, %v1251_v36  ;;  %v6413_v36 = vpop.permute.xlu0 %2298  ;;  %v6415_v51 = vpop.permute.xlu1 %1923  ;;  %2586 = vrot.lane.b32.xlu0 %v4824_v48, %s4553_s23  ;;  %v10212_v4 = vld [vmem:[#allocation133_spill] sm:$0xff] }
 0x354   : > { %vm10094_vm15 = vnez %v10014_v18  ;;  %v1091_v29 = vsel %vm6148_vm12, %v1066_v49, 0.0  ;;  %v1283_v50 = vmul.f32 %v10092_v27, %v1245_v52  ;;  %vm10095_vm9 = vcmp.ge.s32.totalorder %v5873_v16, 2  ;;  %10105 = vst [vmem:[#allocation5_spill] sm:$0xff] %v6413_v36  ;;  %10106 = vst [vmem:[#allocation85_spill] sm:$0xff] %v6415_v51 }
 0x355   : > { %v1090_v30 = vsel %vm10094_vm15, %v1065_v0, 0.0  ;;  %v6396_v20 = vsel %vm10095_vm9, 1, %v9969_v25  ;;  %vm10098_vm10 = vcmp.lt.s32.totalorder %v5894_v28, 30  ;;  %vm6402_vm8 = vcmp.eq.s32.totalorder %v1405_v19, 1  ;;  %v10108_v19 = vld [vmem:[#allocation113_spill] sm:$0xff] }
 0x356   : > { %v925_v55 = vsel %vm10098_vm10, %v10097_v1, %v10096_v45  ;;  %v10099_v34 = vmov 0  ;;  %vm6406_vm4 = vcmp.eq.s32.totalorder %v1409_v42, 1  ;;  %v10102_v2 = vmov 0  ;;  %vm10107_vm9 = vmmov %vm10098_vm10 }
 0x357   : > { %v10100_v34 = vsel %vm6402_vm8, 4294967295, %v10099_v34  ;;  %v10103_v2 = vsel %vm6406_vm4, 4294967295, %v10102_v2  ;;  %v1514_v0 = vrot.slane %v1510_v13, %v5697_v31  ;;  %v1518_v49 = vrot.slane %v1510_v13, %v5901_v3  ;;  %2734 = vperm.xlu0 %4400, %v5537_v38  }
 0x358   : > { %10101 = vst [vmem:[#allocation82_spill] sm:$0xff] %v10100_v34  ;;  %10104 = vst [vmem:[#allocation80_spill] sm:$0xff] %v10103_v2  ;;  %v886_v52 = vadd.f32 %v874_v37, %v776_v53  ;;  %v887_v27 = vadd.f32 %v875_v24, %v777_v22  ;;  %v919_v42 = vsel %vm10107_vm9, %v10096_v45, %v10097_v1  ;;  %vm10110_vm10 = vcmp.lt.s32.totalorder %v5894_v28, 17  ;;  %v10111_v22 = vld [vmem:[#allocation19_spill] sm:$0xff]  ;;  %v10112_v24 = vld [vmem:[#allocation42_spill] sm:$0xff] }
 0x359   : > { %v1143_v63 = vsel %vm10110_vm10, %v10109_v7, %v10108_v19  ;;  %v1102_v13 = vadd.f32 %v1090_v30, %v992_v61  ;;  %v1103_v56 = vadd.f32 %v1091_v29, %v993_v26  ;;  %v1305_v51 = vsel %vm6336_vm7, %v1282_v9, 0.0  ;;  %2262 = vrot.lane.b32.xlu1 %v10111_v22, %s4547_s18  ;;  %vm10113_vm9 = vmmov %vm10110_vm10  ;;  %v10114_v30 = vld [vmem:[#allocation37_spill] sm:$0xff]  ;;  %v10115_v1 = vld [vmem:[#allocation123_spill] sm:$0xff] }
 0x35a   : > { %v1306_v37 = vsel %vm6350_vm1, %v1283_v50, 0.0  ;;  %v959_v45 = vmul.f32 %v10112_v24, %v925_v55  ;;  %v1137_v61 = vsel %vm10113_vm9, %v10108_v19, %v10109_v7  ;;  %v960_v9 = vmul.f32 %v10112_v24, %v919_v42  ;;  %v10116_v53 = vld [vmem:[#allocation121_spill] sm:$0xff]  ;;  %v6452_v55 = vpop.permute.xlu1 %1935  ;;  %v10120_v19 = vld [vmem:[#allocation127_spill] sm:$0xff]  ;;  %v10278_v2 = vld [vmem:[#allocation206_spill] sm:$0xff] }
 0x35b   : > { %v1175_v29 = vmul.f32 %v10114_v30, %v1143_v63  ;;  %vm10117_vm10 = vcmp.lt.s32.totalorder %v5894_v28, 15  ;;  %10119 = vst [vmem:[#allocation91_spill] sm:$0xff] %v6452_v55  ;;  %v1317_v7 = vadd.f32 %v1305_v51, %v6223_v21  ;;  %v10121_v26 = vld [vmem:[#allocation125_spill] sm:$0xff]  ;;  %vm10122_vm9 = vcmp.lt.s32.totalorder %v5894_v28, 18  ;;  %v6473_v21 = vpop.permute.xlu0 %2402 }
 0x35c   : > { %v1353_v39 = vsel %vm10117_vm10, %v10116_v53, %v10115_v1  ;;  %vm10118_vm3 = vmmov %vm10117_vm10  ;;  %v1029_v42 = vsel %vm10122_vm9, %v10121_v26, %v10120_v19  ;;  %vm6463_vm10 = vcmp.eq.s32.totalorder %v1514_v0, 1  ;;  %v10124_v24 = vmov 0  ;;  %10128 = vst [vmem:[#allocation27_spill] sm:$0xff] %v6473_v21  ;;  %v10129_v55 = vld [vmem:[#allocation129_spill] sm:$0xff]  ;;  %v10138_v21 = vld [vmem:[#allocation48_spill] sm:$0xff] }
 0x35d   : > { %v1359_v50 = vsel %vm10118_vm3, %v10115_v1, %v10116_v53  ;;  %vm10123_vm5 = vmmov %vm10122_vm9  ;;  %v10125_v24 = vsel %vm6463_vm10, 4294967295, %v10124_v24  ;;  %vm10127_vm3 = vcmp.ge.s32.totalorder %v5873_v16, 1  ;;  %v1318_v51 = vadd.f32 %v1306_v37, %v6225_v23  ;;  %2410 = vperm.xlu1 %4393, %v5579_v14  }
 0x35e   : > { %v1035_v63 = vsel %vm10123_vm5, %v10120_v19, %v10121_v26  ;;  %10126 = vst [vmem:[#allocation24_spill] sm:$0xff] %v10125_v24  ;;  %v6470_v53 = vsel %vm10127_vm3, 1, %v9969_v25  ;;  %v1176_v1 = vmul.f32 %v10114_v30, %v1137_v61  ;;  %vm10131_vm5 = vcmp.lt.s32.totalorder %v5894_v28, 16  ;;  %v10135_v19 = vld [vmem:[#allocation41_spill] sm:$0xff] }
 0x35f   : > { %v1252_v0 = vsel %vm10131_vm5, %v10130_v35, %v10129_v55  ;;  %vm6481_vm9 = vcmp.eq.s32.totalorder %v1518_v49, 1  ;;  %v10132_v26 = vmov 0  ;;  %v984_v38 = vsel %vm6077_vm11, %v959_v45, 0.0  ;;  %vm10136_vm14 = vmmov %vm10131_vm5  ;;  %v6501_v45 = vpop.permute.xlu1 %2083 }
 0x360   : > { %v10133_v26 = vsel %vm6481_vm9, 4294967295, %v10132_v26  ;;  %v1390_v23 = vmul.f32 %v10135_v19, %v1359_v50  ;;  %v1391_v37 = vmul.f32 %v10135_v19, %v1353_v39  ;;  %v1246_v61 = vsel %vm10136_vm14, %v10129_v55, %v10130_v35  ;;  %10139 = vst [vmem:[#allocation93_spill] sm:$0xff] %v6501_v45  ;;  %v10140_v50 = vld [vmem:[#allocation45_spill] sm:$0xff]  ;;  %v10142_v19 = vld [vmem:[#allocation139_spill] sm:$0xff]  ;;  %v6513_v55 = vpop.permute.xlu0 %2354 }
 0x361   : > { %10134 = vst [vmem:[#allocation11_spill] sm:$0xff] %v10133_v26  ;;  %v985_v49 = vsel %vm6108_vm0, %v960_v9, 0.0  ;;  %vm10137_vm5 = vnez %v10020_v10  ;;  %v1069_v14 = vmul.f32 %v10138_v21, %v1035_v63  ;;  %v1070_v57 = vmul.f32 %v10138_v21, %v1029_v42  ;;  %v10141_v39 = vld [vmem:[#allocation137_spill] sm:$0xff]  ;;  %10144 = vst [vmem:[#allocation87_spill] sm:$0xff] %v6513_v55  ;;  %2461 = vrot.lane.b32.xlu1 %v4798_v40, %s4551_s12 }
 0x362   : > { %v1199_v30 = vsel %vm10137_vm5, %v1175_v29, 0.0  ;;  %v1284_v36 = vmul.f32 %v10140_v50, %v1252_v0  ;;  %vm10143_vm3 = vcmp.lt.s32.totalorder %v5894_v28, 14  ;;  %v1730_v35 = vrot.slane %v6470_v53, %v5697_v31 }
 0x363   : > { %v1468_v11 = vsel %vm10143_vm3, %v10142_v19, %v10141_v39  ;;  %v1734_v9 = vrot.slane %v6470_v53, %v5901_v3  ;;  %v9481_v29 = vmov 22   ;;  %v996_v42 = vadd.f32 %v984_v38, %v886_v52  ;;  %v6527_v53 = vld [vmem:[%s9131_s3 + $0x18] sm:$0xff] }
 0x364   : > { %4404 = vset.pattern.permute.xlu0 %v9481_v29  ;;  %vm10145_vm14 = vnez %v10023_v8  ;;  %v1285_v21 = vmul.f32 %v10140_v50, %v1246_v61  ;;  %v1462_v0 = vsel %vm10143_vm3, %v10141_v39, %v10142_v19  ;;  %v997_v52 = vadd.f32 %v985_v49, %v887_v27  ;;  %v10147_v29 = vld [vmem:[#allocation49_spill] sm:$0xff]  ;;  %v6545_v49 = vpop.permute.xlu1 %2135  ;;  %v6561_v60 = vpop.permute.xlu0 %2366 }
 0x365   : > { %v1200_v63 = vsel %vm10145_vm14, %v1176_v1, 0.0  ;;  %2839 = vperm.xlu0 %4404, %v6527_v53   ;;  %v1211_v38 = vadd.f32 %v1199_v30, %v1102_v13  ;;  %v1414_v1 = vsel %vm6402_vm8, %v1390_v23, 0.0  ;;  %v1415_v61 = vsel %vm6406_vm4, %v1391_v37, 0.0  ;;  %v10148_v27 = vld [vmem:[#allocation141_spill] sm:$0xff]  ;;  %v10149_v13 = vld [vmem:[#allocation143_spill] sm:$0xff]  ;;  %10151 = vst [vmem:[#allocation99_spill] sm:$0xff] %v6545_v49  ;;  %2473 = vrot.lane.b32.xlu1 %v4804_v41, %s4551_s12 }
 0x366   : > { %v10146_v50 = vmov 20   ;;  %v1094_v39 = vsel %vm10094_vm15, %v1069_v14, 0.0  ;;  %v1095_v19 = vsel %vm6148_vm12, %v1070_v57, 0.0  ;;  %v1499_v45 = vmul.f32 %v10147_v29, %v1468_v11  ;;  %10157 = vst [vmem:[#allocation38_spill] sm:$0xff] %v6561_v60  ;;  %v10206_v60 = vld [vmem:[#allocation173_spill] sm:$0xff] }
 0x367   : > { %4394 = vset.pattern.permute.xlu1 %v10146_v50  ;;  %vm10150_vm0 = vcmp.lt.s32.totalorder %v5894_v28, 17  ;;  %v1212_v37 = vadd.f32 %v1200_v63, %v1103_v56  ;;  %v1307_v30 = vsel %vm6336_vm7, %v1284_v36, 0.0  ;;  %v1500_v6 = vmul.f32 %v10147_v29, %v1462_v0  ;;  %v10158_v29 = vld [vmem:[#allocation145_spill] sm:$0xff]  ;;  %v10159_v0 = vld [vmem:[#allocation147_spill] sm:$0xff] }
 0x368   : > { %v1145_v23 = vsel %vm10150_vm0, %v10149_v13, %v10148_v27  ;;  %vm10152_vm3 = vmmov %vm10150_vm0  ;;  %v10153_v11 = vrot.slane %v6396_v20, %v5697_v31  ;;  %v10154_v14 = vmov 0  ;;  %v1426_v56 = vadd.f32 %v1414_v1, %v1317_v7  ;;  %v10170_v50 = vld [vmem:[#allocation153_spill] sm:$0xff] }
 0x369   : > { %v1139_v57 = vsel %vm10152_vm3, %v10148_v27, %v10149_v13  ;;  %v1427_v63 = vadd.f32 %v1415_v61, %v1318_v51  ;;  %v1308_v36 = vsel %vm6350_vm1, %v1285_v21, 0.0  ;;  %vm10160_vm0 = vcmp.lt.s32.totalorder %v5894_v28, 15  ;;  %2791 = vrot.lane.b32.xlu0 %v4808_v43, %s4557_s19  ;;  %v10165_v21 = vld [vmem:[#allocation101_spill] sm:$0xff] }
 0x36a   : > { %vm6557_vm12 = vcmp.eq.s32.totalorder %v10153_v11, 1  ;;  %v1360_v49 = vsel %vm10160_vm0, %v10159_v0, %v10158_v29  ;;  %v10161_v27 = vrot.slane %v6396_v20, %v5901_v3  ;;  %v10162_v13 = vmov 0 }
 0x36b   : > { %v10155_v14 = vsel %vm6557_vm12, 4294967295, %v10154_v14  ;;  %v1106_v7 = vadd.f32 %v1094_v39, %v996_v42  ;;  %v1107_v51 = vadd.f32 %v1095_v19, %v997_v52  ;;  %v1179_v1 = vmul.f32 %v10165_v21, %v1145_v23  ;;  %v6593_v42 = vpop.permute.xlu1 %2147  ;;  %v10169_v19 = vld [vmem:[#allocation106_spill] sm:$0xff] }
 0x36c   : > { %10156 = vst [vmem:[#allocation68_spill] sm:$0xff] %v10155_v14  ;;  %vm6572_vm3 = vcmp.eq.s32.totalorder %v10161_v27, 1  ;;  %vm10166_vm0 = vcmp.lt.s32.totalorder %v5873_v16, 15  ;;  %v1319_v20 = vadd.f32 %v1307_v30, %v1211_v38  ;;  %v1523_v11 = vsel %vm6463_vm10, %v1499_v45, 0.0  ;;  %10168 = vst [vmem:[#allocation105_spill] sm:$0xff] %v6593_v42  ;;  %v10171_v38 = vld [vmem:[#allocation155_spill] sm:$0xff]  ;;  %v6602_v30 = vpop.permute.xlu0 %2033 }
 0x36d   : > { %v10163_v13 = vsel %vm6572_vm3, 4294967295, %v10162_v13  ;;  %v6584_v61 = vsel %vm10166_vm0, 1, %v9969_v25  ;;  %v1180_v27 = vmul.f32 %v10165_v21, %v1139_v57  ;;  %vm10167_vm15 = vcmp.lt.s32.totalorder %v5894_v28, 15  ;;  %10173 = vst [vmem:[#allocation107_spill] sm:$0xff] %v6602_v30  ;;  %2803 = vrot.lane.b32.xlu0 %v4814_v44, %s4557_s19  ;;  %v10186_v30 = vld [vmem:[#allocation110_spill] sm:$0xff] }
 0x36e   : > { %10164 = vst [vmem:[#allocation30_spill] sm:$0xff] %v10163_v13  ;;  %v1354_v18 = vsel %vm10167_vm15, %v10158_v29, %v10159_v0  ;;  %v1320_v52 = vadd.f32 %v1308_v36, %v1212_v37  ;;  %v1524_v39 = vsel %vm6481_vm9, %v1500_v6, 0.0  ;;  %v1392_v23 = vmul.f32 %v10169_v19, %v1360_v49  ;;  %v10175_v29 = vld [vmem:[#allocation157_spill] sm:$0xff]  ;;  %v10176_v0 = vld [vmem:[#allocation159_spill] sm:$0xff] }
 0x36f   : > { %vm10172_vm0 = vcmp.lt.s32.totalorder %v5894_v28, 2  ;;  %vm10177_vm15 = vcmp.lt.s32.totalorder %v5894_v28, 16  ;;  %vm6612_vm13 = vcmp.eq.s32.totalorder %v1730_v35, 1  ;;  %v10178_v6 = vmov 0 }
 0x370   : > { %v1577_v45 = vsel %vm10172_vm0, %v10171_v38, %v10170_v50  ;;  %vm10174_vm11 = vmmov %vm10172_vm0  ;;  %v1254_v37 = vsel %vm10177_vm15, %v10176_v0, %v10175_v29  ;;  %v10179_v6 = vsel %vm6612_vm13, 4294967295, %v10178_v6  ;;  %vm6616_vm2 = vcmp.eq.s32.totalorder %v1734_v9, 1 }
 0x371   : > { %v1571_v57 = vsel %vm10174_vm11, %v10170_v50, %v10171_v38  ;;  %10180 = vst [vmem:[#allocation34_spill] sm:$0xff] %v10179_v6  ;;  %v10181_v49 = vmov 0  ;;  %v6627_v50 = vld [vmem:[%s9131_s3 + $0x10] sm:$0xff]  ;;  %v1535_v35 = vadd.f32 %v1523_v11, %v1426_v56  ;;  %v1203_v9 = vsel %vm10137_vm5, %v1179_v1, 0.0  ;;  %vm10185_vm11 = vmmov %vm10177_vm15  ;;  %2481 = vrot.lane.b32.xlu0 %v4851_v59, %s4551_s12 }
 0x372   : > { %v10182_v49 = vsel %vm6616_vm2, 4294967295, %v10181_v49  ;;  %10184 = vst [vmem:[#allocation111_spill] sm:$0xff] %v6627_v50  ;;  %2616 = vperm.xlu1 %4394, %v6627_v50   ;;  %v1393_v38 = vmul.f32 %v10169_v19, %v1354_v18  ;;  %v1248_v36 = vsel %vm10185_vm11, %v10175_v29, %v10176_v0  ;;  %v1536_v21 = vadd.f32 %v1524_v39, %v1427_v63  ;;  %v6647_v18 = vpop.permute.xlu1 %2290  ;;  %v10189_v19 = vld [vmem:[#allocation117_spill] sm:$0xff]  ;;  %v6654_v63 = vpop.permute.xlu0 %2045 }
 0x373   : > { %10183 = vst [vmem:[#allocation109_spill] sm:$0xff] %v10182_v49  ;;  %v1204_v42 = vsel %vm10145_vm14, %v1180_v27, 0.0  ;;  %v1608_v54 = vmul.f32 %v10186_v30, %v1577_v45  ;;  %vm10187_vm0 = vcmp.lt.s32.totalorder %v5873_v16, 14  ;;  %10188 = vst [vmem:[#allocation113_spill] sm:$0xff] %v6647_v18  ;;  %v1416_v1 = vsel %vm6402_vm8, %v1392_v23, 0.0  ;;  %v10191_v45 = vld [vmem:[#allocation171_spill] sm:$0xff] }
 0x374   : > { %v6645_v56 = vsel %vm10187_vm0, 1, %v9969_v25  ;;  %v1609_v11 = vmul.f32 %v10186_v30, %v1571_v57  ;;  %v1288_v29 = vmul.f32 %v10189_v19, %v1254_v37  ;;  %10190 = vst [vmem:[#allocation115_spill] sm:$0xff] %v6654_v63  ;;  %v1215_v27 = vadd.f32 %v1203_v9, %v1106_v7  ;;  %v10192_v0 = vld [vmem:[#allocation169_spill] sm:$0xff]  ;;  %v10213_v18 = vld [vmem:[#allocation179_spill] sm:$0xff] }
 0x375   : > { %v1289_v39 = vmul.f32 %v10189_v19, %v1248_v36  ;;  %vm10193_vm11 = vcmp.lt.s32.totalorder %v5894_v28, 1  ;;  %v10195_v30 = vmov 22   ;;  %v1216_v57 = vadd.f32 %v1204_v42, %v1107_v51  ;;  %v6677_v9 = vld [vmem:[%s9131_s3] sm:$0xff]  ;;  %2684 = vrot.lane.b32.xlu0 %v4818_v47, %s4555_s26  ;;  %v10326_v49 = vld [vmem:[#allocation227_spill] sm:$0xff] }
 0x376   : > { %v1679_v8 = vsel %vm10193_vm11, %v10192_v0, %v10191_v45  ;;  %vm10194_vm0 = vmmov %vm10193_vm11  ;;  %4395 = vset.pattern.permute.xlu1 %v10195_v30  ;;  %v1417_v37 = vsel %vm6406_vm4, %v1393_v38, 0.0  ;;  %10196 = vst [vmem:[#allocation42_spill] sm:$0xff] %v6677_v9  ;;  %v1428_v51 = vadd.f32 %v1416_v1, %v1319_v20  ;;  %v1631_v42 = vsel %vm6557_vm12, %v1608_v54, 0.0  ;;  %v10197_v38 = vld [vmem:[#allocation163_spill] sm:$0xff]  ;;  %v10198_v19 = vld [vmem:[#allocation161_spill] sm:$0xff]  ;;  %v6700_v10 = vpop.permute.xlu0 %2248  ;;  %v6702_v30 = vpop.permute.xlu1 %2499 }
 0x377   : > { %v1685_v23 = vsel %vm10194_vm0, %v10191_v45, %v10192_v0  ;;  %2827 = vperm.xlu1 %4395, %v6677_v9   ;;  %vm10199_vm11 = vcmp.lt.s32.totalorder %v5894_v28, 14  ;;  %vm10201_vm15 = vcmp.ge.s32.totalorder %v5873_v16, 2  ;;  %vm10202_vm14 = vcmp.lt.s32.totalorder %v5868_v32, 15  ;;  %v10203_v1 = vld [vmem:[#allocation130_spill] sm:$0xff]  ;;  %10204 = vst [vmem:[#allocation37_spill] sm:$0xff] %v6702_v30 }
 0x378   : > { %v1463_v45 = vsel %vm10199_vm11, %v10198_v19, %v10197_v38  ;;  %vm10200_vm0 = vmmov %vm10199_vm11  ;;  %v1632_v20 = vsel %vm6572_vm3, %v1609_v11, 0.0  ;;  %v1311_v54 = vsel %vm6336_vm7, %v1288_v29, 0.0  ;;  %v1716_v36 = vmul.f32 %v10203_v1, %v1685_v23  ;;  %v10207_v11 = vld [vmem:[#allocation175_spill] sm:$0xff] }
 0x379   : > { %v1469_v0 = vsel %vm10200_vm0, %v10197_v38, %v10198_v19  ;;  %vm2099_vm5 = vmand %vm10202_vm14, %vm10201_vm15  ;;  %v1717_v7 = vmul.f32 %v10203_v1, %v1679_v8  ;;  %v1429_v38 = vadd.f32 %v1417_v37, %v1320_v52  ;;  %v10205_v19 = vld [vmem:[#allocation150_spill] sm:$0xff]  ;;  %v1312_v55 = vsel %vm6350_vm1, %v1289_v39, 0.0  ;;  %2696 = vrot.lane.b32.xlu0 %v4824_v48, %s4555_s26 }
 0x37a   : > { %v1787_v63 = vmul.f32 %v10205_v19, %v4808_v43  ;;  %vm10208_vm14 = vcmp.lt.s32.totalorder %v5894_v28, 15  ;;  %v1501_v23 = vmul.f32 %v10209_v15, %v1469_v0  ;;  %v1502_v8 = vmul.f32 %v10209_v15, %v1463_v45  ;;  %v6726_v39 = vld [vmem:[%s9131_s3 + $0x8] sm:$0xff]  ;;  %v6736_v58 = vpop.permute.xlu0 %2260  ;;  %v6738_v50 = vpop.permute.xlu1 %2503 }
 0x37b   : > { %v1362_v29 = vsel %vm10208_vm14, %v10207_v11, %v10206_v60  ;;  %vm10210_vm15 = vmmov %vm10208_vm14  ;;  %v6719_v37 = vsel %vm2099_vm5, 1, %v9969_v25  ;;  %10211 = vst [vmem:[#allocation123_spill] sm:$0xff] %v6726_v39  ;;  %2831 = vperm.xlu1 %4395, %v6726_v39   ;;  %v1788_v15 = vmul.f32 %v10205_v19, %v4814_v44  ;;  %v1643_v45 = vadd.f32 %v1631_v42, %v1535_v35  ;;  %v10214_v19 = vld [vmem:[#allocation177_spill] sm:$0xff] }
 0x37c   : > { %v1356_v52 = vsel %vm10210_vm15, %v10206_v60, %v10207_v11  ;;  %v1644_v0 = vadd.f32 %v1632_v20, %v1536_v21  ;;  %v1323_v1 = vadd.f32 %v1311_v54, %v1215_v27  ;;  %v1324_v60 = vadd.f32 %v1312_v55, %v1216_v57  ;;  %vm10219_vm14 = vmmov %vm10200_vm0  ;;  %v10220_v54 = vld [vmem:[#allocation191_spill] sm:$0xff]  ;;  %v10231_v35 = vld [vmem:[#allocation149_spill] sm:$0xff] }
 0x37d   : > { %v1739_v11 = vsel %vm6612_vm13, %v1716_v36, 0.0  ;;  %v1740_v30 = vsel %vm6616_vm2, %v1717_v7, 0.0  ;;  %v1396_v9 = vmul.f32 %v10212_v4, %v1362_v29  ;;  %v1397_v39 = vmul.f32 %v10212_v4, %v1356_v52  ;;  %v10217_v4 = vld [vmem:[#allocation187_spill] sm:$0xff]  ;;  %v10218_v7 = vld [vmem:[#allocation185_spill] sm:$0xff] }
 0x37e   : > { %vm10215_vm5 = vcmp.lt.s32.totalorder %v5894_v28, 2  ;;  %v1525_v27 = vsel %vm6463_vm10, %v1501_v23, 0.0  ;;  %v1526_v57 = vsel %vm6481_vm9, %v1502_v8, 0.0  ;;  %v1465_v36 = vsel %vm10200_vm0, %v10218_v7, %v10217_v4  ;;  %v10221_v29 = vld [vmem:[#allocation189_spill] sm:$0xff] }
 0x37f   : > { %v1572_v21 = vsel %vm10215_vm5, %v10214_v19, %v10213_v18  ;;  %vm10216_vm11 = vmmov %vm10215_vm5  ;;  %v1471_v42 = vsel %vm10219_vm14, %v10217_v4, %v10218_v7  ;;  %2145 = vrot.lane.b32.xlu1 %v4860_v62, %s4545_s17  ;;  %v1752_v20 = vadd.f32 %v1740_v30, %v1644_v0  ;;  %vm10222_vm15 = vcmp.lt.s32.totalorder %v5894_v28, 1  ;;  %v6791_v4 = vpop.permute.xlu0 %2406  ;;  %v6793_v7 = vpop.permute.xlu1 %1819 }
 0x380   : > { %v1578_v55 = vsel %vm10216_vm11, %v10213_v18, %v10214_v19  ;;  %v1751_v18 = vadd.f32 %v1739_v11, %v1643_v45  ;;  %v1680_v23 = vsel %vm10222_vm15, %v10221_v29, %v10220_v54  ;;  %vm10223_vm5 = vmmov %vm10222_vm15  ;;  %vm10224_vm0 = vcmp.ge.s32.totalorder %v5873_v16, 1  ;;  %4397 = vset.pattern.permute.xlu1 %v9945_v46  ;;  %v10228_v45 = vld [vmem:[#allocation146_spill] sm:$0xff]  ;;  %10229 = vst [vmem:[#allocation121_spill] sm:$0xff] %v6791_v4 }
 0x381   : > { %v1686_v8 = vsel %vm10223_vm5, %v10220_v54, %v10221_v29  ;;  %vm10225_vm14 = vcmp.lt.s32.totalorder %v5868_v32, 15  ;;  %v1420_v30 = vsel %vm6402_vm8, %v1396_v9, 0.0  ;;  %v1610_v0 = vmul.f32 %v10228_v45, %v1578_v55  ;;  %10230 = vst [vmem:[#allocation127_spill] sm:$0xff] %v6793_v7  ;;  %v10232_v55 = vld [vmem:[#allocation166_spill] sm:$0xff] }
 0x382   : > { %vm6780_vm1 = vmand %vm10225_vm14, %vm10224_vm0  ;;  %v1611_v11 = vmul.f32 %v10228_v45, %v1572_v21  ;;  %v1537_v54 = vadd.f32 %v1525_v27, %v1428_v51  ;;  %v1421_v29 = vsel %vm6406_vm4, %v1397_v39, 0.0  ;;  %v1505_v46 = vmul.f32 %v10231_v35, %v1471_v42  ;;  %v6810_v51 = vld [vmem:[%s9131_s3 + $0x20] sm:$0xff]  ;;  %v10233_v42 = vld [vmem:[#allocation199_spill] sm:$0xff] }
 0x383   : > { %v1506_v34 = vmul.f32 %v10231_v35, %v1465_v36  ;;  %v1538_v9 = vadd.f32 %v1526_v57, %v1429_v38  ;;  %v1718_v21 = vmul.f32 %v10232_v55, %v1686_v8  ;;  %v1719_v45 = vmul.f32 %v10232_v55, %v1680_v23  ;;  %2843 = vperm.xlu0 %4404, %v6810_v51   ;;  %v10234_v23 = vld [vmem:[#allocation202_spill] sm:$0xff]  ;;  %v6827_v52 = vpop.permute.xlu1 %1831 }
 0x384   : > { %v6805_v19 = vsel %vm6780_vm1, 1, %v9969_v25  ;;  %2157 = vrot.lane.b32.xlu1 %v10085_v5, %s4545_s17  ;;  %v1432_v38 = vadd.f32 %v1420_v30, %v1323_v1  ;;  %v6815_v39 = vadd.f32 %v1787_v63, %v1751_v18  ;;  %v6817_v35 = vadd.f32 %v1788_v15, %v1752_v20  ;;  %vm10235_vm1 = vmmov %vm10216_vm11  ;;  %10236 = vst [vmem:[#allocation125_spill] sm:$0xff] %v6827_v52  ;;  %v6839_v18 = vpop.permute.xlu0 %2511  ;;  %s4559_s17 = smov 95   ;;  %v10280_v5 = vld [vmem:[#allocation205_spill] sm:$0xff] }
 0x385   : > { %v1433_v27 = vadd.f32 %v1421_v29, %v1324_v60  ;;  %v1633_v57 = vsel %vm6557_vm12, %v1610_v0, 0.0  ;;  %v1634_v36 = vsel %vm6572_vm3, %v1611_v11, 0.0  ;;  %v1580_v8 = vsel %vm10235_vm1, %v10234_v23, %v10233_v42  ;;  %vm10237_vm5 = vmmov %vm10235_vm1  ;;  %10238 = vst [vmem:[#allocation129_spill] sm:$0xff] %v6839_v18 }
 0x386   : > { %v1529_v63 = vsel %vm6463_vm10, %v1505_v46, 0.0  ;;  %v1530_v15 = vsel %vm6481_vm9, %v1506_v34, 0.0  ;;  %v1574_v1 = vsel %vm10237_vm5, %v10233_v42, %v10234_v23  ;;  %v1741_v20 = vsel %vm6612_vm13, %v1718_v21, 0.0  ;;  %v10248_v42 = vld [vmem:[#allocation188_spill] sm:$0xff] }
 0x387   : > { %v1742_v30 = vsel %vm6616_vm2, %v1719_v45, 0.0  ;;  %v10239_v0 = vrot.slane %v6645_v56, %v5697_v31  ;;  %v10240_v34 = vmov 0  ;;  %v10243_v11 = vrot.slane %v6645_v56, %v5901_v3 }
 0x388   : > { %v10244_v29 = vmov 0  ;;  %vm10247_vm1 = vcmp.lt.s32.totalorder %v5868_v32, 15  ;;  %v9533_v21 = vmov 23   ;;  %2358 = vrot.lane.b32.xlu1 %v10093_v33, %s4549_s25  ;;  %v1645_v45 = vadd.f32 %v1633_v57, %v1537_v54 }
 0x389   : > { %vm6848_vm0 = vcmp.eq.s32.totalorder %v10239_v0, 1  ;;  %vm6855_vm14 = vcmp.eq.s32.totalorder %v10243_v11, 1  ;;  %v6864_v55 = vsel %vm10247_vm1, 1, %v9969_v25  ;;  %4407 = vset.pattern.permute.xlu0 %v9533_v21  ;;  %v1646_v56 = vadd.f32 %v1634_v36, %v1538_v9  ;;  %v10249_v0 = vld [vmem:[#allocation165_spill] sm:$0xff] }
 0x38a   : > { %v10241_v34 = vsel %vm6848_vm0, 4294967295, %v10240_v34  ;;  %v10245_v29 = vsel %vm6855_vm14, 4294967295, %v10244_v29  ;;  %v1789_v23 = vmul.f32 %v10248_v42, %v4818_v47  ;;  %v1614_v11 = vmul.f32 %v10249_v0, %v1580_v8  ;;  %2947 = vperm.xlu0 %4407, %v6527_v53   ;;  %v10257_v8 = vld [vmem:[#allocation214_spill] sm:$0xff] }
 0x38b   : > { %10242 = vst [vmem:[#allocation131_spill] sm:$0xff] %v10241_v34  ;;  %10246 = vst [vmem:[#allocation41_spill] sm:$0xff] %v10245_v29  ;;  %v1541_v46 = vadd.f32 %v1529_v63, %v1432_v38  ;;  %v1542_v60 = vadd.f32 %v1530_v15, %v1433_v27  ;;  %v1790_v18 = vmul.f32 %v10248_v42, %v4824_v48  ;;  %v10251_v7 = vmov 0  ;;  %v6890_v27 = vpop.permute.xlu1 %2031  ;;  %v10258_v63 = vld [vmem:[#allocation216_spill] sm:$0xff]  ;;  %v10267_v42 = vld [vmem:[#allocation221_spill] sm:$0xff] }
 0x38c   : > { %v10250_v21 = vrot.slane %v6584_v61, %v5697_v31  ;;  %v10253_v54 = vrot.slane %v6584_v61, %v5901_v3  ;;  %v10254_v9 = vmov 0  ;;  %v1615_v38 = vmul.f32 %v10249_v0, %v1574_v1  ;;  %10256 = vst [vmem:[#allocation48_spill] sm:$0xff] %v6890_v27  ;;  %v10268_v0 = vld [vmem:[#allocation219_spill] sm:$0xff]  ;;  %2370 = vrot.lane.b32.xlu1 %v10111_v22, %s4549_s25  ;;  %v10273_v27 = vld [vmem:[#allocation218_spill] sm:$0xff] }
 0x38d   : > { %v1753_v57 = vadd.f32 %v1741_v20, %v1645_v45  ;;  %v1754_v36 = vadd.f32 %v1742_v30, %v1646_v56  ;;  %v1688_v15 = vsel %vm10222_vm15, %v10258_v63, %v10257_v8  ;;  %vm10259_vm9 = vcmp.lt.s32.totalorder %v5873_v16, 15  ;;  %v6907_v20 = vpop.permute.xlu0 %2463  ;;  %v10263_v30 = vld [vmem:[#allocation212_spill] sm:$0xff] }
 0x38e   : > { %vm6878_vm5 = vcmp.eq.s32.totalorder %v10250_v21, 1  ;;  %vm6885_vm1 = vcmp.eq.s32.totalorder %v10253_v54, 1  ;;  %vm10260_vm10 = vcmp.lt.s32.totalorder %v5868_v32, 15  ;;  %v10264_v21 = vld [vmem:[#allocation210_spill] sm:$0xff]  ;;  %vm10265_vm8 = vcmp.lt.s32.totalorder %v5894_v28, 126  ;;  %2899 = vrot.lane.b32.xlu0 %v4808_v43, %s4559_s17 }
 0x38f   : > { %v10252_v7 = vsel %vm6878_vm5, 4294967295, %v10251_v7  ;;  %v10255_v9 = vsel %vm6885_vm1, 4294967295, %v10254_v9  ;;  %vm6903_vm4 = vmand %vm10260_vm10, %vm10259_vm9  ;;  %v1943_v45 = vsel %vm10265_vm8, %v10264_v21, %v10263_v30  ;;  %vm10269_vm11 = vcmp.lt.s32.totalorder %v5894_v28, 127  ;;  %v6954_v24 = vpop.permute.xlu1 %2043 }
 0x390   : > { %vm10266_vm15 = vmmov %vm10265_vm8  ;;  %v1835_v54 = vsel %vm10269_vm11, %v10268_v0, %v10267_v42  ;;  %v1637_v52 = vsel %vm6557_vm12, %v1614_v11, 0.0  ;;  %vm10271_vm8 = vcmp.lt.s32.totalorder %v5894_v28, 1  ;;  %v1638_v11 = vsel %vm6572_vm3, %v1615_v38, 0.0  ;;  %10277 = vst [vmem:[#allocation45_spill] sm:$0xff] %v6954_v24  ;;  %v10279_v38 = vld [vmem:[#allocation170_spill] sm:$0xff] }
 0x391   : > { %v1949_v56 = vsel %vm10266_vm15, %v10263_v30, %v10264_v21  ;;  %vm10270_vm10 = vmmov %vm10269_vm11  ;;  %v1682_v30 = vsel %vm10271_vm8, %v10257_v8, %v10258_v63  ;;  %v10272_v21 = vld [vmem:[#allocation220_spill] sm:$0xff]  ;;  %v6952_v63 = vsel %vm6903_vm4, 1, %v9969_v25  ;;  %v6957_v4 = vmul.f32 %v10278_v2, %v1943_v45  ;;  %v6972_v45 = vld [vmem:[%s9131_s3 + $0x28] sm:$0xff] }
 0x392   : > { %v1841_v61 = vsel %vm10270_vm10, %v10267_v42, %v10268_v0  ;;  %vm10274_vm9 = vmmov %vm10270_vm10  ;;  %v2325_v42 = vrot.slane %v6864_v55, %v5901_v3  ;;  %v10275_v0 = vld [vmem:[#allocation181_spill] sm:$0xff]  ;;  %v6960_v13 = vmul.f32 %v10278_v2, %v1949_v56  ;;  %v1802_v33 = vadd.f32 %v1790_v18, %v1754_v36  ;;  %2519 = vperm.xlu1 %4397, %v6972_v45  }
 0x393   : > { %v1836_v26 = vsel %vm10274_vm9, %v10273_v27, %v10272_v21  ;;  %v1722_v14 = vmul.f32 %v10275_v0, %v1688_v15  ;;  %vm10276_vm15 = vmmov %vm10274_vm9  ;;  %v1872_v15 = vmul.f32 %v10279_v38, %v1835_v54  ;;  %v1873_v22 = vmul.f32 %v10279_v38, %v1841_v61  ;;  %2911 = vrot.lane.b32.xlu0 %v4814_v44, %s4559_s17  ;;  %v7018_v38 = vpop.permute.xlu1 %2193 }
 0x394   : > { %v1842_v8 = vsel %vm10276_vm15, %v10272_v21, %v10273_v27  ;;  %v6965_v27 = vpop.permute.xlu0 %2475  ;;  %v1723_v1 = vmul.f32 %v10275_v0, %v1682_v30  ;;  %v1801_v21 = vadd.f32 %v1789_v23, %v1753_v57  ;;  %v1874_v24 = vmul.f32 %v10280_v5, %v1836_v26  ;;  %10293 = vst [vmem:[#allocation49_spill] sm:$0xff] %v7018_v38 }
 0x395   : > { %v1649_v2 = vadd.f32 %v1637_v52, %v1541_v46  ;;  %v1650_v56 = vadd.f32 %v1638_v11, %v1542_v60  ;;  %v1875_v61 = vmul.f32 %v10280_v5, %v1842_v8  ;;  %v2430_v54 = vrot.slane %v6952_v63, %v5697_v31  ;;  %v10289_v60 = vld [vmem:[#allocation231_spill] sm:$0xff]  ;;  %v10290_v46 = vld [vmem:[#allocation229_spill] sm:$0xff] }
 0x396   : > { %v1745_v26 = vsel %vm6612_vm13, %v1722_v14, 0.0  ;;  %v10281_v18 = vrot.slane %v6719_v37, %v5697_v31  ;;  %v10282_v23 = vmov 0  ;;  %v10285_v52 = vrot.slane %v6719_v37, %v5901_v3  ;;  %2570 = vrot.lane.b32.xlu1 %v4798_v40, %s4553_s23 }
 0x397   : > { %v10286_v5 = vmov 0  ;;  %vm10291_vm9 = vcmp.lt.s32.totalorder %v5894_v28, 126  ;;  %v2434_v36 = vrot.slane %v6952_v63, %v5901_v3  ;;  %v2003_v37 = vsel %vm6848_vm0, %v6957_v4, 0.0  ;;  %2590 = vrot.lane.b32.xlu0 %v4851_v59, %s4553_s23 }
 0x398   : > { %vm6985_vm4 = vcmp.eq.s32.totalorder %v10281_v18, 1  ;;  %vm6992_vm8 = vcmp.eq.s32.totalorder %v10285_v52, 1  ;;  %v1944_v57 = vsel %vm10291_vm9, %v10290_v46, %v10289_v60  ;;  %vm10292_vm15 = vmmov %vm10291_vm9  ;;  %v2004_v30 = vsel %vm6855_vm14, %v6960_v13, 0.0  ;;  %v7016_v8 = vpop.permute.xlu0 %2143  ;;  %v10302_v52 = vld [vmem:[#allocation257_spill] sm:$0xff] }
 0x399   : > { %v10283_v23 = vsel %vm6985_vm4, 4294967295, %v10282_v23  ;;  %v10287_v5 = vsel %vm6992_vm8, 4294967295, %v10286_v5  ;;  %v1950_v14 = vsel %vm10292_vm15, %v10289_v60, %v10290_v46  ;;  %v1895_v11 = vsel %vm6878_vm5, %v1872_v15, 0.0  ;;  %v10303_v60 = vld [vmem:[#allocation252_spill] sm:$0xff] }
 0x39a   : > { %10284 = vst [vmem:[#allocation137_spill] sm:$0xff] %v10283_v23  ;;  %10288 = vst [vmem:[#allocation139_spill] sm:$0xff] %v10287_v5  ;;  %v1896_v0 = vsel %vm6885_vm1, %v1873_v22, 0.0  ;;  %v1746_v63 = vsel %vm6616_vm2, %v1723_v1, 0.0  ;;  %v1897_v4 = vsel %vm6878_vm5, %v1874_v24, 0.0  ;;  %v10294_v18 = vrot.slane %v6805_v19, %v5697_v31  ;;  %2582 = vrot.lane.b32.xlu1 %v4804_v41, %s4553_s23 }
 0x39b   : > { %v10295_v13 = vmov 0  ;;  %v10298_v22 = vrot.slane %v6805_v19, %v5901_v3  ;;  %v10299_v15 = vmov 0  ;;  %vm10304_vm10 = vcmp.lt.s32.totalorder %v5894_v28, 114  ;;  %2793 = vrot.lane.b32.xlu0 %v4818_v47, %s4557_s19 }
 0x39c   : > { %vm7027_vm9 = vcmp.eq.s32.totalorder %v10294_v18, 1  ;;  %v2052_v1 = vsel %vm10304_vm10, %v10303_v60, %v10302_v52  ;;  %vm10305_vm11 = vmmov %vm10304_vm10  ;;  %v1898_v19 = vsel %vm6885_vm1, %v1875_v61, 0.0  ;;  %v7050_v46 = vadd.f32 %v1745_v26, %v1649_v2  ;;  %v10306_v18 = vld [vmem:[#allocation208_spill] sm:$0xff] }
 0x39d   : > { %v10296_v13 = vsel %vm7027_vm9, 4294967295, %v10295_v13  ;;  %vm7034_vm15 = vcmp.eq.s32.totalorder %v10298_v22, 1  ;;  %v2058_v24 = vsel %vm10305_vm11, %v10302_v52, %v10303_v60  ;;  %v1982_v22 = vmul.f32 %v10306_v18, %v1944_v57  ;;  %v7091_v60 = vpop.permute.xlu0 %2155 }
 0x39e   : > { %10297 = vst [vmem:[#allocation141_spill] sm:$0xff] %v10296_v13  ;;  %v10300_v15 = vsel %vm7034_vm15, 4294967295, %v10299_v15  ;;  %v1983_v38 = vmul.f32 %v10306_v18, %v1950_v14  ;;  %vm10307_vm2 = vcmp.lt.s32.totalorder %v5873_v16, 14  ;;  %vm10308_vm10 = vcmp.lt.s32.totalorder %v5868_v32, 15  ;;  %v7093_v18 = vpop.permute.xlu1 %2244  ;;  %v10502_v13 = vld [vmem:[#allocation64_spill] sm:$0xff] }
 0x39f   : > { %10301 = vst [vmem:[#allocation143_spill] sm:$0xff] %v10300_v15  ;;  %vm7058_vm13 = vmand %vm10308_vm10, %vm10307_vm2  ;;  %v10311_v52 = vmov 21   ;;  %v1907_v2 = vadd.f32 %v1895_v11, %v6815_v39  ;;  %v1908_v61 = vadd.f32 %v1896_v0, %v6817_v35  ;;  %v10312_v26 = vrot.slane %v6864_v55, %v5697_v31  ;;  %v10321_v11 = vld [vmem:[#allocation242_spill] sm:$0xff]  ;;  %2805 = vrot.lane.b32.xlu0 %v4824_v48, %s4557_s19 }
 0x3a0   : > { %4398 = vset.pattern.permute.xlu1 %v10311_v52  ;;  %v10313_v57 = vmov 0  ;;  %vm7074_vm2 = vcmp.eq.s32.totalorder %v2325_v42, 1  ;;  %v10316_v32 = vmov 0  ;;  %vm10319_vm10 = vcmp.lt.s32.totalorder %v5894_v28, 113  ;;  %10322 = vst [vmem:[#allocation101_spill] sm:$0xff] %v7093_v18  ;;  %v10341_v52 = vld [vmem:[#allocation228_spill] sm:$0xff] }
 0x3a1   : > { %vm7070_vm11 = vcmp.eq.s32.totalorder %v10312_v26, 1  ;;  %v10317_v32 = vsel %vm7074_vm2, 4294967295, %v10316_v32  ;;  %v2162_v14 = vsel %vm10319_vm10, %v6324_v12, %v6374_v17  ;;  %vm10320_vm3 = vmmov %vm10319_vm10  ;;  %v1909_v35 = vadd.f32 %v1897_v4, %v1801_v21 }
 0x3a2   : > { %v10314_v57 = vsel %vm7070_vm11, 4294967295, %v10313_v57  ;;  %10318 = vst [vmem:[#allocation147_spill] sm:$0xff] %v10317_v32  ;;  %v2168_v39 = vsel %vm10320_vm3, %v6374_v17, %v6324_v12  ;;  %v7086_v55 = vadd.f32 %v1746_v63, %v1650_v56  ;;  %v2090_v0 = vmul.f32 %v10321_v11, %v2052_v1  ;;  %v10325_v56 = vld [vmem:[#allocation10_spill] sm:$0xff] }
 0x3a3   : > { %10315 = vst [vmem:[#allocation145_spill] sm:$0xff] %v10314_v57  ;;  %v2091_v42 = vmul.f32 %v10321_v11, %v2058_v24  ;;  %v1910_v26 = vadd.f32 %v1898_v19, %v1802_v33  ;;  %vm10323_vm10 = vcmp.lt.s32.totalorder %v5894_v28, 112  ;;  %v7106_v17 = vsel %vm7058_vm13, 1, %v9969_v25  ;;  %v10327_v1 = vld [vmem:[#allocation226_spill] sm:$0xff]  ;;  %v7144_v11 = vpop.permute.xlu1 %2256  ;;  %2951 = vperm.xlu0 %4407, %v6810_v51  }
 0x3a4   : > { %v2271_v6 = vsel %vm10323_vm10, %v6700_v10, %v6736_v58  ;;  %vm10324_vm3 = vmmov %vm10323_vm10  ;;  %v2005_v33 = vsel %vm6848_vm0, %v1982_v22, 0.0  ;;  %v2006_v21 = vsel %vm6855_vm14, %v1983_v38, 0.0  ;;  %v2200_v63 = vmul.f32 %v10325_v56, %v2162_v14  ;;  %10337 = vst [vmem:[#allocation155_spill] sm:$0xff] %v7144_v11  ;;  %v10461_v57 = vld [vmem:[#allocation254_spill] sm:$0xff] }
 0x3a5   : > { %v2277_v12 = vsel %vm10324_vm3, %v6736_v58, %v6700_v10  ;;  %v2201_v4 = vmul.f32 %v10325_v56, %v2168_v39  ;;  %v7118_v58 = vadd.f32 %v2003_v37, %v1907_v2  ;;  %v7120_v10 = vadd.f32 %v2004_v30, %v1908_v61  ;;  %v10336_v2 = vld [vmem:[#allocation113_spill] sm:$0xff]  ;;  %v2357_v39 = vpop.permute.xlu0 %2356 }
 0x3a6   : > { %vm10328_vm13 = vcmp.lt.s32.totalorder %v5894_v28, 114  ;;  %vm7130_vm3 = vcmp.eq.s32.totalorder %v2430_v54, 1  ;;  %v10330_v19 = vmov 0  ;;  %vm7134_vm12 = vcmp.eq.s32.totalorder %v2434_v36, 1 }
 0x3a7   : > { %v2051_v24 = vsel %vm10328_vm13, %v10327_v1, %v10326_v49  ;;  %vm10329_vm10 = vmmov %vm10328_vm13  ;;  %v10331_v19 = vsel %vm7130_vm3, 4294967295, %v10330_v19  ;;  %v10333_v22 = vmov 0  ;;  %v2115_v37 = vsel %vm6985_vm4, %v2090_v0, 0.0  ;;  %v10339_v0 = vld [vmem:[#allocation209_spill] sm:$0xff]  ;;  %v2399_v11 = vpop.permute.xlu1 %2398 }
 0x3a8   : > { %v2057_v38 = vsel %vm10329_vm10, %v10326_v49, %v10327_v1  ;;  %10332 = vst [vmem:[#allocation106_spill] sm:$0xff] %v10331_v19  ;;  %v10334_v22 = vsel %vm7134_vm12, 4294967295, %v10333_v22  ;;  %v2116_v30 = vsel %vm6992_vm8, %v2091_v42, 0.0  ;;  %v2309_v61 = vmul.f32 %v10336_v2, %v2271_v6  ;;  %v10338_v1 = vld [vmem:[#allocation111_spill] sm:$0xff]  ;;  %v10340_v42 = vld [vmem:[#allocation20_spill] sm:$0xff]  ;;  %v10532_v19 = vld [vmem:[#allocation90_spill] sm:$0xff] }
 0x3a9   : > { %10335 = vst [vmem:[#allocation153_spill] sm:$0xff] %v10334_v22  ;;  %v2310_v14 = vmul.f32 %v10336_v2, %v2277_v12  ;;  %v2017_v54 = vadd.f32 %v2005_v33, %v1909_v35  ;;  %v2018_v56 = vadd.f32 %v2006_v21, %v1910_v26  ;;  %v2539_v36 = vrot.slane %v7106_v17, %v5697_v31  ;;  %v10342_v33 = vld [vmem:[#allocation243_spill] sm:$0xff]  ;;  %v10531_v22 = vld [vmem:[#allocation84_spill] sm:$0xff] }
 0x3aa   : > { %v2543_v49 = vrot.slane %v7106_v17, %v5901_v3  ;;  %2726 = vperm.xlu1 %4398, %v10338_v1   ;;  %v2088_v18 = vmul.f32 %v10339_v0, %v2051_v24  ;;  %v1793_v6 = vmul.f32 %v10341_v52, %v10340_v42  ;;  %v2224_v12 = vsel %vm7027_vm9, %v2200_v63, 0.0  ;;  %v10343_v17 = vld [vmem:[#allocation241_spill] sm:$0xff] }
 0x3ab   : > { %v2225_v35 = vsel %vm7034_vm15, %v2201_v4, 0.0  ;;  %v2089_v26 = vmul.f32 %v10339_v0, %v2057_v38  ;;  %vm10344_vm13 = vcmp.lt.s32.totalorder %v5894_v28, 113  ;;  %v2127_v24 = vadd.f32 %v2115_v37, %v2017_v54  ;;  %v2369_v0 = vpop.permute.xlu0 %2368  ;;  %v7177_v37 = vld [vmem:[%s9129_s1] ss:$2 sm:$0x3] }
 0x3ac   : > { %v2161_v21 = vsel %vm10344_vm13, %v10343_v17, %v10342_v33  ;;  %v2128_v2 = vadd.f32 %v2116_v30, %v2018_v56  ;;  %vm10345_vm7 = vmmov %vm10344_vm13  ;;  %v2332_v4 = vsel %vm7070_vm11, %v2309_v61, 0.0  ;;  %v2333_v38 = vsel %vm7074_vm2, %v2310_v14, 0.0  ;;  %10346 = vst [vmem:[#allocation157_spill] sm:$0xff] %v7177_v37 }
 0x3ad   : > { %v2167_v63 = vsel %vm10345_vm7, %v10342_v33, %v10343_v17  ;;  %vm9582_vm13 = vcmp.lt.s32.totalorder %v7177_v37, 14  ;;  %v2236_v30 = vadd.f32 %v2224_v12, %v2127_v24  ;;  %vm10347_vm10 = vcmp.lt.s32.totalorder %v5894_v28, 111  ;;  %v10350_v12 = vld [vmem:[#allocation42_spill] sm:$0xff] }
 0x3ae   : > { %v2237_v54 = vadd.f32 %v2225_v35, %v2128_v2  ;;  %v2379_v56 = vsel %vm10347_vm10, %v2357_v39, %v2369_v0  ;;  %vm10348_vm7 = vmmov %vm10347_vm10  ;;  %v10349_v33 = vmov 23   ;;  %v2113_v14 = vsel %vm6985_vm4, %v2088_v18, 0.0 }
 0x3af   : > { %v2385_v61 = vsel %vm10348_vm7, %v2369_v0, %v2357_v39  ;;  %4399 = vset.pattern.permute.xlu1 %v10349_v33  ;;  %v1794_v17 = vmul.f32 %v10341_v52, %v4851_v59  ;;  %v2417_v42 = vmul.f32 %v2399_v11, %v2379_v56  ;;  %v2114_v35 = vsel %vm6992_vm8, %v2089_v26, 0.0  ;;  %v10354_v52 = vld [vmem:[#allocation236_spill] sm:$0xff]  ;;  %v10378_v33 = vld [vmem:[#allocation75_spill] sm:$0xff] }
 0x3b0   : > { %v2418_v48 = vmul.f32 %v2399_v11, %v2385_v61  ;;  %2935 = vperm.xlu1 %4399, %v10350_v12   ;;  %v2344_v24 = vadd.f32 %v2332_v4, %v2236_v30  ;;  %v2345_v2 = vadd.f32 %v2333_v38, %v2237_v54  ;;  %vm10351_vm10 = vcmp.ge.s32.totalorder %v5873_v16, 2  ;;  %v7207_v4 = vpop.permute.xlu0 %2515  ;;  %v10356_v38 = vld [vmem:[#allocation7_spill] sm:$0xff]  ;;  %v10357_v0 = vld [vmem:[#allocation272_spill] sm:$0xff] }
 0x3b1   : > { %vm7197_vm7 = vmand %vm9582_vm13, %vm10351_vm10  ;;  %v2198_v39 = vmul.f32 %v10354_v52, %v2161_v21  ;;  %v2199_v11 = vmul.f32 %v10354_v52, %v2167_v63  ;;  %v2441_v51 = vsel %vm7130_vm3, %v2417_v42, 0.0  ;;  %10355 = vst [vmem:[#allocation159_spill] sm:$0xff] %v7207_v4  ;;  %vm10358_vm6 = vcmp.lt.s32.totalorder %v5894_v28, 112  ;;  %v7221_v42 = vpop.permute.xlu1 %2608 }
 0x3b2   : > { %v2442_v26 = vsel %vm7134_vm12, %v2418_v48, 0.0  ;;  %v2270_v30 = vsel %vm10358_vm6, %v10357_v0, %v10356_v38  ;;  %vm10359_vm10 = vmmov %vm10358_vm6  ;;  %v7217_v54 = vadd.f32 %v2441_v51, %v2344_v24  ;;  %10360 = vst [vmem:[#allocation110_spill] sm:$0xff] %v7221_v42  ;;  %v7224_v48 = vadd.f32 %v1793_v6, %v7050_v46  ;;  %v10367_v24 = vld [vmem:[#allocation123_spill] sm:$0xff]  ;;  %v10368_v6 = vld [vmem:[#allocation38_spill] sm:$0xff] }
 0x3b3   : > { %v2276_v21 = vsel %vm10359_vm10, %v10356_v38, %v10357_v0  ;;  %v7219_v63 = vadd.f32 %v2442_v26, %v2345_v2  ;;  %vm7226_vm13 = vcmp.eq.s32.totalorder %v2539_v36, 1  ;;  %v10361_v56 = vmov 0  ;;  %v10369_v51 = vld [vmem:[#allocation87_spill] sm:$0xff]  ;;  %v10373_v0 = vld [vmem:[#allocation245_spill] sm:$0xff] }
 0x3b4   : > { %v10362_v56 = vsel %vm7226_vm13, 4294967295, %v10361_v56  ;;  %vm7230_vm8 = vcmp.eq.s32.totalorder %v2543_v49, 1  ;;  %v10364_v61 = vmov 0  ;;  %v9587_v52 = vmov 24   ;;  %2939 = vperm.xlu1 %4399, %v10367_v24   ;;  %v10372_v38 = vld [vmem:[#allocation247_spill] sm:$0xff] }
 0x3b5   : > { %10363 = vst [vmem:[#allocation117_spill] sm:$0xff] %v10362_v56  ;;  %v10365_v61 = vsel %vm7230_vm8, 4294967295, %v10364_v61  ;;  %4410 = vset.pattern.permute.xlu0 %v9587_v52  ;;  %v2645_v2 = vsel %vm7197_vm7, 1, %v9969_v25  ;;  %v2125_v46 = vadd.f32 %v2113_v14, %v7118_v58  ;;  %v2126_v36 = vadd.f32 %v2114_v35, %v7120_v10  ;;  %v10376_v10 = vld [vmem:[#allocation248_spill] sm:$0xff] }
 0x3b6   : > { %10366 = vst [vmem:[#allocation171_spill] sm:$0xff] %v10365_v61  ;;  %vm10370_vm6 = vcmp.lt.s32.totalorder %v5894_v28, 111  ;;  %3056 = vperm.xlu0 %4410, %v6527_v53   ;;  %vm10374_vm7 = vcmp.lt.s32.totalorder %v5894_v28, 127  ;;  %v2307_v14 = vmul.f32 %v10376_v10, %v2270_v30  ;;  %v2308_v35 = vmul.f32 %v10376_v10, %v2276_v21  ;;  %v10381_v21 = vld [vmem:[#allocation204_spill] sm:$0xff] }
 0x3b7   : > { %v2378_v49 = vsel %vm10370_vm6, %v10369_v51, %v10368_v6  ;;  %vm10371_vm10 = vmmov %vm10370_vm6  ;;  %v1838_v18 = vsel %vm10374_vm7, %v10373_v0, %v10372_v38  ;;  %v2222_v52 = vsel %vm7027_vm9, %v2198_v39, 0.0  ;;  %v2223_v53 = vsel %vm7034_vm15, %v2199_v11, 0.0 }
 0x3b8   : > { %v2384_v26 = vsel %vm10371_vm10, %v10368_v6, %v10369_v51  ;;  %vm10375_vm4 = vmmov %vm10374_vm7  ;;  %v7264_v6 = vpop.permute.xlu0 %2620  ;;  %v2613_v51 = vpop.permute.xlu1 %2612  ;;  %v2649_v4 = vrot.slane %v2645_v2, %v5697_v31  ;;  %v2653_v42 = vrot.slane %v2645_v2, %v5901_v3  ;;  %v2415_v24 = vmul.f32 %v10378_v33, %v2378_v49  ;;  %2254 = vrot.lane.b32.xlu1 %v4860_v62, %s4547_s18 }
 0x3b9   : > { %v1844_v58 = vsel %vm10375_vm4, %v10372_v38, %v10373_v0  ;;  %10377 = vst [vmem:[#allocation169_spill] sm:$0xff] %v7264_v6  ;;  %v2416_v38 = vmul.f32 %v10378_v33, %v2384_v26  ;;  %vm10379_vm4 = vcmp.lt.s32.totalorder %v5894_v28, 110  ;;  %v1806_v11 = vadd.f32 %v1794_v17, %v7086_v55  ;;  %v10383_v55 = vld [vmem:[#allocation36_spill] sm:$0xff]  ;;  %v10384_v17 = vld [vmem:[#allocation73_spill] sm:$0xff] }
 0x3ba   : > { %v2487_v30 = vsel %vm10379_vm4, %v6907_v20, %v6965_v27  ;;  %vm10380_vm6 = vmmov %vm10379_vm4  ;;  %v1878_v2 = vmul.f32 %v10381_v21, %v1838_v18  ;;  %v1879_v49 = vmul.f32 %v10381_v21, %v1844_v58  ;;  %3008 = vrot.lane.b32.xlu0 %v4808_v43, %s4561_s21  ;;  %v10382_v33 = vmov 20  }
 0x3bb   : > { %v2493_v39 = vsel %vm10380_vm6, %v6965_v27, %v6907_v20  ;;  %4401 = vset.pattern.permute.xlu1 %v10382_v33  ;;  %v2234_v26 = vadd.f32 %v2222_v52, %v2125_v46  ;;  %v2235_v0 = vadd.f32 %v2223_v53, %v2126_v36  ;;  %v2330_v20 = vsel %vm7070_vm11, %v2307_v14, 0.0 }
 0x3bc   : > { %v2331_v27 = vsel %vm7074_vm2, %v2308_v35, 0.0  ;;  %vm10385_vm7 = vcmp.lt.s32.totalorder %v5894_v28, 126  ;;  %v2524_v58 = vmul.f32 %v6738_v50, %v2487_v30  ;;  %v2525_v52 = vmul.f32 %v6738_v50, %v2493_v39  ;;  %v2573_v46 = vpop.permute.xlu0 %2572  ;;  %v7301_v36 = vpop.permute.xlu1 %1927  ;;  %v10388_v35 = vld [vmem:[#allocation23_spill] sm:$0xff] }
 0x3bd   : > { %v1946_v18 = vsel %vm10385_vm7, %v10384_v17, %v10383_v55  ;;  %vm10386_vm4 = vmmov %vm10385_vm7  ;;  %10387 = vst [vmem:[#allocation163_spill] sm:$0xff] %v7301_v36  ;;  %v2439_v10 = vsel %vm7130_vm3, %v2415_v24, 0.0  ;;  %v2440_v14 = vsel %vm7134_vm12, %v2416_v38, 0.0  ;;  %2266 = vrot.lane.b32.xlu1 %v10388_v35, %s4547_s18  ;;  %vm7309_vm6 = vcmp.eq.s32.totalorder %v2649_v4, 1  ;;  %v10393_v38 = vld [vmem:[#allocation222_spill] sm:$0xff] }
 0x3be   : > { %v1952_v43 = vsel %vm10386_vm4, %v10383_v55, %v10384_v17  ;;  %v10389_v53 = vmov 0  ;;  %vm7313_vm7 = vcmp.eq.s32.totalorder %v2653_v42, 1  ;;  %v10391_v30 = vmov 0  ;;  %3020 = vrot.lane.b32.xlu0 %v4814_v44, %s4561_s21  ;;  %v10394_v55 = vld [vmem:[#allocation115_spill] sm:$0xff] }
 0x3bf   : > { %v10390_v53 = vsel %vm7309_vm6, 4294967295, %v10389_v53  ;;  %v10392_v30 = vsel %vm7313_vm7, 4294967295, %v10391_v30  ;;  %v1901_v50 = vsel %vm6878_vm5, %v1878_v2, 0.0  ;;  %v1902_v24 = vsel %vm6885_vm1, %v1879_v49, 0.0  ;;  %v10395_v42 = vld [vmem:[#allocation107_spill] sm:$0xff] }
 0x3c0   : > { %v2342_v39 = vadd.f32 %v2330_v20, %v2234_v26  ;;  %v2343_v21 = vadd.f32 %v2331_v27, %v2235_v0  ;;  %v1986_v4 = vmul.f32 %v10393_v38, %v1946_v18  ;;  %v1987_v33 = vmul.f32 %v10393_v38, %v1952_v43  ;;  %v2585_v20 = vpop.permute.xlu0 %2584  ;;  %v7337_v27 = vpop.permute.xlu1 %1939 }
 0x3c1   : > { %vm10396_vm4 = vcmp.lt.s32.totalorder %v5894_v28, 114  ;;  %v2548_v0 = vsel %vm7226_vm13, %v2524_v58, 0.0  ;;  %v2549_v44 = vsel %vm7230_vm8, %v2525_v52, 0.0  ;;  %10398 = vst [vmem:[#allocation161_spill] sm:$0xff] %v7337_v27  ;;  %vm10401_vm1 = vcmp.lt.s32.totalorder %v5894_v28, 98  ;;  %v10403_v52 = vld [vmem:[#allocation17_spill] sm:$0xff] }
 0x3c2   : > { %v2054_v17 = vsel %vm10396_vm4, %v10395_v42, %v10394_v55  ;;  %vm10397_vm10 = vmmov %vm10396_vm4  ;;  %v2451_v49 = vadd.f32 %v2439_v10, %v2342_v39  ;;  %v2452_v26 = vadd.f32 %v2440_v14, %v2343_v21  ;;  %vm10399_vm4 = vcmp.lt.s32.totalorder %v5894_v28, 113  ;;  %2467 = vrot.lane.b32.xlu1 %v10403_v52, %s4551_s12  ;;  %v10404_v14 = vld [vmem:[#allocation233_spill] sm:$0xff]  ;;  %2690 = vrot.lane.b32.xlu0 %v4860_v62, %s4555_s26  ;;  %v10455_v27 = vld [vmem:[#allocation123_spill] sm:$0xff] }
 0x3c3   : > { %v2060_v2 = vsel %vm10397_vm10, %v10394_v55, %v10395_v42  ;;  %v2164_v18 = vsel %vm10399_vm4, %v7016_v8, %v7091_v60  ;;  %vm10400_vm10 = vmmov %vm10399_vm4  ;;  %v2596_v10 = vsel %vm10401_vm1, %v2573_v46, %v2585_v20  ;;  %v2094_v39 = vmul.f32 %v10404_v14, %v2054_v17 }
 0x3c4   : > { %v2170_v43 = vsel %vm10400_vm10, %v7091_v60, %v7016_v8  ;;  %vm10402_vm5 = vmmov %vm10401_vm1  ;;  %v2095_v21 = vmul.f32 %v10404_v14, %v2060_v2  ;;  %v2633_v38 = vmul.f32 %v2613_v51, %v2596_v10  ;;  %v2009_v8 = vsel %vm6848_vm0, %v1986_v4, 0.0  ;;  %v2253_v2 = vpop.permute.xlu0 %2252  ;;  %v7367_v10 = vpop.permute.xlu1 %2141 }
 0x3c5   : > { %v2602_v58 = vsel %vm10402_vm5, %v2585_v20, %v2573_v46  ;;  %v2010_v60 = vsel %vm6855_vm14, %v1987_v33, 0.0  ;;  %v2560_v42 = vadd.f32 %v2548_v0, %v2451_v49  ;;  %v2561_v46 = vadd.f32 %v2549_v44, %v2452_v26  ;;  %v10405_v20 = vld [vmem:[#allocation261_spill] sm:$0xff]  ;;  %10406 = vst [vmem:[#allocation130_spill] sm:$0xff] %v7367_v10  ;;  %v10407_v49 = vld [vmem:[#allocation19_spill] sm:$0xff] }
 0x3c6   : > { %v2634_v55 = vmul.f32 %v2613_v51, %v2602_v58  ;;  %v2204_v6 = vmul.f32 %v10405_v20, %v2164_v18  ;;  %v2205_v36 = vmul.f32 %v10405_v20, %v2170_v43  ;;  %v2658_v17 = vsel %vm7309_vm6, %v2633_v38, 0.0  ;;  %2479 = vrot.lane.b32.xlu1 %v10407_v49, %s4551_s12  ;;  %2702 = vrot.lane.b32.xlu0 %v10388_v35, %s4555_s26  ;;  %v10503_v10 = vld [vmem:[#allocation59_spill] sm:$0xff] }
 0x3c7   : > { %v1913_v4 = vadd.f32 %v1901_v50, %v7224_v48  ;;  %v1914_v58 = vadd.f32 %v1902_v24, %v1806_v11  ;;  %v7370_v14 = vadd.f32 %v2658_v17, %v2560_v42  ;;  %vm10408_vm5 = vnez %v10283_v23  ;;  %v10539_v23 = vld [vmem:[#allocation271_spill] sm:$0xff] }
 0x3c8   : > { %v2659_v51 = vsel %vm7313_vm7, %v2634_v55, 0.0  ;;  %v2119_v26 = vsel %vm10408_vm5, %v2094_v39, 0.0  ;;  %vm10409_vm1 = vnez %v10287_v5  ;;  %v2228_v48 = vsel %vm7027_vm9, %v2204_v6, 0.0  ;;  %v2265_v50 = vpop.permute.xlu0 %2264  ;;  %v7386_v24 = vpop.permute.xlu1 %2153  ;;  %v10413_v55 = vld [vmem:[#allocation5_spill] sm:$0xff] }
 0x3c9   : > { %v7372_v33 = vadd.f32 %v2659_v51, %v2561_v46  ;;  %v2120_v0 = vsel %vm10409_vm1, %v2095_v21, 0.0  ;;  %v2021_v44 = vadd.f32 %v2009_v8, %v1913_v4  ;;  %v2022_v18 = vadd.f32 %v2010_v60, %v1914_v58  ;;  %10410 = vst [vmem:[#allocation150_spill] sm:$0xff] %v7386_v24  ;;  %v10508_v24 = vld [vmem:[#allocation74_spill] sm:$0xff] }
 0x3ca   : > { %v2229_v11 = vsel %vm7034_vm15, %v2205_v36, 0.0  ;;  %vm10411_vm4 = vcmp.lt.s32.totalorder %v5894_v28, 112  ;;  %2628 = vperm.xlu1 %4401, %v6972_v45   ;;  %2903 = vrot.lane.b32.xlu0 %v10403_v52, %s4559_s17  ;;  %v10415_v4 = vmov 22   ;;  %vm10434_vm9 = vcmp.lt.s32.totalorder %v5894_v28, 32 }
 0x3cb   : > { %v2131_v43 = vadd.f32 %v2119_v26, %v2021_v44  ;;  %v2132_v38 = vadd.f32 %v2120_v0, %v2022_v18  ;;  %v2273_v39 = vsel %vm10411_vm4, %v2253_v2, %v2265_v50  ;;  %vm10412_vm10 = vmmov %vm10411_vm4  ;;  %vm10417_vm4 = vcmp.lt.s32.totalorder %v5894_v28, 110 }
 0x3cc   : > { %v2279_v21 = vsel %vm10412_vm10, %v2265_v50, %v2253_v2  ;;  %v2313_v8 = vmul.f32 %v10413_v55, %v2273_v39  ;;  %v2466_v20 = vpop.permute.xlu0 %2465  ;;  %v7401_v17 = vpop.permute.xlu1 %2302  ;;  %vm10418_vm10 = vmmov %vm10417_vm4  ;;  %v10422_v50 = vld [vmem:[#allocation60_spill] sm:$0xff]  ;;  %vm10471_vm5 = vcmp.lt.s32.totalorder %v5894_v28, 30  ;;  %vm10479_vm0 = vcmp.lt.s32.totalorder %v5894_v28, 18 }
 0x3cd   : > { %v2314_v6 = vmul.f32 %v10413_v55, %v2279_v21  ;;  %v2240_v36 = vadd.f32 %v2228_v48, %v2131_v43  ;;  %v2241_v60 = vadd.f32 %v2229_v11, %v2132_v38  ;;  %10414 = vst [vmem:[#allocation173_spill] sm:$0xff] %v7401_v17  ;;  %v10421_v11 = vld [vmem:[#allocation51_spill] sm:$0xff]  ;;  %v10425_v39 = vld [vmem:[#allocation52_spill] sm:$0xff]  ;;  %v10444_v17 = vld [vmem:[#allocation61_spill] sm:$0xff]  ;;  %vm10495_vm6 = vcmp.lt.s32.totalorder %v5894_v28, 111 }
 0x3ce   : > { %v2336_v42 = vsel %vm7070_vm11, %v2313_v8, 0.0  ;;  %2680 = vrot.lane.b32.xlu1 %v4798_v40, %s4555_s26  ;;  %2915 = vrot.lane.b32.xlu0 %v10407_v49, %s4559_s17  ;;  %v10426_v21 = vld [vmem:[#allocation56_spill] sm:$0xff]  ;;  %v10429_v8 = vld [vmem:[#allocation6_spill] sm:$0xff]  ;;  %vm10431_vm11 = vcmp.lt.s32.totalorder %v7177_v37, 14  ;;  %v10477_v37 = vld [vmem:[#allocation57_spill] sm:$0xff] }
 0x3cf   : > { %v2337_v46 = vsel %vm7074_vm2, %v2314_v6, 0.0  ;;  %v7403_v51 = vadd.f32 %v2336_v42, %v2240_v36  ;;  %4402 = vset.pattern.permute.xlu1 %v10415_v4  ;;  %vm10423_vm2 = vcmp.lt.s32.totalorder %v5894_v28, 33  ;;  %v10433_v42 = vld [vmem:[#allocation58_spill] sm:$0xff] }
 0x3d0   : > { %v7405_v2 = vadd.f32 %v2337_v46, %v2241_v60  ;;  %v2478_v58 = vpop.permute.xlu0 %2477  ;;  %v7412_v26 = vpop.permute.xlu1 %2352  ;;  %v593_v43 = vsel %vm10423_vm2, %v10422_v50, %v10421_v11  ;;  %v10432_v60 = vld [vmem:[#allocation54_spill] sm:$0xff] }
 0x3d1   : > { %10416 = vst [vmem:[#allocation175_spill] sm:$0xff] %v7412_v26  ;;  %v2488_v0 = vsel %vm10417_vm4, %v2466_v20, %v2478_v58  ;;  %v2494_v44 = vsel %vm10418_vm10, %v2478_v58, %v2466_v20  ;;  %vm10424_vm4 = vmmov %vm10423_vm2  ;;  %vm10427_vm10 = vcmp.lt.s32.totalorder %v5894_v28, 34  ;;  %v623_v6 = vmul.f32 %v10429_v8, %v593_v43  ;;  %v10437_v43 = vld [vmem:[#allocation16_spill] sm:$0xff] }
 0x3d2   : > { %2692 = vrot.lane.b32.xlu1 %v4804_v41, %s4555_s26  ;;  %3064 = vperm.xlu0 %4410, %v6972_v45   ;;  %v587_v38 = vsel %vm10424_vm4, %v10421_v11, %v10422_v50  ;;  %v476_v55 = vsel %vm10427_vm10, %v10426_v21, %v10425_v39  ;;  %vm10428_vm2 = vmmov %vm10427_vm10  ;;  %vm10430_vm4 = vcmp.ge.s32.totalorder %v5873_v16, 1  ;;  %v703_v46 = vsel %vm10434_vm9, %v10433_v42, %v10432_v60  ;;  %v10458_v16 = vld [vmem:[#allocation12_spill] sm:$0xff] }
 0x3d3   : > { %vm2753_vm15 = vmand %vm10431_vm11, %vm10430_vm4  ;;  %v624_v20 = vmul.f32 %v10429_v8, %v587_v38  ;;  %v10435_v58 = vmov 24   ;;  %v10439_v8 = vld [vmem:[#allocation29_spill] sm:$0xff] }
 0x3d4   : > { %v7421_v18 = vpop.permute.xlu1 %2364  ;;  %v7423_v48 = vpop.permute.xlu0 %2624  ;;  %vm10438_vm10 = vmmov %vm10434_vm9 }
 0x3d5   : > { %10419 = vst [vmem:[#allocation126_spill] sm:$0xff] %v7421_v18  ;;  %10420 = vst [vmem:[#allocation133_spill] sm:$0xff] %v7423_v48  ;;  %v697_v48 = vsel %vm10438_vm10, %v10432_v60, %v10433_v42  ;;  %vm10453_vm10 = vcmp.lt.s32.totalorder %v5894_v28, 30  ;;  %v10459_v18 = vld [vmem:[#allocation251_spill] sm:$0xff] }
 0x3d6   : > { %2835 = vperm.xlu1 %4402, %v10338_v1   ;;  %2809 = vrot.lane.b32.xlu0 %v4851_v59, %s4557_s19  ;;  %v470_v1 = vsel %vm10428_vm2, %v10425_v39, %v10426_v21  ;;  %v512_v21 = vmul.f32 %v10437_v43, %v476_v55  ;;  %v2754_v55 = vsel %vm2753_vm15, 1, %v9969_v25  ;;  %vm10446_vm15 = vcmp.lt.s32.totalorder %v5894_v28, 31 }
 0x3d7   : > { %4413 = vset.pattern.permute.xlu0 %v9969_v25  ;;  %v513_v38 = vmul.f32 %v10437_v43, %v470_v1  ;;  %v734_v1 = vmul.f32 %v10439_v8, %v697_v48  ;;  %v10442_v43 = vld [vmem:[#allocation256_spill] sm:$0xff]  ;;  %vm10447_vm2 = vmmov %vm10446_vm15  ;;  %v10451_v48 = vld [vmem:[#allocation55_spill] sm:$0xff]  ;;  %v2758_v61 = vrot.slane %v2754_v55, %v5697_v31 }
 0x3d8   : > { %v2508_v36 = vpop.permute.xlu1 %2507  ;;  %v7456_v39 = vpop.permute.xlu0 %2730  ;;  %vm10443_vm11 = vnez %v10442_v43  ;;  %v10463_v31 = vld [vmem:[#allocation13_spill] sm:$0xff]  ;;  %v10478_v25 = vld [vmem:[#allocation63_spill] sm:$0xff] }
 0x3d9   : > { %v2526_v11 = vmul.f32 %v2508_v36, %v2488_v0  ;;  %v2527_v50 = vmul.f32 %v2508_v36, %v2494_v44  ;;  %10436 = vst [vmem:[#allocation179_spill] sm:$0xff] %v7456_v39  ;;  %v733_v36 = vmul.f32 %v10439_v8, %v703_v46  ;;  %v10440_v39 = vld [vmem:[#allocation255_spill] sm:$0xff] }
 0x3da   : > { %4403 = vset.pattern.permute.xlu1 %v10435_v58  ;;  %3010 = vrot.lane.b32.xlu0 %v4818_v47, %s4561_s21  ;;  %vm10441_vm9 = vnez %v10440_v39  ;;  %v10454_v8 = vld [vmem:[#allocation15_spill] sm:$0xff] }
 0x3db   : > { %3044 = vperm.xlu1 %4403, %v10350_v12   ;;  %v2550_v0 = vsel %vm7226_vm13, %v2526_v11, 0.0  ;;  %v2551_v44 = vsel %vm7230_vm8, %v2527_v50, 0.0  ;;  %v648_v60 = vsel %vm10441_vm9, %v623_v6, 0.0  ;;  %v649_v11 = vsel %vm10443_vm11, %v624_v20, 0.0  ;;  %v10445_v50 = vld [vmem:[#allocation53_spill] sm:$0xff] }
 0x3dc   : > { %v7476_v42 = vadd.f32 %v2550_v0, %v7217_v54  ;;  %v7479_v12 = vadd.f32 %v2551_v44, %v7219_v63  ;;  %v805_v47 = vsel %vm10446_vm15, %v10445_v50, %v10444_v17  ;;  %v811_v6 = vsel %vm10447_vm2, %v10444_v17, %v10445_v50  ;;  %v2683_v54 = vpop.permute.xlu0 %2682  ;;  %v7492_v46 = vpop.permute.xlu1 %2718  ;;  %v10449_v63 = vld [vmem:[#allocation249_spill] sm:$0xff]  ;;  %v10452_v44 = vld [vmem:[#allocation62_spill] sm:$0xff] }
 0x3dd   : > { %10448 = vst [vmem:[#allocation177_spill] sm:$0xff] %v7492_v46  ;;  %vm10450_vm4 = vnez %v10449_v63  ;;  %v921_v20 = vsel %vm10453_vm10, %v10452_v44, %v10451_v48  ;;  %v2762_v17 = vrot.slane %v2754_v55, %v5901_v3  ;;  %v10456_v50 = vld [vmem:[#allocation250_spill] sm:$0xff]  ;;  %vm9633_vm2 = vcmp.lt.s32.totalorder %v5894_v28, 97  ;;  %v10464_v3 = vld [vmem:[#allocation20_spill] sm:$0xff] }
 0x3de   : > { %v538_v0 = vsel %vm10450_vm4, %v512_v21, 0.0  ;;  %3022 = vrot.lane.b32.xlu0 %v10454_v8, %s4561_s21  ;;  %vm10457_vm15 = vnez %v10456_v50  ;;  %v841_v26 = vmul.f32 %v10458_v16, %v811_v6  ;;  %vm10460_vm10 = vnez %v10459_v18 }
 0x3df   : > { %3048 = vperm.xlu1 %4403, %v10455_v27   ;;  %v539_v46 = vsel %vm10457_vm15, %v513_v38, 0.0  ;;  %v660_v56 = vadd.f32 %v648_v60, %v538_v0  ;;  %v756_v32 = vsel %vm10460_vm10, %v733_v36, 0.0  ;;  %vm10462_vm8 = vnez %v10461_v57  ;;  %v10572_v57 = vld [vmem:[#allocation112_spill] sm:$0xff] }
 0x3e0   : > { %v661_v21 = vadd.f32 %v649_v11, %v539_v46  ;;  %v757_v8 = vsel %vm10462_vm8, %v734_v1, 0.0  ;;  %v842_v27 = vmul.f32 %v10458_v16, %v805_v47  ;;  %v951_v15 = vmul.f32 %v10463_v31, %v921_v20  ;;  %v2695_v55 = vpop.permute.xlu0 %2694  ;;  %v2723_v16 = vpop.permute.xlu1 %2722 }
 0x3e1   : > { %v2706_v38 = vsel %vm9633_vm2, %v2683_v54, %v2695_v55  ;;  %v2712_v60 = vsel %vm9633_vm2, %v2695_v55, %v2683_v54  ;;  %vm7523_vm13 = vcmp.eq.s32.totalorder %v2758_v61, 1  ;;  %v10465_v36 = vmov 0  ;;  %v10473_v61 = vld [vmem:[#allocation259_spill] sm:$0xff]  ;;  %v10475_v55 = vld [vmem:[#allocation260_spill] sm:$0xff] }
 0x3e2   : > { %2905 = vrot.lane.b32.xlu0 %v10464_v3, %s4559_s17  ;;  %v10466_v36 = vsel %vm7523_vm13, 4294967295, %v10465_v36  ;;  %vm7527_vm1 = vcmp.eq.s32.totalorder %v2762_v17, 1  ;;  %v10468_v47 = vmov 0  ;;  %v768_v1 = vadd.f32 %v756_v32, %v660_v56 }
 0x3e3   : > { %2362 = vrot.lane.b32.xlu1 %v4860_v62, %s4549_s25  ;;  %10467 = vst [vmem:[#allocation187_spill] sm:$0xff] %v10466_v36  ;;  %v10469_v47 = vsel %vm7527_vm1, 4294967295, %v10468_v47  ;;  %v915_v11 = vsel %vm10471_vm5, %v10451_v48, %v10452_v44  ;;  %v2743_v6 = vmul.f32 %v2723_v16, %v2706_v38  ;;  %v2744_v54 = vmul.f32 %v2723_v16, %v2712_v60  ;;  %v10555_v36 = vld [vmem:[#allocation96_spill] sm:$0xff] }
 0x3e4   : > { %10470 = vst [vmem:[#allocation185_spill] sm:$0xff] %v10469_v47  ;;  %v10472_v46 = vmov 21   ;;  %v769_v0 = vadd.f32 %v757_v8, %v661_v21  ;;  %vm10474_vm2 = vnez %v10473_v61  ;;  %vm10476_vm14 = vnez %v10475_v55  ;;  %v2361_v44 = vpop.permute.xlu0 %2360  ;;  %v10480_v21 = vld [vmem:[#allocation263_spill] sm:$0xff]  ;;  %v7561_v60 = vpop.permute.xlu1 %2035  ;;  %v10552_v47 = vld [vmem:[#allocation88_spill] sm:$0xff] }
 0x3e5   : > { %4405 = vset.pattern.permute.xlu1 %v10472_v46  ;;  %v866_v20 = vsel %vm10474_vm2, %v841_v26, 0.0  ;;  %v867_v17 = vsel %vm10476_vm14, %v842_v27, 0.0  ;;  %v1031_v32 = vsel %vm10479_vm0, %v10478_v25, %v10477_v37  ;;  %v2767_v56 = vsel %vm7523_vm13, %v2743_v6, 0.0  ;;  %10484 = vst [vmem:[#allocation146_spill] sm:$0xff] %v7561_v60  ;;  %v10487_v6 = vld [vmem:[#allocation81_spill] sm:$0xff] }
 0x3e6   : > { %v2768_v48 = vsel %vm7527_vm1, %v2744_v54, 0.0  ;;  %v952_v8 = vmul.f32 %v10463_v31, %v915_v11  ;;  %vm10481_vm5 = vnez %v10480_v21  ;;  %v7552_v38 = vadd.f32 %v2767_v56, %v7370_v14  ;;  %2917 = vrot.lane.b32.xlu0 %v4851_v59, %s4559_s17  ;;  %v10486_v11 = vld [vmem:[#allocation77_spill] sm:$0xff]  ;;  %v10489_v56 = vld [vmem:[#allocation72_spill] sm:$0xff] }
 0x3e7   : > { %v976_v26 = vsel %vm10481_vm5, %v951_v15, 0.0  ;;  %v7555_v27 = vadd.f32 %v2768_v48, %v7372_v33  ;;  %2374 = vrot.lane.b32.xlu1 %v10388_v35, %s4549_s25  ;;  %v878_v16 = vadd.f32 %v866_v20, %v768_v1  ;;  %v1025_v31 = vsel %vm10479_vm0, %v10477_v37, %v10478_v25  ;;  %v10485_v15 = vld [vmem:[#allocation44_spill] sm:$0xff]  ;;  %v10490_v48 = vld [vmem:[#allocation67_spill] sm:$0xff]  ;;  %v10493_v37 = vld [vmem:[#allocation265_spill] sm:$0xff]  ;;  %s9084_s25 = scalar_lea.hbm %s9136_s8, %s4204_s20 }
 0x3e8   : > { %10482 = vst [vmem:[#allocation191_spill] sm:$0xff] %v7552_v38  ;;  %v1061_v14 = vmul.f32 %v10485_v15, %v1031_v32  ;;  %vm10488_vm1 = vcmp.lt.s32.totalorder %v5894_v28, 33  ;;  %v879_v54 = vadd.f32 %v867_v17, %v769_v0  ;;  %vm10491_vm13 = vcmp.lt.s32.totalorder %v5894_v28, 34  ;;  %v2373_v25 = vpop.permute.xlu0 %2372  ;;  %v10500_v38 = vld [vmem:[#allocation268_spill] sm:$0xff] }
 0x3e9   : > { %10483 = vst [vmem:[#allocation189_spill] sm:$0xff] %v7555_v27  ;;  %v596_v33 = vsel %vm10488_vm1, %v10487_v6, %v10486_v11  ;;  %v988_v46 = vadd.f32 %v976_v26, %v878_v16  ;;  %v473_v27 = vsel %vm10491_vm13, %v10490_v48, %v10489_v56  ;;  %vm10492_vm7 = vmmov %vm10491_vm13  ;;  %vm10494_vm0 = vnez %v10493_v37  ;;  %v7594_v26 = vpop.permute.xlu1 %2047  ;;  %v10498_v16 = vld [vmem:[#allocation8_spill] sm:$0xff] }
 0x3ea   : > { %v479_v1 = vsel %vm10492_vm7, %v10489_v56, %v10490_v48  ;;  %v977_v20 = vsel %vm10494_vm0, %v952_v8, 0.0  ;;  %v590_v0 = vsel %vm10488_vm1, %v10486_v11, %v10487_v6  ;;  %3014 = vrot.lane.b32.xlu0 %v10464_v3, %s4561_s21  ;;  %v2381_v17 = vsel %vm10495_vm6, %v2361_v44, %v2373_v25  ;;  %vm10496_vm13 = vmmov %vm10495_vm6  ;;  %10497 = vst [vmem:[#allocation149_spill] sm:$0xff] %v7594_v26  ;;  %v10499_v11 = vld [vmem:[#allocation121_spill] sm:$0xff] }
 0x3eb   : > { %v2387_v32 = vsel %vm10496_vm13, %v2373_v25, %v2361_v44  ;;  %2576 = vrot.lane.b32.xlu1 %v10403_v52, %s4553_s23  ;;  %v7597_v8 = vmul.f32 %v10485_v15, %v1025_v31  ;;  %v629_v56 = vmul.f32 %v10498_v16, %v596_v33  ;;  %v2421_v6 = vmul.f32 %v10499_v11, %v2381_v17  ;;  %v10506_v15 = vld [vmem:[#allocation22_spill] sm:$0xff]  ;;  %v10507_v26 = vld [vmem:[#allocation69_spill] sm:$0xff] }
 0x3ec   : > { %v2422_v48 = vmul.f32 %v10499_v11, %v2387_v32  ;;  %vm10501_vm7 = vnez %v10500_v38  ;;  %vm10504_vm6 = vcmp.lt.s32.totalorder %v5894_v28, 17  ;;  %v518_v25 = vmul.f32 %v10506_v15, %v479_v1  ;;  %v2575_v11 = vpop.permute.xlu0 %2574 }
 0x3ed   : > { %v1086_v60 = vsel %vm10501_vm7, %v1061_v14, 0.0  ;;  %v1135_v44 = vsel %vm10504_vm6, %v10503_v10, %v10502_v13  ;;  %vm10505_vm1 = vmmov %vm10504_vm6  ;;  %v519_v33 = vmul.f32 %v10506_v15, %v473_v27  ;;  %v630_v17 = vmul.f32 %v10498_v16, %v590_v0  ;;  %v7633_v27 = vpop.permute.xlu1 %2250  ;;  %v10513_v0 = vld [vmem:[#allocation269_spill] sm:$0xff] }
 0x3ee   : > { %v1141_v31 = vsel %vm10505_vm1, %v10502_v13, %v10503_v10  ;;  %v2445_v32 = vsel %vm7130_vm3, %v2421_v6, 0.0  ;;  %v2446_v14 = vsel %vm7134_vm12, %v2422_v48, 0.0  ;;  %vm10509_vm13 = vcmp.lt.s32.totalorder %v5894_v28, 32  ;;  %3026 = vrot.lane.b32.xlu0 %v4851_v59, %s4561_s21  ;;  %10512 = vst [vmem:[#allocation202_spill] sm:$0xff] %v7633_v27 }
 0x3ef   : > { %v706_v5 = vsel %vm10509_vm13, %v10508_v24, %v10507_v26  ;;  %v7624_v13 = vadd.f32 %v2445_v32, %v7403_v51  ;;  %v7627_v10 = vadd.f32 %v2446_v14, %v7405_v2  ;;  %2588 = vrot.lane.b32.xlu1 %v10407_v49, %s4553_s23  ;;  %v7635_v1 = vadd.f32 %v977_v20, %v879_v54  ;;  %v10515_v2 = vld [vmem:[#allocation26_spill] sm:$0xff]  ;;  %vm10516_vm1 = vmmov %vm10509_vm13  ;;  %v10517_v20 = vld [vmem:[#allocation31_spill] sm:$0xff] }
 0x3f0   : > { %vm10514_vm6 = vnez %v10513_v0  ;;  %v7640_v6 = vadd.f32 %v1086_v60, %v988_v46  ;;  %v654_v51 = vsel %vm10441_vm9, %v629_v56, 0.0  ;;  %v7645_v48 = vmul.f32 %v10515_v2, %v1141_v31  ;;  %v10518_v46 = vld [vmem:[#allocation79_spill] sm:$0xff]  ;;  %v10519_v14 = vld [vmem:[#allocation76_spill] sm:$0xff]  ;;  %v2587_v16 = vpop.permute.xlu0 %2586 }
 0x3f1   : > { %10510 = vst [vmem:[#allocation166_spill] sm:$0xff] %v7624_v13  ;;  %10511 = vst [vmem:[#allocation199_spill] sm:$0xff] %v7627_v10  ;;  %v7648_v15 = vmul.f32 %v10515_v2, %v1135_v44  ;;  %v544_v32 = vsel %vm10450_vm4, %v518_v25, 0.0  ;;  %v700_v54 = vsel %vm10516_vm1, %v10507_v26, %v10508_v24  ;;  %v739_v60 = vmul.f32 %v10517_v20, %v706_v5  ;;  %v10521_v44 = vld [vmem:[#allocation95_spill] sm:$0xff]  ;;  %v10522_v2 = vld [vmem:[#allocation97_spill] sm:$0xff] }
 0x3f2   : > { %vm10520_vm13 = vcmp.lt.s32.totalorder %v5894_v28, 31  ;;  %v655_v31 = vsel %vm10443_vm11, %v630_v17, 0.0  ;;  %vm10523_vm12 = vcmp.lt.s32.totalorder %v5894_v28, 33  ;;  %v545_v10 = vsel %vm10457_vm15, %v519_v33, 0.0  ;;  %v7678_v17 = vpop.permute.xlu1 %2262 }
 0x3f3   : > { %v814_v56 = vsel %vm10520_vm13, %v10519_v14, %v10518_v46  ;;  %v598_v25 = vsel %vm10523_vm12, %v10522_v2, %v10521_v44  ;;  %v666_v24 = vadd.f32 %v654_v51, %v544_v32  ;;  %vm10524_vm1 = vcmp.lt.s32.totalorder %v5894_v28, 98  ;;  %2738 = vperm.xlu1 %4405, %v6972_v45   ;;  %10526 = vst [vmem:[#allocation188_spill] sm:$0xff] %v7678_v17  ;;  %vm10527_vm12 = vmmov %vm10520_vm13  ;;  %v10528_v51 = vld [vmem:[#allocation70_spill] sm:$0xff] }
 0x3f4   : > { %v7671_v5 = vsel %vm10524_vm1, %v2575_v11, %v2587_v16  ;;  %vm10525_vm3 = vmmov %vm10524_vm1  ;;  %v740_v13 = vmul.f32 %v10517_v20, %v700_v54  ;;  %v808_v33 = vsel %vm10527_vm12, %v10518_v46, %v10519_v14  ;;  %v10529_v32 = vld [vmem:[#allocation78_spill] sm:$0xff]  ;;  %vm10530_vm13 = vcmp.lt.s32.totalorder %v5894_v28, 30  ;;  %v10536_v20 = vld [vmem:[#allocation9_spill] sm:$0xff] }
 0x3f5   : > { %v7675_v26 = vsel %vm10525_vm3, %v2587_v16, %v2575_v11  ;;  %v924_v59 = vsel %vm10530_vm13, %v10529_v32, %v10528_v51  ;;  %vm10533_vm3 = vcmp.lt.s32.totalorder %v5894_v28, 34  ;;  %v10534_v45 = vld [vmem:[#allocation18_spill] sm:$0xff]  ;;  %v667_v27 = vadd.f32 %v655_v31, %v545_v10 }
 0x3f6   : > { %v481_v11 = vsel %vm10533_vm3, %v10532_v19, %v10531_v22  ;;  %v847_v16 = vmul.f32 %v10534_v45, %v814_v56  ;;  %vm10535_vm1 = vcmp.lt.s32.totalorder %v5894_v28, 33  ;;  %v633_v46 = vmul.f32 %v10536_v20, %v598_v25  ;;  %v10537_v14 = vld [vmem:[#allocation270_spill] sm:$0xff]  ;;  %v7711_v56 = vpop.permute.xlu0 %2734 }
 0x3f7   : > { %v592_v54 = vsel %vm10535_vm1, %v10521_v44, %v10522_v2  ;;  %vm10538_vm12 = vnez %v10537_v14  ;;  %vm10540_vm13 = vnez %v10539_v23  ;;  %v762_v34 = vsel %vm10460_vm10, %v739_v60, 0.0  ;;  %10542 = vst [vmem:[#allocation165_spill] sm:$0xff] %v7711_v56  ;;  %v10544_v2 = vld [vmem:[#allocation25_spill] sm:$0xff]  ;;  %2789 = vrot.lane.b32.xlu1 %v4798_v40, %s4557_s19  ;;  %v7721_v60 = vpop.permute.xlu1 %2410  ;;  %v10547_v56 = vld [vmem:[#allocation86_spill] sm:$0xff]  ;;  %v10653_v14 = vld [vmem:[#allocation135_spill] sm:$0xff] }
 0x3f8   : > { %v1195_v17 = vsel %vm10538_vm12, %v7645_v48, 0.0  ;;  %v1196_v29 = vsel %vm10540_vm13, %v7648_v15, 0.0  ;;  %vm10541_vm3 = vcmp.lt.s32.totalorder %v5894_v28, 30  ;;  %v848_v31 = vmul.f32 %v10534_v45, %v808_v33  ;;  %10545 = vst [vmem:[#allocation214_spill] sm:$0xff] %v7721_v60  ;;  %v10548_v33 = vld [vmem:[#allocation92_spill] sm:$0xff] }
 0x3f9   : > { %v918_v10 = vsel %vm10541_vm3, %v10528_v51, %v10529_v32  ;;  %v774_v44 = vadd.f32 %v762_v34, %v666_v24  ;;  %vm10543_vm1 = vcmp.lt.s32.totalorder %v5894_v28, 34  ;;  %v522_v15 = vmul.f32 %v10544_v2, %v481_v11  ;;  %v10546_v51 = vld [vmem:[#allocation40_spill] sm:$0xff] }
 0x3fa   : > { %v475_v48 = vsel %vm10543_vm1, %v10531_v22, %v10532_v19  ;;  %v763_v25 = vsel %vm10462_vm8, %v740_v13, 0.0  ;;  %v957_v32 = vmul.f32 %v10546_v51, %v924_v59  ;;  %vm10549_vm3 = vcmp.lt.s32.totalorder %v5894_v28, 32 }
 0x3fb   : > { %v708_v34 = vsel %vm10549_vm3, %v10548_v33, %v10547_v56  ;;  %v634_v24 = vmul.f32 %v10536_v20, %v592_v54  ;;  %v10550_v19 = vmov 23   ;;  %v872_v22 = vsel %vm10474_vm2, %v847_v16, 0.0  ;;  %vm10551_vm1 = vmmov %vm10549_vm3  ;;  %v10553_v54 = vld [vmem:[#allocation94_spill] sm:$0xff]  ;;  %2801 = vrot.lane.b32.xlu1 %v4804_v41, %s4557_s19 }
 0x3fc   : > { %4406 = vset.pattern.permute.xlu1 %v10550_v19  ;;  %v958_v11 = vmul.f32 %v10546_v51, %v918_v10  ;;  %v775_v45 = vadd.f32 %v763_v25, %v667_v27  ;;  %v658_v13 = vsel %vm10441_vm9, %v633_v46, 0.0  ;;  %v523_v59 = vmul.f32 %v10544_v2, %v475_v48  ;;  %v10556_v16 = vld [vmem:[#allocation98_spill] sm:$0xff]  ;;  %v10558_v10 = vld [vmem:[#allocation33_spill] sm:$0xff]  ;;  %v7759_v25 = vpop.permute.xlu0 %2839 }
 0x3fd   : > { %v702_v60 = vsel %vm10551_vm1, %v10547_v56, %v10548_v33  ;;  %vm10554_vm3 = vcmp.lt.s32.totalorder %v5894_v28, 31  ;;  %vm10557_vm13 = vcmp.lt.s32.totalorder %v5894_v28, 18  ;;  %v873_v39 = vsel %vm10476_vm14, %v848_v31, 0.0  ;;  %v7757_v56 = vpop.permute.xlu1 %2461  ;;  %10560 = vst [vmem:[#allocation212_spill] sm:$0xff] %v7759_v25  ;;  %v10563_v33 = vld [vmem:[#allocation28_spill] sm:$0xff]  ;;  %v10564_v25 = vld [vmem:[#allocation46_spill] sm:$0xff] }
 0x3fe   : > { %v816_v20 = vsel %vm10554_vm3, %v10553_v54, %v10552_v47  ;;  %v1034_v27 = vsel %vm10557_vm13, %v10556_v16, %v10555_v36  ;;  %v548_v46 = vsel %vm10450_vm4, %v522_v15, 0.0  ;;  %v743_v48 = vmul.f32 %v10558_v10, %v708_v34  ;;  %10559 = vst [vmem:[#allocation216_spill] sm:$0xff] %v7757_v56  ;;  %vm10561_vm9 = vmmov %vm10554_vm3 }
 0x3ff   : > { %v884_v2 = vadd.f32 %v872_v22, %v774_v44  ;;  %v810_v51 = vsel %vm10561_vm9, %v10552_v47, %v10553_v54  ;;  %v659_v31 = vsel %vm10443_vm11, %v634_v24, 0.0  ;;  %v670_v63 = vadd.f32 %v658_v13, %v548_v46  ;;  %vm10562_vm4 = vmmov %vm10557_vm13  ;;  %v10567_v46 = vld [vmem:[#allocation104_spill] sm:$0xff] }
 0x400   : > { %v1028_v44 = vsel %vm10562_vm4, %v10555_v36, %v10556_v16  ;;  %v744_v15 = vmul.f32 %v10558_v10, %v702_v60  ;;  %v851_v34 = vmul.f32 %v10563_v33, %v816_v20  ;;  %v885_v22 = vadd.f32 %v873_v39, %v775_v45  ;;  %v7800_v50 = vpop.permute.xlu0 %2791  ;;  %v10568_v10 = vld [vmem:[#allocation102_spill] sm:$0xff] }
 0x401   : > { %v1067_v56 = vmul.f32 %v10564_v25, %v1034_v27  ;;  %v10565_v47 = vsel %vm10514_vm6, %v7597_v8, 0.0  ;;  %v7780_v24 = vadd.f32 %v1195_v17, %v7640_v6  ;;  %v982_v13 = vsel %vm10481_vm5, %v957_v32, 0.0  ;;  %v7795_v8 = vld [vmem:[%s9131_s3 + $0x10] sm:$0xff]  ;;  %10566 = vst [vmem:[#allocation210_spill] sm:$0xff] %v7800_v50 }
 0x402   : > { %v1099_v43 = vadd.f32 %v10565_v47, %v7635_v1  ;;  %v549_v36 = vsel %vm10457_vm15, %v523_v59, 0.0  ;;  %v766_v60 = vsel %vm10460_vm10, %v743_v48, 0.0  ;;  %v852_v45 = vmul.f32 %v10563_v33, %v810_v51  ;;  %2943 = vperm.xlu1 %4406, %v7795_v8   ;;  %v7798_v1 = vpop.permute.xlu1 %2473  ;;  %v10571_v48 = vld [vmem:[#allocation114_spill] sm:$0xff] }
 0x403   : > { %v671_v54 = vadd.f32 %v659_v31, %v549_v36  ;;  %v7790_v20 = vmul.f32 %v10564_v25, %v1028_v44  ;;  %v983_v18 = vsel %vm10494_vm0, %v958_v11, 0.0  ;;  %v778_v17 = vadd.f32 %v766_v60, %v670_v63  ;;  %v10575_v31 = vld [vmem:[#allocation116_spill] sm:$0xff]  ;;  %v10576_v63 = vld [vmem:[#allocation118_spill] sm:$0xff]  ;;  %v10579_v60 = vld [vmem:[#allocation35_spill] sm:$0xff] }
 0x404   : > { %v1208_v6 = vadd.f32 %v1196_v29, %v1099_v43  ;;  %v994_v32 = vadd.f32 %v982_v13, %v884_v2  ;;  %v767_v59 = vsel %vm10462_vm8, %v744_v15, 0.0  ;;  %v876_v16 = vsel %vm10474_vm2, %v851_v34, 0.0  ;;  %v7837_v33 = vpop.permute.xlu0 %2803  ;;  %v10578_v43 = vld [vmem:[#allocation32_spill] sm:$0xff] }
 0x405   : > { %v995_v27 = vadd.f32 %v983_v18, %v885_v22  ;;  %v1092_v39 = vsel %vm10501_vm7, %v1067_v56, 0.0  ;;  %vm10569_vm11 = vcmp.lt.s32.totalorder %v5894_v28, 16  ;;  %vm10573_vm8 = vcmp.lt.s32.totalorder %v5894_v28, 30  ;;  %v10581_v18 = vld [vmem:[#allocation50_spill] sm:$0xff] }
 0x406   : > { %v1244_v29 = vsel %vm10569_vm11, %v10568_v10, %v10567_v46  ;;  %vm10570_vm15 = vmmov %vm10569_vm11  ;;  %v920_v61 = vsel %vm10573_vm8, %v10572_v57, %v10571_v48  ;;  %v877_v56 = vsel %vm10476_vm14, %v852_v45, 0.0  ;;  %v779_v25 = vadd.f32 %v767_v59, %v671_v54  ;;  %2469 = vrot.lane.b32.xlu1 %v10464_v3, %s4551_s12  ;;  %v2617_v15 = vpop.permute.xlu1 %2616 }
 0x407   : > { %v1250_v11 = vsel %vm10570_vm15, %v10567_v46, %v10568_v10  ;;  %vm10574_vm2 = vmmov %vm10573_vm8  ;;  %v1093_v51 = vsel %vm10514_vm6, %v7790_v20, 0.0  ;;  %vm10577_vm10 = vcmp.lt.s32.totalorder %v5894_v28, 17  ;;  %v1104_v34 = vadd.f32 %v1092_v39, %v994_v32  ;;  %4408 = vset.pattern.permute.xlu1 %v10415_v4  ;;  %v10585_v32 = vld [vmem:[#allocation122_spill] sm:$0xff] }
 0x408   : > { %v926_v2 = vsel %vm10574_vm2, %v10571_v48, %v10572_v57  ;;  %v1144_v44 = vsel %vm10577_vm10, %v10576_v63, %v10575_v31  ;;  %v888_v22 = vadd.f32 %v876_v16, %v778_v17  ;;  %v2635_v55 = vmul.f32 %v2617_v15, %v7671_v5  ;;  %vm10580_vm14 = vmmov %vm10577_vm10  ;;  %v7871_v10 = vpop.permute.xlu0 %2481  ;;  %v10590_v48 = vld [vmem:[#allocation132_spill] sm:$0xff] }
 0x409   : > { %v2636_v47 = vmul.f32 %v2617_v15, %v7675_v26  ;;  %v1280_v13 = vmul.f32 %v10578_v43, %v1250_v11  ;;  %v1281_v36 = vmul.f32 %v10578_v43, %v1244_v29  ;;  %v961_v45 = vmul.f32 %v10579_v60, %v926_v2  ;;  %v10584_v26 = vld [vmem:[#allocation124_spill] sm:$0xff]  ;;  %10588 = vst [vmem:[#allocation221_spill] sm:$0xff] %v7871_v10  ;;  %v10589_v11 = vld [vmem:[#allocation134_spill] sm:$0xff]  ;;  %vm10591_vm11 = vmmov %vm10562_vm4 }
 0x40a   : > { %v962_v54 = vmul.f32 %v10579_v60, %v920_v61  ;;  %v1138_v20 = vsel %vm10580_vm14, %v10575_v31, %v10576_v63  ;;  %v1177_v17 = vmul.f32 %v10581_v18, %v1144_v44  ;;  %vm10582_vm13 = vnez %v10390_v53  ;;  %2471 = vrot.lane.b32.xlu1 %v4860_v62, %s4551_s12  ;;  %v10592_v61 = vld [vmem:[#allocation136_spill] sm:$0xff]  ;;  %v10593_v2 = vld [vmem:[#allocation138_spill] sm:$0xff]  ;;  %v7885_v31 = vpop.permute.xlu1 %2827  ;;  %v10595_v63 = vld [vmem:[#allocation89_spill] sm:$0xff] }
 0x40b   : > { %v2660_v5 = vsel %vm10582_vm13, %v2635_v55, 0.0  ;;  %vm10583_vm1 = vnez %v10392_v30  ;;  %vm10586_vm3 = vcmp.lt.s32.totalorder %v5894_v28, 15  ;;  %v889_v29 = vadd.f32 %v877_v56, %v779_v25  ;;  %10594 = vst [vmem:[#allocation219_spill] sm:$0xff] %v7885_v31  ;;  %v10597_v25 = vld [vmem:[#allocation66_spill] sm:$0xff]  ;;  %vm10599_vm10 = vmmov %vm10570_vm15  ;;  %v10600_v60 = vld [vmem:[#allocation39_spill] sm:$0xff] }
 0x40c   : > { %v2661_v4 = vsel %vm10583_vm1, %v2636_v47, 0.0  ;;  %v1352_v59 = vsel %vm10586_vm3, %v10585_v32, %v10584_v26  ;;  %vm10587_vm9 = vmmov %vm10586_vm3  ;;  %v7864_v39 = vadd.f32 %v2660_v5, %v7476_v42  ;;  %v1030_v57 = vsel %vm10562_vm4, %v10590_v48, %v10589_v11  ;;  %v2685_v37 = vpop.permute.xlu0 %2684  ;;  %v8010_v10 = vld [vmem:[%s9131_s3 + $0x28] sm:$0xff] }
 0x40d   : > { %v1358_v16 = vsel %vm10587_vm9, %v10584_v26, %v10585_v32  ;;  %v7867_v46 = vadd.f32 %v2661_v4, %v7479_v12  ;;  %v1036_v42 = vsel %vm10591_vm11, %v10589_v11, %v10590_v48  ;;  %v1253_v12 = vsel %vm10570_vm15, %v10593_v2, %v10592_v61  ;;  %v10601_v4 = vld [vmem:[#allocation43_spill] sm:$0xff] }
 0x40e   : > { %vm10596_vm8 = vnez %v10595_v63  ;;  %vm10598_vm2 = vnez %v10597_v25  ;;  %v986_v15 = vsel %vm10481_vm5, %v961_v45, 0.0  ;;  %v1247_v55 = vsel %vm10599_vm10, %v10592_v61, %v10593_v2  ;;  %v10602_v26 = vld [vmem:[#allocation103_spill] sm:$0xff]  ;;  %2483 = vrot.lane.b32.xlu1 %v10388_v35, %s4551_s12  ;;  %v7915_v11 = vpop.permute.xlu1 %2831 }
 0x40f   : > { %v1303_v56 = vsel %vm10596_vm8, %v1280_v13, 0.0  ;;  %v1304_v44 = vsel %vm10598_vm2, %v1281_v36, 0.0  ;;  %v987_v47 = vsel %vm10494_vm0, %v962_v54, 0.0  ;;  %v1178_v43 = vmul.f32 %v10581_v18, %v1138_v20  ;;  %10606 = vst [vmem:[#allocation220_spill] sm:$0xff] %v7915_v11 }
 0x410   : > { %v1388_v5 = vmul.f32 %v10600_v60, %v1358_v16  ;;  %v1389_v13 = vmul.f32 %v10600_v60, %v1352_v59  ;;  %v1201_v36 = vsel %vm10538_vm12, %v1177_v17, 0.0  ;;  %v1071_v21 = vmul.f32 %v10601_v4, %v1036_v42  ;;  %v10603_v16 = vld [vmem:[#allocation142_spill] sm:$0xff]  ;;  %v10604_v59 = vld [vmem:[#allocation144_spill] sm:$0xff] }
 0x411   : > { %v1072_v45 = vmul.f32 %v10601_v4, %v1030_v57  ;;  %v1286_v32 = vmul.f32 %v10602_v26, %v1253_v12  ;;  %v1105_v54 = vadd.f32 %v1093_v51, %v995_v27  ;;  %v1315_v20 = vadd.f32 %v1303_v56, %v7780_v24  ;;  %v10609_v51 = vld [vmem:[#allocation82_spill] sm:$0xff]  ;;  %v10611_v12 = vld [vmem:[#allocation80_spill] sm:$0xff] }
 0x412   : > { %v1287_v18 = vmul.f32 %v10602_v26, %v1247_v55  ;;  %vm10605_vm5 = vcmp.lt.s32.totalorder %v5894_v28, 14  ;;  %v1316_v48 = vadd.f32 %v1304_v44, %v1208_v6  ;;  %v998_v57 = vadd.f32 %v986_v15, %v888_v22  ;;  %v10613_v44 = vld [vmem:[#allocation47_spill] sm:$0xff]  ;;  %2686 = vrot.lane.b32.xlu1 %v10403_v52, %s4555_s26  ;;  %v10618_v4 = vld [vmem:[#allocation154_spill] sm:$0xff] }
 0x413   : > { %v1467_v17 = vsel %vm10605_vm5, %v10604_v59, %v10603_v16  ;;  %v999_v42 = vadd.f32 %v987_v47, %v889_v29  ;;  %vm10607_vm0 = vmmov %vm10605_vm5  ;;  %vm10608_vm14 = vnez %v10539_v23  ;;  %v1213_v27 = vadd.f32 %v1201_v36, %v1104_v34  ;;  %v2697_v34 = vpop.permute.xlu0 %2696  ;;  %v10617_v36 = vld [vmem:[#allocation152_spill] sm:$0xff] }
 0x414   : > { %v1461_v61 = vsel %vm10607_vm0, %v10603_v16, %v10604_v59  ;;  %v1202_v24 = vsel %vm10608_vm14, %v1178_v43, 0.0  ;;  %vm10610_vm3 = vnez %v10609_v51  ;;  %vm10612_vm9 = vnez %v10611_v12  ;;  %v7947_v43 = vpop.permute.xlu1 %2145  ;;  %v10624_v59 = vld [vmem:[#allocation24_spill] sm:$0xff] }
 0x415   : > { %v1412_v2 = vsel %vm10610_vm3, %v1388_v5, 0.0  ;;  %v1413_v56 = vsel %vm10612_vm9, %v1389_v13, 0.0  ;;  %v1096_v6 = vsel %vm10501_vm7, %v1071_v21, 0.0  ;;  %v1097_v22 = vsel %vm10514_vm6, %v1072_v45, 0.0  ;;  %10616 = vst [vmem:[#allocation218_spill] sm:$0xff] %v7947_v43 }
 0x416   : > { %v1309_v29 = vsel %vm10596_vm8, %v1286_v32, 0.0  ;;  %v1497_v15 = vmul.f32 %v10613_v44, %v1467_v17  ;;  %v1310_v55 = vsel %vm10598_vm2, %v1287_v18, 0.0  ;;  %v1498_v47 = vmul.f32 %v10613_v44, %v1461_v61  ;;  %v10621_v18 = vld [vmem:[#allocation162_spill] sm:$0xff]  ;;  %2698 = vrot.lane.b32.xlu1 %v10407_v49, %s4555_s26  ;;  %v10629_v61 = vld [vmem:[#allocation100_spill] sm:$0xff] }
 0x417   : > { %vm10614_vm4 = vcmp.lt.s32.totalorder %v5894_v28, 97  ;;  %v1214_v60 = vadd.f32 %v1202_v24, %v1105_v54  ;;  %v1424_v5 = vadd.f32 %v1412_v2, %v1315_v20  ;;  %v1425_v13 = vadd.f32 %v1413_v56, %v1316_v48  ;;  %v10630_v2 = vld [vmem:[#allocation156_spill] sm:$0xff]  ;;  %v10631_v56 = vld [vmem:[#allocation158_spill] sm:$0xff]  ;;  %v8067_v25 = vpop.permute.xlu0 %2843 }
 0x418   : > { %v7941_v38 = vsel %vm10614_vm4, %v2685_v37, %v2697_v34  ;;  %vm10615_vm7 = vmmov %vm10614_vm4  ;;  %vm10619_vm6 = vcmp.lt.s32.totalorder %v5894_v28, 17  ;;  %v1108_v45 = vadd.f32 %v1096_v6, %v998_v57  ;;  %v1109_v26 = vadd.f32 %v1097_v22, %v999_v42  ;;  %v10627_v57 = vld [vmem:[#allocation11_spill] sm:$0xff]  ;;  %v10633_v6 = vld [vmem:[#allocation182_spill] sm:$0xff]  ;;  %v7980_v44 = vpop.permute.xlu1 %2157  ;;  %10666 = vst [vmem:[#allocation206_spill] sm:$0xff] %v8067_v25 }
 0x419   : > { %v7945_v0 = vsel %vm10615_vm7, %v2697_v34, %v2685_v37  ;;  %v1146_v21 = vsel %vm10619_vm6, %v10618_v4, %v10617_v36  ;;  %vm10620_vm11 = vmmov %vm10619_vm6  ;;  %v10622_v37 = vld [vmem:[#allocation164_spill] sm:$0xff]  ;;  %vm10623_vm15 = vcmp.lt.s32.totalorder %v5894_v28, 2  ;;  %v1321_v54 = vadd.f32 %v1309_v29, %v1213_v27  ;;  %10636 = vst [vmem:[#allocation181_spill] sm:$0xff] %v7980_v44 }
 0x41a   : > { %v1140_v32 = vsel %vm10620_vm11, %v10617_v36, %v10618_v4  ;;  %v1576_v16 = vsel %vm10623_vm15, %v10622_v37, %v10621_v18  ;;  %v1322_v20 = vadd.f32 %v1310_v55, %v1214_v60  ;;  %vm10625_vm10 = vnez %v10624_v59  ;;  %vm10626_vm5 = vmmov %vm10623_vm15  ;;  %v10634_v22 = vld [vmem:[#allocation184_spill] sm:$0xff]  ;;  %v10640_v4 = vld [vmem:[#allocation174_spill] sm:$0xff]  ;;  %2847 = vperm.xlu1 %4408, %v8010_v10  }
 0x41b   : > { %v1521_v17 = vsel %vm10625_vm10, %v1497_v15, 0.0  ;;  %v1570_v48 = vsel %vm10626_vm5, %v10621_v18, %v10622_v37  ;;  %vm10628_vm0 = vnez %v10627_v57  ;;  %v1181_v24 = vmul.f32 %v10629_v61, %v1146_v21  ;;  %v10638_v55 = vld [vmem:[#allocation108_spill] sm:$0xff] }
 0x41c   : > { %v1522_v42 = vsel %vm10628_vm0, %v1498_v47, 0.0  ;;  %vm10632_vm4 = vcmp.lt.s32.totalorder %v5894_v28, 15  ;;  %vm10635_vm7 = vcmp.lt.s32.totalorder %v5894_v28, 1  ;;  %v1182_v15 = vmul.f32 %v10629_v61, %v1140_v32  ;;  %v10641_v21 = vld [vmem:[#allocation172_spill] sm:$0xff]  ;;  %v10645_v61 = vld [vmem:[#allocation178_spill] sm:$0xff] }
 0x41d   : > { %v1361_v27 = vsel %vm10632_vm4, %v10631_v56, %v10630_v2  ;;  %v1684_v29 = vsel %vm10635_vm7, %v10634_v22, %v10633_v6  ;;  %vm10637_vm6 = vmmov %vm10632_vm4  ;;  %v1606_v47 = vmul.f32 %v10638_v55, %v1576_v16  ;;  %v1607_v36 = vmul.f32 %v10638_v55, %v1570_v48  ;;  %v10644_v37 = vld [vmem:[#allocation176_spill] sm:$0xff] }
 0x41e   : > { %v1355_v34 = vsel %vm10637_vm6, %v10630_v2, %v10631_v56  ;;  %vm10639_vm11 = vmmov %vm10635_vm7  ;;  %vm10642_vm15 = vcmp.lt.s32.totalorder %v5894_v28, 16  ;;  %vm10646_vm4 = vcmp.lt.s32.totalorder %v5894_v28, 14  ;;  %v1533_v2 = vadd.f32 %v1521_v17, %v1424_v5  ;;  %v10648_v48 = vld [vmem:[#allocation128_spill] sm:$0xff]  ;;  %v8021_v17 = vpop.permute.xlu1 %2358  ;;  %2897 = vrot.lane.b32.xlu1 %v4798_v40, %s4559_s17 }
 0x41f   : > { %v1678_v60 = vsel %vm10639_vm11, %v10633_v6, %v10634_v22  ;;  %v1249_v18 = vsel %vm10642_vm15, %v10641_v21, %v10640_v4  ;;  %vm10643_vm5 = vmmov %vm10642_vm15  ;;  %v1470_v16 = vsel %vm10646_vm4, %v10645_v61, %v10644_v37  ;;  %v1534_v56 = vadd.f32 %v1522_v42, %v1425_v13  ;;  %v10647_v6 = vld [vmem:[#allocation119_spill] sm:$0xff]  ;;  %v10650_v42 = vld [vmem:[#allocation68_spill] sm:$0xff]  ;;  %4409 = vset.pattern.permute.xlu1 %v10435_v58 }
 0x420   : > { %v1255_v32 = vsel %vm10643_vm5, %v10640_v4, %v10641_v21  ;;  %v1394_v22 = vmul.f32 %v10647_v6, %v1361_v27  ;;  %v1714_v55 = vmul.f32 %v10648_v48, %v1684_v29  ;;  %v1205_v4 = vsel %vm10538_vm12, %v1181_v24, 0.0  ;;  %vm10649_vm7 = vmmov %vm10646_vm4  ;;  %v10652_v29 = vld [vmem:[#allocation120_spill] sm:$0xff] }
 0x421   : > { %v1395_v21 = vmul.f32 %v10647_v6, %v1355_v34  ;;  %v1464_v5 = vsel %vm10649_vm7, %v10644_v37, %v10645_v61  ;;  %v1715_v13 = vmul.f32 %v10648_v48, %v1678_v60  ;;  %vm10651_vm6 = vnez %v10650_v42  ;;  %v10654_v34 = vld [vmem:[#allocation148_spill] sm:$0xff]  ;;  %v10655_v37 = vld [vmem:[#allocation30_spill] sm:$0xff] }
 0x422   : > { %v1629_v27 = vsel %vm10651_vm6, %v1606_v47, 0.0  ;;  %v1290_v31 = vmul.f32 %v10652_v29, %v1255_v32  ;;  %v1291_v43 = vmul.f32 %v10652_v29, %v1249_v18  ;;  %v1503_v24 = vmul.f32 %v10653_v14, %v1470_v16  ;;  %v10657_v32 = vld [vmem:[#allocation34_spill] sm:$0xff]  ;;  %2909 = vrot.lane.b32.xlu1 %v4804_v41, %s4559_s17 }
 0x423   : > { %v1785_v6 = vmul.f32 %v10654_v34, %v4798_v40  ;;  %v1786_v44 = vmul.f32 %v10654_v34, %v4804_v41  ;;  %v1206_v60 = vsel %vm10608_vm14, %v1182_v15, 0.0  ;;  %vm10656_vm12 = vnez %v10655_v37  ;;  %v10659_v15 = vld [vmem:[#allocation109_spill] sm:$0xff] }
 0x424   : > { %v1630_v61 = vsel %vm10656_vm12, %v1607_v36, 0.0  ;;  %v1217_v48 = vadd.f32 %v1205_v4, %v1108_v45  ;;  %v1418_v47 = vsel %vm10610_vm3, %v1394_v22, 0.0  ;;  %v1504_v18 = vmul.f32 %v10653_v14, %v1464_v5  ;;  %v10661_v36 = vld [vmem:[#allocation192_spill] sm:$0xff]  ;;  %v10662_v45 = vld [vmem:[#allocation194_spill] sm:$0xff]  ;;  %v8051_v4 = vpop.permute.xlu1 %2370 }
 0x425   : > { %vm10658_vm11 = vnez %v10657_v32  ;;  %v1419_v29 = vsel %vm10612_vm9, %v1395_v21, 0.0  ;;  %v1641_v23 = vadd.f32 %v1629_v27, %v1533_v2  ;;  %vm10660_vm14 = vnez %v10659_v15 }
 0x426   : > { %v1737_v16 = vsel %vm10658_vm11, %v1714_v55, 0.0  ;;  %v1738_v34 = vsel %vm10660_vm14, %v1715_v13, 0.0  ;;  %vm10663_vm15 = vcmp.lt.s32.totalorder %v5894_v28, 15  ;;  %v1642_v55 = vadd.f32 %v1630_v61, %v1534_v56  ;;  %3052 = vperm.xlu1 %4409, %v7795_v8  }
 0x427   : > { %v1363_v22 = vsel %vm10663_vm15, %v10662_v45, %v10661_v36  ;;  %v1313_v5 = vsel %vm10596_vm8, %v1290_v31, 0.0  ;;  %v1314_v21 = vsel %vm10598_vm2, %v1291_v43, 0.0  ;;  %v1527_v2 = vsel %vm10625_vm10, %v1503_v24, 0.0  ;;  %vm10664_vm5 = vmmov %vm10663_vm15  ;;  %v10665_v31 = vld [vmem:[#allocation140_spill] sm:$0xff]  ;;  %v10667_v24 = vld [vmem:[#allocation197_spill] sm:$0xff] }
 0x428   : > { %v1218_v13 = vadd.f32 %v1206_v60, %v1109_v26  ;;  %v1430_v27 = vadd.f32 %v1418_v47, %v1321_v54  ;;  %v1749_v14 = vadd.f32 %v1737_v16, %v1641_v23  ;;  %v1357_v11 = vsel %vm10664_vm5, %v10661_v36, %v10662_v45  ;;  %v10668_v60 = vld [vmem:[#allocation201_spill] sm:$0xff]  ;;  %v10671_v16 = vld [vmem:[#allocation196_spill] sm:$0xff]  ;;  %vm10677_vm15 = vmmov %vm10649_vm7 }
 0x429   : > { %v1431_v50 = vadd.f32 %v1419_v29, %v1322_v20  ;;  %v1528_v56 = vsel %vm10628_vm0, %v1504_v18, 0.0  ;;  %v1750_v63 = vadd.f32 %v1738_v34, %v1642_v55  ;;  %v1398_v61 = vmul.f32 %v10665_v31, %v1363_v22  ;;  %v8075_v20 = vpop.permute.xlu1 %2519  ;;  %v10672_v29 = vld [vmem:[#allocation193_spill] sm:$0xff]  ;;  %v10675_v34 = vld [vmem:[#allocation211_spill] sm:$0xff] }
 0x42a   : > { %v1325_v43 = vadd.f32 %v1313_v5, %v1217_v48  ;;  %v1326_v26 = vadd.f32 %v1314_v21, %v1218_v13  ;;  %v1539_v54 = vadd.f32 %v1527_v2, %v1430_v27  ;;  %vm10669_vm8 = vcmp.lt.s32.totalorder %v5894_v28, 2  ;;  %10670 = vst [vmem:[#allocation170_spill] sm:$0xff] %v8075_v20  ;;  %v10676_v36 = vld [vmem:[#allocation213_spill] sm:$0xff]  ;;  %v10678_v5 = vld [vmem:[#allocation215_spill] sm:$0xff]  ;;  %2578 = vrot.lane.b32.xlu1 %v10464_v3, %s4553_s23 }
 0x42b   : > { %v1579_v47 = vsel %vm10669_vm8, %v10668_v60, %v10667_v24  ;;  %v1399_v18 = vmul.f32 %v10665_v31, %v1357_v11  ;;  %vm10673_vm2 = vcmp.lt.s32.totalorder %v5894_v28, 127  ;;  %vm10674_vm4 = vmmov %vm10669_vm8  ;;  %v1472_v45 = vsel %vm10649_vm7, %v10676_v36, %v10675_v34  ;;  %v10679_v21 = vld [vmem:[#allocation217_spill] sm:$0xff]  ;;  %v10681_v31 = vld [vmem:[#allocation151_spill] sm:$0xff]  ;;  %4411 = vset.pattern.permute.xlu1 %v10550_v19 }
 0x42c   : > { %v1834_v23 = vsel %vm10673_vm2, %v10672_v29, %v10671_v16  ;;  %v1573_v48 = vsel %vm10674_vm4, %v10667_v24, %v10668_v60  ;;  %v1540_v22 = vadd.f32 %v1528_v56, %v1431_v50  ;;  %v8090_v55 = vadd.f32 %v1785_v6, %v1749_v14  ;;  %v10683_v14 = vld [vmem:[#allocation168_spill] sm:$0xff]  ;;  %v10685_v60 = vld [vmem:[#allocation190_spill] sm:$0xff]  ;;  %v10698_v19 = vld [vmem:[#allocation203_spill] sm:$0xff] }
 0x42d   : > { %v1466_v11 = vsel %vm10677_vm15, %v10675_v34, %v10676_v36  ;;  %vm10680_vm5 = vcmp.lt.s32.totalorder %v5894_v28, 1  ;;  %v1422_v13 = vsel %vm10610_vm3, %v1398_v61, 0.0  ;;  %v8102_v27 = vadd.f32 %v1786_v44, %v1750_v63  ;;  %v10684_v44 = vld [vmem:[#allocation160_spill] sm:$0xff]  ;;  %v8117_v61 = vpop.permute.xlu1 %2570  ;;  %v10686_v36 = vld [vmem:[#allocation167_spill] sm:$0xff]  ;;  %vm10690_vm3 = vmmov %vm10674_vm4 }
 0x42e   : > { %v1687_v2 = vsel %vm10680_vm5, %v10679_v21, %v10678_v5  ;;  %v1612_v24 = vmul.f32 %v10681_v31, %v1579_v47  ;;  %vm10682_vm8 = vmmov %vm10680_vm5  ;;  %v1840_v6 = vsel %vm10673_vm2, %v10671_v16, %v10672_v29  ;;  %v1870_v56 = vmul.f32 %v10683_v14, %v1834_v23  ;;  %v8127_v16 = vpop.permute.xlu0 %2947  ;;  %2580 = vrot.lane.b32.xlu1 %v4860_v62, %s4553_s23  ;;  %v10761_v20 = vld [vmem:[#allocation157_spill] sm:$0xff] }
 0x42f   : > { %v1681_v50 = vsel %vm10682_vm8, %v10678_v5, %v10679_v21  ;;  %v1613_v51 = vmul.f32 %v10681_v31, %v1573_v48  ;;  %v1507_v63 = vmul.f32 %v10684_v44, %v1472_v45  ;;  %v8121_v47 = vmul.f32 %v10685_v60, %v10403_v52  ;;  %10687 = vst [vmem:[#allocation205_spill] sm:$0xff] %v8127_v16  ;;  %v10688_v45 = vld [vmem:[#allocation234_spill] sm:$0xff]  ;;  %v10689_v21 = vld [vmem:[#allocation232_spill] sm:$0xff]  ;;  %vm10694_vm4 = vmmov %vm10680_vm5 }
 0x430   : > { %v1423_v8 = vsel %vm10612_vm9, %v1399_v18, 0.0  ;;  %v1508_v34 = vmul.f32 %v10684_v44, %v1466_v11  ;;  %v1720_v5 = vmul.f32 %v10686_v36, %v1687_v2  ;;  %v8131_v29 = vmul.f32 %v10685_v60, %v10407_v49  ;;  %vm10691_vm9 = vmmov %vm10690_vm3  ;;  %v10692_v2 = vld [vmem:[#allocation258_spill] sm:$0xff]  ;;  %v10693_v44 = vld [vmem:[#allocation253_spill] sm:$0xff] }
 0x431   : > { %v1434_v23 = vadd.f32 %v1422_v13, %v1325_v43  ;;  %v1721_v48 = vmul.f32 %v10686_v36, %v1681_v50  ;;  %v1575_v31 = vsel %vm10690_vm3, %v10689_v21, %v10688_v45  ;;  %v1871_v12 = vmul.f32 %v10683_v14, %v1840_v6  ;;  %v8157_v14 = vpop.permute.xlu1 %2582  ;;  %vm10697_vm15 = vmmov %vm10694_vm4 }
 0x432   : > { %v1635_v18 = vsel %vm10651_vm6, %v1612_v24, 0.0  ;;  %v1581_v11 = vsel %vm10691_vm9, %v10688_v45, %v10689_v21  ;;  %v1683_v43 = vsel %vm10694_vm4, %v10693_v44, %v10692_v2  ;;  %v1435_v13 = vadd.f32 %v1423_v8, %v1326_v26  ;;  %v10696_v26 = vld [vmem:[#allocation180_spill] sm:$0xff]  ;;  %v10701_v21 = vld [vmem:[#allocation237_spill] sm:$0xff]  ;;  %vm10707_vm8 = vmmov %vm10673_vm2  ;;  %2592 = vrot.lane.b32.xlu1 %v10388_v35, %s4553_s23  ;;  %s4451_s23 = sshll.u32 %s4562_s22, 4  ;;  %s4452_s23 = int_to_ptr.vmem [resolvable:$false] %s4451_s23 }
 0x433   : > { %vm10695_vm7 = vnez %v10252_v7  ;;  %v1636_v24 = vsel %vm10656_vm12, %v1613_v51, 0.0  ;;  %v1531_v6 = vsel %vm10625_vm10, %v1507_v63, 0.0  ;;  %v1532_v60 = vsel %vm10628_vm0, %v1508_v34, 0.0 }
 0x434   : > { %v1893_v50 = vsel %vm10695_vm7, %v1870_v56, 0.0  ;;  %v1743_v36 = vsel %vm10658_vm11, %v1720_v5, 0.0  ;;  %v1617_v8 = vmul.f32 %v10696_v26, %v1575_v31  ;;  %v1689_v56 = vsel %vm10697_vm15, %v10692_v2, %v10693_v44  ;;  %v10700_v5 = vld [vmem:[#allocation240_spill] sm:$0xff] }
 0x435   : > { %v1647_v51 = vadd.f32 %v1635_v18, %v1539_v54  ;;  %v1744_v59 = vsel %vm10660_vm14, %v1721_v48, 0.0  ;;  %v1616_v63 = vmul.f32 %v10696_v26, %v1581_v11  ;;  %v1725_v45 = vmul.f32 %v10698_v19, %v1683_v43  ;;  %v8183_v18 = vpop.permute.xlu0 %2899 }
 0x436   : > { %vm10699_vm10 = vnez %v10255_v9  ;;  %v1648_v34 = vadd.f32 %v1636_v24, %v1540_v22  ;;  %vm10702_vm0 = vcmp.lt.s32.totalorder %v5894_v28, 126  ;;  %v1543_v48 = vadd.f32 %v1531_v6, %v1434_v23  ;;  %v10705_v6 = vld [vmem:[#allocation264_spill] sm:$0xff]  ;;  %2795 = vrot.lane.b32.xlu1 %v10403_v52, %s4557_s19 }
 0x437   : > { %v1894_v57 = vsel %vm10699_vm10, %v1871_v12, 0.0  ;;  %v1942_v31 = vsel %vm10702_vm0, %v10701_v21, %v10700_v5  ;;  %vm10703_vm5 = vmmov %vm10702_vm0  ;;  %v1544_v11 = vadd.f32 %v1532_v60, %v1435_v13  ;;  %v1755_v2 = vadd.f32 %v1743_v36, %v1647_v51  ;;  %v2727_v12 = vpop.permute.xlu1 %2726  ;;  %v10706_v60 = vld [vmem:[#allocation262_spill] sm:$0xff]  ;;  %v10711_v36 = vld [vmem:[#allocation185_spill] sm:$0xff] }
 0x438   : > { %v1948_v54 = vsel %vm10703_vm5, %v10700_v5, %v10701_v21  ;;  %v1724_v22 = vmul.f32 %v10698_v19, %v1689_v56  ;;  %v1756_v44 = vadd.f32 %v1744_v59, %v1648_v34  ;;  %v1640_v43 = vsel %vm10656_vm12, %v1617_v8, 0.0  ;;  %v10704_v21 = vld [vmem:[#allocation186_spill] sm:$0xff]  ;;  %vm10708_vm12 = vmmov %vm10673_vm2  ;;  %v10713_v56 = vld [vmem:[#allocation65_spill] sm:$0xff] }
 0x439   : > { %v2745_v24 = vmul.f32 %v2727_v12, %v7941_v38  ;;  %v2746_v26 = vmul.f32 %v2727_v12, %v7945_v0  ;;  %v1639_v5 = vsel %vm10651_vm6, %v1616_v63, 0.0  ;;  %v1978_v25 = vmul.f32 %v10704_v21, %v1942_v31  ;;  %v10709_v0 = vld [vmem:[#allocation187_spill] sm:$0xff]  ;;  %vm10724_vm9 = vmmov %vm10702_vm0 }
 0x43a   : > { %v1979_v23 = vmul.f32 %v10704_v21, %v1948_v54  ;;  %v1748_v13 = vsel %vm10660_vm14, %v1725_v45, 0.0  ;;  %v1837_v37 = vsel %vm10707_vm8, %v10706_v60, %v10705_v6  ;;  %v1843_v38 = vsel %vm10708_vm12, %v10705_v6, %v10706_v60  ;;  %v10714_v51 = vld [vmem:[#allocation71_spill] sm:$0xff]  ;;  %v8229_v54 = vpop.permute.xlu0 %2911  ;;  %v10723_v21 = vld [vmem:[#allocation85_spill] sm:$0xff]  ;;  %vm10728_vm15 = vmmov %vm10702_vm0  ;;  %2807 = vrot.lane.b32.xlu1 %v10407_v49, %s4557_s19 }
 0x43b   : > { %vm10710_vm2 = vnez %v10709_v0  ;;  %vm10712_vm6 = vnez %v10711_v36  ;;  %v1747_v15 = vsel %vm10658_vm11, %v1724_v22, 0.0  ;;  %vm10715_vm14 = vcmp.lt.s32.totalorder %v5894_v28, 114  ;;  %v8231_v22 = vpop.permute.xlu1 %2935 }
 0x43c   : > { %v2769_v42 = vsel %vm10710_vm2, %v2745_v24, 0.0  ;;  %v2770_v8 = vsel %vm10712_vm6, %v2746_v26, 0.0  ;;  %v2050_v59 = vsel %vm10715_vm14, %v10714_v51, %v10713_v56  ;;  %v1905_v45 = vadd.f32 %v1893_v50, %v8090_v55  ;;  %vm10716_vm3 = vmmov %vm10715_vm14  ;;  %10717 = vst [vmem:[#allocation231_spill] sm:$0xff] %v8231_v22  ;;  %v10759_v22 = vld [vmem:[#allocation235_spill] sm:$0xff] }
 0x43d   : > { %v8219_v63 = vadd.f32 %v2769_v42, %v7864_v39  ;;  %v8222_v19 = vadd.f32 %v2770_v8, %v7867_v46  ;;  %v1651_v34 = vadd.f32 %v1639_v5, %v1543_v48  ;;  %v1652_v31 = vadd.f32 %v1640_v43, %v1544_v11  ;;  %v10718_v39 = vld [vmem:[#allocation131_spill] sm:$0xff]  ;;  %vm10740_vm12 = vmmov %vm10716_vm3 }
 0x43e   : > { %v2056_v32 = vsel %vm10716_vm3, %v10713_v56, %v10714_v51  ;;  %v1906_v12 = vadd.f32 %v1894_v57, %v8102_v27  ;;  %vm10719_vm11 = vnez %v10718_v39  ;;  %v10720_v46 = vld [vmem:[#allocation183_spill] sm:$0xff]  ;;  %v10725_v27 = vld [vmem:[#allocation41_spill] sm:$0xff]  ;;  %v1804_v60 = vadd.f32 %v8131_v29, %v1756_v44  ;;  %vm10741_vm14 = vmmov %vm10716_vm3  ;;  %2955 = vperm.xlu1 %4411, %v8010_v10  }
 0x43f   : > { %v2001_v24 = vsel %vm10719_vm11, %v1978_v25, 0.0  ;;  %v1876_v26 = vmul.f32 %v10720_v46, %v1837_v37  ;;  %v1877_v55 = vmul.f32 %v10720_v46, %v1843_v38  ;;  %v1759_v50 = vadd.f32 %v1747_v15, %v1651_v34  ;;  %v10721_v11 = vld [vmem:[#allocation207_spill] sm:$0xff]  ;;  %v8258_v56 = vpop.permute.xlu1 %2939  ;;  %v10733_v34 = vld [vmem:[#allocation137_spill] sm:$0xff]  ;;  %v8275_v46 = vpop.permute.xlu0 %2590 }
 0x440   : > { %v1760_v48 = vadd.f32 %v1748_v13, %v1652_v31  ;;  %v2086_v43 = vmul.f32 %v10721_v11, %v2050_v59  ;;  %v10722_v5 = vld [vmem:[#allocation91_spill] sm:$0xff]  ;;  %vm10726_vm4 = vnez %v10725_v27  ;;  %v1803_v25 = vadd.f32 %v8121_v47, %v1755_v2  ;;  %v10727_v13 = vld [vmem:[#allocation230_spill] sm:$0xff]  ;;  %10735 = vst [vmem:[#allocation229_spill] sm:$0xff] %v8275_v46 }
 0x441   : > { %v1945_v6 = vsel %vm10724_vm9, %v10723_v21, %v10722_v5  ;;  %v2002_v57 = vsel %vm10726_vm4, %v1979_v23, 0.0  ;;  %v2087_v37 = vmul.f32 %v10721_v11, %v2056_v32  ;;  %v1795_v38 = vmul.f32 %v10727_v13, %v4860_v62  ;;  %v10729_v2 = vld [vmem:[#allocation223_spill] sm:$0xff]  ;;  %v10730_v23 = vld [vmem:[#allocation105_spill] sm:$0xff] }
 0x442   : > { %v1796_v42 = vmul.f32 %v10727_v13, %v10388_v35  ;;  %v2013_v8 = vadd.f32 %v2001_v24, %v1905_v45  ;;  %v1951_v15 = vsel %vm10728_vm15, %v10722_v5, %v10723_v21  ;;  %v1899_v47 = vsel %vm10695_vm7, %v1876_v26, 0.0  ;;  %v10731_v51 = vld [vmem:[#allocation99_spill] sm:$0xff]  ;;  %v10738_v5 = vld [vmem:[#allocation45_spill] sm:$0xff]  ;;  %v10739_v21 = vld [vmem:[#allocation48_spill] sm:$0xff]  ;;  %3006 = vrot.lane.b32.xlu1 %v4798_v40, %s4561_s21 }
 0x443   : > { %v1900_v29 = vsel %vm10699_vm10, %v1877_v55, 0.0  ;;  %v1984_v44 = vmul.f32 %v10729_v2, %v1945_v6  ;;  %vm10732_vm0 = vcmp.lt.s32.totalorder %v5894_v28, 113  ;;  %v2014_v45 = vadd.f32 %v2002_v57, %v1906_v12  ;;  %v10736_v26 = vld [vmem:[#allocation139_spill] sm:$0xff]  ;;  %v10743_v57 = vld [vmem:[#allocation225_spill] sm:$0xff]  ;;  %v8295_v13 = vpop.permute.xlu1 %2254  ;;  %4412 = vset.pattern.permute.xlu1 %v10435_v58 }
 0x444   : > { %v2160_v59 = vsel %vm10732_vm0, %v10731_v51, %v10730_v23  ;;  %vm10734_vm5 = vnez %v10733_v34  ;;  %v8271_v32 = vadd.f32 %v1795_v38, %v1759_v50  ;;  %v8273_v24 = vadd.f32 %v1796_v42, %v1760_v48  ;;  %vm10742_vm3 = vmmov %vm10732_vm0 }
 0x445   : > { %v2111_v31 = vsel %vm10734_vm5, %v2086_v43, 0.0  ;;  %vm10737_vm8 = vnez %v10736_v26  ;;  %v1985_v11 = vmul.f32 %v10729_v2, %v1951_v15  ;;  %v2053_v12 = vsel %vm10740_vm12, %v10739_v21, %v10738_v5  ;;  %v10744_v15 = vld [vmem:[#allocation150_spill] sm:$0xff]  ;;  %vm10746_vm9 = vmmov %vm10732_vm0 }
 0x446   : > { %v2112_v55 = vsel %vm10737_vm8, %v2087_v37, 0.0  ;;  %v2059_v50 = vsel %vm10741_vm14, %v10738_v5, %v10739_v21  ;;  %v1911_v48 = vadd.f32 %v1899_v47, %v1803_v25  ;;  %v1912_v43 = vadd.f32 %v1900_v29, %v1804_v60  ;;  %v10745_v2 = vld [vmem:[#allocation130_spill] sm:$0xff]  ;;  %vm10747_vm15 = vmmov %vm10732_vm0  ;;  %v10748_v47 = vld [vmem:[#allocation125_spill] sm:$0xff]  ;;  %3018 = vrot.lane.b32.xlu1 %v4804_v41, %s4561_s21 }
 0x447   : > { %v2166_v6 = vsel %vm10742_vm3, %v10730_v23, %v10731_v51  ;;  %v2196_v37 = vmul.f32 %v10743_v57, %v2160_v59  ;;  %v2123_v38 = vadd.f32 %v2111_v31, %v2013_v8  ;;  %v2007_v42 = vsel %vm10719_vm11, %v1984_v44, 0.0  ;;  %v10749_v29 = vld [vmem:[#allocation127_spill] sm:$0xff]  ;;  %v10751_v23 = vld [vmem:[#allocation224_spill] sm:$0xff] }
 0x448   : > { %v2163_v5 = vsel %vm10746_vm9, %v10745_v2, %v10744_v15  ;;  %v2169_v25 = vsel %vm10747_vm15, %v10744_v15, %v10745_v2  ;;  %v8307_v60 = vadd.f32 %v2112_v55, %v2014_v45  ;;  %vm10750_vm0 = vcmp.lt.s32.totalorder %v5894_v28, 127  ;;  %v10752_v21 = vld [vmem:[#allocation188_spill] sm:$0xff]  ;;  %v10753_v45 = vld [vmem:[#allocation202_spill] sm:$0xff] }
 0x449   : > { %v1839_v8 = vsel %vm10750_vm0, %v10749_v29, %v10748_v47  ;;  %v2092_v51 = vmul.f32 %v10751_v23, %v2053_v12  ;;  %v2093_v44 = vmul.f32 %v10751_v23, %v2059_v50  ;;  %v2008_v59 = vsel %vm10726_vm4, %v1985_v11, 0.0  ;;  %v10756_v50 = vld [vmem:[#allocation141_spill] sm:$0xff]  ;;  %v10758_v2 = vld [vmem:[#allocation238_spill] sm:$0xff] }
 0x44a   : > { %v8319_v31 = vmul.f32 %v10743_v57, %v2166_v6  ;;  %vm10754_vm12 = vcmp.lt.s32.totalorder %v5894_v28, 112  ;;  %v2019_v15 = vadd.f32 %v2007_v42, %v1911_v48  ;;  %vm10757_vm3 = vnez %v10756_v50  ;;  %v8333_v6 = vpop.permute.xlu0 %2793  ;;  %v8335_v57 = vpop.permute.xlu1 %2266  ;;  %2688 = vrot.lane.b32.xlu1 %v10464_v3, %s4555_s26 }
 0x44b   : > { %v2272_v55 = vsel %vm10754_vm12, %v10753_v45, %v10752_v21  ;;  %vm10755_vm14 = vmmov %vm10754_vm12  ;;  %v2220_v10 = vsel %vm10757_vm3, %v2196_v37, 0.0  ;;  %v2202_v23 = vmul.f32 %v10758_v2, %v2163_v5  ;;  %v2203_v11 = vmul.f32 %v10758_v2, %v2169_v25  ;;  %v10765_v25 = vld [vmem:[#allocation266_spill] sm:$0xff]  ;;  %v10766_v2 = vld [vmem:[#allocation143_spill] sm:$0xff] }
 0x44c   : > { %v2278_v12 = vsel %vm10755_vm14, %v10752_v21, %v10753_v45  ;;  %v8338_v16 = vmul.f32 %v10759_v22, %v1839_v8  ;;  %v10760_v46 = vmov 0   ;;  %vm10762_vm9 = vcmp.lt.s32.totalorder %v10761_v20, 14 }
 0x44d   : > { %v8343_v49 = vsel %vm10762_vm9, 1, %v10760_v46  ;;  %vm10763_vm15 = vcmp.lt.s32.totalorder %v5894_v28, 111  ;;  %v2117_v42 = vsel %vm10734_vm5, %v2092_v51, 0.0  ;;  %v2118_v5 = vsel %vm10737_vm8, %v2093_v44, 0.0 }
 0x44e   : > { %v2380_v48 = vsel %vm10763_vm15, %v8021_v17, %v8051_v4  ;;  %vm10764_vm0 = vmmov %vm10763_vm15  ;;  %v2311_v8 = vmul.f32 %v10765_v25, %v2272_v55  ;;  %v2312_v21 = vmul.f32 %v10765_v25, %v2278_v12  ;;  %v2020_v45 = vadd.f32 %v2008_v59, %v1912_v43  ;;  %v10769_v43 = vld [vmem:[#allocation27_spill] sm:$0xff]  ;;  %v2468_v59 = vpop.permute.xlu1 %2467  ;;  %v10786_v12 = vld [vmem:[#allocation153_spill] sm:$0xff] }
 0x44f   : > { %v2386_v37 = vsel %vm10764_vm0, %v8051_v4, %v8021_v17  ;;  %vm10767_vm12 = vnez %v10766_v2  ;;  %v8364_v35 = vadd.f32 %v2220_v10, %v2123_v38  ;;  %vm10768_vm14 = vcmp.lt.s32.totalorder %v5894_v28, 127  ;;  %v10770_v55 = vld [vmem:[#allocation195_spill] sm:$0xff]  ;;  %v10771_v10 = vld [vmem:[#allocation244_spill] sm:$0xff] }
 0x450   : > { %v2221_v52 = vsel %vm10767_vm12, %v8319_v31, 0.0  ;;  %v1845_v17 = vsel %vm10768_vm14, %v10748_v47, %v10749_v29  ;;  %v2226_v4 = vsel %vm10757_vm3, %v2202_v23, 0.0  ;;  %v2227_v40 = vsel %vm10767_vm12, %v2203_v11, 0.0  ;;  %v10772_v23 = vld [vmem:[#allocation145_spill] sm:$0xff] }
 0x451   : > { %v2419_v51 = vmul.f32 %v10769_v43, %v2380_v48  ;;  %v2420_v44 = vmul.f32 %v10769_v43, %v2386_v37  ;;  %v2129_v38 = vadd.f32 %v2117_v42, %v2019_v15  ;;  %v2130_v31 = vadd.f32 %v2118_v5, %v2020_v45  ;;  %v10774_v48 = vld [vmem:[#allocation147_spill] sm:$0xff]  ;;  %v8391_v37 = vpop.permute.xlu0 %2805  ;;  %v10777_v5 = vld [vmem:[#allocation101_spill] sm:$0xff] }
 0x452   : > { %v2870_v47 = vrot.slane %v8343_v49, %v10771_v10  ;;  %v8382_v58 = vmul.f32 %v10759_v22, %v1845_v17  ;;  %v1903_v29 = vsel %vm10695_vm7, %v8338_v16, 0.0  ;;  %vm10773_vm9 = vnez %v10772_v23  ;;  %v10776_v42 = vld [vmem:[#allocation155_spill] sm:$0xff]  ;;  %v10784_v17 = vld [vmem:[#allocation106_spill] sm:$0xff]  ;;  %v2480_v50 = vpop.permute.xlu1 %2479 }
 0x453   : > { %v2334_v11 = vsel %vm10773_vm9, %v2311_v8, 0.0  ;;  %vm10775_vm15 = vnez %v10774_v48  ;;  %vm10778_vm0 = vcmp.lt.s32.totalorder %v5894_v28, 112  ;;  %v2238_v16 = vadd.f32 %v2226_v4, %v2129_v38  ;;  %v10780_v8 = vld [vmem:[#allocation126_spill] sm:$0xff]  ;;  %v10781_v45 = vld [vmem:[#allocation175_spill] sm:$0xff] }
 0x454   : > { %v2335_v15 = vsel %vm10775_vm15, %v2312_v21, 0.0  ;;  %v2269_v22 = vsel %vm10778_vm0, %v10777_v5, %v10776_v42  ;;  %vm10779_vm7 = vmmov %vm10778_vm0  ;;  %v2239_v25 = vadd.f32 %v2227_v40, %v2130_v31  ;;  %vm10782_vm14 = vcmp.lt.s32.totalorder %v5894_v28, 111  ;;  %v10790_v31 = vld [vmem:[#allocation246_spill] sm:$0xff] }
 0x455   : > { %v2275_v7 = vsel %vm10779_vm7, %v10776_v42, %v10777_v5  ;;  %v2377_v21 = vsel %vm10782_vm14, %v10781_v45, %v10780_v8  ;;  %vm10783_vm12 = vmmov %vm10782_vm14  ;;  %vm10785_vm3 = vnez %v10784_v17  ;;  %vm10787_vm0 = vnez %v10786_v12  ;;  %v10882_v17 = vld [vmem:[#allocation169_spill] sm:$0xff] }
 0x456   : > { %v2383_v41 = vsel %vm10783_vm12, %v10780_v8, %v10781_v45  ;;  %v2443_v43 = vsel %vm10785_vm3, %v2419_v51, 0.0  ;;  %v2444_v2 = vsel %vm10787_vm0, %v2420_v44, 0.0  ;;  %v2346_v42 = vadd.f32 %v2334_v11, %v2238_v16  ;;  %v10791_v8 = vld [vmem:[#allocation129_spill] sm:$0xff]  ;;  %v10792_v44 = vld [vmem:[#allocation216_spill] sm:$0xff] }
 0x457   : > { %v2347_v4 = vadd.f32 %v2335_v15, %v2239_v25  ;;  %vm10788_vm7 = vcmp.lt.s32.totalorder %v5894_v28, 110  ;;  %v2305_v5 = vmul.f32 %v10790_v31, %v2269_v22  ;;  %v2306_v26 = vmul.f32 %v10790_v31, %v2275_v7  ;;  %v10795_v22 = vld [vmem:[#allocation83_spill] sm:$0xff]  ;;  %v8436_v25 = vpop.permute.xlu0 %2951  ;;  %v10802_v31 = vld [vmem:[#allocation117_spill] sm:$0xff] }
 0x458   : > { %v2489_v40 = vsel %vm10788_vm7, %v2468_v59, %v2480_v50  ;;  %vm10789_vm8 = vmmov %vm10788_vm7  ;;  %v2413_v7 = vmul.f32 %v10795_v22, %v2377_v21  ;;  %v2414_v16 = vmul.f32 %v10795_v22, %v2383_v41  ;;  %10796 = vst [vmem:[#allocation257_spill] sm:$0xff] %v8436_v25  ;;  %vm10799_vm5 = vcmp.lt.s32.totalorder %v10761_v20, 14 }
 0x459   : > { %v2495_v38 = vsel %vm10789_vm8, %v2480_v50, %v2468_v59  ;;  %v2528_v45 = vmul.f32 %v10791_v8, %v2489_v40  ;;  %vm10793_vm12 = vmmov %vm10788_vm7  ;;  %v2455_v59 = vadd.f32 %v2443_v43, %v2346_v42  ;;  %v2456_v15 = vadd.f32 %v2444_v2, %v2347_v4  ;;  %v10797_v40 = vld [vmem:[#allocation239_spill] sm:$0xff]  ;;  %v8450_v43 = vpop.permute.xlu1 %2628 }
 0x45a   : > { %v2529_v51 = vmul.f32 %v10791_v8, %v2495_v38  ;;  %v2486_v11 = vsel %vm10793_vm12, %v10792_v44, %v7798_v1  ;;  %vm10794_vm8 = vmmov %vm10788_vm7  ;;  %vm10798_vm7 = vcmp.lt.s32.totalorder %v10797_v40, 15  ;;  %v10804_v2 = vld [vmem:[#allocation171_spill] sm:$0xff]  ;;  %10806 = vst [vmem:[#allocation252_spill] sm:$0xff] %v8450_v43  ;;  %vm10807_vm14 = vcmp.lt.s32.totalorder %v5894_v28, 98  ;;  %v10810_v43 = vld [vmem:[#allocation21_spill] sm:$0xff] }
 0x45b   : > { %v2492_v50 = vsel %vm10794_vm8, %v7798_v1, %v10792_v44  ;;  %vm8442_vm12 = vmand %vm10799_vm5, %vm10798_vm7  ;;  %vm10803_vm8 = vnez %v10802_v31  ;;  %vm10805_vm4 = vnez %v10804_v2  ;;  %v2595_v41 = vsel %vm10807_vm14, %v8117_v61, %v8157_v14  ;;  %v10809_v44 = vld [vmem:[#allocation37_spill] sm:$0xff]  ;;  %2700 = vrot.lane.b32.xlu1 %v10810_v43, %s4555_s26  ;;  %v10817_v38 = vld [vmem:[#allocation163_spill] sm:$0xff]  ;;  %s4453_s26 = scalar_lea.vmem %s4452_s23, 1024 }
 0x45c   : > { %v2552_v1 = vsel %vm10803_vm8, %v2528_v45, 0.0  ;;  %v2553_v21 = vsel %vm10805_vm4, %v2529_v51, 0.0  ;;  %vm10808_vm5 = vmmov %vm10807_vm14  ;;  %v2328_v45 = vsel %vm10773_vm9, %v2305_v5, 0.0  ;;  %v2329_v51 = vsel %vm10775_vm15, %v2306_v26, 0.0 }
 0x45d   : > { %v2601_v42 = vsel %vm10808_vm5, %v8157_v14, %v8117_v61  ;;  %v8460_v4 = vadd.f32 %v2552_v1, %v2455_v59  ;;  %v8462_v8 = vadd.f32 %v2553_v21, %v2456_v15  ;;  %v2522_v22 = vmul.f32 %v10809_v44, %v2486_v11  ;;  %v2681_v59 = vpop.permute.xlu1 %2680 }
 0x45e   : > { %v2523_v25 = vmul.f32 %v10809_v44, %v2492_v50  ;;  %v2233_v34 = vadd.f32 %v2221_v52, %v8307_v60  ;;  %v1904_v61 = vsel %vm10699_vm10, %v8382_v58, 0.0  ;;  %v8477_v14 = vadd.f32 %v1903_v29, %v8271_v32  ;;  %v10811_v50 = vld [vmem:[#allocation110_spill] sm:$0xff]  ;;  %v10826_v44 = vld [vmem:[#allocation267_spill] sm:$0xff] }
 0x45f   : > { %v8482_v26 = vsel %vm8442_vm12, 1, %v10760_v46  ;;  %v2437_v5 = vsel %vm10785_vm3, %v2413_v7, 0.0  ;;  %v2438_v11 = vsel %vm10787_vm0, %v2414_v16, 0.0  ;;  %v2631_v52 = vmul.f32 %v10811_v50, %v2595_v41  ;;  %v10816_v7 = vld [vmem:[#allocation161_spill] sm:$0xff] }
 0x460   : > { %v2632_v60 = vmul.f32 %v10811_v50, %v2601_v42  ;;  %vm10812_vm14 = vcmp.lt.s32.totalorder %v10797_v40, 14  ;;  %vm10813_vm7 = vcmp.lt.s32.totalorder %v10761_v20, 14  ;;  %v2340_v29 = vadd.f32 %v2328_v45, %v8364_v35  ;;  %v8525_v42 = vpop.permute.xlu0 %3056 }
 0x461   : > { %vm8494_vm5 = vmand %vm10813_vm7, %vm10812_vm14  ;;  %v2341_v15 = vadd.f32 %v2329_v51, %v2233_v34  ;;  %vm10818_vm12 = vcmp.lt.s32.totalorder %v5894_v28, 126  ;;  %v2546_v20 = vsel %vm10803_vm8, %v2522_v22, 0.0  ;;  %v2547_v40 = vsel %vm10805_vm4, %v2523_v25, 0.0  ;;  %v10825_v25 = vld [vmem:[#allocation14_spill] sm:$0xff] }
 0x462   : > { %v1947_v16 = vsel %vm10818_vm12, %v10817_v38, %v10816_v7  ;;  %vm10819_vm0 = vmmov %vm10818_vm12  ;;  %v10820_v35 = vrot.slane %v8343_v49, %v10770_v55  ;;  %vm8518_vm7 = vcmp.eq.s32.totalorder %v2870_v47, 1  ;;  %v2975_v41 = vrot.slane %v8482_v26, %v10770_v55  ;;  %2901 = vrot.lane.b32.xlu1 %v10825_v25, %s4559_s17 }
 0x463   : > { %v1953_v1 = vsel %vm10819_vm0, %v10816_v7, %v10817_v38  ;;  %v2449_v45 = vadd.f32 %v2437_v5, %v2340_v29  ;;  %v2450_v49 = vadd.f32 %v2438_v11, %v2341_v15  ;;  %v2979_v51 = vrot.slane %v8482_v26, %v10771_v10  ;;  %v2693_v11 = vpop.permute.xlu1 %2692  ;;  %v10829_v38 = vld [vmem:[#allocation177_spill] sm:$0xff] }
 0x464   : > { %vm8514_vm14 = vcmp.eq.s32.totalorder %v10820_v35, 1  ;;  %v3080_v47 = vsel %vm8494_vm5, 1, %v10760_v46  ;;  %v8535_v22 = vmul.f32 %v10826_v44, %v1947_v16  ;;  %v8538_v50 = vmul.f32 %v10826_v44, %v1953_v1  ;;  %v10830_v35 = vld [vmem:[#allocation15_spill] sm:$0xff] }
 0x465   : > { %v2656_v7 = vsel %vm10582_vm13, %v2631_v52, 0.0  ;;  %v2657_v5 = vsel %vm10583_vm1, %v2632_v60, 0.0  ;;  %v2558_v29 = vadd.f32 %v2546_v20, %v2449_v45  ;;  %v2559_v15 = vadd.f32 %v2547_v40, %v2450_v49  ;;  %v10831_v20 = vld [vmem:[#allocation210_spill] sm:$0xff] }
 0x466   : > { %vm10827_vm0 = vcmp.lt.s32.totalorder %v5894_v28, 97  ;;  %2913 = vrot.lane.b32.xlu1 %v10830_v35, %s4559_s17  ;;  %v3084_v52 = vrot.slane %v3080_v47, %v10770_v55  ;;  %v3088_v60 = vrot.slane %v3080_v47, %v10771_v10  ;;  %vm10832_vm12 = vcmp.lt.s32.totalorder %v5894_v28, 96  ;;  %v3009_v47 = vpop.permute.xlu0 %3008  ;;  %v4446_v35 = vld [vmem:[%s9131_s3 + $0x20] sm:$0xff] }
 0x467   : > { %v2705_v26 = vsel %vm10827_vm0, %v2681_v59, %v2693_v11  ;;  %vm10828_vm5 = vmmov %vm10827_vm0  ;;  %v2815_v40 = vsel %vm10832_vm12, %v10831_v20, %v7837_v33  ;;  %v2668_v25 = vadd.f32 %v2656_v7, %v2558_v29  ;;  %v2669_v45 = vadd.f32 %v2657_v5, %v2559_v15 }
 0x468   : > { %v2711_v32 = vsel %vm10828_vm5, %v2693_v11, %v2681_v59  ;;  %v2741_v16 = vmul.f32 %v10829_v38, %v2705_v26  ;;  %vm10833_vm0 = vmmov %vm10832_vm12  ;;  %v10836_v26 = vld [vmem:[#allocation149_spill] sm:$0xff]  ;;  %vm10838_vm12 = vcmp.lt.s32.totalorder %v5894_v28, 114  ;;  %vm10847_vm10 = vnez %v10725_v27  ;;  %v3116_v27 = vld [vmem:[%s9132_s4 + $0x8] sm:$0xff] }
 0x469   : > { %v2742_v1 = vmul.f32 %v10829_v38, %v2711_v32  ;;  %v2821_v59 = vsel %vm10833_vm0, %v7837_v33, %v10831_v20  ;;  %vm10834_vm5 = vmmov %vm10833_vm0  ;;  %v2836_v33 = vpop.permute.xlu1 %2835  ;;  %v10837_v32 = vld [vmem:[#allocation146_spill] sm:$0xff]  ;;  %v2012_v9 = vsel %vm10847_vm10, %v8538_v50, 0.0  ;;  %vm10855_vm10 = vcmp.lt.s32.totalorder %v5894_v28, 113 }
 0x46a   : > { %v2816_v49 = vsel %vm10834_vm5, %v8333_v6, %v8391_v37  ;;  %vm10835_vm4 = vmmov %vm10833_vm0  ;;  %v2765_v44 = vsel %vm10710_vm2, %v2741_v16, 0.0  ;;  %v2055_v38 = vsel %vm10838_vm12, %v10837_v32, %v10836_v26  ;;  %3060 = vperm.xlu1 %4412, %v4446_v35   ;;  %vm10841_vm0 = vcmp.lt.s32.totalorder %v5894_v28, 95  ;;  %v10854_v50 = vld [vmem:[#allocation218_spill] sm:$0xff] }
 0x46b   : > { %v2822_v10 = vsel %vm10835_vm4, %v8391_v37, %v8333_v6  ;;  %v2766_v11 = vsel %vm10712_vm6, %v2742_v1, 0.0  ;;  %v8574_v7 = vadd.f32 %v2765_v44, %v2668_v25  ;;  %v2854_v29 = vmul.f32 %v2836_v33, %v2816_v49  ;;  %vm10839_vm4 = vmmov %vm10838_vm12  ;;  %v10840_v37 = vld [vmem:[#allocation220_spill] sm:$0xff] }
 0x46c   : > { %v8576_v5 = vadd.f32 %v2766_v11, %v2669_v45  ;;  %v2855_v15 = vmul.f32 %v2836_v33, %v2822_v10  ;;  %v2061_v6 = vsel %vm10839_vm4, %v10836_v26, %v10837_v32  ;;  %v2852_v16 = vmul.f32 %v10840_v37, %v2815_v40  ;;  %vm10842_vm5 = vmmov %vm10841_vm0 }
 0x46d   : > { %v2853_v1 = vmul.f32 %v10840_v37, %v2821_v59  ;;  %v2923_v20 = vsel %vm10841_vm0, %v8183_v18, %v8229_v54  ;;  %v2929_v25 = vsel %vm10842_vm5, %v8229_v54, %v8183_v18  ;;  %v2877_v40 = vsel %vm8514_vm14, %v2854_v29, 0.0  ;;  %vm10856_vm4 = vmmov %vm10855_vm10 }
 0x46e   : > { %v2878_v59 = vsel %vm8518_vm7, %v2855_v15, 0.0  ;;  %v2960_v45 = vmul.f32 %v8258_v56, %v2923_v20  ;;  %v2961_v49 = vmul.f32 %v8258_v56, %v2929_v25  ;;  %v8606_v10 = vadd.f32 %v2877_v40, %v8219_v63  ;;  %v8625_v63 = vpop.permute.xlu1 %3044  ;;  %2797 = vrot.lane.b32.xlu1 %v10464_v3, %s4557_s19  ;;  %v10857_v15 = vld [vmem:[#allocation191_spill] sm:$0xff]  ;;  %v10863_v25 = vld [vmem:[#allocation49_spill] sm:$0xff] }
 0x46f   : > { %v8609_v44 = vadd.f32 %v2878_v59, %v8222_v19  ;;  %v1916_v18 = vadd.f32 %v1904_v61, %v8273_v24  ;;  %vm8616_vm12 = vcmp.eq.s32.totalorder %v2975_v41, 1  ;;  %vm8621_vm0 = vcmp.eq.s32.totalorder %v2979_v51, 1  ;;  %v3021_v61 = vpop.permute.xlu0 %3020  ;;  %v10848_v41 = vld [vmem:[#allocation93_spill] sm:$0xff]  ;;  %4414 = vset.pattern.permute.xlu1 %v10760_v46 }
 0x470   : > { %v2011_v19 = vsel %vm10719_vm11, %v8535_v22, 0.0  ;;  %v2875_v24 = vsel %vm8514_vm14, %v2852_v16, 0.0  ;;  %v2876_v58 = vsel %vm8518_vm7, %v2853_v1, 0.0  ;;  %v2096_v51 = vmul.f32 %v10848_v41, %v2055_v38  ;;  %v10853_v22 = vld [vmem:[#allocation181_spill] sm:$0xff] }
 0x471   : > { %v2097_v11 = vmul.f32 %v10848_v41, %v2061_v6  ;;  %vm8641_vm5 = vcmp.eq.s32.totalorder %v3084_v52, 1  ;;  %vm8645_vm11 = vcmp.eq.s32.totalorder %v3088_v60, 1  ;;  %v2165_v33 = vsel %vm10855_vm10, %v10854_v50, %v10853_v22  ;;  %v10860_v6 = vld [vmem:[#allocation189_spill] sm:$0xff] }
 0x472   : > { %v2171_v29 = vsel %vm10856_vm4, %v10853_v22, %v10854_v50  ;;  %v2984_v52 = vsel %vm8616_vm12, %v2960_v45, 0.0  ;;  %v2985_v60 = vsel %vm8621_vm0, %v2961_v49, 0.0  ;;  %v2887_v26 = vadd.f32 %v2875_v24, %v10857_v15  ;;  %v3049_v38 = vpop.permute.xlu1 %3048  ;;  %2799 = vrot.lane.b32.xlu1 %v4860_v62, %s4557_s19  ;;  %v10864_v49 = vld [vmem:[#allocation137_spill] sm:$0xff] }
 0x473   : > { %vm10858_vm6 = vcmp.lt.s32.totalorder %v5894_v28, 94  ;;  %v2888_v37 = vadd.f32 %v2876_v58, %v10860_v6  ;;  %vm10861_vm4 = vcmp.lt.s32.totalorder %v5894_v28, 112  ;;  %v2207_v40 = vmul.f32 %v10863_v25, %v2171_v29  ;;  %v10866_v58 = vld [vmem:[#allocation139_spill] sm:$0xff]  ;;  %v10868_v41 = vld [vmem:[#allocation173_spill] sm:$0xff] }
 0x474   : > { %v3032_v46 = vsel %vm10858_vm6, %v3009_v47, %v3021_v61  ;;  %vm10859_vm2 = vmmov %vm10858_vm6  ;;  %v2274_v16 = vsel %vm10861_vm4, %v8295_v13, %v8335_v57  ;;  %v2996_v45 = vadd.f32 %v2984_v52, %v2887_v26  ;;  %vm10867_vm6 = vnez %v10866_v58  ;;  %v10870_v15 = vld [vmem:[#allocation141_spill] sm:$0xff]  ;;  %v10879_v58 = vld [vmem:[#allocation19_spill] sm:$0xff] }
 0x475   : > { %v3038_v32 = vsel %vm10859_vm2, %v3021_v61, %v3009_v47  ;;  %vm10862_vm10 = vmmov %vm10861_vm4  ;;  %v3069_v35 = vmul.f32 %v3049_v38, %v3032_v46  ;;  %v2206_v47 = vmul.f32 %v10863_v25, %v2165_v33  ;;  %v2997_v59 = vadd.f32 %v2985_v60, %v2888_v37  ;;  %v10872_v46 = vld [vmem:[#allocation143_spill] sm:$0xff] }
 0x476   : > { %v2280_v1 = vsel %vm10862_vm10, %v8335_v57, %v8295_v13  ;;  %v3070_v20 = vmul.f32 %v3049_v38, %v3038_v32  ;;  %vm10865_vm2 = vnez %v10864_v49  ;;  %v2122_v61 = vsel %vm10867_vm6, %v2097_v11, 0.0  ;;  %v2363_v33 = vpop.permute.xlu1 %2362  ;;  %v10869_v11 = vld [vmem:[#allocation23_spill] sm:$0xff] }
 0x477   : > { %v2121_v24 = vsel %vm10865_vm2, %v2096_v51, 0.0  ;;  %v3093_v13 = vsel %vm8641_vm5, %v3069_v35, 0.0  ;;  %v2315_v22 = vmul.f32 %v10868_v41, %v2274_v16  ;;  %v2316_v50 = vmul.f32 %v10868_v41, %v2280_v1  ;;  %2811 = vrot.lane.b32.xlu1 %v10869_v11, %s4557_s19  ;;  %v10876_v35 = vld [vmem:[#allocation17_spill] sm:$0xff]  ;;  %s296_s19 = sand.u32 1, %s4501_s28  }
 0x478   : > { %v3094_v57 = vsel %vm8645_vm11, %v3070_v20, 0.0  ;;  %v8692_v52 = vadd.f32 %v3093_v13, %v2996_v45  ;;  %v2023_v51 = vadd.f32 %v2011_v19, %v8477_v14  ;;  %v2024_v60 = vadd.f32 %v2012_v9, %v1916_v18  ;;  %v10877_v20 = vld [vmem:[#allocation214_spill] sm:$0xff]  ;;  %s9086_s12 = scalar_lea.sflag [#allocation3], %s296_s19 }
 0x479   : > { %v8690_v29 = vadd.f32 %v3094_v57, %v2997_v59  ;;  %vm10871_vm4 = vnez %v10870_v15  ;;  %vm10873_vm10 = vnez %v10872_v46  ;;  %v2338_v37 = vsel %vm10773_vm9, %v2315_v22, 0.0 }
 0x47a   : > { %v2230_v26 = vsel %vm10871_vm4, %v2206_v47, 0.0  ;;  %v2231_v32 = vsel %vm10873_vm10, %v2207_v40, 0.0  ;;  %v2133_v38 = vadd.f32 %v2121_v24, %v2023_v51  ;;  %v2134_v6 = vadd.f32 %v2122_v61, %v2024_v60  ;;  %v2375_v1 = vpop.permute.xlu1 %2374 }
 0x47b   : > { %v2339_v16 = vsel %vm10775_vm15, %v2316_v50, 0.0  ;;  %vm10874_vm2 = vcmp.lt.s32.totalorder %v5894_v28, 111  ;;  %3012 = vrot.lane.b32.xlu1 %v10876_v35, %s4561_s21  ;;  %vm10878_vm9 = vnez %v10786_v12  ;;  %vm10880_vm15 = vcmp.lt.s32.totalorder %v5894_v28, 98 }
 0x47c   : > { %v2242_v14 = vadd.f32 %v2230_v26, %v2133_v38  ;;  %v2243_v18 = vadd.f32 %v2231_v32, %v2134_v6  ;;  %v2382_v19 = vsel %vm10874_vm2, %v2363_v33, %v2375_v1  ;;  %vm10875_vm6 = vmmov %vm10874_vm2  ;;  %vm10887_vm2 = vcmp.lt.s32.totalorder %v5894_v28, 110 }
 0x47d   : > { %v2388_v9 = vsel %vm10875_vm6, %v2375_v1, %v2363_v33  ;;  %v2423_v25 = vmul.f32 %v10877_v20, %v2382_v19  ;;  %vm10881_vm4 = vmmov %vm10880_vm15  ;;  %v10886_v19 = vld [vmem:[#allocation221_spill] sm:$0xff]  ;;  %v10943_v39 = vmov 0.0  }
 0x47e   : > { %v2424_v23 = vmul.f32 %v10877_v20, %v2388_v9  ;;  %v2350_v47 = vadd.f32 %v2338_v37, %v2242_v14  ;;  %v2351_v40 = vadd.f32 %v2339_v16, %v2243_v18  ;;  %v2577_v45 = vpop.permute.xlu1 %2576  ;;  %vm10888_vm6 = vmmov %vm10887_vm2  ;;  %v10889_v20 = vld [vmem:[#allocation159_spill] sm:$0xff] }
 0x47f   : > { %v2447_v48 = vsel %vm10785_vm3, %v2423_v25, 0.0  ;;  %3024 = vrot.lane.b32.xlu1 %v10879_v58, %s4561_s21  ;;  %vm10883_vm3 = vcmp.lt.s32.totalorder %v5894_v28, 96 }
 0x480   : > { %v2448_v59 = vsel %vm10878_vm9, %v2424_v23, 0.0  ;;  %v2459_v49 = vadd.f32 %v2447_v48, %v2350_v47  ;;  %vm10884_vm10 = vmmov %vm10883_vm3  ;;  %vm10890_vm9 = vnez %v10804_v2 }
 0x481   : > { %v2460_v24 = vadd.f32 %v2448_v59, %v2351_v40  ;;  %v10891_v40 = vld [vmem:[#allocation166_spill] sm:$0xff]  ;;  %v10892_v59 = vld [vmem:[#allocation199_spill] sm:$0xff] }
 0x482   : > { %v2589_v61 = vpop.permute.xlu1 %2588 }
 0x483   : > { %v2598_v13 = vsel %vm10880_vm15, %v2577_v45, %v2589_v61  ;;  %v2604_v57 = vsel %vm10881_vm4, %v2589_v61, %v2577_v45  ;;  %2907 = vrot.lane.b32.xlu1 %v4860_v62, %s4559_s17  ;;  %vm10893_vm15 = vmmov %vm10887_vm2 }
 0x484   : > { %v2637_v41 = vmul.f32 %v10882_v17, %v2598_v13  ;;  %v2638_v12 = vmul.f32 %v10882_v17, %v2604_v57  ;;  %vm10894_vm4 = vmmov %vm10887_vm2  ;;  %v10895_v57 = vld [vmem:[#allocation170_spill] sm:$0xff] }
 0x486   : > { %v2662_v22 = vsel %vm10582_vm13, %v2637_v41, 0.0  ;;  %v2663_v50 = vsel %vm10583_vm1, %v2638_v12, 0.0  ;;  %v8731_v33 = vpop.permute.xlu1 %2738 }
 0x487   : > { %v2674_v51 = vadd.f32 %v2662_v22, %v8460_v4  ;;  %v2675_v60 = vadd.f32 %v2663_v50, %v8462_v8  ;;  %2919 = vrot.lane.b32.xlu1 %v10869_v11, %s4559_s17  ;;  %v10885_v4 = vld [vmem:[#allocation219_spill] sm:$0xff]  ;;  %s4172_s17 = sshll.u32 %s296_s19, 5 }
 0x488   : > { %s298_s24 = scalar_lea.vmem [#allocation2], %s4172_s17 }
 0x489   : > { %s4106_s13 = sshll.u32 %s298_s24, 4  ;;  %s9079_s13 = int_to_ptr.vmem [resolvable:$true] %s4106_s13 }
 0x48a   : > { %v2790_v15 = vpop.permute.xlu1 %2789  ;;  %s4447_s9 = scalar_lea.vmem %s9079_s13, 512  ;;  %p4454_p0 = scmp.lt.s32.totalorder %s9079_s13, %s4452_s23 }
 0x48b   : > { %3016 = vrot.lane.b32.xlu1 %v4860_v62, %s4561_s21  ;;  %p4448_p11 = scmp.ne.s32.totalorder %s9079_s13, %s4447_s9  ;;  %p4455_p1 = scmp.lt.s32.totalorder %s4453_s26, %s4447_s9 }
 0x48d   : > { %p4449_p12 = pnand %p4448_p11, %p4647_p5  ;;  %p4456_p2 = por %p4455_p1, %p4454_p0 }
 0x48e   : > { %v2802_v26 = vpop.permute.xlu1 %2801 }
 0x48f   : > { %v2814_v46 = vsel %vm10883_vm3, %v2790_v15, %v2802_v26  ;;  %v2820_v32 = vsel %vm10884_vm10, %v2802_v26, %v2790_v15  ;;  %3028 = vrot.lane.b32.xlu1 %v10869_v11, %s4561_s21  ;;  %vm10896_vm3 = vcmp.lt.s32.totalorder %v5894_v28, 97  ;;  %p4450_p13 = pneg %p4449_p12 }
 0x490   : > { %v2850_v38 = vmul.f32 %v10885_v4, %v2814_v46  ;;  %v2851_v8 = vmul.f32 %v10885_v4, %v2820_v32  ;;  %vm10897_vm10 = vmmov %vm10896_vm3 }
 0x491   : > { %p4457_p3 = pnand %p4456_p2, %p4450_p13 }
 0x492   : > { %v2873_v6 = vsel %vm8514_vm14, %v2850_v38, 0.0  ;;  %v2874_v37 = vsel %vm8518_vm7, %v2851_v8, 0.0  ;;  %v8751_v16 = vpop.permute.xlu1 %2943  ;;  %v10898_v38 = vld [vmem:[#allocation179_spill] sm:$0xff] }
 0x493   : > { %v8754_v1 = vadd.f32 %v2873_v6, %v8574_v7  ;;  %v8757_v14 = vadd.f32 %v2874_v37, %v8576_v5 }
 0x496   : > { %v2470_v18 = vpop.permute.xlu1 %2469 }
 0x497   : > { %v2490_v9 = vsel %vm10887_vm2, %v2470_v18, %v10886_v19  ;;  %v2496_v35 = vsel %vm10888_vm6, %v10886_v19, %v2470_v18  ;;  %vm10899_vm2 = vnez %v10709_v0  ;;  %vm10902_vm6 = vcmp.lt.s32.totalorder %v5894_v28, 98 }
 0x498   : > { %v2530_v25 = vmul.f32 %v10889_v20, %v2490_v9  ;;  %v2531_v23 = vmul.f32 %v10889_v20, %v2496_v35  ;;  %v2691_v9 = vpop.permute.xlu0 %2690 }
 0x49a   : > { %v2554_v7 = vsel %vm10803_vm8, %v2530_v25, 0.0  ;;  %v2555_v5 = vsel %vm10890_vm9, %v2531_v23, 0.0  ;;  %v2472_v47 = vpop.permute.xlu1 %2471  ;;  %v10901_v23 = vld [vmem:[#allocation229_spill] sm:$0xff] }
 0x49b   : > { %v2566_v48 = vadd.f32 %v2554_v7, %v10891_v40  ;;  %v2567_v45 = vadd.f32 %v2555_v5, %v10892_v59 }
 0x49c   : > { %v2703_v20 = vpop.permute.xlu0 %2702 }
 0x49e   : > { %v2484_v58 = vpop.permute.xlu1 %2483 }
 0x49f   : > { %v2491_v61 = vsel %vm10893_vm15, %v2472_v47, %v2484_v58  ;;  %v2497_v13 = vsel %vm10894_vm4, %v2484_v58, %v2472_v47  ;;  %v10904_v47 = vld [vmem:[#allocation133_spill] sm:$0xff]  ;;  %vm10905_vm15 = vmmov %vm10896_vm3 }
 0x4a0   : > { %v2532_v17 = vmul.f32 %v10895_v57, %v2491_v61  ;;  %v2533_v41 = vmul.f32 %v10895_v57, %v2497_v13  ;;  %v2904_v57 = vpop.permute.xlu0 %2903  ;;  %vm10906_vm4 = vmmov %vm10896_vm3 }
 0x4a2   : > { %v2556_v12 = vsel %vm10803_vm8, %v2532_v17, 0.0  ;;  %v2557_v22 = vsel %vm10890_vm9, %v2533_v41, 0.0  ;;  %v2687_v50 = vpop.permute.xlu1 %2686  ;;  %vm10900_vm8 = vnez %v10711_v36  ;;  %vm10903_vm9 = vmmov %vm10902_vm6  ;;  %v2710_v41 = vsel %vm10905_vm15, %v2691_v9, %v2703_v20 }
 0x4a3   : > { %v2568_v15 = vadd.f32 %v2556_v12, %v2459_v49  ;;  %v2569_v26 = vadd.f32 %v2557_v22, %v2460_v24  ;;  %v2716_v12 = vsel %vm10906_vm4, %v2703_v20, %v2691_v9 }
 0x4a6   : > { %v2699_v46 = vpop.permute.xlu1 %2698 }
 0x4a7   : > { %v2708_v32 = vsel %vm10896_vm3, %v2687_v50, %v2699_v46  ;;  %v2714_v4 = vsel %vm10897_vm10, %v2699_v46, %v2687_v50  ;;  %vm10907_vm3 = vmmov %vm10902_vm6  ;;  %v2751_v46 = vmul.f32 %v8731_v33, %v2710_v41 }
 0x4a8   : > { %v2747_v8 = vmul.f32 %v10898_v38, %v2708_v32  ;;  %v2748_v6 = vmul.f32 %v10898_v38, %v2714_v4  ;;  %vm10908_vm10 = vmmov %vm10907_vm3  ;;  %v2916_v38 = vpop.permute.xlu0 %2915 }
 0x4a9   : > { %v2775_v20 = vsel %vm10899_vm2, %v2751_v46, 0.0 }
 0x4aa   : > { %v2771_v31 = vsel %vm10899_vm2, %v2747_v8, 0.0  ;;  %v2772_v2 = vsel %vm10900_vm8, %v2748_v6, 0.0  ;;  %v8793_v37 = vpop.permute.xlu1 %2847 }
 0x4ab   : > { %v2783_v49 = vadd.f32 %v2771_v31, %v2674_v51  ;;  %v2784_v24 = vadd.f32 %v2772_v2, %v2675_v60 }
 0x4ae   : > { %v2898_v18 = vpop.permute.xlu1 %2897 }
 0x4b2   : > { %v2910_v19 = vpop.permute.xlu1 %2909 }
 0x4b6   : > { %v8795_v35 = vpop.permute.xlu1 %3052 }
 0x4ba   : > { %v2579_v25 = vpop.permute.xlu1 %2578 }
 0x4bb   : > { %v2599_v7 = vsel %vm10902_vm6, %v2579_v25, %v10901_v23  ;;  %v2605_v5 = vsel %vm10903_vm9, %v10901_v23, %v2579_v25  ;;  %vm10910_vm6 = vcmp.lt.s32.totalorder %v5894_v28, 95 }
 0x4bc   : > { %v2639_v40 = vmul.f32 %v10904_v47, %v2599_v7  ;;  %v2640_v51 = vmul.f32 %v10904_v47, %v2605_v5  ;;  %v2925_v25 = vsel %vm10910_vm6, %v2904_v57, %v2916_v38  ;;  %vm10911_vm9 = vmmov %vm10910_vm6  ;;  %v10914_v5 = vld [vmem:[#allocation205_spill] sm:$0xff] }
 0x4bd   : > { %v2931_v23 = vsel %vm10911_vm9, %v2916_v38, %v2904_v57  ;;  %v2964_v47 = vmul.f32 %v10914_v5, %v2925_v25  ;;  %vm10916_vm15 = vmmov %vm10910_vm6 }
 0x4be   : > { %v2664_v60 = vsel %vm10582_vm13, %v2639_v40, 0.0  ;;  %v2665_v59 = vsel %vm10583_vm1, %v2640_v51, 0.0  ;;  %v2581_v58 = vpop.permute.xlu1 %2580  ;;  %v2965_v40 = vmul.f32 %v10914_v5, %v2931_v23  ;;  %v8847_v51 = vpop.permute.xlu0 %3064  ;;  %vm10917_vm4 = vmmov %vm10910_vm6 }
 0x4bf   : > { %v8809_v61 = vadd.f32 %v2664_v60, %v2566_v48  ;;  %v8811_v13 = vadd.f32 %v2665_v59, %v2567_v45  ;;  %v2752_v48 = vmul.f32 %v8731_v33, %v2716_v12  ;;  %v10909_v45 = vld [vmem:[#allocation252_spill] sm:$0xff]  ;;  %v2922_v12 = vsel %vm10916_vm15, %v2898_v18, %v2910_v19  ;;  %vm10925_vm15 = vmmov %vm10917_vm4 }
 0x4c0   : > { %v10915_v60 = vld [vmem:[#allocation212_spill] sm:$0xff] }
 0x4c1   : > { %v2776_v33 = vsel %vm10900_vm8, %v2752_v48, 0.0  ;;  %v2988_v48 = vsel %vm8616_vm12, %v2964_v47, 0.0 }
 0x4c2   : > { %v2593_v17 = vpop.permute.xlu1 %2592  ;;  %v2810_v38 = vpop.permute.xlu0 %2809 }
 0x4c3   : > { %v2600_v22 = vsel %vm10907_vm3, %v2581_v58, %v2593_v17  ;;  %v2606_v50 = vsel %vm10908_vm10, %v2593_v17, %v2581_v58  ;;  %vm10919_vm3 = vcmp.lt.s32.totalorder %v5894_v28, 94 }
 0x4c4   : > { %v2641_v32 = vmul.f32 %v10909_v45, %v2600_v22  ;;  %v2642_v4 = vmul.f32 %v10909_v45, %v2606_v50  ;;  %v2928_v22 = vsel %vm10917_vm4, %v2910_v19, %v2898_v18  ;;  %v2989_v45 = vsel %vm8621_vm0, %v2965_v40, 0.0  ;;  %vm10920_vm10 = vmmov %vm10919_vm3 }
 0x4c5   : > { %vm10921_vm6 = vmmov %vm10919_vm3 }
 0x4c6   : > { %v2666_v8 = vsel %vm10582_vm13, %v2641_v32, 0.0  ;;  %v2667_v6 = vsel %vm10583_vm1, %v2642_v4, 0.0  ;;  %v2796_v31 = vpop.permute.xlu1 %2795  ;;  %vm10912_vm13 = vcmp.lt.s32.totalorder %v5894_v28, 96  ;;  %vm10922_vm9 = vmmov %vm10919_vm3 }
 0x4c7   : > { %v2678_v2 = vadd.f32 %v2666_v8, %v2568_v15  ;;  %v2679_v9 = vadd.f32 %v2667_v6, %v2569_v26  ;;  %vm10913_vm1 = vmmov %vm10912_vm13  ;;  %v10918_v8 = vld [vmem:[#allocation231_spill] sm:$0xff] }
 0x4c8   : > { %v2958_v6 = vmul.f32 %v10918_v8, %v2922_v12 }
 0x4c9   : > { %v8837_v53 = vadd.f32 %v2775_v20, %v2678_v2  ;;  %v8839_v7 = vadd.f32 %v2776_v33, %v2679_v9  ;;  %v3011_v20 = vpop.permute.xlu0 %3010 }
 0x4ca   : > { %v2808_v30 = vpop.permute.xlu1 %2807 }
 0x4cb   : > { %v2817_v15 = vsel %vm10912_vm13, %v2796_v31, %v2808_v30  ;;  %v2823_v26 = vsel %vm10913_vm1, %v2808_v30, %v2796_v31  ;;  %v2959_v31 = vmul.f32 %v10918_v8, %v2928_v22  ;;  %vm10923_vm13 = vcmp.lt.s32.totalorder %v5894_v28, 97 }
 0x4cc   : > { %v2856_v59 = vmul.f32 %v10915_v60, %v2817_v15  ;;  %v2857_v58 = vmul.f32 %v10915_v60, %v2823_v26  ;;  %vm10924_vm1 = vmmov %vm10923_vm13 }
 0x4ce   : > { %v2879_v57 = vsel %vm8514_vm14, %v2856_v59, 0.0  ;;  %v2880_v17 = vsel %vm8518_vm7, %v2857_v58, 0.0  ;;  %v8855_v41 = vpop.permute.xlu1 %2955  ;;  %v3023_v58 = vpop.permute.xlu0 %3022 }
 0x4cf   : > { %v2891_v50 = vadd.f32 %v2879_v57, %v2783_v49  ;;  %v2892_v46 = vadd.f32 %v2880_v17, %v2784_v24  ;;  %v2982_v49 = vsel %vm8616_vm12, %v2958_v6, 0.0  ;;  %v2983_v24 = vsel %vm8621_vm0, %v2959_v31, 0.0  ;;  %v10926_v31 = vld [vmem:[#allocation165_spill] sm:$0xff] }
 0x4d0   : > { %v2995_v23 = vadd.f32 %v2983_v24, %v8757_v14  ;;  %v2994_v30 = vadd.f32 %v2982_v49, %v8754_v1  ;;  %v3033_v1 = vsel %vm10921_vm6, %v3011_v20, %v3023_v58  ;;  %v3039_v17 = vsel %vm10922_vm9, %v3023_v58, %v3011_v20 }
 0x4d1   : > { %v8865_v32 = vadd.f32 %v2988_v48, %v2891_v50  ;;  %v8867_v4 = vadd.f32 %v2989_v45, %v2892_v46  ;;  %v3071_v46 = vmul.f32 %v8795_v35, %v3033_v1  ;;  %v3072_v48 = vmul.f32 %v8795_v35, %v3039_v17 }
 0x4d2   : > { %v3007_v2 = vpop.permute.xlu1 %3006  ;;  %v2906_v14 = vpop.permute.xlu0 %2905  ;;  %vm10929_vm6 = vcmp.lt.s32.totalorder %v5894_v28, 96 }
 0x4d3   : > { %v3096_v20 = vsel %vm8645_vm11, %v3072_v48, 0.0  ;;  %vm10930_vm9 = vmmov %vm10929_vm6 }
 0x4d6   : > { %v3019_v18 = vpop.permute.xlu1 %3018  ;;  %v2918_v6 = vpop.permute.xlu0 %2917 }
 0x4d7   : > { %v3031_v19 = vsel %vm10919_vm3, %v3007_v2, %v3019_v18  ;;  %v3037_v9 = vsel %vm10920_vm10, %v3019_v18, %v3007_v2  ;;  %vm10927_vm3 = vmmov %vm10917_vm4 }
 0x4d8   : > { %v3067_v33 = vmul.f32 %v8625_v63, %v3031_v19  ;;  %v3068_v25 = vmul.f32 %v8625_v63, %v3037_v9  ;;  %vm10928_vm10 = vmmov %vm10927_vm3 }
 0x4da   : > { %v2689_v15 = vpop.permute.xlu1 %2688  ;;  %v3092_v26 = vsel %vm8645_vm11, %v3068_v25, 0.0  ;;  %v3091_v5 = vsel %vm8641_vm5, %v3067_v33, 0.0  ;;  %v2926_v33 = vsel %vm10927_vm3, %v2906_v14, %v2918_v6  ;;  %v2932_v25 = vsel %vm10928_vm10, %v2918_v6, %v2906_v14 }
 0x4db   : > { %v3104_v47 = vadd.f32 %v3092_v26, %v2995_v23  ;;  %v3103_v40 = vadd.f32 %v3091_v5, %v2994_v30 }
 0x4dd   : > { %v4209_v60 = vpack.c.bf16 %v8690_v29, %v3104_v47  ;;  %v4211_v59 = vpack.c.bf16 %v8692_v52, %v3103_v40  ;;  %v10931_v47 = vld [vmem:[#allocation257_spill] sm:$0xff] }
 0x4de   : > { %v2701_v57 = vpop.permute.xlu1 %2700  ;;  %v2966_v40 = vmul.f32 %v10931_v47, %v2926_v33 }
 0x4df   : > { %4210 = vmatprep.subr.bf16.mxu1 %v4209_v60  ;;  %v2709_v22 = vsel %vm10923_vm13, %v2689_v15, %v2701_v57  ;;  %v2715_v29 = vsel %vm10924_vm1, %v2701_v57, %v2689_v15  ;;  %v2967_v60 = vmul.f32 %v10931_v47, %v2932_v25 }
 0x4e0   : > { %4212 = vmatpush1.bf16.msra.mxu1 %v4211_v59  ;;  %v2749_v2 = vmul.f32 %v10926_v31, %v2709_v22  ;;  %v2750_v49 = vmul.f32 %v10926_v31, %v2715_v29  ;;  %v10932_v59 = vld [vmem:[#allocation206_spill] sm:$0xff] }
 0x4e1   : > { %v2991_v22 = vsel %vm8621_vm0, %v2967_v60, 0.0 }
 0x4e2   : > { %v2902_v63 = vpop.permute.xlu1 %2901  ;;  %v2773_v15 = vsel %vm10899_vm2, %v2749_v2, 0.0  ;;  %vm10933_vm2 = vmmov %vm10929_vm6 }
 0x4e3   : > { %v2785_v0 = vadd.f32 %v2773_v15, %v8809_v61  ;;  %vm10936_vm1 = vmmov %vm10933_vm2 }
 0x4e6   : > { %v2914_v12 = vpop.permute.xlu1 %2913 }
 0x4e7   : > { %v2924_v52 = vsel %vm10925_vm15, %v2902_v63, %v2914_v12  ;;  %v2930_v50 = vsel %vm10917_vm4, %v2914_v12, %v2902_v63  ;;  %v2990_v12 = vsel %vm8616_vm12, %v2966_v40, 0.0  ;;  %vm10937_vm15 = vmmov %vm10927_vm3 }
 0x4e8   : > { %v2962_v45 = vmul.f32 %v8751_v16, %v2924_v52  ;;  %v2963_v8 = vmul.f32 %v8751_v16, %v2930_v50  ;;  %v3095_v16 = vsel %vm8641_vm5, %v3071_v46, 0.0  ;;  %vm10938_vm4 = vmmov %vm10927_vm3 }
 0x4ea   : > { %v2986_v24 = vsel %vm8616_vm12, %v2962_v45, 0.0  ;;  %v2987_v18 = vsel %vm8621_vm0, %v2963_v8, 0.0  ;;  %v8911_v19 = vpop.permute.xlu1 %3060 }
 0x4eb   : > { %v2998_v9 = vadd.f32 %v2986_v24, %v8606_v10  ;;  %v2999_v35 = vadd.f32 %v2987_v18, %v8609_v44  ;;  %v2774_v10 = vsel %vm10900_vm8, %v2750_v49, 0.0  ;;  %vm10934_vm8 = vcmp.lt.s32.totalorder %v5894_v28, 94 }
 0x4ec   : > { %v2786_v36 = vadd.f32 %v2774_v10, %v8811_v13  ;;  %vm10935_vm13 = vmmov %vm10934_vm8 }
 0x4ed   : > { %v3108_v23 = vadd.f32 %v3096_v20, %v2999_v35  ;;  %v3107_v30 = vadd.f32 %v3095_v16, %v2998_v9  ;;  %v3015_v35 = vpop.permute.xlu0 %3014  ;;  %vm10940_vm3 = vmmov %vm10934_vm8 }
 0x4ee   : > { %v2798_v44 = vpop.permute.xlu1 %2797 }
 0x4ef   : > { %v2818_v26 = vsel %vm10929_vm6, %v2798_v44, %v2810_v38  ;;  %v2824_v5 = vsel %vm10930_vm9, %v2810_v38, %v2798_v44 }
 0x4f0   : > { %v2858_v58 = vmul.f32 %v10932_v59, %v2818_v26  ;;  %v2859_v57 = vmul.f32 %v10932_v59, %v2824_v5 }
 0x4f2   : > { %v2881_v63 = vsel %vm8514_vm14, %v2858_v58, 0.0  ;;  %v2882_v14 = vsel %vm8518_vm7, %v2859_v57, 0.0  ;;  %v2800_v1 = vpop.permute.xlu1 %2799 }
 0x4f3   : > { %v2893_v38 = vadd.f32 %v2881_v63, %v2785_v0  ;;  %v2894_v17 = vadd.f32 %v2882_v14, %v2786_v36 }
 0x4f5   : > { %v3002_v29 = vadd.f32 %v2990_v12, %v2893_v38  ;;  %v3003_v52 = vadd.f32 %v2991_v22, %v2894_v17  ;;  %v3115_v22 = vld [vmem:[%s9132_s4] sm:$0xff] }
 0x4f6   : > { %v2812_v61 = vpop.permute.xlu1 %2811 }
 0x4f7   : > { %v2819_v46 = vsel %vm10933_vm2, %v2800_v1, %v2812_v61  ;;  %v2825_v16 = vsel %vm10936_vm1, %v2812_v61, %v2800_v1  ;;  %v3120_v61 = vld [vmem:[%s9132_s4 + $0x28] sm:$0xff] }
 0x4f8   : > { %v2860_v31 = vmul.f32 %v8793_v37, %v2819_v46 }
 0x4fa   : > { %v3013_v50 = vpop.permute.xlu1 %3012 }
 0x4fe   : > { %v3025_v13 = vpop.permute.xlu1 %3024 }
 0x4ff   : > { %v3034_v48 = vsel %vm10934_vm8, %v3013_v50, %v3025_v13  ;;  %v3040_v45 = vsel %vm10935_vm13, %v3025_v13, %v3013_v50  ;;  %v10944_v50 = vmov 1.0  }
 0x500   : > { %v3073_v8 = vmul.f32 %v8525_v42, %v3034_v48  ;;  %v3074_v6 = vmul.f32 %v8525_v42, %v3040_v45  ;;  %v2883_v42 = vsel %vm8514_vm14, %v2860_v31, 0.0  ;;  %vm10939_vm14 = vmmov %vm10934_vm8  ;;  %vm3972_vm8 = vcmask 261120  }
 0x501   : > { %v2895_v44 = vadd.f32 %v2883_v42, %v8837_v53 }
 0x502   : > { %v3097_v2 = vsel %vm8641_vm5, %v3073_v8, 0.0  ;;  %v3098_v49 = vsel %vm8645_vm11, %v3074_v6, 0.0  ;;  %v2908_v24 = vpop.permute.xlu1 %2907 }
 0x503   : > { %v3109_v18 = vadd.f32 %v3097_v2, %v8865_v32  ;;  %v3110_v9 = vadd.f32 %v3098_v49, %v8867_v4  ;;  %v2861_v32 = vmul.f32 %v8793_v37, %v2825_v16 }
 0x505   : > { %v4213_v20 = vpack.c.bf16 %v3110_v9, %v3108_v23  ;;  %v4215_v33 = vpack.c.bf16 %v3109_v18, %v3107_v30  ;;  %v3027_v23 = vpop.permute.xlu0 %3026  ;;  %v2884_v47 = vsel %vm8518_vm7, %v2861_v32, 0.0  ;;  %vm10942_vm7 = vmmov %vm10940_vm3 }
 0x506   : > { %v2920_v25 = vpop.permute.xlu1 %2919  ;;  %v3035_v40 = vsel %vm10939_vm14, %v3015_v35, %v3027_v23  ;;  %v3041_v37 = vsel %vm10940_vm3, %v3027_v23, %v3015_v35  ;;  %v2896_v59 = vadd.f32 %v2884_v47, %v8839_v7 }
 0x507   : > { %v2927_v15 = vsel %vm10937_vm15, %v2908_v24, %v2920_v25  ;;  %v2933_v10 = vsel %vm10938_vm4, %v2920_v25, %v2908_v24  ;;  %4214 = vmatprep.subr.bf16.mxu1 %v4213_v20  ;;  %v3075_v60 = vmul.f32 %v8911_v19, %v3035_v40  ;;  %v3076_v53 = vmul.f32 %v8911_v19, %v3041_v37 }
 0x508   : > { %v2968_v4 = vmul.f32 %v8855_v41, %v2927_v15  ;;  %4216 = vmatpush1.bf16.msra.mxu1 %v4215_v33  ;;  %v2969_v30 = vmul.f32 %v8855_v41, %v2933_v10 }
 0x509   : > { %v3099_v19 = vsel %vm8641_vm5, %v3075_v60, 0.0  ;;  %v3100_v56 = vsel %vm8645_vm11, %v3076_v53, 0.0 }
 0x50a   : > { %v2992_v34 = vsel %vm8616_vm12, %v2968_v4, 0.0  ;;  %v3017_v26 = vpop.permute.xlu1 %3016  ;;  %v2993_v41 = vsel %vm8621_vm0, %v2969_v30, 0.0  ;;  %vm10941_vm12 = vmmov %vm10940_vm3  ;;  %v3112_v1 = vadd.f32 %v3100_v56, %v3003_v52  ;;  %v3111_v38 = vadd.f32 %v3099_v19, %v3002_v29  ;;  %v3118_v52 = vld [vmem:[%s9132_s4 + $0x18] sm:$0xff] }
 0x50b   : > { %v3004_v5 = vadd.f32 %v2992_v34, %v2895_v44  ;;  %v3005_v36 = vadd.f32 %v2993_v41, %v2896_v59  ;;  %vm3121_vm0 = vcmask 392192   ;;  %v3426_v29 = vmax.f32 %v10464_v3, 0.0  ;;  %v3119_v3 = vld [vmem:[%s9132_s4 + $0x20] sm:$0xff] }
 0x50e   : > { %v3029_v54 = vpop.permute.xlu1 %3028 }
 0x50f   : > { %v3036_v21 = vsel %vm10941_vm12, %v3017_v26, %v3029_v54  ;;  %v3042_v58 = vsel %vm10942_vm7, %v3029_v54, %v3017_v26 }
 0x510   : > { %v3077_v57 = vmul.f32 %v8847_v51, %v3036_v21  ;;  %v3078_v0 = vmul.f32 %v8847_v51, %v3042_v58  ;;  %v3427_v51 = vmax.f32 %v10810_v43, 0.0  ;;  %v3117_v43 = vld [vmem:[%s9132_s4 + $0x10] sm:$0xff] }
 0x512   : > { %v3101_v7 = vsel %vm8641_vm5, %v3077_v57, 0.0  ;;  %v3102_v63 = vsel %vm8645_vm11, %v3078_v0, 0.0  ;;  %vm10945_vm5 = vcmask 64512  }
 0x513   : > { %v3113_v14 = vadd.f32 %v3101_v7, %v3004_v5  ;;  %v3114_v28 = vadd.f32 %v3102_v63, %v3005_v36  ;;  %vm10946_vm11 = vmmov %vm10945_vm5 }
 0x514   : > { %vm10947_vm10 = vmmov %vm10945_vm5 }
 0x515   : > { %v4217_v17 = vpack.c.bf16 %v3114_v28, %v3112_v1  ;;  %v4219_v12 = vpack.c.bf16 %v3113_v14, %v3111_v38  ;;  %vm10948_vm6 = vmmov %vm10945_vm5  ;;  %v10951_v38 = vld [vmem:[#allocation198_spill] sm:$0xff] }
 0x516   : > { %vm10949_vm9 = vmmov %vm10945_vm5 }
 0x517   : > { %4218 = vmatprep.subr.bf16.mxu1 %v4217_v17  ;;  %vm10950_vm2 = vmmov %vm10945_vm5 }
 0x518   : > { %4220 = vmatpush1.bf16.msra.mxu1 %v4219_v12  ;;  %v10952_v12 = vld [vmem:[#allocation200_spill] sm:$0xff] }
 0x519   : > { %3428 = vmatprep.subr.mxu1 %v3427_v51 }
 0x51b   : > { %4182 = vmatmul.mubr.msk.f32.vlgmr.msra.gmra.mrb[0].mxu1 %vm3121_vm0, %v3115_v22  ;;  %v4057_v22 = vld [vmem:[%s9134_s6 + $0x8] sm:$0xff] }
 0x51c   : > { %3210 = vmatprep.mubr.f32.mxu1 %v10943_v39  ;;  %4065 = vperm.xlu1 %4414, %v4057_v22  }
 0x51f   : > { %4183 = vmatmul.mubr.msk.f32.gmra.mrb[2].mxu1 %vm3121_vm0, %v3116_v27  ;;  %v4056_v27 = vld [vmem:[%s9134_s6] sm:$0xff] }
 0x520   : > { %3216 = vmatprep.mubr.f32.mxu1 %v10943_v39  ;;  %4060 = vperm.xlu0 %4413, %v4056_v27  }
 0x521   : > { %3429 = vmatpush1.xpose.msra.mxu1 %v3426_v29  ;;  %v4072_v29 = vld [vmem:[%s9135_s7] sm:$0xff] }
 0x522   : > { %4076 = vperm.xlu1 %4414, %v4072_v29  }
 0x523   : > { %4184 = vmatmul.mubr.msk.f32.gmra.mrb[4].mxu1 %vm3121_vm0, %v3117_v43  ;;  %v4073_v43 = vld [vmem:[%s9135_s7 + $0x8] sm:$0xff] }
 0x524   : > { %3222 = vmatprep.mubr.f32.mxu1 %v10943_v39  ;;  %4081 = vperm.xlu0 %4413, %v4073_v43  }
 0x527   : > { %4185 = vmatmul.mubr.msk.f32.gmra.mrb[6].mxu1 %vm3121_vm0, %v3118_v52 }
 0x528   : > { %3228 = vmatprep.mubr.f32.mxu1 %v10943_v39 }
 0x52b   : > { %4186 = vmatmul.mubr.msk.f32.gmra.mrb[8].mxu1 %vm3121_vm0, %v3119_v3 }
 0x52c   : > { %3234 = vmatprep.mubr.f32.mxu1 %v10943_v39 }
 0x52f   : > { %4187 = vmatmul.mubr.msk.f32.gmra.mrb[10].mxu1 %vm3121_vm0, %v3120_v61 }
 0x530   : > { %3492 = vmatprep.mubr.f32.mxu1 %v10869_v11 }
 0x533   : > { %3493 = vmatmul.mubr.f32.vlgmr.msra.gmra.mrb[12].mxu1 %v4860_v62 }
 0x534   : > { %3497 = vmatprep.mubr.f32.mxu1 %v10944_v50 }
 0x537   : > { %3498 = vmatmul.mubr.f32.gmra.mrb[14].mxu1 %v10944_v50 }
 0x5ee   : > { %v3206_v13 = vpop.f32.mrb[0].mxu1 }
 0x5ef   : > { %v3208_v46 = vpop.f32.mrb[1].mxu1  ;;  %v3606_v33 = vmax.f32 %v3206_v13, 0.0 }
 0x5f0   : > { %v3607_v48 = vmax.f32 %v3208_v46, 0.0 }
 0x5f2   : > { %v3212_v45 = vpop.f32.mrb[2].mxu1  ;;  %3691 = vmatprep.subr.mxu0 %v3607_v48 }
 0x5f3   : > { %v3214_v8 = vpop.f32.mrb[3].mxu1  ;;  %v3608_v31 = vmax.f32 %v3212_v45, 0.0 }
 0x5f4   : > { %v3609_v6 = vmax.f32 %v3214_v8, 0.0 }
 0x5f6   : > { %v3218_v2 = vpop.f32.mrb[4].mxu1  ;;  %3610 = vmatprep.subr.mxu1 %v3609_v6 }
 0x5f7   : > { %v3220_v49 = vpop.f32.mrb[5].mxu1  ;;  %3611 = vmatpush1.xpose.msra.mxu1 %v3608_v31 }
 0x5f8   : > { %3674 = vmatprep.mubr.f32.mxu1 %v3220_v49 }
 0x5fa   : > { %v3224_v11 = vpop.f32.mrb[6].mxu1  ;;  %3675 = vmatmul.mubr.f32.vlgmr.msra.gmra.mrb[16].mxu1 %v3218_v2 }
 0x5fb   : > { %v3226_v62 = vpop.f32.mrb[7].mxu1  ;;  %3679 = vmatprep.mubr.f32.mxu1 %v10944_v50  ;;  %v3788_v4 = vmax.f32 %v3224_v11, 0.0 }
 0x5fc   : > { %v3789_v25 = vmax.f32 %v3226_v62, 0.0 }
 0x5fe   : > { %v3230_v24 = vpop.f32.mrb[8].mxu1  ;;  %3680 = vmatmul.mubr.f32.gmra.mrb[18].mxu1 %v10944_v50 }
 0x5ff   : > { %v3232_v18 = vpop.f32.mrb[9].mxu1  ;;  %v3790_v35 = vmax.f32 %v3230_v24, 0.0 }
 0x600   : > { %v3791_v9 = vmax.f32 %v3232_v18, 0.0 }
 0x602   : > { %3792 = vmatprep.subr.mxu1 %v3791_v9  ;;  %v3236_v16 = vpop.f32.mrb[10].mxu1 }
 0x603   : > { %3793 = vmatpush1.xpose.msra.mxu1 %v3790_v35  ;;  %v3238_v20 = vpop.f32.mrb[11].mxu1 }
 0x604   : > { %3856 = vmatprep.mubr.f32.mxu1 %v3238_v20 }
 0x606   : > { %v3494_v42 = vpop.f32.mrb[12].mxu1  ;;  %3857 = vmatmul.mubr.f32.vlgmr.msra.gmra.mrb[20].mxu1 %v3236_v16 }
 0x607   : > { %v3496_v15 = vpop.f32.mrb[13].mxu1  ;;  %4190 = vmatmul.mubr.msk.f32.vlgmr.msra.gmra.mrb[20].mxu0 %vm10945_vm5, %v3494_v42  ;;  %3861 = vmatprep.mubr.f32.mxu1 %v10944_v50 }
 0x608   : > { %3692 = vmatpush1.msra.mxu0 %v3606_v33  ;;  %3579 = vmatprep.mubr.f32.mxu0 %v10943_v39 }
 0x609   : > { %3873 = vmatprep.subr.mxu0 %v3789_v25 }
 0x60a   : > { %v3499_v10 = vpop.f32.mrb[14].mxu1  ;;  %3862 = vmatmul.mubr.f32.gmra.mrb[22].mxu1 %v10944_v50 }
 0x60b   : > { %4191 = vmatmul.mubr.msk.f32.gmra.mrb[22].mxu0 %vm10946_vm11, %v3499_v10  ;;  %v3501_v32 = vpop.f32.mrb[15].mxu1  ;;  %4043 = vmatprep.mubr.f32.mxu1 %v10943_v39 }
 0x60c   : > { %3755 = vmatprep.mubr.f32.mxu0 %v10943_v39 }
 0x6cd   : > { %v3676_v44 = vpop.f32.mrb[16].mxu1 }
 0x6ce   : > { %v3678_v23 = vpop.f32.mrb[17].mxu1  ;;  %4192 = vmatmul.mubr.msk.f32.vlgmr.msra.gmra.mrb[24].mxu0 %vm10947_vm10, %v3676_v44 }
 0x6cf   : > { %3874 = vmatpush1.msra.mxu0 %v3788_v4  ;;  %3761 = vmatprep.mubr.f32.mxu0 %v10943_v39 }
 0x6d1   : > { %v3681_v30 = vpop.f32.mrb[18].mxu1 }
 0x6d2   : > { %4193 = vmatmul.mubr.msk.f32.gmra.mrb[26].mxu0 %vm10948_vm6, %v3681_v30  ;;  %v3683_v34 = vpop.f32.mrb[19].mxu1 }
 0x6d3   : > { %3937 = vmatprep.mubr.f32.mxu0 %v10943_v39 }
 0x6d9   : > { %v3858_v26 = vpop.f32.mrb[20].mxu1 }
 0x6da   : > { %v3575_v5 = vpop.f32.mrb[20].mxu0  ;;  %4194 = vmatmul.mubr.msk.f32.vlgmr.msra.gmra.mrb[28].mxu0 %vm10949_vm9, %v3858_v26  ;;  %v3860_v47 = vpop.f32.mrb[21].mxu1 }
 0x6db   : > { %v3577_v40 = vpop.f32.mrb[21].mxu0  ;;  %3943 = vmatprep.mubr.f32.mxu0 %v10943_v39 }
 0x6dd   : > { %v3863_v37 = vpop.f32.mrb[22].mxu1 }
 0x6de   : > { %v3581_v60 = vpop.f32.mrb[22].mxu0  ;;  %4195 = vmatmul.mubr.msk.f32.gmra.mrb[30].mxu0 %vm10950_vm2, %v3863_v37  ;;  %v3865_v53 = vpop.f32.mrb[23].mxu1 }
 0x6df   : > { %v3586_v41 = vadd.f32 1e-15, %v3581_v60  ;;  %v3583_v54 = vpop.f32.mrb[23].mxu0  ;;  %v3970_v53 = vld [vmem:[%s9133_s5] sm:$0xff] }
 0x6e0   : > { %v3587_v59 = vadd.f32 1e-15, %v3583_v54  ;;  %v4061_v54 = vpop.permute.xlu0 %4060 }
 0x6e1   : > { %4419 = vrcp.f32 %v3586_v41 }
 0x6e2   : > { %4421 = vrcp.f32 %v3587_v59 }
 0x6eb   : > { %v4420_v21 = vpop.eup %4419 }
 0x6ec   : > { %v4422_v58 = vpop.eup %4421  ;;  %v3590_v57 = vmul.f32 %v4420_v21, %v3586_v41  ;;  %v3971_v41 = vld [vmem:[%s9133_s5 + $0x8] sm:$0xff] }
 0x6ed   : > { %v3591_v0 = vmul.f32 %v4422_v58, %v3587_v59 }
 0x6ee   : > { %v3592_v36 = vsub.f32 2.0, %v3590_v57 }
 0x6ef   : > { %v3593_v19 = vsub.f32 2.0, %v3591_v0 }
 0x6f0   : > { %v3594_v56 = vmul.f32 %v4420_v21, %v3592_v36 }
 0x6f1   : > { %v3595_v7 = vmul.f32 %v4422_v58, %v3593_v19 }
 0x6f2   : > { %v3599_v63 = vrot.slane %v3594_v56, %v10770_v55 }
 0x6f3   : > { %v3603_v14 = vrot.slane %v3595_v7, %v10770_v55 }
 0x6f4   : > { %v3604_v28 = vmul.f32 %v3599_v63, %v3575_v5 }
 0x6f5   : > { %v3605_v1 = vmul.f32 %v3603_v14, %v3577_v40  ;;  %v4082_v14 = vpop.permute.xlu0 %4081 }
 0x6f6   : > { %v4223_v17 = vpack.c.bf16 %v3604_v28, %v10951_v38 }
 0x6f7   : > { %v4221_v51 = vpack.c.bf16 %v3605_v1, %v10952_v12 }
 0x6f9   : > { %4222 = vmatprep.subr.bf16.mxu1 %v4221_v51 }
 0x6fa   : > { %4224 = vmatpush1.bf16.msra.mxu1 %v4223_v17 }
 0x7a1   : > { %v3757_v52 = vpop.f32.mrb[24].mxu0 }
 0x7a2   : > { %v3759_v3 = vpop.f32.mrb[25].mxu0 }
 0x7a5   : > { %v3763_v61 = vpop.f32.mrb[26].mxu0 }
 0x7a6   : > { %v3768_v50 = vadd.f32 1e-15, %v3763_v61  ;;  %v3765_v13 = vpop.f32.mrb[27].mxu0 }
 0x7a7   : > { %v3769_v46 = vadd.f32 1e-15, %v3765_v13 }
 0x7a8   : > { %4423 = vrcp.f32 %v3768_v50 }
 0x7a9   : > { %4425 = vrcp.f32 %v3769_v46 }
 0x7ad   : > { %v3939_v48 = vpop.f32.mrb[28].mxu0 }
 0x7ae   : > { %v3941_v45 = vpop.f32.mrb[29].mxu0 }
 0x7b1   : > { %v3945_v8 = vpop.f32.mrb[30].mxu0 }
 0x7b2   : > { %v4424_v6 = vpop.eup %4423  ;;  %v3950_v31 = vadd.f32 1e-15, %v3945_v8  ;;  %v3947_v2 = vpop.f32.mrb[31].mxu0 }
 0x7b3   : > { %v4426_v49 = vpop.eup %4425  ;;  %v3772_v11 = vmul.f32 %v4424_v6, %v3768_v50  ;;  %v3951_v62 = vadd.f32 1e-15, %v3947_v2 }
 0x7b4   : > { %v3773_v24 = vmul.f32 %v4426_v49, %v3769_v46  ;;  %4427 = vrcp.f32 %v3950_v31 }
 0x7b5   : > { %v3774_v18 = vsub.f32 2.0, %v3772_v11  ;;  %4429 = vrcp.f32 %v3951_v62 }
 0x7b6   : > { %v3775_v9 = vsub.f32 2.0, %v3773_v24 }
 0x7b7   : > { %v3776_v35 = vmul.f32 %v4424_v6, %v3774_v18 }
 0x7b8   : > { %v3777_v16 = vmul.f32 %v4426_v49, %v3775_v9 }
 0x7b9   : > { %v3781_v20 = vrot.slane %v3776_v35, %v10770_v55 }
 0x7ba   : > { %v3785_v33 = vrot.slane %v3777_v16, %v10770_v55 }
 0x7bb   : > { %v3786_v42 = vmul.f32 %v3781_v20, %v3757_v52 }
 0x7bc   : > { %v3787_v25 = vmul.f32 %v3785_v33, %v3759_v3 }
 0x7be   : > { %v4428_v15 = vpop.eup %4427 }
 0x7bf   : > { %v4430_v10 = vpop.eup %4429  ;;  %v3954_v32 = vmul.f32 %v4428_v15, %v3950_v31 }
 0x7c0   : > { %v3955_v4 = vmul.f32 %v4430_v10, %v3951_v62 }
 0x7c1   : > { %v3956_v44 = vsub.f32 2.0, %v3954_v32 }
 0x7c2   : > { %v3957_v23 = vsub.f32 2.0, %v3955_v4 }
 0x7c3   : > { %v3958_v30 = vmul.f32 %v4428_v15, %v3956_v44 }
 0x7c4   : > { %v3959_v34 = vmul.f32 %v4430_v10, %v3957_v23 }
 0x7c5   : > { %v3963_v26 = vrot.slane %v3958_v30, %v10770_v55 }
 0x7c6   : > { %v3967_v5 = vrot.slane %v3959_v34, %v10770_v55  ;;  %v4066_v55 = vpop.permute.xlu1 %4065 }
 0x7c7   : > { %v3968_v47 = vmul.f32 %v3963_v26, %v3939_v48 }
 0x7c8   : > { %v3969_v40 = vmul.f32 %v3967_v5, %v3941_v45 }
 0x7c9   : > { %v4227_v37 = vpack.c.bf16 %v3968_v47, %v3786_v42 }
 0x7ca   : > { %v4225_v60 = vpack.c.bf16 %v3969_v40, %v3787_v25  ;;  %v4077_v21 = vpop.permute.xlu1 %4076 }
 0x7cc   : > { %4226 = vmatprep.subr.bf16.mxu1 %v4225_v60 }
 0x7cd   : > { %4228 = vmatpush1.bf16.msra.mxu1 %v4227_v37 }
 0x7d0   : > { %4196 = vmatmul.mubr.msk.f32.vlgmr.msra.gmra.mrb[24].mxu1 %vm3972_vm8, %v3970_v53 }
 0x7d1   : > { %4049 = vmatprep.mubr.f32.mxu1 %v10943_v39 }
 0x7d4   : > { %4197 = vmatmul.mubr.msk.f32.gmra.mrb[26].mxu1 %vm3972_vm8, %v3971_v41 }
 0x8a3   : > { %v4045_v59 = vpop.f32.mrb[24].mxu1 }
 0x8a4   : > { %v4068_v58 = vmul.f32 %v4061_v54, %v4045_v59  ;;  %v4047_v57 = vpop.f32.mrb[25].mxu1 }
 0x8a5   : > { %v4069_v0 = vmul.f32 %v4061_v54, %v4047_v57 }
 0x8a6   : > { %v4084_v36 = vadd.f32 %v4077_v21, %v4068_v58 }
 0x8a7   : > { %v4051_v19 = vpop.f32.mrb[26].mxu1  ;;  %v4085_v56 = vadd.f32 %v4077_v21, %v4069_v0 }
 0x8a8   : > { %v4070_v39 = vmul.f32 %v4066_v55, %v4051_v19  ;;  %v4053_v7 = vpop.f32.mrb[27].mxu1  ;;  %4088 = vst [vmem:[%s298_s24] sm:$0xff] %v4084_v36 }
 0x8a9   : > { %v4071_v63 = vmul.f32 %v4066_v55, %v4053_v7  ;;  %4089 = vst [vmem:[%s298_s24 + $0x8] sm:$0xff] %v4085_v56 }
 0x8aa   : > { %v4086_v28 = vadd.f32 %v4082_v14, %v4070_v39 }
 0x8ab   : > { %v4087_v1 = vadd.f32 %v4082_v14, %v4071_v63 }
 0x8ac   : > { %4090 = vst [vmem:[%s298_s24 + $0x10] sm:$0xff] %v4086_v28 }
 0x8ad   : > { %4091 = vst [vmem:[%s298_s24 + $0x18] sm:$0xff] %v4087_v1 }
 0x8ae   : > { %4460 = shalt.err (!%p4457_p3)
}
 0x8af   : > { %s4461_s19 = scalar_lea.hbm %s9084_s25, 512  ;;  %s4465_s20 = scalar_lea.hbm %s9136_s8, 1024 }
 0x8b0   : > { %p4462_p4 = scmp.ne.s32.totalorder %s9084_s25, %s4461_s19  ;;  %p4466_p9 = scmp.lt.u32.totalorder %s9084_s25, %s9136_s8 }
 0x8b1   : > { %p4467_p10 = scmp.lt.u32.totalorder %s4465_s20, %s4461_s19  ;;  %p4469_p12 = scmp.lt.u32.totalorder %s4461_s19, %s9084_s25 }
 0x8b2   : > { %p4463_p7 = pnand %p4462_p4, %p4647_p5 }
 0x8b3   : > { %p4468_p11 = por %p4467_p10, %p4466_p9 }
 0x8b4   : > { %p4464_p8 = pneg %p4463_p7 }
 0x8b5   : > { %p4470_p13 = por %p4469_p12, %p4468_p11 }
 0x8b7   : > { %p4471_p0 = pnand %p4470_p13, %p4464_p8 }
 0x8b9   : > { %4474 = shalt.err (!%p4471_p0)
}
 0x8ba   : > { %s4563_s9 = smov 256  }
 0x8bb   : > { %4229 = dma.vmem_to_hbm [thread:$0]  (%p4647_p5), %s9079_s13, 512, %s9084_s25, %s9086_s12, %s4563_s9, %s4563_s9, %s4530_s10  }
 0x8bc PF: > { %p4235_p1 = scmp.ge.s32.totalorder %s4509_s30, 2  ;;  %s4121_s22 = sand.u32 1, %s4497_s27  }
 0x8bd   : > { %s4122_s23 = scalar_lea.sflag [#allocation3], %s4121_s22 }
 0x8be   : > { %p4232_p2 = pnand %p4235_p1, %p4651_p6 }
 0x8c0   : > { %4492 = dma.done.wait (!%p4232_p2), %s4122_s23, 512  }
 0x8c1   : > { %4494 = vsyncadd (!%p4232_p2), %s4122_s23, 4294966784  ;;  %p18_p3 = scmp.ge.s32.totalorder %s4634_s11, 4   ;;  %s10953_s27 = smov %s4501_s28 }
 0x8c2   : > { %s10954_s28 = smov %s4505_s29  ;;  %s10955_s29 = smov %s4645_s14 }
 0x8c3   : > { %s10956_s30 = smov %s4634_s11  ;;  %20 = sbr.rel (!%p18_p3) target bundleno = 3 (0x3), region = 88 }
 0x8ca   :  { %4127 = vsyncpa [#allocation3], 1 }
 0x8cb   :  { %4129 = vsyncpa [#allocation3 + $0x1], 1 }

</bundles_post_ra>
